<compile_context>
chip_gen: v7x
topology: tpu7x:2x2x1
jax: 0.10.0
libtpu: 0.0.40
codegen_flags: <defaults>
</compile_context>

<pallas_src>
import numpy as np
import jax
import jax.numpy as jnp
from jax.experimental import pallas as pl
from jax.experimental.pallas import tpu as pltpu

EPS = 1e-5        # PyTorch BatchNorm2d default eps
LANES = 128       # channel padding target (TPU lane width)


def _round_up(x, m):
    return (x + m - 1) // m * m


# --------------------------- host-side constant helpers ----------------------

def _conv3x3_tap_masks(N, H_in, W_in, Ho, Wo, stride):
    """Validity masks (9, N*Ho*Wo, 1) for a 3x3, pad=1, stride=s conv.

    Tap t = di*3+dj of output pixel (n, p, q) reads input pixel
    (stride*p + di - 1, stride*q + dj - 1); mask is 1.0 iff that pixel lies inside
    the (H_in, W_in) image (zero padding otherwise)."""
    Mo = N * Ho * Wo
    m = np.arange(Mo)
    p = (m // Wo) % Ho
    q = m % Wo
    masks = np.zeros((9, Mo, 1), np.float32)
    for di in range(3):
        for dj in range(3):
            r = stride * p + di - 1
            c = stride * q + dj - 1
            masks[di * 3 + dj, :, 0] = (
                (r >= 0) & (r < H_in) & (c >= 0) & (c < W_in)).astype(np.float32)
    return jnp.asarray(masks)


def _prep_conv3x3_w(w, C):
    """(3,3,ci,co) f32 -> (9, C, C) bf16, zero-padded channels."""
    _, _, ci, co = w.shape
    wp = jnp.zeros((9, C, C), jnp.float32).at[:, :ci, :co].set(w.reshape(9, ci, co))
    return wp.astype(jnp.bfloat16)


def _prep_conv1x1_w(w, C):
    """(1,1,ci,co) f32 -> (C, C) bf16, zero-padded channels."""
    ci, co = w.shape[2], w.shape[3]
    wp = jnp.zeros((C, C), jnp.float32).at[:ci, :co].set(w.reshape(ci, co))
    return wp.astype(jnp.bfloat16)


def _pad_row(v, C):
    """(1, c) -> (1, C) zero padded (padded-channel beta must be 0)."""
    return jnp.pad(v.astype(jnp.float32), ((0, 0), (0, C - v.shape[1])))


def _extract_strided_taps(x_img, stride, Ho, Wo):
    """x_img (N,H,W,C) -> (9, N*Ho*Wo, C): 3x3 pad-1 stride-s taps of x (zero padded)."""
    N, H, W, C = x_img.shape
    xp = jnp.pad(x_img, ((0, 0), (1, 1), (1, 1), (0, 0)))
    taps = []
    for di in range(3):
        for dj in range(3):
            taps.append(xp[:, di:di + stride * (Ho - 1) + 1:stride,
                           dj:dj + stride * (Wo - 1) + 1:stride, :])
    return jnp.stack(taps, axis=0).reshape(9, N * Ho * Wo, C)


# --------------------------- in-kernel helpers --------------------------------

def _bn_relu(x, gamma, beta):
    """Training-mode batch norm (batch stats over rows) + ReLU. x: (M, C) f32."""
    mean = jnp.mean(x, axis=0, keepdims=True)
    var = jnp.mean(jnp.square(x - mean), axis=0, keepdims=True)
    inv = jax.lax.rsqrt(var + EPS)
    return jnp.maximum((x - mean) * inv * gamma + beta, 0.0)


# --------------------------- fused BasicBlock kernels --------------------------

def _make_identity_block_kernel(N, H, W):
    """BasicBlock with stride=1 and in_planes == out_planes (identity shortcut)."""
    M = N * H * W
    PAD = _round_up(W + 1, 8)
    Mp = M + 2 * PAD
    C = LANES

    def conv3x3(pad_ref, w_ref, masks_ref, acc):
        # pad_ref rows [PAD, PAD+M) hold the conv input; border bands are zero.
        for t in range(9):
            di, dj = divmod(t, 3)
            off = (di - 1) * W + (dj - 1)
            tap = pad_ref[pl.ds(PAD + off, M), :] * masks_ref[t]
            acc = acc + jnp.dot(tap.astype(jnp.bfloat16), w_ref[t],
                                preferred_element_type=jnp.float32)
        return acc

    def kernel(x_ref, g1_ref, b1_ref, w1_ref, g2_ref, b2_ref, w2_ref,
               masks_ref, out_ref, pad_ref):
        x = x_ref[...]
        # bn1 + relu1
        o1 = _bn_relu(x, g1_ref[...], b1_ref[...])
        zeros_band = jnp.zeros((PAD, C), jnp.float32)
        pad_ref[pl.ds(0, PAD), :] = zeros_band
        pad_ref[pl.ds(PAD + M, PAD), :] = zeros_band
        pad_ref[pl.ds(PAD, M), :] = o1
        # conv1 (3x3, stride 1, pad 1)
        h = conv3x3(pad_ref, w1_ref, masks_ref, jnp.zeros((M, C), jnp.float32))
        # bn2 + relu2 (dropout is identity, dropRate == 0)
        h = _bn_relu(h, g2_ref[...], b2_ref[...])
        pad_ref[pl.ds(PAD, M), :] = h
        # conv2 (3x3, stride 1, pad 1) + identity residual, fused
        out_ref[...] = conv3x3(pad_ref, w2_ref, masks_ref, x)

    return kernel, Mp


def _make_projection_block_kernel(N, H, W, stride):
    """BasicBlock with a 1x1 conv shortcut (in_planes != out_planes), stride 1 or 2."""
    Ho = (H - 1) // stride + 1
    Wo = (W - 1) // stride + 1
    Mo = N * Ho * Wo
    PAD = _round_up(Wo + 1, 8)
    Mp = Mo + 2 * PAD
    C = LANES

    def conv3x3(pad_ref, w_ref, masks_ref, acc):
        for t in range(9):
            di, dj = divmod(t, 3)
            off = (di - 1) * Wo + (dj - 1)
            tap = pad_ref[pl.ds(PAD + off, Mo), :] * masks_ref[t]
            acc = acc + jnp.dot(tap.astype(jnp.bfloat16), w_ref[t],
                                preferred_element_type=jnp.float32)
        return acc

    def kernel(x_ref, taps_ref, g1_ref, b1_ref, w1_ref, g2_ref, b2_ref,
               w2_ref, wsc_ref, m1_ref, m2_ref, out_ref, pad_ref):
        # bn1 statistics from the full-resolution input.
        x = x_ref[...]
        mean = jnp.mean(x, axis=0, keepdims=True)
        var = jnp.mean(jnp.square(x - mean), axis=0, keepdims=True)
        inv = jax.lax.rsqrt(var + EPS)
        g1 = g1_ref[...]
        b1 = b1_ref[...]

        # conv1 (3x3, stride s, pad 1) on o1 = relu(bn1(x)), built tap-by-tap from the
        # pre-gathered strided taps of x; the 1x1 stride-s shortcut reuses the center tap.
        acc = jnp.zeros((Mo, C), jnp.float32)
        res = jnp.zeros((Mo, C), jnp.float32)
        for t in range(9):
            o1t = jnp.maximum((taps_ref[t] - mean) * inv * g1 + b1, 0.0) * m1_ref[t]
            o1t = o1t.astype(jnp.bfloat16)
            acc = acc + jnp.dot(o1t, w1_ref[t], preferred_element_type=jnp.float32)
            if t == 4:  # center tap == o1 at (stride*p, stride*q); always valid
                res = jnp.dot(o1t, wsc_ref[...], preferred_element_type=jnp.float32)

        # bn2 + relu2 (dropout is identity)
        h = _bn_relu(acc, g2_ref[...], b2_ref[...])
        zeros_band = jnp.zeros((PAD, C), jnp.float32)
        pad_ref[pl.ds(0, PAD), :] = zeros_band
        pad_ref[pl.ds(PAD + Mo, PAD), :] = zeros_band
        pad_ref[pl.ds(PAD, Mo), :] = h
        # conv2 (3x3, stride 1, pad 1) + conv-shortcut residual, fused
        out_ref[...] = conv3x3(pad_ref, w2_ref, m2_ref, res)

    return kernel, Mp


# --------------------------- wrappers -----------------------------------------

def basic_block_forward(x_img, p):
    """x_img: (N, H, W, LANES) float32, true channels in the leading lanes (rest 0)."""
    N, H, W, C = x_img.shape
    assert C == LANES
    stride, equal = p["stride"], p["equal"]
    Ho = (H - 1) // stride + 1
    Wo = (W - 1) // stride + 1
    Mi, Mo = N * H * W, N * Ho * Wo

    x2d = x_img.reshape(Mi, C)
    g1, b1 = _pad_row(p["bn1_gamma"], C), _pad_row(p["bn1_beta"], C)
    g2, b2 = _pad_row(p["bn2_gamma"], C), _pad_row(p["bn2_beta"], C)
    w1 = _prep_conv3x3_w(p["w1"], C)
    w2 = _prep_conv3x3_w(p["w2"], C)
    m2 = _conv3x3_tap_masks(N, Ho, Wo, Ho, Wo, 1)   # conv2 masks (stride-1 output grid)

    row = lambda i: (0, 0)
    cube = lambda i: (0, 0, 0)
    cparams = pltpu.CompilerParams(dimension_semantics=("arbitrary",))

    if equal:
        assert stride == 1
        kernel, Mp = _make_identity_block_kernel(N, H, W)
        out2d = pl.pallas_call(
            kernel,
            out_shape=jax.ShapeDtypeStruct((Mo, C), jnp.float32),
            grid=(1,),
            in_specs=[
                pl.BlockSpec((Mi, C), row),        # x
                pl.BlockSpec((1, C), row),         # bn1 gamma
                pl.BlockSpec((1, C), row),         # bn1 beta
                pl.BlockSpec((9, C, C), cube),     # w1
                pl.BlockSpec((1, C), row),         # bn2 gamma
                pl.BlockSpec((1, C), row),         # bn2 beta
                pl.BlockSpec((9, C, C), cube),     # w2
                pl.BlockSpec((9, Mo, 1), cube),    # conv tap validity masks
            ],
            out_specs=pl.BlockSpec((Mo, C), row),
            scratch_shapes=[pltpu.VMEM((Mp, C), jnp.float32)],
            compiler_params=cparams,
        )(x2d, g1, b1, w1, g2, b2, w2, m2)
    else:
        taps = _extract_strided_taps(x_img, stride, Ho, Wo)
        m1 = _conv3x3_tap_masks(N, H, W, Ho, Wo, stride)
        wsc = _prep_conv1x1_w(p["w_sc"], C)
        kernel, Mp = _make_projection_block_kernel(N, H, W, stride)
        out2d = pl.pallas_call(
            kernel,
            out_shape=jax.ShapeDtypeStruct((Mo, C), jnp.float32),
            grid=(1,),
            in_specs=[
                pl.BlockSpec((Mi, C), row),        # x (for bn1 statistics)
                pl.BlockSpec((9, Mo, C), cube),    # strided conv1 taps of x
                pl.BlockSpec((1, C), row),         # bn1 gamma
                pl.BlockSpec((1, C), row),         # bn1 beta
                pl.BlockSpec((9, C, C), cube),     # w1
                pl.BlockSpec((1, C), row),         # bn2 gamma
                pl.BlockSpec((1, C), row),         # bn2 beta
                pl.BlockSpec((9, C, C), cube),     # w2
                pl.BlockSpec((C, C), row),         # shortcut 1x1 weight
                pl.BlockSpec((9, Mo, 1), cube),    # conv1 tap masks
                pl.BlockSpec((9, Mo, 1), cube),    # conv2 tap masks
            ],
            out_specs=pl.BlockSpec((Mo, C), row),
            scratch_shapes=[pltpu.VMEM((Mp, C), jnp.float32)],
            compiler_params=cparams,
        )(x2d, taps, g1, b1, w1, g2, b2, w2, wsc, m1, m2)

    return out2d.reshape(N, Ho, Wo, C)


def network_block_forward(x_nchw, params):
    x = jnp.transpose(x_nchw, (0, 2, 3, 1)).astype(jnp.float32)   # NCHW -> NHWC
    c_in = x.shape[-1]
    x = jnp.pad(x, ((0, 0), (0, 0), (0, 0), (0, LANES - c_in)))   # lane-dense channels
    for p in params:
        x = basic_block_forward(x, p)
    c_out = params[-1]["w1"].shape[-1]
    return jnp.transpose(x[..., :c_out], (0, 3, 1, 2))            # back to NCHW


def init_network_block_params(key, nb_layers, in_planes, out_planes, stride):
    params = []
    for i in range(nb_layers):
        in_c = in_planes if i == 0 else out_planes
        s = stride if i == 0 else 1
        key, *ks = jax.random.split(key, 8)
        p = {
            "bn1_gamma": 1.0 + 0.1 * jax.random.normal(ks[0], (1, in_c), jnp.float32),
            "bn1_beta": 0.1 * jax.random.normal(ks[1], (1, in_c), jnp.float32),
            "w1": jax.random.normal(ks[2], (3, 3, in_c, out_planes), jnp.float32)
                  * jnp.sqrt(2.0 / (9 * out_planes)),
            "bn2_gamma": 1.0 + 0.1 * jax.random.normal(ks[3], (1, out_planes), jnp.float32),
            "bn2_beta": 0.1 * jax.random.normal(ks[4], (1, out_planes), jnp.float32),
            "w2": jax.random.normal(ks[5], (3, 3, out_planes, out_planes), jnp.float32)
                  * jnp.sqrt(2.0 / (9 * out_planes)),
            "stride": s,
            "equal": in_c == out_planes,
        }
        if not p["equal"]:
            p["w_sc"] = jax.random.normal(ks[6], (1, 1, in_c, out_planes), jnp.float32) \
                        * jnp.sqrt(2.0 / out_planes)
        params.append(p)
    return params


# --------------------------- pure-JAX reference -------------------------------

def _ref_bn_relu(x, gamma, beta):
    mean = x.mean(axis=(0, 1, 2), keepdims=True)
    var = ((x - mean) ** 2).mean(axis=(0, 1, 2), keepdims=True)
    g = gamma.reshape(1, 1, 1, -1)
    b = beta.reshape(1, 1, 1, -1)
    return jnp.maximum((x - mean) / jnp.sqrt(var + EPS) * g + b, 0.0)


def _ref_conv(x, w, stride, padding):
    return jax.lax.conv_general_dilated(
        x, w, (stride, stride), [(padding, padding)] * 2,
        dimension_numbers=("NHWC", "HWIO", "NHWC"))


def network_block_reference(x_nchw, params):
    x = jnp.transpose(x_nchw, (0, 2, 3, 1)).astype(jnp.float32)
    for p in params:
        o1 = _ref_bn_relu(x, p["bn1_gamma"], p["bn1_beta"])
        h = _ref_conv(o1, p["w1"], p["stride"], 1)
        h = _ref_bn_relu(h, p["bn2_gamma"], p["bn2_beta"])
        h = _ref_conv(h, p["w2"], 1, 1)
        res = x if p["equal"] else _ref_conv(o1, p["w_sc"], p["stride"], 0)
        x = res + h
    return jnp.transpose(x, (0, 3, 1, 2))


# --------------------------- main --------------------------------------------

if __name__ == "__main__":
    key = jax.random.PRNGKey(0)
    k_x, k_p = jax.random.split(key)

    # NetworkBlock(nb_layers=2, in_planes=4, out_planes=8, block=BasicBlock,
    #              stride=2, dropRate=0.0)
    nb_layers, in_planes, out_planes, stride = 2, 4, 8, 2
    N, H, W = 2, 16, 16

    x = jax.random.normal(k_x, (N, in_planes, H, W), jnp.float32)  # NCHW like PyTorch
    params = init_network_block_params(k_p, nb_layers, in_planes, out_planes, stride)

    out = network_block_forward(x, params)
    out = jax.block_until_ready(out)

    ref = jax.block_until_ready(network_block_reference(x, params))
    assert out.shape == (N, out_planes, H // stride, W // stride), out.shape
    # Kernel matmuls run in bf16 (f32 accumulation), reference is pure f32.
    if not jnp.allclose(out, ref, atol=5e-2, rtol=5e-2):
        raise AssertionError(
            f"mismatch vs reference, max abs diff {jnp.max(jnp.abs(out - ref))}")

    print("KERNEL_OK")
</pallas_src>

<mosaic_0001>
module attributes {stable_mosaic.version = 11 : i64} {
  func.func @kernel(%arg0: i32, %arg1: memref<512x128xf32, #tpu.memory_space<vmem>>, %arg2: memref<9x128x128xf32, #tpu.memory_space<vmem>>, %arg3: memref<1x128xf32, #tpu.memory_space<vmem>>, %arg4: memref<1x128xf32, #tpu.memory_space<vmem>>, %arg5: memref<9x128x128xbf16, #tpu.memory_space<vmem>>, %arg6: memref<1x128xf32, #tpu.memory_space<vmem>>, %arg7: memref<1x128xf32, #tpu.memory_space<vmem>>, %arg8: memref<9x128x128xbf16, #tpu.memory_space<vmem>>, %arg9: memref<128x128xbf16, #tpu.memory_space<vmem>>, %arg10: memref<9x128x1xf32, #tpu.memory_space<vmem>>, %arg11: memref<9x128x1xf32, #tpu.memory_space<vmem>>, %arg12: memref<128x128xf32, #tpu.memory_space<vmem>>, %arg13: memref<160x128xf32, #tpu.memory_space<vmem>>) attributes {dimension_semantics = [#tpu.dimension_semantics<arbitrary>], iteration_bounds = array<i64: 1>, scalar_prefetch = 0 : i64, scratch_operands = 1 : i64, tpu.core_type = #tpu.core_type<tc>, window_params = [{pipeline_mode = #tpu.pipeline_mode<synchronous>, transform_indices = @transform_0, window_bounds = array<i64: 512, 128>}, {pipeline_mode = #tpu.pipeline_mode<synchronous>, transform_indices = @transform_1, window_bounds = array<i64: 9, 128, 128>}, {pipeline_mode = #tpu.pipeline_mode<synchronous>, transform_indices = @transform_2, window_bounds = array<i64: 1, 128>}, {pipeline_mode = #tpu.pipeline_mode<synchronous>, transform_indices = @transform_3, window_bounds = array<i64: 1, 128>}, {pipeline_mode = #tpu.pipeline_mode<synchronous>, transform_indices = @transform_4, window_bounds = array<i64: 9, 128, 128>}, {pipeline_mode = #tpu.pipeline_mode<synchronous>, transform_indices = @transform_5, window_bounds = array<i64: 1, 128>}, {pipeline_mode = #tpu.pipeline_mode<synchronous>, transform_indices = @transform_6, window_bounds = array<i64: 1, 128>}, {pipeline_mode = #tpu.pipeline_mode<synchronous>, transform_indices = @transform_7, window_bounds = array<i64: 9, 128, 128>}, {pipeline_mode = #tpu.pipeline_mode<synchronous>, transform_indices = @transform_8, window_bounds = array<i64: 128, 128>}, {pipeline_mode = #tpu.pipeline_mode<synchronous>, transform_indices = @transform_9, window_bounds = array<i64: 9, 128, 1>}, {pipeline_mode = #tpu.pipeline_mode<synchronous>, transform_indices = @transform_10, window_bounds = array<i64: 9, 128, 1>}, {pipeline_mode = #tpu.pipeline_mode<synchronous>, transform_indices = @transform_11, window_bounds = array<i64: 128, 128>}]} {
    %c0 = arith.constant 0 : index
    %c0_0 = arith.constant 0 : index
    %0 = vector.load %arg1[%c0, %c0_0] : memref<512x128xf32, #tpu.memory_space<vmem>>, vector<512x128xf32>
    %cst = arith.constant dense<0.000000e+00> : vector<128xf32>
    %1 = vector.multi_reduction <add>, %0, %cst [0] : vector<512x128xf32> to vector<128xf32>
    %2 = vector.shape_cast %1 : vector<128xf32> to vector<1x128xf32>
    %cst_1 = arith.constant 5.120000e+02 : f32
    %3 = vector.broadcast %cst_1 : f32 to vector<1x128xf32>
    %4 = arith.divf %2, %3 : vector<1x128xf32>
    %5 = vector.broadcast %4 : vector<1x128xf32> to vector<512x128xf32>
    %6 = arith.subf %0, %5 : vector<512x128xf32>
    %7 = arith.mulf %6, %6 : vector<512x128xf32>
    %cst_2 = arith.constant dense<0.000000e+00> : vector<128xf32>
    %8 = vector.multi_reduction <add>, %7, %cst_2 [0] : vector<512x128xf32> to vector<128xf32>
    %9 = vector.shape_cast %8 : vector<128xf32> to vector<1x128xf32>
    %cst_3 = arith.constant 5.120000e+02 : f32
    %10 = vector.broadcast %cst_3 : f32 to vector<1x128xf32>
    %11 = arith.divf %9, %10 : vector<1x128xf32>
    %cst_4 = arith.constant 9.99999974E-6 : f32
    %12 = vector.broadcast %cst_4 : f32 to vector<1x128xf32>
    %13 = arith.addf %11, %12 : vector<1x128xf32>
    %14 = math.rsqrt %13 : vector<1x128xf32>
    %c0_5 = arith.constant 0 : index
    %c0_6 = arith.constant 0 : index
    %15 = vector.load %arg3[%c0_5, %c0_6] : memref<1x128xf32, #tpu.memory_space<vmem>>, vector<1x128xf32>
    %c0_7 = arith.constant 0 : index
    %c0_8 = arith.constant 0 : index
    %16 = vector.load %arg4[%c0_7, %c0_8] : memref<1x128xf32, #tpu.memory_space<vmem>>, vector<1x128xf32>
    %cst_9 = arith.constant 0.000000e+00 : f32
    %17 = vector.broadcast %cst_9 : f32 to vector<128x128xf32>
    %c0_10 = arith.constant 0 : index
    %c0_11 = arith.constant 0 : index
    %c0_12 = arith.constant 0 : index
    %18 = vector.load %arg2[%c0_10, %c0_11, %c0_12] : memref<9x128x128xf32, #tpu.memory_space<vmem>>, vector<1x128x128xf32>
    %19 = vector.shape_cast %18 : vector<1x128x128xf32> to vector<128x128xf32>
    %20 = vector.broadcast %4 : vector<1x128xf32> to vector<128x128xf32>
    %21 = arith.subf %19, %20 : vector<128x128xf32>
    %22 = vector.broadcast %14 : vector<1x128xf32> to vector<128x128xf32>
    %23 = arith.mulf %21, %22 : vector<128x128xf32>
    %24 = vector.broadcast %15 : vector<1x128xf32> to vector<128x128xf32>
    %25 = arith.mulf %23, %24 : vector<128x128xf32>
    %26 = vector.broadcast %16 : vector<1x128xf32> to vector<128x128xf32>
    %27 = arith.addf %25, %26 : vector<128x128xf32>
    %cst_13 = arith.constant 0.000000e+00 : f32
    %28 = vector.broadcast %cst_13 : f32 to vector<128x128xf32>
    %29 = arith.maximumf %27, %28 : vector<128x128xf32>
    %c0_14 = arith.constant 0 : index
    %c0_15 = arith.constant 0 : index
    %c0_16 = arith.constant 0 : index
    %30 = vector.load %arg10[%c0_14, %c0_15, %c0_16] : memref<9x128x1xf32, #tpu.memory_space<vmem>>, vector<1x128x1xf32>
    %31 = vector.shape_cast %30 : vector<1x128x1xf32> to vector<128x1xf32>
    %32 = vector.broadcast %31 : vector<128x1xf32> to vector<128x128xf32>
    %33 = arith.mulf %29, %32 : vector<128x128xf32>
    %34 = arith.truncf %33 : vector<128x128xf32> to vector<128x128xbf16>
    %c0_17 = arith.constant 0 : index
    %c0_18 = arith.constant 0 : index
    %c0_19 = arith.constant 0 : index
    %35 = vector.load %arg5[%c0_17, %c0_18, %c0_19] : memref<9x128x128xbf16, #tpu.memory_space<vmem>>, vector<1x128x128xbf16>
    %36 = vector.shape_cast %35 : vector<1x128x128xbf16> to vector<128x128xbf16>
    %cst_20 = arith.constant dense<0.000000e+00> : vector<128x128xf32>
    %37 = tpu.matmul %34, %36, %cst_20 {dimension_numbers = #tpu.dot_dimension_numbers<[1], [0], [0], [1], [0, 0, 1, 1], [], []>} : vector<128x128xbf16>, vector<128x128xbf16>, vector<128x128xf32> -> vector<128x128xf32>
    %38 = arith.addf %17, %37 : vector<128x128xf32>
    %c1 = arith.constant 1 : index
    %c0_21 = arith.constant 0 : index
    %c0_22 = arith.constant 0 : index
    %39 = vector.load %arg2[%c1, %c0_21, %c0_22] : memref<9x128x128xf32, #tpu.memory_space<vmem>>, vector<1x128x128xf32>
    %40 = vector.shape_cast %39 : vector<1x128x128xf32> to vector<128x128xf32>
    %41 = vector.broadcast %4 : vector<1x128xf32> to vector<128x128xf32>
    %42 = arith.subf %40, %41 : vector<128x128xf32>
    %43 = vector.broadcast %14 : vector<1x128xf32> to vector<128x128xf32>
    %44 = arith.mulf %42, %43 : vector<128x128xf32>
    %45 = vector.broadcast %15 : vector<1x128xf32> to vector<128x128xf32>
    %46 = arith.mulf %44, %45 : vector<128x128xf32>
    %47 = vector.broadcast %16 : vector<1x128xf32> to vector<128x128xf32>
    %48 = arith.addf %46, %47 : vector<128x128xf32>
    %cst_23 = arith.constant 0.000000e+00 : f32
    %49 = vector.broadcast %cst_23 : f32 to vector<128x128xf32>
    %50 = arith.maximumf %48, %49 : vector<128x128xf32>
    %c1_24 = arith.constant 1 : index
    %c0_25 = arith.constant 0 : index
    %c0_26 = arith.constant 0 : index
    %51 = vector.load %arg10[%c1_24, %c0_25, %c0_26] : memref<9x128x1xf32, #tpu.memory_space<vmem>>, vector<1x128x1xf32>
    %52 = vector.shape_cast %51 : vector<1x128x1xf32> to vector<128x1xf32>
    %53 = vector.broadcast %52 : vector<128x1xf32> to vector<128x128xf32>
    %54 = arith.mulf %50, %53 : vector<128x128xf32>
    %55 = arith.truncf %54 : vector<128x128xf32> to vector<128x128xbf16>
    %c1_27 = arith.constant 1 : index
    %c0_28 = arith.constant 0 : index
    %c0_29 = arith.constant 0 : index
    %56 = vector.load %arg5[%c1_27, %c0_28, %c0_29] : memref<9x128x128xbf16, #tpu.memory_space<vmem>>, vector<1x128x128xbf16>
    %57 = vector.shape_cast %56 : vector<1x128x128xbf16> to vector<128x128xbf16>
    %cst_30 = arith.constant dense<0.000000e+00> : vector<128x128xf32>
    %58 = tpu.matmul %55, %57, %cst_30 {dimension_numbers = #tpu.dot_dimension_numbers<[1], [0], [0], [1], [0, 0, 1, 1], [], []>} : vector<128x128xbf16>, vector<128x128xbf16>, vector<128x128xf32> -> vector<128x128xf32>
    %59 = arith.addf %38, %58 : vector<128x128xf32>
    %c2 = arith.constant 2 : index
    %c0_31 = arith.constant 0 : index
    %c0_32 = arith.constant 0 : index
    %60 = vector.load %arg2[%c2, %c0_31, %c0_32] : memref<9x128x128xf32, #tpu.memory_space<vmem>>, vector<1x128x128xf32>
    %61 = vector.shape_cast %60 : vector<1x128x128xf32> to vector<128x128xf32>
    %62 = vector.broadcast %4 : vector<1x128xf32> to vector<128x128xf32>
    %63 = arith.subf %61, %62 : vector<128x128xf32>
    %64 = vector.broadcast %14 : vector<1x128xf32> to vector<128x128xf32>
    %65 = arith.mulf %63, %64 : vector<128x128xf32>
    %66 = vector.broadcast %15 : vector<1x128xf32> to vector<128x128xf32>
    %67 = arith.mulf %65, %66 : vector<128x128xf32>
    %68 = vector.broadcast %16 : vector<1x128xf32> to vector<128x128xf32>
    %69 = arith.addf %67, %68 : vector<128x128xf32>
    %cst_33 = arith.constant 0.000000e+00 : f32
    %70 = vector.broadcast %cst_33 : f32 to vector<128x128xf32>
    %71 = arith.maximumf %69, %70 : vector<128x128xf32>
    %c2_34 = arith.constant 2 : index
    %c0_35 = arith.constant 0 : index
    %c0_36 = arith.constant 0 : index
    %72 = vector.load %arg10[%c2_34, %c0_35, %c0_36] : memref<9x128x1xf32, #tpu.memory_space<vmem>>, vector<1x128x1xf32>
    %73 = vector.shape_cast %72 : vector<1x128x1xf32> to vector<128x1xf32>
    %74 = vector.broadcast %73 : vector<128x1xf32> to vector<128x128xf32>
    %75 = arith.mulf %71, %74 : vector<128x128xf32>
    %76 = arith.truncf %75 : vector<128x128xf32> to vector<128x128xbf16>
    %c2_37 = arith.constant 2 : index
    %c0_38 = arith.constant 0 : index
    %c0_39 = arith.constant 0 : index
    %77 = vector.load %arg5[%c2_37, %c0_38, %c0_39] : memref<9x128x128xbf16, #tpu.memory_space<vmem>>, vector<1x128x128xbf16>
    %78 = vector.shape_cast %77 : vector<1x128x128xbf16> to vector<128x128xbf16>
    %cst_40 = arith.constant dense<0.000000e+00> : vector<128x128xf32>
    %79 = tpu.matmul %76, %78, %cst_40 {dimension_numbers = #tpu.dot_dimension_numbers<[1], [0], [0], [1], [0, 0, 1, 1], [], []>} : vector<128x128xbf16>, vector<128x128xbf16>, vector<128x128xf32> -> vector<128x128xf32>
    %80 = arith.addf %59, %79 : vector<128x128xf32>
    %c3 = arith.constant 3 : index
    %c0_41 = arith.constant 0 : index
    %c0_42 = arith.constant 0 : index
    %81 = vector.load %arg2[%c3, %c0_41, %c0_42] : memref<9x128x128xf32, #tpu.memory_space<vmem>>, vector<1x128x128xf32>
    %82 = vector.shape_cast %81 : vector<1x128x128xf32> to vector<128x128xf32>
    %83 = vector.broadcast %4 : vector<1x128xf32> to vector<128x128xf32>
    %84 = arith.subf %82, %83 : vector<128x128xf32>
    %85 = vector.broadcast %14 : vector<1x128xf32> to vector<128x128xf32>
    %86 = arith.mulf %84, %85 : vector<128x128xf32>
    %87 = vector.broadcast %15 : vector<1x128xf32> to vector<128x128xf32>
    %88 = arith.mulf %86, %87 : vector<128x128xf32>
    %89 = vector.broadcast %16 : vector<1x128xf32> to vector<128x128xf32>
    %90 = arith.addf %88, %89 : vector<128x128xf32>
    %cst_43 = arith.constant 0.000000e+00 : f32
    %91 = vector.broadcast %cst_43 : f32 to vector<128x128xf32>
    %92 = arith.maximumf %90, %91 : vector<128x128xf32>
    %c3_44 = arith.constant 3 : index
    %c0_45 = arith.constant 0 : index
    %c0_46 = arith.constant 0 : index
    %93 = vector.load %arg10[%c3_44, %c0_45, %c0_46] : memref<9x128x1xf32, #tpu.memory_space<vmem>>, vector<1x128x1xf32>
    %94 = vector.shape_cast %93 : vector<1x128x1xf32> to vector<128x1xf32>
    %95 = vector.broadcast %94 : vector<128x1xf32> to vector<128x128xf32>
    %96 = arith.mulf %92, %95 : vector<128x128xf32>
    %97 = arith.truncf %96 : vector<128x128xf32> to vector<128x128xbf16>
    %c3_47 = arith.constant 3 : index
    %c0_48 = arith.constant 0 : index
    %c0_49 = arith.constant 0 : index
    %98 = vector.load %arg5[%c3_47, %c0_48, %c0_49] : memref<9x128x128xbf16, #tpu.memory_space<vmem>>, vector<1x128x128xbf16>
    %99 = vector.shape_cast %98 : vector<1x128x128xbf16> to vector<128x128xbf16>
    %cst_50 = arith.constant dense<0.000000e+00> : vector<128x128xf32>
    %100 = tpu.matmul %97, %99, %cst_50 {dimension_numbers = #tpu.dot_dimension_numbers<[1], [0], [0], [1], [0, 0, 1, 1], [], []>} : vector<128x128xbf16>, vector<128x128xbf16>, vector<128x128xf32> -> vector<128x128xf32>
    %101 = arith.addf %80, %100 : vector<128x128xf32>
    %c4 = arith.constant 4 : index
    %c0_51 = arith.constant 0 : index
    %c0_52 = arith.constant 0 : index
    %102 = vector.load %arg2[%c4, %c0_51, %c0_52] : memref<9x128x128xf32, #tpu.memory_space<vmem>>, vector<1x128x128xf32>
    %103 = vector.shape_cast %102 : vector<1x128x128xf32> to vector<128x128xf32>
    %104 = vector.broadcast %4 : vector<1x128xf32> to vector<128x128xf32>
    %105 = arith.subf %103, %104 : vector<128x128xf32>
    %106 = vector.broadcast %14 : vector<1x128xf32> to vector<128x128xf32>
    %107 = arith.mulf %105, %106 : vector<128x128xf32>
    %108 = vector.broadcast %15 : vector<1x128xf32> to vector<128x128xf32>
    %109 = arith.mulf %107, %108 : vector<128x128xf32>
    %110 = vector.broadcast %16 : vector<1x128xf32> to vector<128x128xf32>
    %111 = arith.addf %109, %110 : vector<128x128xf32>
    %cst_53 = arith.constant 0.000000e+00 : f32
    %112 = vector.broadcast %cst_53 : f32 to vector<128x128xf32>
    %113 = arith.maximumf %111, %112 : vector<128x128xf32>
    %c4_54 = arith.constant 4 : index
    %c0_55 = arith.constant 0 : index
    %c0_56 = arith.constant 0 : index
    %114 = vector.load %arg10[%c4_54, %c0_55, %c0_56] : memref<9x128x1xf32, #tpu.memory_space<vmem>>, vector<1x128x1xf32>
    %115 = vector.shape_cast %114 : vector<1x128x1xf32> to vector<128x1xf32>
    %116 = vector.broadcast %115 : vector<128x1xf32> to vector<128x128xf32>
    %117 = arith.mulf %113, %116 : vector<128x128xf32>
    %118 = arith.truncf %117 : vector<128x128xf32> to vector<128x128xbf16>
    %c4_57 = arith.constant 4 : index
    %c0_58 = arith.constant 0 : index
    %c0_59 = arith.constant 0 : index
    %119 = vector.load %arg5[%c4_57, %c0_58, %c0_59] : memref<9x128x128xbf16, #tpu.memory_space<vmem>>, vector<1x128x128xbf16>
    %120 = vector.shape_cast %119 : vector<1x128x128xbf16> to vector<128x128xbf16>
    %cst_60 = arith.constant dense<0.000000e+00> : vector<128x128xf32>
    %121 = tpu.matmul %118, %120, %cst_60 {dimension_numbers = #tpu.dot_dimension_numbers<[1], [0], [0], [1], [0, 0, 1, 1], [], []>} : vector<128x128xbf16>, vector<128x128xbf16>, vector<128x128xf32> -> vector<128x128xf32>
    %122 = arith.addf %101, %121 : vector<128x128xf32>
    %c0_61 = arith.constant 0 : index
    %c0_62 = arith.constant 0 : index
    %123 = vector.load %arg9[%c0_61, %c0_62] : memref<128x128xbf16, #tpu.memory_space<vmem>>, vector<128x128xbf16>
    %cst_63 = arith.constant dense<0.000000e+00> : vector<128x128xf32>
    %124 = tpu.matmul %118, %123, %cst_63 {dimension_numbers = #tpu.dot_dimension_numbers<[1], [0], [0], [1], [0, 0, 1, 1], [], []>} : vector<128x128xbf16>, vector<128x128xbf16>, vector<128x128xf32> -> vector<128x128xf32>
    %c5 = arith.constant 5 : index
    %c0_64 = arith.constant 0 : index
    %c0_65 = arith.constant 0 : index
    %125 = vector.load %arg2[%c5, %c0_64, %c0_65] : memref<9x128x128xf32, #tpu.memory_space<vmem>>, vector<1x128x128xf32>
    %126 = vector.shape_cast %125 : vector<1x128x128xf32> to vector<128x128xf32>
    %127 = vector.broadcast %4 : vector<1x128xf32> to vector<128x128xf32>
    %128 = arith.subf %126, %127 : vector<128x128xf32>
    %129 = vector.broadcast %14 : vector<1x128xf32> to vector<128x128xf32>
    %130 = arith.mulf %128, %129 : vector<128x128xf32>
    %131 = vector.broadcast %15 : vector<1x128xf32> to vector<128x128xf32>
    %132 = arith.mulf %130, %131 : vector<128x128xf32>
    %133 = vector.broadcast %16 : vector<1x128xf32> to vector<128x128xf32>
    %134 = arith.addf %132, %133 : vector<128x128xf32>
    %cst_66 = arith.constant 0.000000e+00 : f32
    %135 = vector.broadcast %cst_66 : f32 to vector<128x128xf32>
    %136 = arith.maximumf %134, %135 : vector<128x128xf32>
    %c5_67 = arith.constant 5 : index
    %c0_68 = arith.constant 0 : index
    %c0_69 = arith.constant 0 : index
    %137 = vector.load %arg10[%c5_67, %c0_68, %c0_69] : memref<9x128x1xf32, #tpu.memory_space<vmem>>, vector<1x128x1xf32>
    %138 = vector.shape_cast %137 : vector<1x128x1xf32> to vector<128x1xf32>
    %139 = vector.broadcast %138 : vector<128x1xf32> to vector<128x128xf32>
    %140 = arith.mulf %136, %139 : vector<128x128xf32>
    %141 = arith.truncf %140 : vector<128x128xf32> to vector<128x128xbf16>
    %c5_70 = arith.constant 5 : index
    %c0_71 = arith.constant 0 : index
    %c0_72 = arith.constant 0 : index
    %142 = vector.load %arg5[%c5_70, %c0_71, %c0_72] : memref<9x128x128xbf16, #tpu.memory_space<vmem>>, vector<1x128x128xbf16>
    %143 = vector.shape_cast %142 : vector<1x128x128xbf16> to vector<128x128xbf16>
    %cst_73 = arith.constant dense<0.000000e+00> : vector<128x128xf32>
    %144 = tpu.matmul %141, %143, %cst_73 {dimension_numbers = #tpu.dot_dimension_numbers<[1], [0], [0], [1], [0, 0, 1, 1], [], []>} : vector<128x128xbf16>, vector<128x128xbf16>, vector<128x128xf32> -> vector<128x128xf32>
    %145 = arith.addf %122, %144 : vector<128x128xf32>
    %c6 = arith.constant 6 : index
    %c0_74 = arith.constant 0 : index
    %c0_75 = arith.constant 0 : index
    %146 = vector.load %arg2[%c6, %c0_74, %c0_75] : memref<9x128x128xf32, #tpu.memory_space<vmem>>, vector<1x128x128xf32>
    %147 = vector.shape_cast %146 : vector<1x128x128xf32> to vector<128x128xf32>
    %148 = vector.broadcast %4 : vector<1x128xf32> to vector<128x128xf32>
    %149 = arith.subf %147, %148 : vector<128x128xf32>
    %150 = vector.broadcast %14 : vector<1x128xf32> to vector<128x128xf32>
    %151 = arith.mulf %149, %150 : vector<128x128xf32>
    %152 = vector.broadcast %15 : vector<1x128xf32> to vector<128x128xf32>
    %153 = arith.mulf %151, %152 : vector<128x128xf32>
    %154 = vector.broadcast %16 : vector<1x128xf32> to vector<128x128xf32>
    %155 = arith.addf %153, %154 : vector<128x128xf32>
    %cst_76 = arith.constant 0.000000e+00 : f32
    %156 = vector.broadcast %cst_76 : f32 to vector<128x128xf32>
    %157 = arith.maximumf %155, %156 : vector<128x128xf32>
    %c6_77 = arith.constant 6 : index
    %c0_78 = arith.constant 0 : index
    %c0_79 = arith.constant 0 : index
    %158 = vector.load %arg10[%c6_77, %c0_78, %c0_79] : memref<9x128x1xf32, #tpu.memory_space<vmem>>, vector<1x128x1xf32>
    %159 = vector.shape_cast %158 : vector<1x128x1xf32> to vector<128x1xf32>
    %160 = vector.broadcast %159 : vector<128x1xf32> to vector<128x128xf32>
    %161 = arith.mulf %157, %160 : vector<128x128xf32>
    %162 = arith.truncf %161 : vector<128x128xf32> to vector<128x128xbf16>
    %c6_80 = arith.constant 6 : index
    %c0_81 = arith.constant 0 : index
    %c0_82 = arith.constant 0 : index
    %163 = vector.load %arg5[%c6_80, %c0_81, %c0_82] : memref<9x128x128xbf16, #tpu.memory_space<vmem>>, vector<1x128x128xbf16>
    %164 = vector.shape_cast %163 : vector<1x128x128xbf16> to vector<128x128xbf16>
    %cst_83 = arith.constant dense<0.000000e+00> : vector<128x128xf32>
    %165 = tpu.matmul %162, %164, %cst_83 {dimension_numbers = #tpu.dot_dimension_numbers<[1], [0], [0], [1], [0, 0, 1, 1], [], []>} : vector<128x128xbf16>, vector<128x128xbf16>, vector<128x128xf32> -> vector<128x128xf32>
    %166 = arith.addf %145, %165 : vector<128x128xf32>
    %c7 = arith.constant 7 : index
    %c0_84 = arith.constant 0 : index
    %c0_85 = arith.constant 0 : index
    %167 = vector.load %arg2[%c7, %c0_84, %c0_85] : memref<9x128x128xf32, #tpu.memory_space<vmem>>, vector<1x128x128xf32>
    %168 = vector.shape_cast %167 : vector<1x128x128xf32> to vector<128x128xf32>
    %169 = vector.broadcast %4 : vector<1x128xf32> to vector<128x128xf32>
    %170 = arith.subf %168, %169 : vector<128x128xf32>
    %171 = vector.broadcast %14 : vector<1x128xf32> to vector<128x128xf32>
    %172 = arith.mulf %170, %171 : vector<128x128xf32>
    %173 = vector.broadcast %15 : vector<1x128xf32> to vector<128x128xf32>
    %174 = arith.mulf %172, %173 : vector<128x128xf32>
    %175 = vector.broadcast %16 : vector<1x128xf32> to vector<128x128xf32>
    %176 = arith.addf %174, %175 : vector<128x128xf32>
    %cst_86 = arith.constant 0.000000e+00 : f32
    %177 = vector.broadcast %cst_86 : f32 to vector<128x128xf32>
    %178 = arith.maximumf %176, %177 : vector<128x128xf32>
    %c7_87 = arith.constant 7 : index
    %c0_88 = arith.constant 0 : index
    %c0_89 = arith.constant 0 : index
    %179 = vector.load %arg10[%c7_87, %c0_88, %c0_89] : memref<9x128x1xf32, #tpu.memory_space<vmem>>, vector<1x128x1xf32>
    %180 = vector.shape_cast %179 : vector<1x128x1xf32> to vector<128x1xf32>
    %181 = vector.broadcast %180 : vector<128x1xf32> to vector<128x128xf32>
    %182 = arith.mulf %178, %181 : vector<128x128xf32>
    %183 = arith.truncf %182 : vector<128x128xf32> to vector<128x128xbf16>
    %c7_90 = arith.constant 7 : index
    %c0_91 = arith.constant 0 : index
    %c0_92 = arith.constant 0 : index
    %184 = vector.load %arg5[%c7_90, %c0_91, %c0_92] : memref<9x128x128xbf16, #tpu.memory_space<vmem>>, vector<1x128x128xbf16>
    %185 = vector.shape_cast %184 : vector<1x128x128xbf16> to vector<128x128xbf16>
    %cst_93 = arith.constant dense<0.000000e+00> : vector<128x128xf32>
    %186 = tpu.matmul %183, %185, %cst_93 {dimension_numbers = #tpu.dot_dimension_numbers<[1], [0], [0], [1], [0, 0, 1, 1], [], []>} : vector<128x128xbf16>, vector<128x128xbf16>, vector<128x128xf32> -> vector<128x128xf32>
    %187 = arith.addf %166, %186 : vector<128x128xf32>
    %c8 = arith.constant 8 : index
    %c0_94 = arith.constant 0 : index
    %c0_95 = arith.constant 0 : index
    %188 = vector.load %arg2[%c8, %c0_94, %c0_95] : memref<9x128x128xf32, #tpu.memory_space<vmem>>, vector<1x128x128xf32>
    %189 = vector.shape_cast %188 : vector<1x128x128xf32> to vector<128x128xf32>
    %190 = vector.broadcast %4 : vector<1x128xf32> to vector<128x128xf32>
    %191 = arith.subf %189, %190 : vector<128x128xf32>
    %192 = vector.broadcast %14 : vector<1x128xf32> to vector<128x128xf32>
    %193 = arith.mulf %191, %192 : vector<128x128xf32>
    %194 = vector.broadcast %15 : vector<1x128xf32> to vector<128x128xf32>
    %195 = arith.mulf %193, %194 : vector<128x128xf32>
    %196 = vector.broadcast %16 : vector<1x128xf32> to vector<128x128xf32>
    %197 = arith.addf %195, %196 : vector<128x128xf32>
    %cst_96 = arith.constant 0.000000e+00 : f32
    %198 = vector.broadcast %cst_96 : f32 to vector<128x128xf32>
    %199 = arith.maximumf %197, %198 : vector<128x128xf32>
    %c8_97 = arith.constant 8 : index
    %c0_98 = arith.constant 0 : index
    %c0_99 = arith.constant 0 : index
    %200 = vector.load %arg10[%c8_97, %c0_98, %c0_99] : memref<9x128x1xf32, #tpu.memory_space<vmem>>, vector<1x128x1xf32>
    %201 = vector.shape_cast %200 : vector<1x128x1xf32> to vector<128x1xf32>
    %202 = vector.broadcast %201 : vector<128x1xf32> to vector<128x128xf32>
    %203 = arith.mulf %199, %202 : vector<128x128xf32>
    %204 = arith.truncf %203 : vector<128x128xf32> to vector<128x128xbf16>
    %c8_100 = arith.constant 8 : index
    %c0_101 = arith.constant 0 : index
    %c0_102 = arith.constant 0 : index
    %205 = vector.load %arg5[%c8_100, %c0_101, %c0_102] : memref<9x128x128xbf16, #tpu.memory_space<vmem>>, vector<1x128x128xbf16>
    %206 = vector.shape_cast %205 : vector<1x128x128xbf16> to vector<128x128xbf16>
    %cst_103 = arith.constant dense<0.000000e+00> : vector<128x128xf32>
    %207 = tpu.matmul %204, %206, %cst_103 {dimension_numbers = #tpu.dot_dimension_numbers<[1], [0], [0], [1], [0, 0, 1, 1], [], []>} : vector<128x128xbf16>, vector<128x128xbf16>, vector<128x128xf32> -> vector<128x128xf32>
    %208 = arith.addf %187, %207 : vector<128x128xf32>
    %c0_104 = arith.constant 0 : index
    %c0_105 = arith.constant 0 : index
    %209 = vector.load %arg6[%c0_104, %c0_105] : memref<1x128xf32, #tpu.memory_space<vmem>>, vector<1x128xf32>
    %c0_106 = arith.constant 0 : index
    %c0_107 = arith.constant 0 : index
    %210 = vector.load %arg7[%c0_106, %c0_107] : memref<1x128xf32, #tpu.memory_space<vmem>>, vector<1x128xf32>
    %cst_108 = arith.constant dense<0.000000e+00> : vector<128xf32>
    %211 = vector.multi_reduction <add>, %208, %cst_108 [0] : vector<128x128xf32> to vector<128xf32>
    %212 = vector.shape_cast %211 : vector<128xf32> to vector<1x128xf32>
    %cst_109 = arith.constant 1.280000e+02 : f32
    %213 = vector.broadcast %cst_109 : f32 to vector<1x128xf32>
    %214 = arith.divf %212, %213 : vector<1x128xf32>
    %215 = vector.broadcast %214 : vector<1x128xf32> to vector<128x128xf32>
    %216 = arith.subf %208, %215 : vector<128x128xf32>
    %217 = arith.mulf %216, %216 : vector<128x128xf32>
    %cst_110 = arith.constant dense<0.000000e+00> : vector<128xf32>
    %218 = vector.multi_reduction <add>, %217, %cst_110 [0] : vector<128x128xf32> to vector<128xf32>
    %219 = vector.shape_cast %218 : vector<128xf32> to vector<1x128xf32>
    %cst_111 = arith.constant 1.280000e+02 : f32
    %220 = vector.broadcast %cst_111 : f32 to vector<1x128xf32>
    %221 = arith.divf %219, %220 : vector<1x128xf32>
    %cst_112 = arith.constant 9.99999974E-6 : f32
    %222 = vector.broadcast %cst_112 : f32 to vector<1x128xf32>
    %223 = arith.addf %221, %222 : vector<1x128xf32>
    %224 = math.rsqrt %223 : vector<1x128xf32>
    %225 = vector.broadcast %214 : vector<1x128xf32> to vector<128x128xf32>
    %226 = arith.subf %208, %225 : vector<128x128xf32>
    %227 = vector.broadcast %224 : vector<1x128xf32> to vector<128x128xf32>
    %228 = arith.mulf %226, %227 : vector<128x128xf32>
    %229 = vector.broadcast %209 : vector<1x128xf32> to vector<128x128xf32>
    %230 = arith.mulf %228, %229 : vector<128x128xf32>
    %231 = vector.broadcast %210 : vector<1x128xf32> to vector<128x128xf32>
    %232 = arith.addf %230, %231 : vector<128x128xf32>
    %cst_113 = arith.constant 0.000000e+00 : f32
    %233 = vector.broadcast %cst_113 : f32 to vector<128x128xf32>
    %234 = arith.maximumf %232, %233 : vector<128x128xf32>
    %cst_114 = arith.constant 0.000000e+00 : f32
    %235 = vector.broadcast %cst_114 : f32 to vector<16x128xf32>
    %c0_115 = arith.constant 0 : index
    %c0_116 = arith.constant 0 : index
    %236 = vector.load %arg13[%c0_115, %c0_116] : memref<160x128xf32, #tpu.memory_space<vmem>>, vector<16x128xf32>
    tpu.vector_store %arg13[%c0_115, %c0_116], %235 {strides = array<i32>} : memref<160x128xf32, #tpu.memory_space<vmem>>, vector<16x128xf32>,
    %c144 = arith.constant 144 : index
    %c0_117 = arith.constant 0 : index
    %237 = vector.load %arg13[%c144, %c0_117] : memref<160x128xf32, #tpu.memory_space<vmem>>, vector<16x128xf32>
    tpu.vector_store %arg13[%c144, %c0_117], %235 {strides = array<i32>} : memref<160x128xf32, #tpu.memory_space<vmem>>, vector<16x128xf32>,
    %c16 = arith.constant 16 : index
    %c0_118 = arith.constant 0 : index
    %238 = vector.load %arg13[%c16, %c0_118] : memref<160x128xf32, #tpu.memory_space<vmem>>, vector<128x128xf32>
    tpu.vector_store %arg13[%c16, %c0_118], %234 {strides = array<i32>} : memref<160x128xf32, #tpu.memory_space<vmem>>, vector<128x128xf32>,
    %c7_119 = arith.constant 7 : index
    %c0_120 = arith.constant 0 : index
    %239 = vector.load %arg13[%c7_119, %c0_120] : memref<160x128xf32, #tpu.memory_space<vmem>>, vector<128x128xf32>
    %c0_121 = arith.constant 0 : index
    %c0_122 = arith.constant 0 : index
    %c0_123 = arith.constant 0 : index
    %240 = vector.load %arg11[%c0_121, %c0_122, %c0_123] : memref<9x128x1xf32, #tpu.memory_space<vmem>>, vector<1x128x1xf32>
    %241 = vector.shape_cast %240 : vector<1x128x1xf32> to vector<128x1xf32>
    %242 = vector.broadcast %241 : vector<128x1xf32> to vector<128x128xf32>
    %243 = arith.mulf %239, %242 : vector<128x128xf32>
    %244 = arith.truncf %243 : vector<128x128xf32> to vector<128x128xbf16>
    %c0_124 = arith.constant 0 : index
    %c0_125 = arith.constant 0 : index
    %c0_126 = arith.constant 0 : index
    %245 = vector.load %arg8[%c0_124, %c0_125, %c0_126] : memref<9x128x128xbf16, #tpu.memory_space<vmem>>, vector<1x128x128xbf16>
    %246 = vector.shape_cast %245 : vector<1x128x128xbf16> to vector<128x128xbf16>
    %cst_127 = arith.constant dense<0.000000e+00> : vector<128x128xf32>
    %247 = tpu.matmul %244, %246, %cst_127 {dimension_numbers = #tpu.dot_dimension_numbers<[1], [0], [0], [1], [0, 0, 1, 1], [], []>} : vector<128x128xbf16>, vector<128x128xbf16>, vector<128x128xf32> -> vector<128x128xf32>
    %248 = arith.addf %124, %247 : vector<128x128xf32>
    %c8_128 = arith.constant 8 : index
    %c0_129 = arith.constant 0 : index
    %249 = vector.load %arg13[%c8_128, %c0_129] : memref<160x128xf32, #tpu.memory_space<vmem>>, vector<128x128xf32>
    %c1_130 = arith.constant 1 : index
    %c0_131 = arith.constant 0 : index
    %c0_132 = arith.constant 0 : index
    %250 = vector.load %arg11[%c1_130, %c0_131, %c0_132] : memref<9x128x1xf32, #tpu.memory_space<vmem>>, vector<1x128x1xf32>
    %251 = vector.shape_cast %250 : vector<1x128x1xf32> to vector<128x1xf32>
    %252 = vector.broadcast %251 : vector<128x1xf32> to vector<128x128xf32>
    %253 = arith.mulf %249, %252 : vector<128x128xf32>
    %254 = arith.truncf %253 : vector<128x128xf32> to vector<128x128xbf16>
    %c1_133 = arith.constant 1 : index
    %c0_134 = arith.constant 0 : index
    %c0_135 = arith.constant 0 : index
    %255 = vector.load %arg8[%c1_133, %c0_134, %c0_135] : memref<9x128x128xbf16, #tpu.memory_space<vmem>>, vector<1x128x128xbf16>
    %256 = vector.shape_cast %255 : vector<1x128x128xbf16> to vector<128x128xbf16>
    %cst_136 = arith.constant dense<0.000000e+00> : vector<128x128xf32>
    %257 = tpu.matmul %254, %256, %cst_136 {dimension_numbers = #tpu.dot_dimension_numbers<[1], [0], [0], [1], [0, 0, 1, 1], [], []>} : vector<128x128xbf16>, vector<128x128xbf16>, vector<128x128xf32> -> vector<128x128xf32>
    %258 = arith.addf %248, %257 : vector<128x128xf32>
    %c9 = arith.constant 9 : index
    %c0_137 = arith.constant 0 : index
    %259 = vector.load %arg13[%c9, %c0_137] : memref<160x128xf32, #tpu.memory_space<vmem>>, vector<128x128xf32>
    %c2_138 = arith.constant 2 : index
    %c0_139 = arith.constant 0 : index
    %c0_140 = arith.constant 0 : index
    %260 = vector.load %arg11[%c2_138, %c0_139, %c0_140] : memref<9x128x1xf32, #tpu.memory_space<vmem>>, vector<1x128x1xf32>
    %261 = vector.shape_cast %260 : vector<1x128x1xf32> to vector<128x1xf32>
    %262 = vector.broadcast %261 : vector<128x1xf32> to vector<128x128xf32>
    %263 = arith.mulf %259, %262 : vector<128x128xf32>
    %264 = arith.truncf %263 : vector<128x128xf32> to vector<128x128xbf16>
    %c2_141 = arith.constant 2 : index
    %c0_142 = arith.constant 0 : index
    %c0_143 = arith.constant 0 : index
    %265 = vector.load %arg8[%c2_141, %c0_142, %c0_143] : memref<9x128x128xbf16, #tpu.memory_space<vmem>>, vector<1x128x128xbf16>
    %266 = vector.shape_cast %265 : vector<1x128x128xbf16> to vector<128x128xbf16>
    %cst_144 = arith.constant dense<0.000000e+00> : vector<128x128xf32>
    %267 = tpu.matmul %264, %266, %cst_144 {dimension_numbers = #tpu.dot_dimension_numbers<[1], [0], [0], [1], [0, 0, 1, 1], [], []>} : vector<128x128xbf16>, vector<128x128xbf16>, vector<128x128xf32> -> vector<128x128xf32>
    %268 = arith.addf %258, %267 : vector<128x128xf32>
    %c15 = arith.constant 15 : index
    %c0_145 = arith.constant 0 : index
    %269 = vector.load %arg13[%c15, %c0_145] : memref<160x128xf32, #tpu.memory_space<vmem>>, vector<128x128xf32>
    %c3_146 = arith.constant 3 : index
    %c0_147 = arith.constant 0 : index
    %c0_148 = arith.constant 0 : index
    %270 = vector.load %arg11[%c3_146, %c0_147, %c0_148] : memref<9x128x1xf32, #tpu.memory_space<vmem>>, vector<1x128x1xf32>
    %271 = vector.shape_cast %270 : vector<1x128x1xf32> to vector<128x1xf32>
    %272 = vector.broadcast %271 : vector<128x1xf32> to vector<128x128xf32>
    %273 = arith.mulf %269, %272 : vector<128x128xf32>
    %274 = arith.truncf %273 : vector<128x128xf32> to vector<128x128xbf16>
    %c3_149 = arith.constant 3 : index
    %c0_150 = arith.constant 0 : index
    %c0_151 = arith.constant 0 : index
    %275 = vector.load %arg8[%c3_149, %c0_150, %c0_151] : memref<9x128x128xbf16, #tpu.memory_space<vmem>>, vector<1x128x128xbf16>
    %276 = vector.shape_cast %275 : vector<1x128x128xbf16> to vector<128x128xbf16>
    %cst_152 = arith.constant dense<0.000000e+00> : vector<128x128xf32>
    %277 = tpu.matmul %274, %276, %cst_152 {dimension_numbers = #tpu.dot_dimension_numbers<[1], [0], [0], [1], [0, 0, 1, 1], [], []>} : vector<128x128xbf16>, vector<128x128xbf16>, vector<128x128xf32> -> vector<128x128xf32>
    %278 = arith.addf %268, %277 : vector<128x128xf32>
    %c16_153 = arith.constant 16 : index
    %c0_154 = arith.constant 0 : index
    %279 = vector.load %arg13[%c16_153, %c0_154] : memref<160x128xf32, #tpu.memory_space<vmem>>, vector<128x128xf32>
    %c4_155 = arith.constant 4 : index
    %c0_156 = arith.constant 0 : index
    %c0_157 = arith.constant 0 : index
    %280 = vector.load %arg11[%c4_155, %c0_156, %c0_157] : memref<9x128x1xf32, #tpu.memory_space<vmem>>, vector<1x128x1xf32>
    %281 = vector.shape_cast %280 : vector<1x128x1xf32> to vector<128x1xf32>
    %282 = vector.broadcast %281 : vector<128x1xf32> to vector<128x128xf32>
    %283 = arith.mulf %279, %282 : vector<128x128xf32>
    %284 = arith.truncf %283 : vector<128x128xf32> to vector<128x128xbf16>
    %c4_158 = arith.constant 4 : index
    %c0_159 = arith.constant 0 : index
    %c0_160 = arith.constant 0 : index
    %285 = vector.load %arg8[%c4_158, %c0_159, %c0_160] : memref<9x128x128xbf16, #tpu.memory_space<vmem>>, vector<1x128x128xbf16>
    %286 = vector.shape_cast %285 : vector<1x128x128xbf16> to vector<128x128xbf16>
    %cst_161 = arith.constant dense<0.000000e+00> : vector<128x128xf32>
    %287 = tpu.matmul %284, %286, %cst_161 {dimension_numbers = #tpu.dot_dimension_numbers<[1], [0], [0], [1], [0, 0, 1, 1], [], []>} : vector<128x128xbf16>, vector<128x128xbf16>, vector<128x128xf32> -> vector<128x128xf32>
    %288 = arith.addf %278, %287 : vector<128x128xf32>
    %c17 = arith.constant 17 : index
    %c0_162 = arith.constant 0 : index
    %289 = vector.load %arg13[%c17, %c0_162] : memref<160x128xf32, #tpu.memory_space<vmem>>, vector<128x128xf32>
    %c5_163 = arith.constant 5 : index
    %c0_164 = arith.constant 0 : index
    %c0_165 = arith.constant 0 : index
    %290 = vector.load %arg11[%c5_163, %c0_164, %c0_165] : memref<9x128x1xf32, #tpu.memory_space<vmem>>, vector<1x128x1xf32>
    %291 = vector.shape_cast %290 : vector<1x128x1xf32> to vector<128x1xf32>
    %292 = vector.broadcast %291 : vector<128x1xf32> to vector<128x128xf32>
    %293 = arith.mulf %289, %292 : vector<128x128xf32>
    %294 = arith.truncf %293 : vector<128x128xf32> to vector<128x128xbf16>
    %c5_166 = arith.constant 5 : index
    %c0_167 = arith.constant 0 : index
    %c0_168 = arith.constant 0 : index
    %295 = vector.load %arg8[%c5_166, %c0_167, %c0_168] : memref<9x128x128xbf16, #tpu.memory_space<vmem>>, vector<1x128x128xbf16>
    %296 = vector.shape_cast %295 : vector<1x128x128xbf16> to vector<128x128xbf16>
    %cst_169 = arith.constant dense<0.000000e+00> : vector<128x128xf32>
    %297 = tpu.matmul %294, %296, %cst_169 {dimension_numbers = #tpu.dot_dimension_numbers<[1], [0], [0], [1], [0, 0, 1, 1], [], []>} : vector<128x128xbf16>, vector<128x128xbf16>, vector<128x128xf32> -> vector<128x128xf32>
    %298 = arith.addf %288, %297 : vector<128x128xf32>
    %c23 = arith.constant 23 : index
    %c0_170 = arith.constant 0 : index
    %299 = vector.load %arg13[%c23, %c0_170] : memref<160x128xf32, #tpu.memory_space<vmem>>, vector<128x128xf32>
    %c6_171 = arith.constant 6 : index
    %c0_172 = arith.constant 0 : index
    %c0_173 = arith.constant 0 : index
    %300 = vector.load %arg11[%c6_171, %c0_172, %c0_173] : memref<9x128x1xf32, #tpu.memory_space<vmem>>, vector<1x128x1xf32>
    %301 = vector.shape_cast %300 : vector<1x128x1xf32> to vector<128x1xf32>
    %302 = vector.broadcast %301 : vector<128x1xf32> to vector<128x128xf32>
    %303 = arith.mulf %299, %302 : vector<128x128xf32>
    %304 = arith.truncf %303 : vector<128x128xf32> to vector<128x128xbf16>
    %c6_174 = arith.constant 6 : index
    %c0_175 = arith.constant 0 : index
    %c0_176 = arith.constant 0 : index
    %305 = vector.load %arg8[%c6_174, %c0_175, %c0_176] : memref<9x128x128xbf16, #tpu.memory_space<vmem>>, vector<1x128x128xbf16>
    %306 = vector.shape_cast %305 : vector<1x128x128xbf16> to vector<128x128xbf16>
    %cst_177 = arith.constant dense<0.000000e+00> : vector<128x128xf32>
    %307 = tpu.matmul %304, %306, %cst_177 {dimension_numbers = #tpu.dot_dimension_numbers<[1], [0], [0], [1], [0, 0, 1, 1], [], []>} : vector<128x128xbf16>, vector<128x128xbf16>, vector<128x128xf32> -> vector<128x128xf32>
    %308 = arith.addf %298, %307 : vector<128x128xf32>
    %c24 = arith.constant 24 : index
    %c0_178 = arith.constant 0 : index
    %309 = vector.load %arg13[%c24, %c0_178] : memref<160x128xf32, #tpu.memory_space<vmem>>, vector<128x128xf32>
    %c7_179 = arith.constant 7 : index
    %c0_180 = arith.constant 0 : index
    %c0_181 = arith.constant 0 : index
    %310 = vector.load %arg11[%c7_179, %c0_180, %c0_181] : memref<9x128x1xf32, #tpu.memory_space<vmem>>, vector<1x128x1xf32>
    %311 = vector.shape_cast %310 : vector<1x128x1xf32> to vector<128x1xf32>
    %312 = vector.broadcast %311 : vector<128x1xf32> to vector<128x128xf32>
    %313 = arith.mulf %309, %312 : vector<128x128xf32>
    %314 = arith.truncf %313 : vector<128x128xf32> to vector<128x128xbf16>
    %c7_182 = arith.constant 7 : index
    %c0_183 = arith.constant 0 : index
    %c0_184 = arith.constant 0 : index
    %315 = vector.load %arg8[%c7_182, %c0_183, %c0_184] : memref<9x128x128xbf16, #tpu.memory_space<vmem>>, vector<1x128x128xbf16>
    %316 = vector.shape_cast %315 : vector<1x128x128xbf16> to vector<128x128xbf16>
    %cst_185 = arith.constant dense<0.000000e+00> : vector<128x128xf32>
    %317 = tpu.matmul %314, %316, %cst_185 {dimension_numbers = #tpu.dot_dimension_numbers<[1], [0], [0], [1], [0, 0, 1, 1], [], []>} : vector<128x128xbf16>, vector<128x128xbf16>, vector<128x128xf32> -> vector<128x128xf32>
    %318 = arith.addf %308, %317 : vector<128x128xf32>
    %c25 = arith.constant 25 : index
    %c0_186 = arith.constant 0 : index
    %319 = vector.load %arg13[%c25, %c0_186] : memref<160x128xf32, #tpu.memory_space<vmem>>, vector<128x128xf32>
    %c8_187 = arith.constant 8 : index
    %c0_188 = arith.constant 0 : index
    %c0_189 = arith.constant 0 : index
    %320 = vector.load %arg11[%c8_187, %c0_188, %c0_189] : memref<9x128x1xf32, #tpu.memory_space<vmem>>, vector<1x128x1xf32>
    %321 = vector.shape_cast %320 : vector<1x128x1xf32> to vector<128x1xf32>
    %322 = vector.broadcast %321 : vector<128x1xf32> to vector<128x128xf32>
    %323 = arith.mulf %319, %322 : vector<128x128xf32>
    %324 = arith.truncf %323 : vector<128x128xf32> to vector<128x128xbf16>
    %c8_190 = arith.constant 8 : index
    %c0_191 = arith.constant 0 : index
    %c0_192 = arith.constant 0 : index
    %325 = vector.load %arg8[%c8_190, %c0_191, %c0_192] : memref<9x128x128xbf16, #tpu.memory_space<vmem>>, vector<1x128x128xbf16>
    %326 = vector.shape_cast %325 : vector<1x128x128xbf16> to vector<128x128xbf16>
    %cst_193 = arith.constant dense<0.000000e+00> : vector<128x128xf32>
    %327 = tpu.matmul %324, %326, %cst_193 {dimension_numbers = #tpu.dot_dimension_numbers<[1], [0], [0], [1], [0, 0, 1, 1], [], []>} : vector<128x128xbf16>, vector<128x128xbf16>, vector<128x128xf32> -> vector<128x128xf32>
    %328 = arith.addf %318, %327 : vector<128x128xf32>
    %c0_194 = arith.constant 0 : index
    %c0_195 = arith.constant 0 : index
    %329 = vector.load %arg12[%c0_194, %c0_195] : memref<128x128xf32, #tpu.memory_space<vmem>>, vector<128x128xf32>
    tpu.vector_store %arg12[%c0_194, %c0_195], %328 {strides = array<i32>} : memref<128x128xf32, #tpu.memory_space<vmem>>, vector<128x128xf32>,
    return
  }
  func.func @transform_0(%arg0: i32) -> (i32, i32) {
    %c0_i32 = arith.constant 0 : i32
    %c0_i32_0 = arith.constant 0 : i32
    %c0_i32_1 = arith.constant 0 : i32
    return %c0_i32, %c0_i32_0 : i32, i32
  }
  func.func @transform_1(%arg0: i32) -> (i32, i32, i32) {
    %c0_i32 = arith.constant 0 : i32
    %c0_i32_0 = arith.constant 0 : i32
    %c0_i32_1 = arith.constant 0 : i32
    %c0_i32_2 = arith.constant 0 : i32
    return %c0_i32, %c0_i32_0, %c0_i32_1 : i32, i32, i32
  }
  func.func @transform_2(%arg0: i32) -> (i32, i32) {
    %c0_i32 = arith.constant 0 : i32
    %c0_i32_0 = arith.constant 0 : i32
    %c0_i32_1 = arith.constant 0 : i32
    return %c0_i32, %c0_i32_0 : i32, i32
  }
  func.func @transform_3(%arg0: i32) -> (i32, i32) {
    %c0_i32 = arith.constant 0 : i32
    %c0_i32_0 = arith.constant 0 : i32
    %c0_i32_1 = arith.constant 0 : i32
    return %c0_i32, %c0_i32_0 : i32, i32
  }
  func.func @transform_4(%arg0: i32) -> (i32, i32, i32) {
    %c0_i32 = arith.constant 0 : i32
    %c0_i32_0 = arith.constant 0 : i32
    %c0_i32_1 = arith.constant 0 : i32
    %c0_i32_2 = arith.constant 0 : i32
    return %c0_i32, %c0_i32_0, %c0_i32_1 : i32, i32, i32
  }
  func.func @transform_5(%arg0: i32) -> (i32, i32) {
    %c0_i32 = arith.constant 0 : i32
    %c0_i32_0 = arith.constant 0 : i32
    %c0_i32_1 = arith.constant 0 : i32
    return %c0_i32, %c0_i32_0 : i32, i32
  }
  func.func @transform_6(%arg0: i32) -> (i32, i32) {
    %c0_i32 = arith.constant 0 : i32
    %c0_i32_0 = arith.constant 0 : i32
    %c0_i32_1 = arith.constant 0 : i32
    return %c0_i32, %c0_i32_0 : i32, i32
  }
  func.func @transform_7(%arg0: i32) -> (i32, i32, i32) {
    %c0_i32 = arith.constant 0 : i32
    %c0_i32_0 = arith.constant 0 : i32
    %c0_i32_1 = arith.constant 0 : i32
    %c0_i32_2 = arith.constant 0 : i32
    return %c0_i32, %c0_i32_0, %c0_i32_1 : i32, i32, i32
  }
  func.func @transform_8(%arg0: i32) -> (i32, i32) {
    %c0_i32 = arith.constant 0 : i32
    %c0_i32_0 = arith.constant 0 : i32
    %c0_i32_1 = arith.constant 0 : i32
    return %c0_i32, %c0_i32_0 : i32, i32
  }
  func.func @transform_9(%arg0: i32) -> (i32, i32, i32) {
    %c0_i32 = arith.constant 0 : i32
    %c0_i32_0 = arith.constant 0 : i32
    %c0_i32_1 = arith.constant 0 : i32
    %c0_i32_2 = arith.constant 0 : i32
    return %c0_i32, %c0_i32_0, %c0_i32_1 : i32, i32, i32
  }
  func.func @transform_10(%arg0: i32) -> (i32, i32, i32) {
    %c0_i32 = arith.constant 0 : i32
    %c0_i32_0 = arith.constant 0 : i32
    %c0_i32_1 = arith.constant 0 : i32
    %c0_i32_2 = arith.constant 0 : i32
    return %c0_i32, %c0_i32_0, %c0_i32_1 : i32, i32, i32
  }
  func.func @transform_11(%arg0: i32) -> (i32, i32) {
    %c0_i32 = arith.constant 0 : i32
    %c0_i32_0 = arith.constant 0 : i32
    %c0_i32_1 = arith.constant 0 : i32
    return %c0_i32, %c0_i32_0 : i32, i32
  }
}

</mosaic_0001>

<bundles_post_ra>
// kernel: tpu_custom_call.1
= control target key start
LH: loop header
LB: loop body
LE: loop exit
PB: predicated region body
PF: predicated region fallthrough
CT: control target
= control target key end

     0   :  { %16 = vsyncpa [#allocation4], 0  ;;  %s13521_s0 = inlined_call_operand.hbm [shape: f32[512,128], index: 0, kind: input, shape index: {}]   ;;  %s13522_s1 = inlined_call_operand.vmem [shape: f32[9,128,128], index: 1, kind: input, shape index: {}]   ;;  %s13523_s2 = inlined_call_operand.vmem [shape: f32[1,128], index: 2, kind: input, shape index: {}]   ;;  %s13524_s3 = inlined_call_operand.vmem [shape: f32[1,128], index: 3, kind: input, shape index: {}]   ;;  %s13525_s4 = inlined_call_operand.vmem [shape: bf16[9,128,128], index: 4, kind: input, shape index: {}]   ;;  %s13526_s5 = inlined_call_operand.vmem [shape: f32[1,128], index: 5, kind: input, shape index: {}]   ;;  %s13527_s6 = inlined_call_operand.vmem [shape: f32[1,128], index: 6, kind: input, shape index: {}]   ;;  %s13528_s7 = inlined_call_operand.vmem [shape: bf16[9,128,128], index: 7, kind: input, shape index: {}]   ;;  %s13529_s8 = inlined_call_operand.hbm [shape: bf16[128,128], index: 8, kind: input, shape index: {}]   ;;  %s13530_s9 = inlined_call_operand.vmem [shape: f32[9,128,1], index: 9, kind: input, shape index: {}]   ;;  %s13531_s10 = inlined_call_operand.vmem [shape: f32[9,128,1], index: 10, kind: input, shape index: {}]   ;;  %s13532_s11 = inlined_call_operand.hbm [shape: f32[128,128], index: 11, kind: output, shape index: {}]  }
   0x1   :  { %17 = vsyncpa [#allocation7], 0 }
   0x2   :  { %18 = vsyncpa [#allocation5], 0  ;;  %s9434_s17 = smov [#allocation3]   ;;  %s9362_s21 = scalar_lea.hbm %s13521_s0, 8192 }
   0x3   :  { %s24_s18 = sshll.u32 %s9434_s17, 4  ;;  %p9363_p0 = scmp.ne.s32.totalorder %s13521_s0, %s9362_s21  ;;  %s25_s18 = int_to_ptr.vmem [resolvable:$true] %s24_s18 }
   0x4   :  { %p9366_p1 = scmp.lt.u32.totalorder %s9362_s21, %s13521_s0 }
   0x6   :  { %p9368_p2 = pnand %p9366_p1, %p9363_p0 }
   0x8   :  { %9371 = shalt.err (!%p9368_p2)
}
   0x9   :  { %s9372_s26 = scalar_lea.vmem %s25_s18, 8192  ;;  %p9377_p4 = scmp.lt.s32.totalorder %s25_s18, %s25_s18 }
   0xa   :  { %p9373_p3 = scmp.ne.s32.totalorder %s25_s18, %s9372_s26  ;;  %p9378_p5 = scmp.lt.s32.totalorder %s9372_s26, %s9372_s26 }
   0xc   :  { %p9379_p6 = por %p9378_p5, %p9377_p4 }
   0xe   :  { %p9380_p7 = pnand %p9379_p6, %p9373_p3 }
  0x10   :  { %9383 = shalt.err (!%p9380_p7)
}
  0x11   :  { %s9435_s27 = smov 128   ;;  %s9436_s28 = smov 8  }
  0x12   :  { %30 = dma.hbm_to_vmem [thread:$0]  %s13521_s0, 8192, %s25_s18, [#allocation4], %s9435_s27, %s9435_s27, %s9436_s28  }
  0x13   :  { %s9437_s12 = smov [#allocation6]   ;;  %s9384_s16 = scalar_lea.hbm %s13529_s8, 1024 }
  0x14   :  { %s50_s13 = sshll.u32 %s9437_s12, 4  ;;  %p9385_p8 = scmp.ne.s32.totalorder %s13529_s8, %s9384_s16  ;;  %s51_s13 = int_to_ptr.vmem [resolvable:$true] %s50_s13 }
  0x15   :  { %p9388_p9 = scmp.lt.u32.totalorder %s9384_s16, %s13529_s8 }
  0x17   :  { %p9390_p10 = pnand %p9388_p9, %p9385_p8 }
  0x19   :  { %9393 = shalt.err (!%p9390_p10)
}
  0x1a   :  { %s9394_s22 = scalar_lea.vmem %s51_s13, 1024  ;;  %p9399_p12 = scmp.lt.s32.totalorder %s51_s13, %s51_s13 }
  0x1b   :  { %p9395_p11 = scmp.ne.s32.totalorder %s51_s13, %s9394_s22  ;;  %p9400_p13 = scmp.lt.s32.totalorder %s9394_s22, %s9394_s22 }
  0x1d   :  { %p9401_p0 = por %p9400_p13, %p9399_p12 }
  0x1f   :  { %p9402_p1 = pnand %p9401_p0, %p9395_p11 }
  0x21   :  { %9405 = shalt.err (!%p9402_p1)
}
  0x22   :  { %s9438_s0 = smov 64   ;;  %s9439_s18 = smov 4  }
  0x23   :  { %56 = dma.hbm_to_vmem [thread:$0]  %s13529_s8, 1024, %s51_s13, [#allocation7], %s9438_s0, %s9438_s0, %s9439_s18  }
  0x24   :  { %9428 = dma.done.wait [#allocation4], 8192  }
  0x25   :  { %9429 = vsyncadd [#allocation4], 4294959104 }
  0x26   :  { %9430 = dma.done.wait [#allocation7], 1024  }
  0x27   :  { %9431 = vsyncadd [#allocation7], 4294966272  ;;  %v9440_v0 = vmov 0   ;;  %v7155_v1 = vld [vmem:[%s13530_s9 + $0x90] sm:$0xff]  ;;  %v7153_v2 = vld [vmem:[%s13530_s9 + $0x80] sm:$0xff] }
  0x28   :  { %9141 = vset.pattern.permute.xlu1 %v9440_v0  ;;  %9140 = vset.pattern.permute.xlu0 %v9440_v0  ;;  %v7156_v3 = vld [vmem:[%s13530_s9 + $0x98] sm:$0xff]  ;;  %v7154_v4 = vld [vmem:[%s13530_s9 + $0x88] sm:$0xff]  ;;  %v7157_v6 = vld [vmem:[%s13530_s9 + $0xa0] sm:$0xff] }
  0x29   :  { %775 = vperm.xlu1 %9141, %v7155_v1   ;;  %765 = vperm.xlu0 %9140, %v7153_v2   ;;  %v7158_v5 = vld [vmem:[%s13530_s9 + $0xa8] sm:$0xff]  ;;  %v7160_v7 = vld [vmem:[%s13530_s9 + $0xb8] sm:$0xff]  ;;  %v7159_v8 = vld [vmem:[%s13530_s9 + $0xb0] sm:$0xff] }
  0x2a   :  { %v7162_v9 = vld [vmem:[%s13530_s9 + $0xc8] sm:$0xff]  ;;  %v7161_v10 = vld [vmem:[%s13530_s9 + $0xc0] sm:$0xff]  ;;  %v7164_v11 = vld [vmem:[%s13530_s9 + $0xd8] sm:$0xff] }
  0x2b   :  { %v7163_v12 = vld [vmem:[%s13530_s9 + $0xd0] sm:$0xff]  ;;  %v68_v13 = vld [vmem:[#allocation3] sm:$0xff]  ;;  %v69_v14 = vld [vmem:[#allocation3 + $0x8] sm:$0xff] }
  0x2c   :  { %v7166_v15 = vld [vmem:[%s13530_s9 + $0xe8] sm:$0xff]  ;;  %v7165_v16 = vld [vmem:[%s13530_s9 + $0xe0] sm:$0xff]  ;;  %v70_v17 = vld [vmem:[#allocation3 + $0x10] sm:$0xff]  ;;  %v132_v18 = vadd.f32 %v69_v14, %v68_v13 }
  0x2d   :  { %780 = vperm.xlu1 %9141, %v7156_v3   ;;  %770 = vperm.xlu0 %9140, %v7154_v4   ;;  %v71_v19 = vld [vmem:[#allocation3 + $0x18] sm:$0xff]  ;;  %v72_v21 = vld [vmem:[#allocation3 + $0x20] sm:$0xff]  ;;  %v7167_v23 = vld [vmem:[%s13530_s9 + $0xf0] sm:$0xff] }
  0x2e   :  { %v133_v20 = vadd.f32 %v132_v18, %v70_v17  ;;  %v7168_v22 = vld [vmem:[%s13530_s9 + $0xf8] sm:$0xff]  ;;  %v73_v25 = vld [vmem:[#allocation3 + $0x28] sm:$0xff]  ;;  %v74_v27 = vld [vmem:[#allocation3 + $0x30] sm:$0xff] }
  0x2f   :  { %v514_v28 = vld [vmem:[%s13530_s9 + $0x8] sm:$0xff]  ;;  %v513_v29 = vld [vmem:[%s13530_s9] sm:$0xff]  ;;  %v75_v31 = vld [vmem:[#allocation3 + $0x38] sm:$0xff] }
  0x30   :  { %v134_v24 = vadd.f32 %v133_v20, %v71_v19  ;;  %v76_v33 = vld [vmem:[#allocation3 + $0x40] sm:$0xff]  ;;  %v516_v34 = vld [vmem:[%s13530_s9 + $0x18] sm:$0xff]  ;;  %v515_v35 = vld [vmem:[%s13530_s9 + $0x10] sm:$0xff] }
  0x31   :  { %790 = vperm.xlu1 %9141, %v7158_v5   ;;  %785 = vperm.xlu0 %9140, %v7157_v6   ;;  %v77_v37 = vld [vmem:[#allocation3 + $0x48] sm:$0xff]  ;;  %v78_v39 = vld [vmem:[#allocation3 + $0x50] sm:$0xff]  ;;  %v517_v41 = vld [vmem:[%s13530_s9 + $0x20] sm:$0xff] }
  0x32   :  { %v135_v26 = vadd.f32 %v134_v24, %v72_v21  ;;  %v518_v40 = vld [vmem:[%s13530_s9 + $0x28] sm:$0xff]  ;;  %v79_v43 = vld [vmem:[#allocation3 + $0x58] sm:$0xff]  ;;  %v80_v46 = vld [vmem:[#allocation3 + $0x60] sm:$0xff] }
  0x33   :  { %v520_v45 = vld [vmem:[%s13530_s9 + $0x38] sm:$0xff]  ;;  %v519_v47 = vld [vmem:[%s13530_s9 + $0x30] sm:$0xff]  ;;  %v81_v48 = vld [vmem:[#allocation3 + $0x68] sm:$0xff] }
  0x34   :  { %v136_v30 = vadd.f32 %v135_v26, %v73_v25  ;;  %v82_v50 = vld [vmem:[#allocation3 + $0x70] sm:$0xff]  ;;  %v522_v51 = vld [vmem:[%s13530_s9 + $0x48] sm:$0xff]  ;;  %v521_v52 = vld [vmem:[%s13530_s9 + $0x40] sm:$0xff] }
  0x35   :  { %800 = vperm.xlu1 %9141, %v7160_v7   ;;  %795 = vperm.xlu0 %9140, %v7159_v8   ;;  %v83_v54 = vld [vmem:[#allocation3 + $0x78] sm:$0xff]  ;;  %v523_v57 = vld [vmem:[%s13530_s9 + $0x50] sm:$0xff]  ;;  %v84_v59 = vld [vmem:[#allocation3 + $0x80] sm:$0xff] }
  0x36   :  { %v137_v32 = vadd.f32 %v136_v30, %v74_v27  ;;  %v524_v56 = vld [vmem:[%s13530_s9 + $0x58] sm:$0xff]  ;;  %v85_v60 = vld [vmem:[#allocation3 + $0x88] sm:$0xff]  ;;  %v525_v63 = vld [vmem:[%s13530_s9 + $0x60] sm:$0xff] }
  0x37   :  { %v526_v62 = vld [vmem:[%s13530_s9 + $0x68] sm:$0xff]  ;;  %v86_v1 = vld [vmem:[#allocation3 + $0x90] sm:$0xff]  ;;  %v87_v2 = vld [vmem:[#allocation3 + $0x98] sm:$0xff] }
  0x38   :  { %v138_v36 = vadd.f32 %v137_v32, %v75_v31  ;;  %v88_v4 = vld [vmem:[#allocation3 + $0xa0] sm:$0xff]  ;;  %v528_v5 = vld [vmem:[%s13530_s9 + $0x78] sm:$0xff]  ;;  %v527_v7 = vld [vmem:[%s13530_s9 + $0x70] sm:$0xff] }
  0x39   :  { %810 = vperm.xlu1 %9141, %v7162_v9   ;;  %805 = vperm.xlu0 %9140, %v7161_v10   ;;  %v89_v8 = vld [vmem:[#allocation3 + $0xa8] sm:$0xff]  ;;  %v90_v10 = vld [vmem:[#allocation3 + $0xb0] sm:$0xff]  ;;  %v7217_v13 = vld [vmem:[%s13530_s9 + $0x100] sm:$0xff] }
  0x3a   :  { %v139_v38 = vadd.f32 %v138_v36, %v76_v33  ;;  %v91_v14 = vld [vmem:[#allocation3 + $0xb8] sm:$0xff]  ;;  %v7219_v18 = vld [vmem:[%s13530_s9 + $0x110] sm:$0xff]  ;;  %v93_v20 = vld [vmem:[#allocation3 + $0xc8] sm:$0xff] }
  0x3b   :  { %v7220_v17 = vld [vmem:[%s13530_s9 + $0x118] sm:$0xff]  ;;  %v7221_v24 = vld [vmem:[%s13530_s9 + $0x120] sm:$0xff]  ;;  %v7223_v30 = vld [vmem:[%s13530_s9 + $0x130] sm:$0xff] }
  0x3c   :  { %v140_v42 = vadd.f32 %v139_v38, %v77_v37  ;;  %v95_v26 = vld [vmem:[#allocation3 + $0xd8] sm:$0xff]  ;;  %v97_v33 = vld [vmem:[#allocation3 + $0xe8] sm:$0xff]  ;;  %v7225_v36 = vld [vmem:[%s13530_s9 + $0x140] sm:$0xff] }
  0x3d   :  { %820 = vperm.xlu1 %9141, %v7164_v11   ;;  %815 = vperm.xlu0 %9140, %v7163_v12   ;;  %v7218_v11 = vld [vmem:[%s13530_s9 + $0x108] sm:$0xff]  ;;  %v99_v38 = vld [vmem:[#allocation3 + $0xf8] sm:$0xff] }
  0x3e   :  { %v141_v44 = vadd.f32 %v140_v42, %v78_v39  ;;  %v100_v42 = vld [vmem:[#allocation3 + $0x100] sm:$0xff] }
  0x40   :  { %v142_v49 = vadd.f32 %v141_v44, %v79_v43  ;;  %v101_v44 = vld [vmem:[#allocation3 + $0x108] sm:$0xff] }
  0x41   :  { %830 = vperm.xlu1 %9141, %v7166_v15   ;;  %825 = vperm.xlu0 %9140, %v7165_v16   ;;  %v92_v16 = vld [vmem:[#allocation3 + $0xc0] sm:$0xff] }
  0x42   :  { %v143_v53 = vadd.f32 %v142_v49, %v80_v46  ;;  %v7230_v46 = vld [vmem:[%s13530_s9 + $0x168] sm:$0xff]  ;;  %v102_v49 = vld [vmem:[#allocation3 + $0x110] sm:$0xff] }
  0x44   :  { %v144_v55 = vadd.f32 %v143_v53, %v81_v48  ;;  %v7232_v53 = vld [vmem:[%s13530_s9 + $0x178] sm:$0xff] }
  0x45   :  { %840 = vperm.xlu1 %9141, %v7168_v22   ;;  %835 = vperm.xlu0 %9140, %v7167_v23   ;;  %v94_v22 = vld [vmem:[#allocation3 + $0xd0] sm:$0xff]  ;;  %v7222_v23 = vld [vmem:[%s13530_s9 + $0x128] sm:$0xff] }
  0x46   :  { %v145_v58 = vadd.f32 %v144_v55, %v82_v50  ;;  %v103_v50 = vld [vmem:[#allocation3 + $0x118] sm:$0xff]  ;;  %v7231_v55 = vld [vmem:[%s13530_s9 + $0x170] sm:$0xff] }
  0x48   :  { %v146_v61 = vadd.f32 %v145_v58, %v83_v54  ;;  %v106_v58 = vld [vmem:[#allocation3 + $0x130] sm:$0xff] }
  0x49   :  { %536 = vperm.xlu1 %9141, %v514_v28   ;;  %531 = vperm.xlu0 %9140, %v513_v29   ;;  %v96_v28 = vld [vmem:[#allocation3 + $0xe0] sm:$0xff]  ;;  %v7224_v29 = vld [vmem:[%s13530_s9 + $0x138] sm:$0xff] }
  0x4a   :  { %v147_v0 = vadd.f32 %v146_v61, %v84_v59  ;;  %v7274_v59 = vld [vmem:[%s13530_s9 + $0x188] sm:$0xff] }
  0x4c   :  { %v148_v3 = vadd.f32 %v147_v0, %v85_v60  ;;  %v7273_v60 = vld [vmem:[%s13530_s9 + $0x180] sm:$0xff] }
  0x4d   :  { %546 = vperm.xlu1 %9141, %v516_v34   ;;  %541 = vperm.xlu0 %9140, %v515_v35   ;;  %v98_v34 = vld [vmem:[#allocation3 + $0xf0] sm:$0xff]  ;;  %v7226_v35 = vld [vmem:[%s13530_s9 + $0x148] sm:$0xff]  ;;  %v108_v0 = vld [vmem:[#allocation3 + $0x140] sm:$0xff] }
  0x4e   :  { %v149_v6 = vadd.f32 %v148_v3, %v86_v1  ;;  %v7276_v1 = vld [vmem:[%s13530_s9 + $0x198] sm:$0xff] }
  0x50   :  { %v150_v9 = vadd.f32 %v149_v6, %v87_v2  ;;  %v7275_v2 = vld [vmem:[%s13530_s9 + $0x190] sm:$0xff]  ;;  %v7278_v6 = vld [vmem:[%s13530_s9 + $0x1a8] sm:$0xff] }
  0x51   :  { %556 = vperm.xlu1 %9141, %v518_v40   ;;  %551 = vperm.xlu0 %9140, %v517_v41   ;;  %v7228_v40 = vld [vmem:[%s13530_s9 + $0x158] sm:$0xff]  ;;  %v7227_v41 = vld [vmem:[%s13530_s9 + $0x150] sm:$0xff] }
  0x52   :  { %v151_v12 = vadd.f32 %v150_v9, %v88_v4  ;;  %v109_v4 = vld [vmem:[#allocation3 + $0x148] sm:$0xff]  ;;  %v110_v9 = vld [vmem:[#allocation3 + $0x150] sm:$0xff] }
  0x54   :  { %v152_v15 = vadd.f32 %v151_v12, %v89_v8  ;;  %v112_v12 = vld [vmem:[#allocation3 + $0x160] sm:$0xff] }
  0x55   :  { %566 = vperm.xlu1 %9141, %v520_v45   ;;  %561 = vperm.xlu0 %9140, %v519_v47   ;;  %v7229_v47 = vld [vmem:[%s13530_s9 + $0x160] sm:$0xff] }
  0x56   :  { %v153_v19 = vadd.f32 %v152_v15, %v90_v10  ;;  %v111_v10 = vld [vmem:[#allocation3 + $0x158] sm:$0xff] }
  0x58   :  { %v154_v21 = vadd.f32 %v153_v19, %v91_v14  ;;  %v7279_v14 = vld [vmem:[%s13530_s9 + $0x1b0] sm:$0xff]  ;;  %v7282_v19 = vld [vmem:[%s13530_s9 + $0x1c8] sm:$0xff] }
  0x59   :  { %576 = vperm.xlu1 %9141, %v522_v51   ;;  %571 = vperm.xlu0 %9140, %v521_v52   ;;  %v104_v52 = vld [vmem:[#allocation3 + $0x120] sm:$0xff] }
  0x5a   :  { %v155_v25 = vadd.f32 %v154_v21, %v92_v16 }
  0x5c   :  { %v156_v27 = vadd.f32 %v155_v25, %v93_v20  ;;  %v7281_v20 = vld [vmem:[%s13530_s9 + $0x1c0] sm:$0xff]  ;;  %v7283_v25 = vld [vmem:[%s13530_s9 + $0x1d0] sm:$0xff] }
  0x5d   :  { %586 = vperm.xlu1 %9141, %v524_v56   ;;  %581 = vperm.xlu0 %9140, %v523_v57   ;;  %v105_v56 = vld [vmem:[#allocation3 + $0x128] sm:$0xff] }
  0x5e   :  { %v157_v31 = vadd.f32 %v156_v27, %v94_v22  ;;  %v115_v22 = vld [vmem:[#allocation3 + $0x178] sm:$0xff] }
  0x60   :  { %v158_v32 = vadd.f32 %v157_v31, %v95_v26  ;;  %v116_v26 = vld [vmem:[#allocation3 + $0x180] sm:$0xff]  ;;  %v7286_v31 = vld [vmem:[%s13530_s9 + $0x1e8] sm:$0xff] }
  0x61   :  { %596 = vperm.xlu1 %9141, %v526_v62   ;;  %591 = vperm.xlu0 %9140, %v525_v63   ;;  %v107_v62 = vld [vmem:[#allocation3 + $0x138] sm:$0xff] }
  0x62   :  { %v159_v37 = vadd.f32 %v158_v32, %v96_v28  ;;  %v117_v28 = vld [vmem:[#allocation3 + $0x188] sm:$0xff] }
  0x64   :  { %v160_v39 = vadd.f32 %v159_v37, %v97_v33  ;;  %v7285_v33 = vld [vmem:[%s13530_s9 + $0x1e0] sm:$0xff]  ;;  %v7288_v37 = vld [vmem:[%s13530_s9 + $0x1f8] sm:$0xff] }
  0x65   :  { %606 = vperm.xlu1 %9141, %v528_v5   ;;  %601 = vperm.xlu0 %9140, %v527_v7   ;;  %v7277_v7 = vld [vmem:[%s13530_s9 + $0x1a0] sm:$0xff] }
  0x66   :  { %v161_v43 = vadd.f32 %v160_v39, %v98_v34  ;;  %v9716_v34 = vld [vmem:[#allocation3 + $0x198] sm:$0xff] }
  0x68   :  { %v162_v45 = vadd.f32 %v161_v43, %v99_v38  ;;  %v7287_v38 = vld [vmem:[%s13530_s9 + $0x1f0] sm:$0xff] }
  0x69   :  { %1295 = vperm.xlu1 %9141, %v7218_v11   ;;  %1290 = vperm.xlu0 %9140, %v7217_v13   ;;  %v7280_v13 = vld [vmem:[%s13530_s9 + $0x1b8] sm:$0xff] }
  0x6a   :  { %v163_v48 = vadd.f32 %v162_v45, %v100_v42  ;;  %v9729_v42 = vld [vmem:[#allocation3 + $0x1b0] sm:$0xff]  ;;  %v7329_v45 = vld [vmem:[%s13530_s9 + $0x200] sm:$0xff] }
  0x6c   :  { %v164_v51 = vadd.f32 %v163_v48, %v101_v44  ;;  %v7330_v44 = vld [vmem:[%s13530_s9 + $0x208] sm:$0xff]  ;;  %v9741_v48 = vld [vmem:[#allocation3 + $0x1c0] sm:$0xff] }
  0x6d   :  { %1305 = vperm.xlu1 %9141, %v7220_v17   ;;  %1300 = vperm.xlu0 %9140, %v7219_v18   ;;  %v113_v17 = vld [vmem:[#allocation3 + $0x168] sm:$0xff]  ;;  %v114_v18 = vld [vmem:[#allocation3 + $0x170] sm:$0xff] }
  0x6e   :  { %v165_v54 = vadd.f32 %v164_v51, %v102_v49 }
  0x70   :  { %v166_v57 = vadd.f32 %v165_v54, %v103_v50  ;;  %v9754_v54 = vld [vmem:[#allocation3 + $0x1c8] sm:$0xff] }
  0x71   :  { %1315 = vperm.xlu1 %9141, %v7222_v23   ;;  %1310 = vperm.xlu0 %9140, %v7221_v24   ;;  %v7284_v24 = vld [vmem:[%s13530_s9 + $0x1d8] sm:$0xff] }
  0x72   :  { %v167_v61 = vadd.f32 %v166_v57, %v104_v52  ;;  %v7332_v52 = vld [vmem:[%s13530_s9 + $0x218] sm:$0xff] }
  0x74   :  { %v168_v63 = vadd.f32 %v167_v61, %v105_v56  ;;  %v9757_v56 = vld [vmem:[#allocation3 + $0x1d0] sm:$0xff] }
  0x75   :  { %1325 = vperm.xlu1 %9141, %v7224_v29   ;;  %1320 = vperm.xlu0 %9140, %v7223_v30   ;;  %v118_v30 = vld [vmem:[#allocation3 + $0x190] sm:$0xff] }
  0x76   :  { %v169_v3 = vadd.f32 %v168_v63, %v106_v58  ;;  %v7333_v63 = vld [vmem:[%s13530_s9 + $0x220] sm:$0xff] }
  0x78   :  { %v170_v5 = vadd.f32 %v169_v3, %v107_v62  ;;  %v7334_v62 = vld [vmem:[%s13530_s9 + $0x228] sm:$0xff]  ;;  %v7336_v3 = vld [vmem:[%s13530_s9 + $0x238] sm:$0xff] }
  0x79   :  { %1335 = vperm.xlu1 %9141, %v7226_v35   ;;  %1330 = vperm.xlu0 %9140, %v7225_v36   ;;  %v9718_v36 = vld [vmem:[#allocation3 + $0x1a0] sm:$0xff] }
  0x7a   :  { %v171_v8 = vadd.f32 %v170_v5, %v108_v0 }
  0x7c   :  { %v172_v11 = vadd.f32 %v171_v8, %v109_v4  ;;  %v7335_v4 = vld [vmem:[%s13530_s9 + $0x230] sm:$0xff] }
  0x7d   :  { %1345 = vperm.xlu1 %9141, %v7228_v40   ;;  %1340 = vperm.xlu0 %9140, %v7227_v41   ;;  %v9726_v40 = vld [vmem:[#allocation3 + $0x1a8] sm:$0xff] }
  0x7e   :  { %v173_v15 = vadd.f32 %v172_v11, %v110_v9  ;;  %v7338_v9 = vld [vmem:[%s13530_s9 + $0x248] sm:$0xff] }
  0x7f   :  { %v9797_v11 = vld [vmem:[#allocation3 + $0x1e8] sm:$0xff] }
  0x80   :  { %v174_v16 = vadd.f32 %v173_v15, %v111_v10  ;;  %v7337_v10 = vld [vmem:[%s13530_s9 + $0x240] sm:$0xff]  ;;  %v9804_v15 = vld [vmem:[#allocation3 + $0x1f0] sm:$0xff] }
  0x81   :  { %1355 = vperm.xlu1 %9141, %v7230_v46   ;;  %1350 = vperm.xlu0 %9140, %v7229_v47   ;;  %v9738_v46 = vld [vmem:[#allocation3 + $0x1b8] sm:$0xff] }
  0x82   :  { %v175_v21 = vadd.f32 %v174_v16, %v112_v12 }
  0x84   :  { %v176_v23 = vadd.f32 %v175_v21, %v113_v17  ;;  %v7340_v17 = vld [vmem:[%s13530_s9 + $0x258] sm:$0xff]  ;;  %v7342_v21 = vld [vmem:[%s13530_s9 + $0x268] sm:$0xff] }
  0x85   :  { %1365 = vperm.xlu1 %9141, %v7232_v53   ;;  %1360 = vperm.xlu0 %9140, %v7231_v55   ;;  %v7331_v53 = vld [vmem:[%s13530_s9 + $0x210] sm:$0xff] }
  0x86   :  { %v177_v27 = vadd.f32 %v176_v23, %v114_v18  ;;  %v7339_v18 = vld [vmem:[%s13530_s9 + $0x250] sm:$0xff]  ;;  %v9823_v23 = vld [vmem:[#allocation3 + $0x1f8] sm:$0xff] }
  0x88   :  { %v178_v29 = vadd.f32 %v177_v27, %v115_v22  ;;  %v7341_v22 = vld [vmem:[%s13530_s9 + $0x260] sm:$0xff]  ;;  %v7344_v27 = vld [vmem:[%s13530_s9 + $0x278] sm:$0xff] }
  0x89   :  { %1691 = vperm.xlu1 %9141, %v7274_v59   ;;  %1686 = vperm.xlu0 %9140, %v7273_v60   ;;  %v9764_v60 = vld [vmem:[#allocation3 + $0x1d8] sm:$0xff] }
  0x8a   :  { %v179_v32 = vadd.f32 %v178_v29, %v116_v26 }
  0x8c   :  { %v180_v35 = vadd.f32 %v179_v32, %v117_v28  ;;  %v7343_v28 = vld [vmem:[%s13530_s9 + $0x270] sm:$0xff] }
  0x8d   :  { %1701 = vperm.xlu1 %9141, %v7276_v1   ;;  %1696 = vperm.xlu0 %9140, %v7275_v2  }
  0x8e   :  { %v181_v39 = vadd.f32 %v180_v35, %v118_v30  ;;  %v7385_v35 = vld [vmem:[%s13530_s9 + $0x280] sm:$0xff] }
  0x90   :  { %v182_v41 = vadd.f32 %v181_v39, %v9716_v34 }
  0x91   :  { %1711 = vperm.xlu1 %9141, %v7278_v6   ;;  %1706 = vperm.xlu0 %9140, %v7277_v7   ;;  %v9785_v6 = vld [vmem:[#allocation3 + $0x1e0] sm:$0xff] }
  0x92   :  { %v183_v43 = vadd.f32 %v182_v41, %v9718_v36  ;;  %v7388_v41 = vld [vmem:[%s13530_s9 + $0x298] sm:$0xff] }
  0x94   :  { %v184_v47 = vadd.f32 %v183_v43, %v9726_v40  ;;  %v7387_v43 = vld [vmem:[%s13530_s9 + $0x290] sm:$0xff] }
  0x95   :  { %1721 = vperm.xlu1 %9141, %v7280_v13   ;;  %1716 = vperm.xlu0 %9140, %v7279_v14  }
  0x96   :  { %v185_v50 = vadd.f32 %v184_v47, %v9729_v42 }
  0x98   :  { %v186_v55 = vadd.f32 %v185_v50, %v9738_v46  ;;  %v7390_v50 = vld [vmem:[%s13530_s9 + $0x2a8] sm:$0xff] }
  0x99   :  { %1731 = vperm.xlu1 %9141, %v7282_v19   ;;  %1726 = vperm.xlu0 %9140, %v7281_v20  }
  0x9a   :  { %v187_v57 = vadd.f32 %v186_v55, %v9741_v48 }
  0x9c   :  { %v188_v61 = vadd.f32 %v187_v57, %v9754_v54 }
  0x9d   :  { %1741 = vperm.xlu1 %9141, %v7284_v24   ;;  %1736 = vperm.xlu0 %9140, %v7283_v25  }
  0x9e   :  { %v189_v0 = vadd.f32 %v188_v61, %v9757_v56  ;;  %v7392_v61 = vld [vmem:[%s13530_s9 + $0x2b8] sm:$0xff] }
  0xa0   :  { %v190_v5 = vadd.f32 %v189_v0, %v9764_v60 }
  0xa1   :  { %1751 = vperm.xlu1 %9141, %v7286_v31   ;;  %1746 = vperm.xlu0 %9140, %v7285_v33   ;;  %v7386_v33 = vld [vmem:[%s13530_s9 + $0x288] sm:$0xff] }
  0xa2   :  { %v191_v12 = vadd.f32 %v190_v5, %v9785_v6  ;;  %v7393_v5 = vld [vmem:[%s13530_s9 + $0x2c0] sm:$0xff] }
  0xa4   :  { %v192_v16 = vadd.f32 %v191_v12, %v9797_v11 }
  0xa5   :  { %1761 = vperm.xlu1 %9141, %v7288_v37   ;;  %1756 = vperm.xlu0 %9140, %v7287_v38  }
  0xa6   :  { %v193_v24 = vadd.f32 %v192_v16, %v9804_v15  ;;  %v7396_v16 = vld [vmem:[%s13530_s9 + $0x2d8] sm:$0xff] }
  0xa8   :  { %v9743_v49 = vpop.permute.xlu1 %775  ;;  %v9746_v51 = vpop.permute.xlu0 %765  ;;  %v194_v29 = vadd.f32 %v193_v24, %v9823_v23  ;;  %v7398_v24 = vld [vmem:[%s13530_s9 + $0x2e8] sm:$0xff] }
  0xa9   :  { %2087 = vperm.xlu1 %9141, %v7330_v44   ;;  %2082 = vperm.xlu0 %9140, %v7329_v45  }
  0xaa   :  { %v195_v32 = vrot.slane %v194_v29, 4 }
  0xac   :  { %v9760_v58 = vpop.permute.xlu1 %780  ;;  %v9762_v59 = vpop.permute.xlu0 %770  ;;  %v196_v39 = vadd.f32 %v195_v32, %v194_v29  ;;  %v9298_v32 = vld [vmem:[#allocation3] sm:$0xff] }
  0xad   :  { %2097 = vperm.xlu1 %9141, %v7332_v52   ;;  %2092 = vperm.xlu0 %9140, %v7331_v53   ;;  %v7389_v52 = vld [vmem:[%s13530_s9 + $0x2a0] sm:$0xff] }
  0xae   :  { %v197_v47 = vrot.slane %v196_v39, 2 }
  0xb0   :  { %v9774_v1 = vpop.permute.xlu1 %790  ;;  %v9776_v2 = vpop.permute.xlu0 %785  ;;  %v198_v57 = vadd.f32 %v197_v47, %v196_v39  ;;  %v9300_v47 = vld [vmem:[#allocation3 + $0x10] sm:$0xff] }
  0xb1   :  { %2107 = vperm.xlu1 %9141, %v7334_v62   ;;  %2102 = vperm.xlu0 %9140, %v7333_v63   ;;  %v7391_v62 = vld [vmem:[%s13530_s9 + $0x2b0] sm:$0xff] }
  0xb4   :  { %v9787_v7 = vpop.permute.xlu1 %800  ;;  %v9789_v8 = vpop.permute.xlu0 %795 }
  0xb5   :  { %2117 = vperm.xlu1 %9141, %v7336_v3   ;;  %2112 = vperm.xlu0 %9140, %v7335_v4   ;;  %v199_v3 = vrot.slane %v198_v57, 1  ;;  %v7394_v4 = vld [vmem:[%s13530_s9 + $0x2c8] sm:$0xff] }
  0xb7   :  { %v200_v12 = vadd.f32 %v199_v3, %v198_v57 }
  0xb8   :  { %v9800_v13 = vpop.permute.xlu1 %810  ;;  %v9802_v14 = vpop.permute.xlu0 %805 }
  0xb9   :  { %2127 = vperm.xlu1 %9141, %v7338_v9   ;;  %2122 = vperm.xlu0 %9140, %v7337_v10  }
  0xbc   :  { %v9813_v19 = vpop.permute.xlu1 %820  ;;  %v9815_v20 = vpop.permute.xlu0 %815 }
  0xbd   :  { %2137 = vperm.xlu1 %9141, %v7340_v17   ;;  %2132 = vperm.xlu0 %9140, %v7339_v18   ;;  %v7395_v17 = vld [vmem:[%s13530_s9 + $0x2d0] sm:$0xff] }
  0xc0   :  { %v9826_v25 = vpop.permute.xlu1 %830  ;;  %v9828_v26 = vpop.permute.xlu0 %825 }
  0xc1   :  { %2147 = vperm.xlu1 %9141, %v7342_v21   ;;  %2142 = vperm.xlu0 %9140, %v7341_v22   ;;  %v9901_v22 = vmul.f32 0.001953125, %v200_v12  ;;  %v7441_v12 = vld [vmem:[%s13530_s9 + $0x300] sm:$0xff] }
  0xc4   :  { %v9837_v30 = vpop.permute.xlu1 %840  ;;  %v9839_v31 = vpop.permute.xlu0 %835 }
  0xc5   :  { %2157 = vperm.xlu1 %9141, %v7344_v27   ;;  %2152 = vperm.xlu0 %9140, %v7343_v28   ;;  %v7397_v27 = vld [vmem:[%s13530_s9 + $0x2e0] sm:$0xff] }
  0xc8   :  { %v9847_v37 = vpop.permute.xlu1 %536  ;;  %v9849_v38 = vpop.permute.xlu0 %531 }
  0xc9   :  { %2499 = vperm.xlu1 %9141, %v7386_v33   ;;  %2494 = vperm.xlu0 %9140, %v7385_v35   ;;  %v203_v33 = vsub.f32 %v9298_v32, %v9901_v22  ;;  %v9299_v35 = vld [vmem:[#allocation3 + $0x8] sm:$0xff] }
  0xca   :  { %v204_v39 = vsub.f32 %v9299_v35, %v9901_v22 }
  0xcb   :  { %v267_v3 = vmul.f32 %v203_v33, %v203_v33  ;;  %v9303_v33 = vld [vmem:[#allocation3 + $0x28] sm:$0xff] }
  0xcc   :  { %v9857_v44 = vpop.permute.xlu1 %546  ;;  %v9859_v45 = vpop.permute.xlu0 %541  ;;  %v208_v35 = vsub.f32 %v9303_v33, %v9901_v22  ;;  %v7446_v33 = vld [vmem:[%s13530_s9 + $0x328] sm:$0xff] }
  0xcd   :  { %2509 = vperm.xlu1 %9141, %v7388_v41   ;;  %2504 = vperm.xlu0 %9140, %v7387_v43   ;;  %v7400_v41 = vld [vmem:[%s13530_s9 + $0x2f8] sm:$0xff]  ;;  %v7399_v43 = vld [vmem:[%s13530_s9 + $0x2f0] sm:$0xff] }
  0xd0   :  { %v9867_v53 = vpop.permute.xlu1 %556  ;;  %v9869_v55 = vpop.permute.xlu0 %551 }
  0xd1   :  { %2519 = vperm.xlu1 %9141, %v7390_v50   ;;  %2514 = vperm.xlu0 %9140, %v7389_v52   ;;  %v205_v50 = vsub.f32 %v9300_v47, %v9901_v22  ;;  %v7443_v47 = vld [vmem:[%s13530_s9 + $0x310] sm:$0xff] }
  0xd4   :  { %v9877_v63 = vpop.permute.xlu1 %566  ;;  %v9879_v0 = vpop.permute.xlu0 %561 }
  0xd5   :  { %2529 = vperm.xlu1 %9141, %v7392_v61   ;;  %2524 = vperm.xlu0 %9140, %v7391_v62   ;;  %v9301_v61 = vld [vmem:[#allocation3 + $0x18] sm:$0xff] }
  0xd6   :  { %v206_v62 = vsub.f32 %v9301_v61, %v9901_v22 }
  0xd8   :  { %v9887_v9 = vpop.permute.xlu1 %576  ;;  %v9889_v10 = vpop.permute.xlu0 %571 }
  0xd9   :  { %2539 = vperm.xlu1 %9141, %v7394_v4   ;;  %2534 = vperm.xlu0 %9140, %v7393_v5   ;;  %v268_v4 = vmul.f32 %v204_v39, %v204_v39  ;;  %v7442_v5 = vld [vmem:[%s13530_s9 + $0x308] sm:$0xff]  ;;  %v270_v39 = vmul.f32 %v206_v62, %v206_v62  ;;  %v9305_v62 = vld [vmem:[#allocation3 + $0x38] sm:$0xff] }
  0xdc   :  { %v9897_v18 = vpop.permute.xlu1 %586  ;;  %v9899_v21 = vpop.permute.xlu0 %581 }
  0xdd   :  { %2549 = vperm.xlu1 %9141, %v7396_v16   ;;  %2544 = vperm.xlu0 %9140, %v7395_v17   ;;  %v9302_v16 = vld [vmem:[#allocation3 + $0x20] sm:$0xff] }
  0xde   :  { %v207_v17 = vsub.f32 %v9302_v16, %v9901_v22 }
  0xe0   :  { %v9909_v28 = vpop.permute.xlu1 %596  ;;  %v9911_v29 = vpop.permute.xlu0 %591  ;;  %v271_v16 = vmul.f32 %v207_v17, %v207_v17  ;;  %v7445_v17 = vld [vmem:[%s13530_s9 + $0x320] sm:$0xff] }
  0xe1   :  { %13583 = vst [vmem:[#allocation12_spill] sm:$0xff] %v9909_v28  ;;  %13584 = vst [vmem:[#allocation13_spill] sm:$0xff] %v9911_v29  ;;  %2559 = vperm.xlu1 %9141, %v7398_v24   ;;  %2554 = vperm.xlu0 %9140, %v7397_v27   ;;  %v269_v24 = vmul.f32 %v205_v50, %v205_v50  ;;  %v9304_v50 = vld [vmem:[#allocation3 + $0x30] sm:$0xff]  ;;  %v9333_v28 = vld [vmem:[#allocation3 + $0x118] sm:$0xff] }
  0xe2   :  { %v209_v61 = vsub.f32 %v9304_v50, %v9901_v22 }
  0xe4   :  { %v9922_v52 = vpop.permute.xlu1 %606  ;;  %v9924_v57 = vpop.permute.xlu0 %601  ;;  %v273_v50 = vmul.f32 %v209_v61, %v209_v61  ;;  %v7447_v61 = vld [vmem:[%s13530_s9 + $0x330] sm:$0xff] }
  0xe5   :  { %13585 = vst [vmem:[#allocation14_spill] sm:$0xff] %v9922_v52  ;;  %13586 = vst [vmem:[#allocation15_spill] sm:$0xff] %v9924_v57  ;;  %2569 = vperm.xlu1 %9141, %v7400_v41   ;;  %2564 = vperm.xlu0 %9140, %v7399_v43   ;;  %v331_v41 = vadd.f32 %v268_v4, %v267_v3  ;;  %v7444_v43 = vld [vmem:[%s13530_s9 + $0x318] sm:$0xff]  ;;  %v210_v3 = vsub.f32 %v9305_v62, %v9901_v22 }
  0xe6   :  { %v272_v4 = vmul.f32 %v208_v35, %v208_v35  ;;  %v7448_v62 = vld [vmem:[%s13530_s9 + $0x338] sm:$0xff] }
  0xe8   :  { %v9934_v27 = vpop.permute.xlu1 %1295  ;;  %v9936_v32 = vpop.permute.xlu0 %1290 }
  0xe9   :  { %13587 = vst [vmem:[#allocation16_spill] sm:$0xff] %v9934_v27  ;;  %13588 = vst [vmem:[#allocation17_spill] sm:$0xff] %v9936_v32  ;;  %2895 = vperm.xlu1 %9141, %v7442_v5   ;;  %2890 = vperm.xlu0 %9140, %v7441_v12   ;;  %v332_v32 = vadd.f32 %v331_v41, %v269_v24  ;;  %v9306_v24 = vld [vmem:[#allocation3 + $0x40] sm:$0xff] }
  0xea   :  { %v211_v41 = vsub.f32 %v9306_v24, %v9901_v22 }
  0xeb   :  { %v333_v12 = vadd.f32 %v332_v32, %v270_v39  ;;  %v9307_v32 = vld [vmem:[#allocation3 + $0x48] sm:$0xff]  ;;  %v274_v39 = vmul.f32 %v210_v3, %v210_v3 }
  0xec   :  { %v9946_v5 = vpop.permute.xlu1 %1305  ;;  %v9948_v27 = vpop.permute.xlu0 %1300  ;;  %v212_v35 = vsub.f32 %v9307_v32, %v9901_v22  ;;  %v275_v24 = vmul.f32 %v211_v41, %v211_v41  ;;  %v7450_v32 = vld [vmem:[%s13530_s9 + $0x348] sm:$0xff]  ;;  %v7449_v41 = vld [vmem:[%s13530_s9 + $0x340] sm:$0xff] }
  0xed   :  { %13589 = vst [vmem:[#allocation18_spill] sm:$0xff] %v9946_v5  ;;  %13590 = vst [vmem:[#allocation19_spill] sm:$0xff] %v9948_v27  ;;  %2905 = vperm.xlu1 %9141, %v7444_v43   ;;  %2900 = vperm.xlu0 %9140, %v7443_v47   ;;  %v334_v27 = vadd.f32 %v333_v12, %v271_v16  ;;  %v9308_v16 = vld [vmem:[#allocation3 + $0x50] sm:$0xff] }
  0xee   :  { %v213_v12 = vsub.f32 %v9308_v16, %v9901_v22 }
  0xef   :  { %v335_v47 = vadd.f32 %v334_v27, %v272_v4  ;;  %v9309_v27 = vld [vmem:[#allocation3 + $0x58] sm:$0xff]  ;;  %v276_v4 = vmul.f32 %v212_v35, %v212_v35 }
  0xf0   :  { %v9958_v43 = vpop.permute.xlu1 %1315  ;;  %v9960_v5 = vpop.permute.xlu0 %1310  ;;  %v214_v3 = vsub.f32 %v9309_v27, %v9901_v22  ;;  %v277_v16 = vmul.f32 %v213_v12, %v213_v12  ;;  %v7452_v27 = vld [vmem:[%s13530_s9 + $0x358] sm:$0xff]  ;;  %v7451_v12 = vld [vmem:[%s13530_s9 + $0x350] sm:$0xff] }
  0xf1   :  { %13591 = vst [vmem:[#allocation20_spill] sm:$0xff] %v9958_v43  ;;  %13592 = vst [vmem:[#allocation21_spill] sm:$0xff] %v9960_v5  ;;  %2915 = vperm.xlu1 %9141, %v7446_v33   ;;  %2910 = vperm.xlu0 %9140, %v7445_v17   ;;  %v336_v5 = vadd.f32 %v335_v47, %v273_v50  ;;  %v9310_v50 = vld [vmem:[#allocation3 + $0x60] sm:$0xff] }
  0xf2   :  { %v215_v47 = vsub.f32 %v9310_v50, %v9901_v22 }
  0xf3   :  { %v337_v17 = vadd.f32 %v336_v5, %v274_v39  ;;  %v9311_v5 = vld [vmem:[#allocation3 + $0x68] sm:$0xff]  ;;  %v278_v39 = vmul.f32 %v214_v3, %v214_v3 }
  0xf4   :  { %v9970_v33 = vpop.permute.xlu1 %1325  ;;  %v9972_v43 = vpop.permute.xlu0 %1320  ;;  %v216_v35 = vsub.f32 %v9311_v5, %v9901_v22  ;;  %v279_v50 = vmul.f32 %v215_v47, %v215_v47  ;;  %v7454_v5 = vld [vmem:[%s13530_s9 + $0x368] sm:$0xff]  ;;  %v7453_v47 = vld [vmem:[%s13530_s9 + $0x360] sm:$0xff] }
  0xf5   :  { %13593 = vst [vmem:[#allocation22_spill] sm:$0xff] %v9970_v33  ;;  %13594 = vst [vmem:[#allocation23_spill] sm:$0xff] %v9972_v43  ;;  %2925 = vperm.xlu1 %9141, %v7448_v62   ;;  %2920 = vperm.xlu0 %9140, %v7447_v61   ;;  %v338_v43 = vadd.f32 %v337_v17, %v275_v24  ;;  %v9312_v24 = vld [vmem:[#allocation3 + $0x70] sm:$0xff] }
  0xf6   :  { %v217_v17 = vsub.f32 %v9312_v24, %v9901_v22 }
  0xf7   :  { %v339_v61 = vadd.f32 %v338_v43, %v276_v4  ;;  %v9313_v43 = vld [vmem:[#allocation3 + $0x78] sm:$0xff]  ;;  %v280_v4 = vmul.f32 %v216_v35, %v216_v35 }
  0xf8   :  { %v9982_v62 = vpop.permute.xlu1 %1335  ;;  %v9984_v33 = vpop.permute.xlu0 %1330  ;;  %v218_v3 = vsub.f32 %v9313_v43, %v9901_v22  ;;  %v281_v24 = vmul.f32 %v217_v17, %v217_v17  ;;  %v7456_v43 = vld [vmem:[%s13530_s9 + $0x378] sm:$0xff]  ;;  %v7455_v17 = vld [vmem:[%s13530_s9 + $0x370] sm:$0xff] }
  0xf9   :  { %13595 = vst [vmem:[#allocation24_spill] sm:$0xff] %v9982_v62  ;;  %13596 = vst [vmem:[#allocation25_spill] sm:$0xff] %v9984_v33  ;;  %2935 = vperm.xlu1 %9141, %v7450_v32   ;;  %2930 = vperm.xlu0 %9140, %v7449_v41   ;;  %v340_v33 = vadd.f32 %v339_v61, %v277_v16  ;;  %v9314_v16 = vld [vmem:[#allocation3 + $0x80] sm:$0xff] }
  0xfa   :  { %v219_v61 = vsub.f32 %v9314_v16, %v9901_v22 }
  0xfb   :  { %v341_v41 = vadd.f32 %v340_v33, %v278_v39  ;;  %v9315_v33 = vld [vmem:[#allocation3 + $0x88] sm:$0xff]  ;;  %v282_v39 = vmul.f32 %v218_v3, %v218_v3 }
  0xfc   :  { %v9994_v32 = vpop.permute.xlu1 %1345  ;;  %v9996_v62 = vpop.permute.xlu0 %1340  ;;  %v220_v35 = vsub.f32 %v9315_v33, %v9901_v22  ;;  %v283_v16 = vmul.f32 %v219_v61, %v219_v61  ;;  %v7498_v33 = vld [vmem:[%s13530_s9 + $0x388] sm:$0xff]  ;;  %v7497_v61 = vld [vmem:[%s13530_s9 + $0x380] sm:$0xff] }
  0xfd   :  { %13597 = vst [vmem:[#allocation26_spill] sm:$0xff] %v9994_v32  ;;  %13598 = vst [vmem:[#allocation27_spill] sm:$0xff] %v9996_v62  ;;  %2945 = vperm.xlu1 %9141, %v7452_v27   ;;  %2940 = vperm.xlu0 %9140, %v7451_v12   ;;  %v342_v62 = vadd.f32 %v341_v41, %v279_v50  ;;  %v9316_v50 = vld [vmem:[#allocation3 + $0x90] sm:$0xff] }
  0xfe   :  { %v221_v41 = vsub.f32 %v9316_v50, %v9901_v22 }
  0xff   :  { %v343_v12 = vadd.f32 %v342_v62, %v280_v4  ;;  %v9317_v62 = vld [vmem:[#allocation3 + $0x98] sm:$0xff]  ;;  %v284_v4 = vmul.f32 %v220_v35, %v220_v35 }
 0x100   :  { %v10006_v27 = vpop.permute.xlu1 %1355  ;;  %v10008_v32 = vpop.permute.xlu0 %1350  ;;  %v222_v3 = vsub.f32 %v9317_v62, %v9901_v22  ;;  %v285_v50 = vmul.f32 %v221_v41, %v221_v41  ;;  %v7500_v62 = vld [vmem:[%s13530_s9 + $0x398] sm:$0xff]  ;;  %v7499_v41 = vld [vmem:[%s13530_s9 + $0x390] sm:$0xff] }
 0x101   :  { %13599 = vst [vmem:[#allocation28_spill] sm:$0xff] %v10006_v27  ;;  %13600 = vst [vmem:[#allocation29_spill] sm:$0xff] %v10008_v32  ;;  %2955 = vperm.xlu1 %9141, %v7454_v5   ;;  %2950 = vperm.xlu0 %9140, %v7453_v47   ;;  %v344_v32 = vadd.f32 %v343_v12, %v281_v24  ;;  %v9318_v24 = vld [vmem:[#allocation3 + $0xa0] sm:$0xff] }
 0x102   :  { %v223_v12 = vsub.f32 %v9318_v24, %v9901_v22 }
 0x103   :  { %v345_v47 = vadd.f32 %v344_v32, %v282_v39  ;;  %v9319_v32 = vld [vmem:[#allocation3 + $0xa8] sm:$0xff]  ;;  %v286_v39 = vmul.f32 %v222_v3, %v222_v3 }
 0x104   :  { %v10018_v5 = vpop.permute.xlu1 %1365  ;;  %v10020_v27 = vpop.permute.xlu0 %1360  ;;  %v224_v35 = vsub.f32 %v9319_v32, %v9901_v22  ;;  %v287_v24 = vmul.f32 %v223_v12, %v223_v12  ;;  %v7502_v32 = vld [vmem:[%s13530_s9 + $0x3a8] sm:$0xff]  ;;  %v7501_v12 = vld [vmem:[%s13530_s9 + $0x3a0] sm:$0xff] }
 0x105   :  { %13601 = vst [vmem:[#allocation30_spill] sm:$0xff] %v10018_v5  ;;  %13602 = vst [vmem:[#allocation31_spill] sm:$0xff] %v10020_v27  ;;  %2965 = vperm.xlu1 %9141, %v7456_v43   ;;  %2960 = vperm.xlu0 %9140, %v7455_v17   ;;  %v346_v27 = vadd.f32 %v345_v47, %v283_v16  ;;  %v9320_v16 = vld [vmem:[#allocation3 + $0xb0] sm:$0xff] }
 0x106   :  { %v225_v47 = vsub.f32 %v9320_v16, %v9901_v22 }
 0x107   :  { %v347_v17 = vadd.f32 %v346_v27, %v284_v4  ;;  %v9321_v27 = vld [vmem:[#allocation3 + $0xb8] sm:$0xff]  ;;  %v288_v4 = vmul.f32 %v224_v35, %v224_v35 }
 0x108   :  { %v10030_v43 = vpop.permute.xlu1 %1691  ;;  %v10032_v5 = vpop.permute.xlu0 %1686  ;;  %v226_v3 = vsub.f32 %v9321_v27, %v9901_v22  ;;  %v289_v16 = vmul.f32 %v225_v47, %v225_v47  ;;  %v7503_v47 = vld [vmem:[%s13530_s9 + $0x3b0] sm:$0xff] }
 0x109   :  { %13603 = vst [vmem:[#allocation32_spill] sm:$0xff] %v10030_v43  ;;  %13604 = vst [vmem:[#allocation33_spill] sm:$0xff] %v10032_v5  ;;  %3291 = vperm.xlu1 %9141, %v7498_v33   ;;  %3286 = vperm.xlu0 %9140, %v7497_v61   ;;  %v348_v5 = vadd.f32 %v347_v17, %v285_v50  ;;  %v9322_v50 = vld [vmem:[#allocation3 + $0xc0] sm:$0xff] }
 0x10a   :  { %v227_v17 = vsub.f32 %v9322_v50, %v9901_v22  ;;  %v290_v35 = vmul.f32 %v226_v3, %v226_v3 }
 0x10b   :  { %v349_v61 = vadd.f32 %v348_v5, %v286_v39 }
 0x10c   :  { %v10042_v33 = vpop.permute.xlu1 %1701  ;;  %v10044_v43 = vpop.permute.xlu0 %1696 }
 0x10d   :  { %13605 = vst [vmem:[#allocation34_spill] sm:$0xff] %v10042_v33  ;;  %13606 = vst [vmem:[#allocation35_spill] sm:$0xff] %v10044_v43  ;;  %3301 = vperm.xlu1 %9141, %v7500_v62   ;;  %3296 = vperm.xlu0 %9140, %v7499_v41   ;;  %v350_v43 = vadd.f32 %v349_v61, %v287_v24  ;;  %v9323_v62 = vld [vmem:[#allocation3 + $0xc8] sm:$0xff]  ;;  %v7504_v33 = vld [vmem:[%s13530_s9 + $0x3b8] sm:$0xff] }
 0x10e   :  { %v228_v27 = vsub.f32 %v9323_v62, %v9901_v22  ;;  %v9324_v24 = vld [vmem:[#allocation3 + $0xd0] sm:$0xff] }
 0x10f   :  { %v351_v5 = vadd.f32 %v350_v43, %v288_v4  ;;  %v229_v61 = vsub.f32 %v9324_v24, %v9901_v22  ;;  %v9325_v43 = vld [vmem:[#allocation3 + $0xd8] sm:$0xff] }
 0x110   :  { %v10055_v39 = vpop.permute.xlu1 %1711  ;;  %v10057_v41 = vpop.permute.xlu0 %1706  ;;  %v230_v3 = vsub.f32 %v9325_v43, %v9901_v22  ;;  %v292_v4 = vmul.f32 %v228_v27, %v228_v27  ;;  %v9327_v27 = vld [vmem:[#allocation3 + $0xe8] sm:$0xff]  ;;  %v7508_v43 = vld [vmem:[%s13530_s9 + $0x3d8] sm:$0xff] }
 0x111   :  { %3311 = vperm.xlu1 %9141, %v7502_v32   ;;  %13607 = vst [vmem:[#allocation36_spill] sm:$0xff] %v10055_v39  ;;  %13608 = vst [vmem:[#allocation37_spill] sm:$0xff] %v10057_v41  ;;  %3306 = vperm.xlu0 %9140, %v7501_v12   ;;  %v291_v32 = vmul.f32 %v227_v17, %v227_v17  ;;  %v352_v50 = vadd.f32 %v351_v5, %v289_v16  ;;  %v7506_v12 = vld [vmem:[%s13530_s9 + $0x3c8] sm:$0xff]  ;;  %v7505_v41 = vld [vmem:[%s13530_s9 + $0x3c0] sm:$0xff] }
 0x112   :  { %v9326_v39 = vld [vmem:[#allocation3 + $0xe0] sm:$0xff]  ;;  %v293_v17 = vmul.f32 %v229_v61, %v229_v61  ;;  %v9328_v61 = vld [vmem:[#allocation3 + $0xf0] sm:$0xff] }
 0x113   :  { %v353_v62 = vadd.f32 %v352_v50, %v290_v35  ;;  %v231_v24 = vsub.f32 %v9326_v39, %v9901_v22  ;;  %v232_v35 = vsub.f32 %v9327_v27, %v9901_v22  ;;  %v7507_v39 = vld [vmem:[%s13530_s9 + $0x3d0] sm:$0xff] }
 0x114   :  { %v10076_v5 = vpop.permute.xlu0 %1716 }
 0x115   :  { %3321 = vperm.xlu1 %9141, %v7504_v33   ;;  %3316 = vperm.xlu0 %9140, %v7503_v47   ;;  %v354_v16 = vadd.f32 %v353_v62, %v291_v32  ;;  %v10074_v33 = vpop.permute.xlu1 %1721  ;;  %13610 = vst [vmem:[#allocation39_spill] sm:$0xff] %v10076_v5  ;;  %v294_v47 = vmul.f32 %v230_v3, %v230_v3 }
 0x116   :  { %13609 = vst [vmem:[#allocation38_spill] sm:$0xff] %v10074_v33  ;;  %v233_v32 = vsub.f32 %v9328_v61, %v9901_v22  ;;  %v295_v62 = vmul.f32 %v231_v24, %v231_v24  ;;  %v296_v3 = vmul.f32 %v232_v35, %v232_v35  ;;  %v7510_v33 = vld [vmem:[%s13530_s9 + $0x3e8] sm:$0xff]  ;;  %v7509_v24 = vld [vmem:[%s13530_s9 + $0x3e0] sm:$0xff] }
 0x117   :  { %v355_v50 = vadd.f32 %v354_v16, %v292_v4 }
 0x118   :  { %v10089_v16 = vpop.permute.xlu0 %1726 }
 0x119   :  { %3331 = vperm.xlu1 %9141, %v7506_v12   ;;  %3326 = vperm.xlu0 %9140, %v7505_v41   ;;  %v356_v5 = vadd.f32 %v355_v50, %v293_v17  ;;  %v9329_v12 = vld [vmem:[#allocation3 + $0xf8] sm:$0xff]  ;;  %v10087_v41 = vpop.permute.xlu1 %1731  ;;  %13612 = vst [vmem:[#allocation41_spill] sm:$0xff] %v10089_v16  ;;  %v9330_v17 = vld [vmem:[#allocation3 + $0x100] sm:$0xff] }
 0x11a   :  { %v234_v27 = vsub.f32 %v9329_v12, %v9901_v22  ;;  %13611 = vst [vmem:[#allocation40_spill] sm:$0xff] %v10087_v41  ;;  %v235_v50 = vsub.f32 %v9330_v17, %v9901_v22 }
 0x11b   :  { %v357_v4 = vadd.f32 %v356_v5, %v294_v47  ;;  %v9331_v5 = vld [vmem:[#allocation3 + $0x108] sm:$0xff] }
 0x11c   :  { %v236_v35 = vsub.f32 %v9331_v5, %v9901_v22  ;;  %v298_v47 = vmul.f32 %v234_v27, %v234_v27  ;;  %v299_v41 = vmul.f32 %v235_v50, %v235_v50  ;;  %v10102_v29 = vpop.permute.xlu0 %1736  ;;  %v7512_v27 = vld [vmem:[%s13530_s9 + $0x3f8] sm:$0xff] }
 0x11d   :  { %3341 = vperm.xlu1 %9141, %v7508_v43   ;;  %3336 = vperm.xlu0 %9140, %v7507_v39   ;;  %v297_v43 = vmul.f32 %v233_v32, %v233_v32  ;;  %v358_v61 = vadd.f32 %v357_v4, %v295_v62  ;;  %v9332_v39 = vld [vmem:[#allocation3 + $0x110] sm:$0xff]  ;;  %v10100_v52 = vpop.permute.xlu1 %1741  ;;  %13614 = vst [vmem:[#allocation43_spill] sm:$0xff] %v10102_v29  ;;  %v9334_v4 = vld [vmem:[#allocation3 + $0x120] sm:$0xff] }
 0x11e   :  { %v237_v16 = vsub.f32 %v9332_v39, %v9901_v22  ;;  %13613 = vst [vmem:[#allocation42_spill] sm:$0xff] %v10100_v52  ;;  %v238_v32 = vsub.f32 %v9333_v28, %v9901_v22  ;;  %v300_v62 = vmul.f32 %v236_v35, %v236_v35  ;;  %v9337_v52 = vld [vmem:[#allocation3 + $0x138] sm:$0xff] }
 0x11f   :  { %v359_v12 = vadd.f32 %v358_v61, %v296_v3  ;;  %v7511_v3 = vld [vmem:[%s13530_s9 + $0x3f0] sm:$0xff] }
 0x120   :  { %v301_v17 = vmul.f32 %v237_v16, %v237_v16  ;;  %v302_v61 = vmul.f32 %v238_v32, %v238_v32  ;;  %v10115_v35 = vpop.permute.xlu0 %1746  ;;  %v242_v16 = vsub.f32 %v9337_v52, %v9901_v22  ;;  %v7553_v32 = vld [vmem:[%s13530_s9 + $0x400] sm:$0xff] }
 0x121   :  { %3351 = vperm.xlu1 %9141, %v7510_v33   ;;  %3346 = vperm.xlu0 %9140, %v7509_v24   ;;  %v360_v57 = vadd.f32 %v359_v12, %v297_v43  ;;  %v239_v24 = vsub.f32 %v9334_v4, %v9901_v22  ;;  %v9335_v43 = vld [vmem:[#allocation3 + $0x128] sm:$0xff]  ;;  %v10113_v5 = vpop.permute.xlu1 %1751  ;;  %13615 = vst [vmem:[#allocation44_spill] sm:$0xff] %v10115_v35 }
 0x122   :  { %v240_v28 = vsub.f32 %v9335_v43, %v9901_v22  ;;  %v306_v43 = vmul.f32 %v242_v16, %v242_v16 }
 0x123   :  { %v361_v33 = vadd.f32 %v360_v57, %v298_v47  ;;  %v9336_v47 = vld [vmem:[#allocation3 + $0x130] sm:$0xff]  ;;  %v303_v39 = vmul.f32 %v239_v24, %v239_v24 }
 0x124   :  { %v241_v12 = vsub.f32 %v9336_v47, %v9901_v22 }
 0x125   :  { %v362_v50 = vadd.f32 %v361_v33, %v299_v41  ;;  %3361 = vperm.xlu1 %9141, %v7512_v27   ;;  %3356 = vperm.xlu0 %9140, %v7511_v3   ;;  %v304_v41 = vmul.f32 %v240_v28, %v240_v28  ;;  %v7554_v27 = vld [vmem:[%s13530_s9 + $0x408] sm:$0xff]  ;;  %v10126_v24 = vpop.permute.xlu1 %1761 }
 0x126   :  { %v305_v4 = vmul.f32 %v241_v12, %v241_v12  ;;  %13616 = vst [vmem:[#allocation45_spill] sm:$0xff] %v10126_v24  ;;  %v7556_v12 = vld [vmem:[%s13530_s9 + $0x418] sm:$0xff] }
 0x127   :  { %v363_v57 = vadd.f32 %v362_v50, %v300_v62  ;;  %v9338_v62 = vld [vmem:[#allocation3 + $0x140] sm:$0xff] }
 0x128   :  { %v243_v3 = vsub.f32 %v9338_v62, %v9901_v22 }
 0x129   :  { %v364_v29 = vadd.f32 %v363_v57, %v301_v17  ;;  %v10128_v17 = vpop.permute.xlu0 %1756  ;;  %3687 = vperm.xlu1 %9141, %v7554_v27   ;;  %3682 = vperm.xlu0 %9140, %v7553_v32   ;;  %v10139_v16 = vpop.permute.xlu1 %2087 }
 0x12a   :  { %13617 = vst [vmem:[#allocation46_spill] sm:$0xff] %v10128_v17  ;;  %v307_v47 = vmul.f32 %v243_v3, %v243_v3  ;;  %13618 = vst [vmem:[#allocation47_spill] sm:$0xff] %v10139_v16  ;;  %v9342_v3 = vld [vmem:[#allocation3 + $0x160] sm:$0xff] }
 0x12b   :  { %v365_v33 = vadd.f32 %v364_v29, %v302_v61  ;;  %v9339_v29 = vld [vmem:[#allocation3 + $0x148] sm:$0xff]  ;;  %v9340_v61 = vld [vmem:[#allocation3 + $0x150] sm:$0xff] }
 0x12c   :  { %v244_v52 = vsub.f32 %v9339_v29, %v9901_v22  ;;  %v245_v57 = vsub.f32 %v9340_v61, %v9901_v22 }
 0x12d   :  { %v366_v50 = vadd.f32 %v365_v33, %v303_v39  ;;  %v7555_v39 = vld [vmem:[%s13530_s9 + $0x410] sm:$0xff]  ;;  %v9341_v33 = vld [vmem:[#allocation3 + $0x158] sm:$0xff]  ;;  %3697 = vperm.xlu1 %9141, %v7556_v12  }
 0x12e   :  { %v246_v27 = vsub.f32 %v9341_v33, %v9901_v22  ;;  %v308_v32 = vmul.f32 %v244_v52, %v244_v52  ;;  %3692 = vperm.xlu0 %9140, %v7555_v39   ;;  %v7557_v52 = vld [vmem:[%s13530_s9 + $0x420] sm:$0xff]  ;;  %v10152_v39 = vpop.permute.xlu1 %2097 }
 0x12f   :  { %v367_v28 = vadd.f32 %v366_v50, %v304_v41  ;;  %v10141_v41 = vpop.permute.xlu0 %2082  ;;  %v309_v50 = vmul.f32 %v245_v57, %v245_v57 }
 0x130   :  { %13619 = vst [vmem:[#allocation48_spill] sm:$0xff] %v10141_v41  ;;  %v310_v17 = vmul.f32 %v246_v27, %v246_v27  ;;  %v9345_v27 = vld [vmem:[#allocation3 + $0x178] sm:$0xff] }
 0x131   :  { %v368_v35 = vadd.f32 %v367_v28, %v305_v4  ;;  %v247_v4 = vsub.f32 %v9342_v3, %v9901_v22  ;;  %v9343_v28 = vld [vmem:[#allocation3 + $0x168] sm:$0xff] }
 0x132   :  { %v248_v61 = vsub.f32 %v9343_v28, %v9901_v22  ;;  %3702 = vperm.xlu0 %9140, %v7557_v52   ;;  %v9347_v52 = vld [vmem:[#allocation3 + $0x188] sm:$0xff] }
 0x133   :  { %v369_v62 = vadd.f32 %v368_v35, %v306_v43  ;;  %v7558_v35 = vld [vmem:[%s13530_s9 + $0x428] sm:$0xff]  ;;  %v9344_v43 = vld [vmem:[#allocation3 + $0x170] sm:$0xff]  ;;  %v311_v57 = vmul.f32 %v247_v4, %v247_v4  ;;  %v10154_v33 = vpop.permute.xlu0 %2092  ;;  %v252_v16 = vsub.f32 %v9347_v52, %v9901_v22 }
 0x134   :  { %3707 = vperm.xlu1 %9141, %v7558_v35   ;;  %v249_v12 = vsub.f32 %v9344_v43, %v9901_v22 }
 0x135   :  { %v370_v29 = vadd.f32 %v369_v62, %v307_v47  ;;  %v312_v62 = vmul.f32 %v248_v61, %v248_v61  ;;  %v9348_v61 = vld [vmem:[#allocation3 + $0x190] sm:$0xff] }
 0x136   :  { %v313_v41 = vmul.f32 %v249_v12, %v249_v12  ;;  %v253_v12 = vsub.f32 %v9348_v61, %v9901_v22 }
 0x137   :  { %v371_v24 = vadd.f32 %v370_v29, %v308_v32  ;;  %v250_v32 = vsub.f32 %v9345_v27, %v9901_v22  ;;  %v9346_v29 = vld [vmem:[#allocation3 + $0x180] sm:$0xff]  ;;  %v7560_v27 = vld [vmem:[%s13530_s9 + $0x438] sm:$0xff] }
 0x138   :  { %v251_v28 = vsub.f32 %v9346_v29, %v9901_v22  ;;  %3717 = vperm.xlu1 %9141, %v7560_v27   ;;  %v255_v29 = vsub.f32 %v9718_v36, %v9901_v22  ;;  %v256_v27 = vsub.f32 %v9726_v40, %v9901_v22  ;;  %v257_v36 = vsub.f32 %v9729_v42, %v9901_v22  ;;  %v7564_v42 = vld [vmem:[%s13530_s9 + $0x458] sm:$0xff] }
 0x139   :  { %v372_v47 = vadd.f32 %v371_v24, %v309_v50  ;;  %v314_v43 = vmul.f32 %v250_v32, %v250_v32  ;;  %v10159_v24 = vpop.permute.xlu1 %2107  ;;  %v10161_v50 = vpop.permute.xlu0 %2102  ;;  %v254_v32 = vsub.f32 %v9716_v34, %v9901_v22  ;;  %v7562_v34 = vld [vmem:[%s13530_s9 + $0x448] sm:$0xff]  ;;  %v258_v40 = vsub.f32 %v9738_v46, %v9901_v22  ;;  %v9142_v46 = vld [vmem:[%s13525_s4 + $0x40] sm:$0xff]  }
 0x13a   :  { %13620 = vst [vmem:[#allocation49_spill] sm:$0xff] %v10159_v24  ;;  %13621 = vst [vmem:[#allocation50_spill] sm:$0xff] %v10161_v50  ;;  %8235 = vmatprep.subr.bf16.mxu0 %v9142_v46 }
 0x13b   :  { %v373_v3 = vadd.f32 %v372_v47, %v310_v17  ;;  %v7559_v17 = vld [vmem:[%s13530_s9 + $0x430] sm:$0xff]  ;;  %8236 = vmatpush3.bf16.msra.mxu0 %v9142_v46 }
 0x13c   :  { %3712 = vperm.xlu0 %9140, %v7559_v17   ;;  %v318_v17 = vmul.f32 %v254_v32, %v254_v32  ;;  %3727 = vperm.xlu1 %9141, %v7562_v34   ;;  %v321_v32 = vmul.f32 %v257_v36, %v257_v36  ;;  %v262_v36 = vsub.f32 %v9764_v60, %v9901_v22 }
 0x13d   :  { %v374_v35 = vadd.f32 %v373_v3, %v311_v57  ;;  %v315_v57 = vmul.f32 %v251_v28, %v251_v28  ;;  %v10174_v50 = vpop.permute.xlu1 %2117  ;;  %v10176_v24 = vpop.permute.xlu0 %2112 }
 0x13f   :  { %v375_v4 = vadd.f32 %v374_v35, %v312_v62  ;;  %v316_v62 = vmul.f32 %v252_v16, %v252_v16  ;;  %v317_v35 = vmul.f32 %v253_v12, %v253_v12  ;;  %v7561_v16 = vld [vmem:[%s13530_s9 + $0x440] sm:$0xff] }
 0x140   :  { %3722 = vperm.xlu0 %9140, %v7561_v16   ;;  %3737 = vperm.xlu1 %9141, %v7564_v42   ;;  %v7566_v16 = vld [vmem:[%s13530_s9 + $0x468] sm:$0xff] }
 0x141   :  { %v376_v47 = vadd.f32 %v375_v4, %v313_v41  ;;  %v319_v41 = vmul.f32 %v255_v29, %v255_v29  ;;  %v320_v4 = vmul.f32 %v256_v27, %v256_v27  ;;  %v10190_v12 = vpop.permute.xlu1 %2127  ;;  %v260_v29 = vsub.f32 %v9754_v54, %v9901_v22  ;;  %v7565_v54 = vld [vmem:[%s13530_s9 + $0x460] sm:$0xff] }
 0x142   :  { %13622 = vst [vmem:[#allocation51_spill] sm:$0xff] %v10190_v12 }
 0x143   :  { %v377_v3 = vadd.f32 %v376_v47, %v314_v43  ;;  %v259_v47 = vsub.f32 %v9741_v48, %v9901_v22  ;;  %v322_v48 = vmul.f32 %v258_v40, %v258_v40  ;;  %v263_v40 = vsub.f32 %v9785_v6, %v9901_v22  ;;  %v7568_v6 = vld [vmem:[%s13530_s9 + $0x478] sm:$0xff] }
 0x144   :  { %3747 = vperm.xlu1 %9141, %v7566_v16  }
 0x145   :  { %v378_v52 = vadd.f32 %v377_v3, %v315_v57  ;;  %v10192_v57 = vpop.permute.xlu0 %2122  ;;  %v7563_v3 = vld [vmem:[%s13530_s9 + $0x450] sm:$0xff]  ;;  %v323_v27 = vmul.f32 %v259_v47, %v259_v47  ;;  %v264_v47 = vsub.f32 %v9797_v11, %v9901_v22  ;;  %v327_v46 = vmul.f32 %v263_v40, %v263_v40 }
 0x146   :  { %13623 = vst [vmem:[#allocation52_spill] sm:$0xff] %v10192_v57  ;;  %3732 = vperm.xlu0 %9140, %v7563_v3   ;;  %v265_v3 = vsub.f32 %v9804_v15, %v9901_v22  ;;  %v266_v11 = vsub.f32 %v9823_v23, %v9901_v22  ;;  %v9144_v15 = vld [vmem:[%s13525_s4 + $0x50] sm:$0xff]   ;;  %v4156_v23 = vld [vmem:[%s13531_s10 + $0x8] sm:$0xff] }
 0x147   :  { %v379_v28 = vadd.f32 %v378_v52, %v316_v62  ;;  %v261_v52 = vsub.f32 %v9757_v56, %v9901_v22 }
 0x148   :  { %3757 = vperm.xlu1 %9141, %v7568_v6   ;;  %v4160_v6 = vld [vmem:[%s13531_s10 + $0x28] sm:$0xff] }
 0x149   :  { %v380_v43 = vadd.f32 %v379_v28, %v317_v35  ;;  %v10209_v28 = vpop.permute.xlu1 %2137  ;;  %v10211_v34 = vpop.permute.xlu0 %2132 }
 0x14a   :  { %13624 = vst [vmem:[#allocation53_spill] sm:$0xff] %v10209_v28  ;;  %13625 = vst [vmem:[#allocation54_spill] sm:$0xff] %v10211_v34  ;;  %3742 = vperm.xlu0 %9140, %v7565_v54  }
 0x14b   :  { %v381_v61 = vadd.f32 %v380_v43, %v318_v17  ;;  %v9143_v43 = vld [vmem:[%s13525_s4 + $0x48] sm:$0xff]  }
 0x14c   :  { %8237 = vmatprep.subr.bf16.mxu0 %v9143_v43  ;;  %4178 = vperm.xlu1 %9141, %v4156_v23  }
 0x14d   :  { %v382_v62 = vadd.f32 %v381_v61, %v319_v41  ;;  %v324_v41 = vmul.f32 %v260_v29, %v260_v29  ;;  %8238 = vmatpush3.bf16.msra.mxu0 %v9143_v43  ;;  %v10230_v42 = vpop.permute.xlu0 %2142  ;;  %v4155_v43 = vld [vmem:[%s13531_s10] sm:$0xff] }
 0x14e   :  { %13627 = vst [vmem:[#allocation56_spill] sm:$0xff] %v10230_v42  ;;  %8239 = vmatprep.subr.bf16.mxu0 %v9144_v15 }
 0x14f   :  { %v383_v35 = vadd.f32 %v382_v62, %v320_v4  ;;  %v325_v4 = vmul.f32 %v261_v52, %v261_v52  ;;  %v10228_v62 = vpop.permute.xlu1 %2147 }
 0x150   :  { %13626 = vst [vmem:[#allocation55_spill] sm:$0xff] %v10228_v62 }
 0x151   :  { %v384_v17 = vadd.f32 %v383_v35, %v321_v32  ;;  %v326_v32 = vmul.f32 %v262_v36, %v262_v36  ;;  %v328_v35 = vmul.f32 %v264_v47, %v264_v47  ;;  %v10247_v54 = vpop.permute.xlu0 %2152  ;;  %8240 = vmatpush3.bf16.msra.mxu0 %v9144_v15  ;;  %v330_v36 = vmul.f32 %v266_v11, %v266_v11  ;;  %v9145_v47 = vld [vmem:[%s13525_s4 + $0x58] sm:$0xff]   ;;  %v9147_v11 = vld [vmem:[%s13525_s4 + $0x68] sm:$0xff]  }
 0x152   :  { %13629 = vst [vmem:[#allocation58_spill] sm:$0xff] %v10247_v54  ;;  %8241 = vmatprep.subr.bf16.mxu0 %v9145_v47 }
 0x153   :  { %v385_v56 = vadd.f32 %v384_v17, %v322_v48  ;;  %v7567_v48 = vld [vmem:[%s13530_s9 + $0x470] sm:$0xff]  ;;  %v10245_v16 = vpop.permute.xlu1 %2157 }
 0x154   :  { %3752 = vperm.xlu0 %9140, %v7567_v48   ;;  %13628 = vst [vmem:[#allocation57_spill] sm:$0xff] %v10245_v16  ;;  %v4159_v48 = vld [vmem:[%s13531_s10 + $0x20] sm:$0xff] }
 0x155   :  { %v386_v61 = vadd.f32 %v385_v56, %v323_v27  ;;  %v329_v27 = vmul.f32 %v265_v3, %v265_v3  ;;  %8242 = vmatpush3.bf16.msra.mxu0 %v9145_v47  ;;  %v4163_v47 = vld [vmem:[%s13531_s10 + $0x40] sm:$0xff] }
 0x157   :  { %v387_v60 = vadd.f32 %v386_v61, %v324_v41  ;;  %v10259_v61 = vpop.permute.xlu0 %2494 }
 0x158   :  { %13631 = vst [vmem:[#allocation60_spill] sm:$0xff] %v10259_v61  ;;  %4173 = vperm.xlu0 %9140, %v4155_v43   ;;  %v4164_v43 = vld [vmem:[%s13531_s10 + $0x48] sm:$0xff] }
 0x159   :  { %v388_v29 = vadd.f32 %v387_v60, %v325_v4  ;;  %v10257_v4 = vpop.permute.xlu1 %2499  ;;  %v4157_v60 = vld [vmem:[%s13531_s10 + $0x10] sm:$0xff] }
 0x15a   :  { %13630 = vst [vmem:[#allocation59_spill] sm:$0xff] %v10257_v4 }
 0x15b   :  { %v389_v52 = vadd.f32 %v388_v29, %v326_v32  ;;  %v4158_v32 = vld [vmem:[%s13531_s10 + $0x18] sm:$0xff]  ;;  %v9146_v29 = vld [vmem:[%s13525_s4 + $0x60] sm:$0xff]  }
 0x15c   :  { %4188 = vperm.xlu1 %9141, %v4158_v32   ;;  %4183 = vperm.xlu0 %9140, %v4157_v60   ;;  %v9149_v32 = vld [vmem:[%s13525_s4 + $0x78] sm:$0xff]  }
 0x15d   :  { %v390_v17 = vadd.f32 %v389_v52, %v327_v46  ;;  %v10270_v3 = vpop.permute.xlu1 %2509  ;;  %v10272_v46 = vpop.permute.xlu0 %2504  ;;  %8243 = vmatprep.subr.bf16.mxu0 %v9146_v29 }
 0x15e   :  { %13632 = vst [vmem:[#allocation61_spill] sm:$0xff] %v10270_v3  ;;  %13633 = vst [vmem:[#allocation62_spill] sm:$0xff] %v10272_v46  ;;  %8244 = vmatpush3.bf16.msra.mxu0 %v9146_v29 }
 0x15f   :  { %v391_v41 = vadd.f32 %v390_v17, %v328_v35  ;;  %8245 = vmatprep.subr.bf16.mxu0 %v9147_v11  ;;  %v4162_v17 = vld [vmem:[%s13531_s10 + $0x38] sm:$0xff] }
 0x160   :  { %4198 = vperm.xlu1 %9141, %v4160_v6   ;;  %4193 = vperm.xlu0 %9140, %v4159_v48   ;;  %v4166_v6 = vld [vmem:[%s13531_s10 + $0x58] sm:$0xff]  ;;  %v4165_v48 = vld [vmem:[%s13531_s10 + $0x50] sm:$0xff] }
 0x161   :  { %v392_v56 = vadd.f32 %v391_v41, %v329_v27  ;;  %v10286_v35 = vpop.permute.xlu1 %2519  ;;  %v10288_v52 = vpop.permute.xlu0 %2514  ;;  %v9148_v41 = vld [vmem:[%s13525_s4 + $0x70] sm:$0xff]  }
 0x162   :  { %13634 = vst [vmem:[#allocation63_spill] sm:$0xff] %v10286_v35  ;;  %13635 = vst [vmem:[#allocation64_spill] sm:$0xff] %v10288_v52  ;;  %8246 = vmatpush3.bf16.msra.mxu0 %v9147_v11  ;;  %v10329_v11 = vld [vmem:[%s13525_s4] sm:$0xff]  }
 0x163   :  { %v10255_v40 = vadd.f32 %v392_v56, %v330_v36  ;;  %v4161_v36 = vld [vmem:[%s13531_s10 + $0x30] sm:$0xff]  ;;  %8247 = vmatprep.subr.bf16.mxu0 %v9148_v41 }
 0x164   :  { %4208 = vperm.xlu1 %9141, %v4162_v17   ;;  %4203 = vperm.xlu0 %9140, %v4161_v36  }
 0x165   :  { %v10290_v15 = vpop.permute.xlu1 %2529  ;;  %v10292_v27 = vpop.permute.xlu0 %2524 }
 0x166   :  { %13636 = vst [vmem:[#allocation65_spill] sm:$0xff] %v10290_v15  ;;  %13637 = vst [vmem:[#allocation66_spill] sm:$0xff] %v10292_v27  ;;  %8248 = vmatpush3.bf16.msra.mxu0 %v9148_v41  ;;  %v4168_v41 = vld [vmem:[%s13531_s10 + $0x68] sm:$0xff] }
 0x167   :  { %8249 = vmatprep.subr.bf16.mxu0 %v9149_v32 }
 0x168   :  { %4218 = vperm.xlu1 %9141, %v4164_v43   ;;  %4213 = vperm.xlu0 %9140, %v4163_v47   ;;  %v4167_v43 = vld [vmem:[%s13531_s10 + $0x60] sm:$0xff] }
 0x169   :  { %v10303_v56 = vpop.permute.xlu1 %2539  ;;  %v10305_v23 = vpop.permute.xlu0 %2534 }
 0x16a   :  { %13638 = vst [vmem:[#allocation67_spill] sm:$0xff] %v10303_v56  ;;  %13639 = vst [vmem:[#allocation68_spill] sm:$0xff] %v10305_v23  ;;  %8250 = vmatpush3.bf16.msra.mxu0 %v9149_v32 }
 0x16b   :  { %8267 = vmatprep.subr.bf16.mxu0 %v10329_v11 }
 0x16c   :  { %4228 = vperm.xlu1 %9141, %v4166_v6   ;;  %4223 = vperm.xlu0 %9140, %v4165_v48   ;;  %v4170_v6 = vld [vmem:[%s13531_s10 + $0x78] sm:$0xff]  ;;  %v4169_v48 = vld [vmem:[%s13531_s10 + $0x70] sm:$0xff] }
 0x16d   :  { %v10316_v60 = vpop.permute.xlu1 %2549  ;;  %v10318_v29 = vpop.permute.xlu0 %2544 }
 0x16e   :  { %13640 = vst [vmem:[#allocation69_spill] sm:$0xff] %v10316_v60  ;;  %13641 = vst [vmem:[#allocation70_spill] sm:$0xff] %v10318_v29 }
 0x170   :  { %4238 = vperm.xlu1 %9141, %v4168_v41   ;;  %4233 = vperm.xlu0 %9140, %v4167_v43   ;;  %v7612_v41 = vld [vmem:[%s13531_s10 + $0x88] sm:$0xff]  ;;  %v7611_v43 = vld [vmem:[%s13531_s10 + $0x80] sm:$0xff] }
 0x171   :  { %v10332_v17 = vpop.permute.xlu1 %2559  ;;  %v10334_v36 = vpop.permute.xlu0 %2554 }
 0x172   :  { %13642 = vst [vmem:[#allocation71_spill] sm:$0xff] %v10332_v17  ;;  %13643 = vst [vmem:[#allocation72_spill] sm:$0xff] %v10334_v36 }
 0x174   :  { %4248 = vperm.xlu1 %9141, %v4170_v6   ;;  %4243 = vperm.xlu0 %9140, %v4169_v48   ;;  %v7613_v6 = vld [vmem:[%s13531_s10 + $0x90] sm:$0xff] }
 0x175   :  { %v10342_v47 = vpop.permute.xlu1 %2569  ;;  %v10344_v32 = vpop.permute.xlu0 %2564 }
 0x176   :  { %13644 = vst [vmem:[#allocation73_spill] sm:$0xff] %v10342_v47  ;;  %13645 = vst [vmem:[#allocation74_spill] sm:$0xff] %v10344_v32  ;;  %v7614_v32 = vld [vmem:[%s13531_s10 + $0x98] sm:$0xff] }
 0x178   :  { %4621 = vperm.xlu1 %9141, %v7612_v41   ;;  %4616 = vperm.xlu0 %9140, %v7611_v43   ;;  %v7615_v41 = vld [vmem:[%s13531_s10 + $0xa0] sm:$0xff] }
 0x179   :  { %v10352_v36 = vpop.permute.xlu1 %2895  ;;  %v10354_v17 = vpop.permute.xlu0 %2890 }
 0x17a   :  { %13646 = vst [vmem:[#allocation75_spill] sm:$0xff] %v10352_v36  ;;  %13647 = vst [vmem:[#allocation76_spill] sm:$0xff] %v10354_v17  ;;  %v7616_v36 = vld [vmem:[%s13531_s10 + $0xa8] sm:$0xff] }
 0x17c   :  { %4631 = vperm.xlu1 %9141, %v7614_v32   ;;  %4626 = vperm.xlu0 %9140, %v7613_v6   ;;  %v7617_v32 = vld [vmem:[%s13531_s10 + $0xb0] sm:$0xff] }
 0x17d   :  { %v10368_v48 = vpop.permute.xlu1 %2905  ;;  %v10370_v17 = vpop.permute.xlu0 %2900 }
 0x17e   :  { %13648 = vst [vmem:[#allocation77_spill] sm:$0xff] %v10368_v48  ;;  %13649 = vst [vmem:[#allocation78_spill] sm:$0xff] %v10370_v17  ;;  %v7618_v17 = vld [vmem:[%s13531_s10 + $0xb8] sm:$0xff] }
 0x180   :  { %4641 = vperm.xlu1 %9141, %v7616_v36   ;;  %4636 = vperm.xlu0 %9140, %v7615_v41   ;;  %v7619_v36 = vld [vmem:[%s13531_s10 + $0xc0] sm:$0xff] }
 0x181   :  { %v10378_v43 = vpop.permute.xlu1 %2915  ;;  %v10380_v47 = vpop.permute.xlu0 %2910 }
 0x182   :  { %13650 = vst [vmem:[#allocation79_spill] sm:$0xff] %v10378_v43  ;;  %13651 = vst [vmem:[#allocation80_spill] sm:$0xff] %v10380_v47  ;;  %v7620_v47 = vld [vmem:[%s13531_s10 + $0xc8] sm:$0xff] }
 0x184   :  { %4651 = vperm.xlu1 %9141, %v7618_v17   ;;  %4646 = vperm.xlu0 %9140, %v7617_v32   ;;  %v7621_v17 = vld [vmem:[%s13531_s10 + $0xd0] sm:$0xff] }
 0x185   :  { %v10388_v6 = vpop.permute.xlu1 %2925  ;;  %v10390_v48 = vpop.permute.xlu0 %2920 }
 0x186   :  { %13652 = vst [vmem:[#allocation81_spill] sm:$0xff] %v10388_v6  ;;  %13653 = vst [vmem:[#allocation82_spill] sm:$0xff] %v10390_v48  ;;  %v7622_v48 = vld [vmem:[%s13531_s10 + $0xd8] sm:$0xff] }
 0x188   :  { %4661 = vperm.xlu1 %9141, %v7620_v47   ;;  %4656 = vperm.xlu0 %9140, %v7619_v36   ;;  %v7623_v47 = vld [vmem:[%s13531_s10 + $0xe0] sm:$0xff] }
 0x189   :  { %v10398_v41 = vpop.permute.xlu1 %2935  ;;  %v10400_v43 = vpop.permute.xlu0 %2930 }
 0x18a   :  { %13654 = vst [vmem:[#allocation83_spill] sm:$0xff] %v10398_v41  ;;  %13655 = vst [vmem:[#allocation84_spill] sm:$0xff] %v10400_v43  ;;  %v7624_v43 = vld [vmem:[%s13531_s10 + $0xe8] sm:$0xff] }
 0x18c   :  { %4671 = vperm.xlu1 %9141, %v7622_v48   ;;  %4666 = vperm.xlu0 %9140, %v7621_v17   ;;  %v7625_v48 = vld [vmem:[%s13531_s10 + $0xf0] sm:$0xff] }
 0x18d   :  { %v10408_v32 = vpop.permute.xlu1 %2945  ;;  %v10410_v6 = vpop.permute.xlu0 %2940 }
 0x18e   :  { %13656 = vst [vmem:[#allocation85_spill] sm:$0xff] %v10408_v32  ;;  %13657 = vst [vmem:[#allocation86_spill] sm:$0xff] %v10410_v6  ;;  %v7626_v6 = vld [vmem:[%s13531_s10 + $0xf8] sm:$0xff] }
 0x190   :  { %4681 = vperm.xlu1 %9141, %v7624_v43   ;;  %4676 = vperm.xlu0 %9140, %v7623_v47   ;;  %v7651_v43 = vld [vmem:[%s13531_s10 + $0x100] sm:$0xff] }
 0x191   :  { %v10418_v36 = vpop.permute.xlu1 %2955  ;;  %v10420_v41 = vpop.permute.xlu0 %2950 }
 0x192   :  { %13658 = vst [vmem:[#allocation87_spill] sm:$0xff] %v10418_v36  ;;  %13659 = vst [vmem:[#allocation88_spill] sm:$0xff] %v10420_v41  ;;  %v7652_v41 = vld [vmem:[%s13531_s10 + $0x108] sm:$0xff] }
 0x194   :  { %4691 = vperm.xlu1 %9141, %v7626_v6   ;;  %4686 = vperm.xlu0 %9140, %v7625_v48   ;;  %v7653_v6 = vld [vmem:[%s13531_s10 + $0x110] sm:$0xff] }
 0x195   :  { %v10428_v17 = vpop.permute.xlu1 %2965  ;;  %v10430_v32 = vpop.permute.xlu0 %2960 }
 0x196   :  { %13660 = vst [vmem:[#allocation89_spill] sm:$0xff] %v10428_v17  ;;  %13661 = vst [vmem:[#allocation90_spill] sm:$0xff] %v10430_v32  ;;  %v7654_v32 = vld [vmem:[%s13531_s10 + $0x118] sm:$0xff] }
 0x198   :  { %4936 = vperm.xlu1 %9141, %v7652_v41   ;;  %4931 = vperm.xlu0 %9140, %v7651_v43   ;;  %v7655_v41 = vld [vmem:[%s13531_s10 + $0x120] sm:$0xff]  ;;  %v7658_v43 = vld [vmem:[%s13531_s10 + $0x138] sm:$0xff] }
 0x199   :  { %v10438_v47 = vpop.permute.xlu1 %3291  ;;  %v10440_v36 = vpop.permute.xlu0 %3286 }
 0x19a   :  { %13662 = vst [vmem:[#allocation91_spill] sm:$0xff] %v10438_v47  ;;  %13663 = vst [vmem:[#allocation92_spill] sm:$0xff] %v10440_v36  ;;  %v7656_v36 = vld [vmem:[%s13531_s10 + $0x128] sm:$0xff] }
 0x19c   :  { %4946 = vperm.xlu1 %9141, %v7654_v32   ;;  %4941 = vperm.xlu0 %9140, %v7653_v6   ;;  %v7657_v6 = vld [vmem:[%s13531_s10 + $0x130] sm:$0xff] }
 0x19d   :  { %v10448_v48 = vpop.permute.xlu1 %3301  ;;  %v10450_v17 = vpop.permute.xlu0 %3296 }
 0x19e   :  { %13664 = vst [vmem:[#allocation93_spill] sm:$0xff] %v10448_v48  ;;  %13665 = vst [vmem:[#allocation94_spill] sm:$0xff] %v10450_v17  ;;  %v394_v48 = vrot.slane %v10255_v40, 4  ;;  %v7659_v17 = vld [vmem:[%s13531_s10 + $0x140] sm:$0xff] }
 0x1a0   :  { %4956 = vperm.xlu1 %9141, %v7656_v36   ;;  %4951 = vperm.xlu0 %9140, %v7655_v41   ;;  %v7660_v36 = vld [vmem:[%s13531_s10 + $0x148] sm:$0xff]  ;;  %v395_v41 = vadd.f32 %v394_v48, %v10255_v40 }
 0x1a1   :  { %v10462_v47 = vpop.permute.xlu1 %3311  ;;  %v10464_v32 = vpop.permute.xlu0 %3306  ;;  %v7664_v40 = vld [vmem:[%s13531_s10 + $0x168] sm:$0xff] }
 0x1a2   :  { %13666 = vst [vmem:[#allocation95_spill] sm:$0xff] %v10462_v47  ;;  %13667 = vst [vmem:[#allocation96_spill] sm:$0xff] %v10464_v32  ;;  %v7661_v32 = vld [vmem:[%s13531_s10 + $0x150] sm:$0xff] }
 0x1a4   :  { %4966 = vperm.xlu1 %9141, %v7658_v43   ;;  %4961 = vperm.xlu0 %9140, %v7657_v6   ;;  %v7662_v43 = vld [vmem:[%s13531_s10 + $0x158] sm:$0xff]  ;;  %v396_v6 = vrot.slane %v395_v41, 2 }
 0x1a5   :  { %v10476_v29 = vpop.permute.xlu1 %3321  ;;  %v10478_v47 = vpop.permute.xlu0 %3316 }
 0x1a6   :  { %13668 = vst [vmem:[#allocation97_spill] sm:$0xff] %v10476_v29  ;;  %13669 = vst [vmem:[#allocation98_spill] sm:$0xff] %v10478_v47  ;;  %v397_v48 = vadd.f32 %v396_v6, %v395_v41  ;;  %v7665_v47 = vld [vmem:[%s13531_s10 + $0x170] sm:$0xff] }
 0x1a8   :  { %4976 = vperm.xlu1 %9141, %v7660_v36   ;;  %4971 = vperm.xlu0 %9140, %v7659_v17   ;;  %v7663_v17 = vld [vmem:[%s13531_s10 + $0x160] sm:$0xff] }
 0x1a9   :  { %v10489_v29 = vpop.permute.xlu1 %3331  ;;  %v10491_v36 = vpop.permute.xlu0 %3326 }
 0x1aa   :  { %13670 = vst [vmem:[#allocation99_spill] sm:$0xff] %v10489_v29  ;;  %13671 = vst [vmem:[#allocation100_spill] sm:$0xff] %v10491_v36  ;;  %v7691_v36 = vld [vmem:[%s13531_s10 + $0x180] sm:$0xff]  ;;  %v7694_v29 = vld [vmem:[%s13531_s10 + $0x198] sm:$0xff] }
 0x1ac   :  { %4986 = vperm.xlu1 %9141, %v7662_v43   ;;  %4981 = vperm.xlu0 %9140, %v7661_v32   ;;  %v7666_v43 = vld [vmem:[%s13531_s10 + $0x178] sm:$0xff]  ;;  %v398_v32 = vrot.slane %v397_v48, 1 }
 0x1ad   :  { %v10502_v41 = vpop.permute.xlu1 %3341  ;;  %v10504_v6 = vpop.permute.xlu0 %3336 }
 0x1ae   :  { %13672 = vst [vmem:[#allocation101_spill] sm:$0xff] %v10502_v41  ;;  %13673 = vst [vmem:[#allocation102_spill] sm:$0xff] %v10504_v6 }
 0x1b0   :  { %4996 = vperm.xlu1 %9141, %v7664_v40   ;;  %4991 = vperm.xlu0 %9140, %v7663_v17   ;;  %v7692_v40 = vld [vmem:[%s13531_s10 + $0x188] sm:$0xff]  ;;  %v399_v17 = vadd.f32 %v398_v32, %v397_v48  ;;  %v7695_v32 = vld [vmem:[%s13531_s10 + $0x1a0] sm:$0xff] }
 0x1b1   :  { %v10515_v60 = vpop.permute.xlu1 %3351  ;;  %v7696_v48 = vld [vmem:[%s13531_s10 + $0x1a8] sm:$0xff] }
 0x1b2   :  { %v400_v41 = vmul.f32 0.001953125, %v399_v17  ;;  %13674 = vst [vmem:[#allocation103_spill] sm:$0xff] %v10515_v60  ;;  %v7142_v60 = vld [vmem:[%s13522_s1 + $0xa8] sm:$0xff] }
 0x1b4   :  { %5006 = vperm.xlu1 %9141, %v7666_v43   ;;  %5001 = vperm.xlu0 %9140, %v7665_v47   ;;  %v10517_v43 = vpop.permute.xlu0 %3346  ;;  %v7693_v47 = vld [vmem:[%s13531_s10 + $0x190] sm:$0xff] }
 0x1b5   :  { %13675 = vst [vmem:[#allocation104_spill] sm:$0xff] %v10517_v43 }
 0x1b8   :  { %5251 = vperm.xlu1 %9141, %v7692_v40   ;;  %5246 = vperm.xlu0 %9140, %v7691_v36   ;;  %v401_v36 = vadd.f32 1e-05, %v400_v41  ;;  %v10528_v40 = vpop.permute.xlu1 %3361  ;;  %v10530_v17 = vpop.permute.xlu0 %3356  ;;  %v7700_v41 = vld [vmem:[%s13531_s10 + $0x1c8] sm:$0xff] }
 0x1b9   :  { %13676 = vst [vmem:[#allocation105_spill] sm:$0xff] %v10528_v40  ;;  %13677 = vst [vmem:[#allocation106_spill] sm:$0xff] %v10530_v17 }
 0x1ba   :  { %9294 = vrsqrt.f32 %v401_v36  ;;  %v7139_v36 = vld [vmem:[%s13522_s1 + $0x90] sm:$0xff] }
 0x1bb   :  { %v668_v43 = vsub.f32 %v7139_v36, %v9901_v22  ;;  %v7704_v36 = vld [vmem:[%s13531_s10 + $0x1e8] sm:$0xff] }
 0x1bc   :  { %5261 = vperm.xlu1 %9141, %v7694_v29   ;;  %5256 = vperm.xlu0 %9140, %v7693_v47   ;;  %v7698_v29 = vld [vmem:[%s13531_s10 + $0x1b8] sm:$0xff]  ;;  %v7697_v47 = vld [vmem:[%s13531_s10 + $0x1b0] sm:$0xff]  ;;  %v10541_v40 = vpop.permute.xlu1 %3687  ;;  %v10543_v17 = vpop.permute.xlu0 %3682 }
 0x1bd   :  { %13678 = vst [vmem:[#allocation107_spill] sm:$0xff] %v10541_v40  ;;  %13679 = vst [vmem:[#allocation108_spill] sm:$0xff] %v10543_v17  ;;  %v7702_v17 = vld [vmem:[%s13531_s10 + $0x1d8] sm:$0xff]  ;;  %v7701_v40 = vld [vmem:[%s13531_s10 + $0x1d0] sm:$0xff] }
 0x1c0   :  { %5271 = vperm.xlu1 %9141, %v7696_v48   ;;  %5266 = vperm.xlu0 %9140, %v7695_v32   ;;  %v7699_v48 = vld [vmem:[%s13531_s10 + $0x1c0] sm:$0xff]  ;;  %v7140_v32 = vld [vmem:[%s13522_s1 + $0x98] sm:$0xff]  ;;  %v10578_v27 = vpop.permute.xlu1 %3697  ;;  %v10580_v15 = vpop.permute.xlu0 %3692 }
 0x1c1   :  { %13680 = vst [vmem:[#allocation109_spill] sm:$0xff] %v10578_v27  ;;  %13681 = vst [vmem:[#allocation110_spill] sm:$0xff] %v10580_v15 }
 0x1c4   :  { %5281 = vperm.xlu1 %9141, %v7698_v29   ;;  %5276 = vperm.xlu0 %9140, %v7697_v47   ;;  %v7137_v29 = vld [vmem:[%s13522_s1 + $0x80] sm:$0xff]  ;;  %v7138_v47 = vld [vmem:[%s13522_s1 + $0x88] sm:$0xff]  ;;  %v10574_v6 = vpop.eup %9294  ;;  %v10610_v35 = vpop.permute.xlu1 %3707 }
 0x1c5   :  { %v666_v23 = vsub.f32 %v7137_v29, %v9901_v22  ;;  %v667_v56 = vsub.f32 %v7138_v47, %v9901_v22  ;;  %v7703_v29 = vld [vmem:[%s13531_s10 + $0x1e0] sm:$0xff]  ;;  %v684_v47 = vmul.f32 %v10574_v6, %v668_v43  ;;  %v7143_v43 = vld [vmem:[%s13522_s1 + $0xb0] sm:$0xff]  ;;  %13682 = vst [vmem:[#allocation111_spill] sm:$0xff] %v10610_v35 }
 0x1c7   :  { %v683_v15 = vmul.f32 %v10574_v6, %v667_v56  ;;  %v10612_v56 = vpop.permute.xlu0 %3702 }
 0x1c8   :  { %5291 = vperm.xlu1 %9141, %v7700_v41   ;;  %5286 = vperm.xlu0 %9140, %v7699_v48   ;;  %v669_v41 = vsub.f32 %v7140_v32, %v9901_v22  ;;  %v7141_v48 = vld [vmem:[%s13522_s1 + $0xa0] sm:$0xff]  ;;  %v671_v32 = vsub.f32 %v7142_v60, %v9901_v22  ;;  %v7144_v60 = vld [vmem:[%s13522_s1 + $0xb8] sm:$0xff]  ;;  %13683 = vst [vmem:[#allocation112_spill] sm:$0xff] %v10612_v56  ;;  %v10650_v42 = vpop.permute.xlu1 %3717 }
 0x1c9   :  { %v670_v52 = vsub.f32 %v7141_v48, %v9901_v22  ;;  %v673_v3 = vsub.f32 %v7144_v60, %v9901_v22  ;;  %v10629_v56 = vld [vmem:[%s13524_s3] ss:$0 sm:$0xff]  ;;  %v7732_v60 = vld [vmem:[%s13531_s10 + $0x208] sm:$0xff]  ;;  %13684 = vst [vmem:[#allocation113_spill] sm:$0xff] %v10650_v42 }
 0x1ca   :  { %v685_v27 = vmul.f32 %v10574_v6, %v669_v41  ;;  %v7706_v41 = vld [vmem:[%s13531_s10 + $0x1f8] sm:$0xff]  ;;  %v687_v48 = vmul.f32 %v10574_v6, %v671_v32  ;;  %v7146_v32 = vld [vmem:[%s13522_s1 + $0xc8] sm:$0xff] }
 0x1cb   :  { %v675_v54 = vsub.f32 %v7146_v32, %v9901_v22  ;;  %v10652_v32 = vpop.permute.xlu0 %3712 }
 0x1cc   :  { %5301 = vperm.xlu1 %9141, %v7702_v17   ;;  %5296 = vperm.xlu0 %9140, %v7701_v40   ;;  %v10595_v40 = vld [vmem:[%s13523_s2] ss:$0 sm:$0xff]  ;;  %v682_v17 = vmul.f32 %v10574_v6, %v666_v23  ;;  %v686_v23 = vmul.f32 %v10574_v6, %v670_v52  ;;  %13685 = vst [vmem:[#allocation114_spill] sm:$0xff] %v10652_v32  ;;  %v7733_v32 = vld [vmem:[%s13531_s10 + $0x210] sm:$0xff] }
 0x1cd   :  { %v700_v46 = vmul.f32 %v10595_v40, %v684_v47  ;;  %v7145_v52 = vld [vmem:[%s13522_s1 + $0xc0] sm:$0xff]  ;;  %v699_v47 = vmul.f32 %v10595_v40, %v683_v15  ;;  %v703_v61 = vmul.f32 %v10595_v40, %v687_v48 }
 0x1ce   :  { %v698_v35 = vmul.f32 %v10595_v40, %v682_v17  ;;  %v702_v4 = vmul.f32 %v10595_v40, %v686_v23  ;;  %v674_v16 = vsub.f32 %v7145_v52, %v9901_v22  ;;  %v7731_v15 = vld [vmem:[%s13531_s10 + $0x200] sm:$0xff]  ;;  %v7148_v52 = vld [vmem:[%s13522_s1 + $0xd8] sm:$0xff] }
 0x1cf   :  { %v716_v17 = vadd.f32 %v10629_v56, %v700_v46  ;;  %v715_v48 = vadd.f32 %v10629_v56, %v699_v47  ;;  %v7147_v46 = vld [vmem:[%s13522_s1 + $0xd0] sm:$0xff]  ;;  %v691_v47 = vmul.f32 %v10574_v6, %v675_v54  ;;  %v677_v34 = vsub.f32 %v7148_v52, %v9901_v22  ;;  %v10689_v52 = vpop.permute.xlu0 %3722 }
 0x1d0   :  { %5311 = vperm.xlu1 %9141, %v7704_v36   ;;  %5306 = vperm.xlu0 %9140, %v7703_v29   ;;  %v7705_v36 = vld [vmem:[%s13531_s10 + $0x1f0] sm:$0xff]  ;;  %v701_v29 = vmul.f32 %v10595_v40, %v685_v27  ;;  %v672_v27 = vsub.f32 %v7143_v43, %v9901_v22  ;;  %v676_v28 = vsub.f32 %v7147_v46, %v9901_v22  ;;  %v7735_v46 = vld [vmem:[%s13531_s10 + $0x220] sm:$0xff] }
 0x1d1   :  { %v732_v42 = vmax.f32 %v716_v17, 0.0  ;;  %v731_v54 = vmax.f32 %v715_v48, 0.0  ;;  %v7736_v17 = vld [vmem:[%s13531_s10 + $0x228] sm:$0xff]  ;;  %13686 = vst [vmem:[#allocation115_spill] sm:$0xff] %v10689_v52 }
 0x1d2   :  { %v717_v43 = vadd.f32 %v10629_v56, %v701_v29  ;;  %v688_v23 = vmul.f32 %v10574_v6, %v672_v27  ;;  %v718_v29 = vadd.f32 %v10629_v56, %v702_v4  ;;  %v690_v27 = vmul.f32 %v10574_v6, %v674_v16 }
 0x1d3   :  { %v692_v52 = vmul.f32 %v10574_v6, %v676_v28 }
 0x1d4   :  { %5321 = vperm.xlu1 %9141, %v7706_v41   ;;  %5316 = vperm.xlu0 %9140, %v7705_v36   ;;  %v689_v41 = vmul.f32 %v10574_v6, %v673_v3  ;;  %v714_v36 = vadd.f32 %v10629_v56, %v698_v35  ;;  %v7734_v3 = vld [vmem:[%s13531_s10 + $0x218] sm:$0xff]  ;;  %v719_v35 = vadd.f32 %v10629_v56, %v703_v61  ;;  %v733_v61 = vmax.f32 %v717_v43, 0.0 }
 0x1d5   :  { %v704_v16 = vmul.f32 %v10595_v40, %v688_v23  ;;  %v706_v48 = vmul.f32 %v10595_v40, %v690_v27  ;;  %v10687_v23 = vpop.permute.xlu1 %3727  ;;  %v693_v27 = vmul.f32 %v10574_v6, %v677_v34 }
 0x1d6   :  { %v705_v4 = vmul.f32 %v10595_v40, %v689_v41  ;;  %v730_v62 = vmax.f32 %v714_v36, 0.0  ;;  %v735_v43 = vmax.f32 %v719_v35, 0.0  ;;  %v734_v41 = vmax.f32 %v718_v29, 0.0 }
 0x1d7   :  { %v707_v36 = vmul.f32 %v10595_v40, %v691_v47  ;;  %v844_v29 = vmul.f32 %v9762_v59, %v731_v54  ;;  %v720_v47 = vadd.f32 %v10629_v56, %v704_v16  ;;  %v7738_v59 = vld [vmem:[%s13531_s10 + $0x238] sm:$0xff]  ;;  %v722_v28 = vadd.f32 %v10629_v56, %v706_v48 }
 0x1d8   :  { %5566 = vperm.xlu1 %9141, %v7732_v60   ;;  %5561 = vperm.xlu0 %9140, %v7731_v15   ;;  %v7150_v60 = vld [vmem:[%s13522_s1 + $0xe8] sm:$0xff]  ;;  %v7149_v15 = vld [vmem:[%s13522_s1 + $0xe0] sm:$0xff]  ;;  %v843_v35 = vmul.f32 %v9746_v51, %v730_v62  ;;  %v7151_v51 = vld [vmem:[%s13522_s1 + $0xf0] sm:$0xff]  ;;  %v848_v34 = vmul.f32 %v9774_v1, %v735_v43  ;;  %v847_v62 = vmul.f32 %v9776_v2, %v734_v41 }
 0x1d9   :  { %v679_v57 = vsub.f32 %v7150_v60, %v9901_v22  ;;  %v678_v12 = vsub.f32 %v7149_v15, %v9901_v22  ;;  %v721_v60 = vadd.f32 %v10629_v56, %v705_v4  ;;  %v7152_v15 = vld [vmem:[%s13522_s1 + $0xf8] sm:$0xff]  ;;  %v405_v1 = vld [vmem:[%s13522_s1] sm:$0xff]  ;;  %v736_v2 = vmax.f32 %v720_v47, 0.0  ;;  %v10729_v41 = vpop.permute.xlu1 %3737 }
 0x1da   :  { %v681_v54 = vsub.f32 %v7152_v15, %v9901_v22  ;;  %v709_v16 = vmul.f32 %v10595_v40, %v693_v27  ;;  %v859_v43 = vpack.c.bf16 %v844_v29, %v843_v35  ;;  %v708_v48 = vmul.f32 %v10595_v40, %v692_v52  ;;  %v7740_v52 = vld [vmem:[%s13531_s10 + $0x248] sm:$0xff] }
 0x1db   :  { %v737_v4 = vmax.f32 %v721_v60, 0.0  ;;  %v9151_v60 = vld [vmem:[%s13525_s4 + $0x8] sm:$0xff]   ;;  %v861_v47 = vpack.c.bf16 %v848_v34, %v847_v62  ;;  %v738_v29 = vmax.f32 %v722_v28, 0.0  ;;  %v421_v27 = vsub.f32 %v405_v1, %v9901_v22  ;;  %v408_v62 = vld [vmem:[%s13522_s1 + $0x18] sm:$0xff]  ;;  %v409_v1 = vld [vmem:[%s13522_s1 + $0x20] sm:$0xff] }
 0x1dc   :  { %5576 = vperm.xlu1 %9141, %v7734_v3   ;;  %5571 = vperm.xlu0 %9140, %v7733_v32   ;;  %v845_v32 = vmul.f32 %v9743_v49, %v732_v42  ;;  %v846_v3 = vmul.f32 %v9760_v58, %v733_v61  ;;  %v695_v49 = vmul.f32 %v10574_v6, %v679_v57  ;;  %v7737_v57 = vld [vmem:[%s13531_s10 + $0x230] sm:$0xff] }
 0x1dd   :  { %v694_v58 = vmul.f32 %v10574_v6, %v678_v12  ;;  %v723_v42 = vadd.f32 %v10629_v56, %v707_v36  ;;  %v406_v12 = vld [vmem:[%s13522_s1 + $0x8] sm:$0xff]  ;;  %v10731_v36 = vpop.permute.xlu0 %3732  ;;  %8251 = vmatprep.mubr.bf16.mxu0 %v859_v43  ;;  %v850_v15 = vmul.f32 %v9787_v7, %v737_v4  ;;  %v724_v7 = vadd.f32 %v10629_v56, %v708_v48 }
 0x1de   :  { %v860_v61 = vpack.c.bf16 %v846_v3, %v845_v32  ;;  %v422_v3 = vsub.f32 %v406_v12, %v9901_v22  ;;  %v410_v12 = vld [vmem:[%s13522_s1 + $0x28] sm:$0xff]  ;;  %v424_v43 = vsub.f32 %v408_v62, %v9901_v22 }
 0x1df   :  { %v710_v32 = vmul.f32 %v10595_v40, %v694_v58  ;;  %v739_v35 = vmax.f32 %v723_v42, 0.0  ;;  %v7739_v58 = vld [vmem:[%s13531_s10 + $0x240] sm:$0xff] }
 0x1e0   :  { %5586 = vperm.xlu1 %9141, %v7736_v17   ;;  %5581 = vperm.xlu0 %9140, %v7735_v46   ;;  %v680_v17 = vsub.f32 %v7151_v51, %v9901_v22  ;;  %v711_v46 = vmul.f32 %v10595_v40, %v695_v49  ;;  %v697_v49 = vmul.f32 %v10574_v6, %v681_v54 }
 0x1e1   :  { %8252 = vmatmul.mubr.bf16.vlgmr.msra.gmra.mrb[0].mxu0 %v860_v61  ;;  %v849_v51 = vmul.f32 %v9789_v8, %v736_v2  ;;  %v726_v28 = vadd.f32 %v10629_v56, %v710_v32  ;;  %v407_v8 = vld [vmem:[%s13522_s1 + $0x10] sm:$0xff]  ;;  %v851_v61 = vmul.f32 %v9802_v14, %v738_v29  ;;  %v438_v4 = vmul.f32 %v10574_v6, %v422_v3  ;;  %v10775_v2 = vpop.permute.xlu1 %3747 }
 0x1e2   :  { %v696_v34 = vmul.f32 %v10574_v6, %v680_v17  ;;  %8268 = vmatpush3.bf16.msra.mxu0 %v10329_v11  ;;  %8255 = vmatprep.mubr.bf16.mxu0 %v861_v47  ;;  %v727_v42 = vadd.f32 %v10629_v56, %v711_v46  ;;  %v9152_v11 = vld [vmem:[%s13525_s4 + $0x10] sm:$0xff]   ;;  %v437_v54 = vmul.f32 %v10574_v6, %v421_v27 }
 0x1e3   :  { %8269 = vmatprep.subr.bf16.mxu0 %v9151_v60  ;;  %v713_v17 = vmul.f32 %v10595_v40, %v697_v49  ;;  %v7741_v14 = vld [vmem:[%s13531_s10 + $0x250] sm:$0xff]  ;;  %v423_v32 = vsub.f32 %v407_v8, %v9901_v22  ;;  %v426_v3 = vsub.f32 %v410_v12, %v9901_v22  ;;  %v862_v47 = vpack.c.bf16 %v850_v15, %v849_v51  ;;  %v7744_v15 = vld [vmem:[%s13531_s10 + $0x268] sm:$0xff]  ;;  %v7743_v12 = vld [vmem:[%s13531_s10 + $0x260] sm:$0xff] }
 0x1e4   :  { %5596 = vperm.xlu1 %9141, %v7738_v59   ;;  %5591 = vperm.xlu0 %9140, %v7737_v57   ;;  %v725_v59 = vadd.f32 %v10629_v56, %v709_v16  ;;  %v852_v57 = vmul.f32 %v9800_v13, %v739_v35  ;;  %v10777_v16 = vpop.permute.xlu0 %3742  ;;  %v7742_v13 = vld [vmem:[%s13531_s10 + $0x258] sm:$0xff]  ;;  %v712_v46 = vmul.f32 %v10595_v40, %v696_v34  ;;  %v740_v35 = vmax.f32 %v724_v7, 0.0 }
 0x1e5   :  { %v743_v29 = vmax.f32 %v727_v42, 0.0  ;;  %v425_v27 = vsub.f32 %v409_v1, %v9901_v22  ;;  %v459_v34 = vmul.f32 %v10595_v40, %v437_v54  ;;  %v440_v7 = vmul.f32 %v10574_v6, %v424_v43  ;;  %v412_v42 = vld [vmem:[%s13522_s1 + $0x38] sm:$0xff]  ;;  %v414_v54 = vld [vmem:[%s13522_s1 + $0x48] sm:$0xff]  ;;  %v9154_v1 = vld [vmem:[%s13525_s4 + $0x20] sm:$0xff]  }
 0x1e6   :  { %v741_v48 = vmax.f32 %v725_v59, 0.0  ;;  %8270 = vmatpush3.bf16.msra.mxu0 %v9151_v60  ;;  %v863_v49 = vpack.c.bf16 %v852_v57, %v851_v61  ;;  %v460_v59 = vmul.f32 %v10595_v40, %v438_v4  ;;  %v729_v60 = vadd.f32 %v10629_v56, %v713_v17 }
 0x1e7   :  { %8271 = vmatprep.subr.bf16.mxu0 %v9152_v11  ;;  %v728_v62 = vadd.f32 %v10629_v56, %v712_v46  ;;  %v856_v57 = vmul.f32 %v9826_v25, %v743_v29  ;;  %v439_v61 = vmul.f32 %v10574_v6, %v423_v32  ;;  %v442_v4 = vmul.f32 %v10574_v6, %v426_v3  ;;  %v7746_v46 = vld [vmem:[%s13531_s10 + $0x278] sm:$0xff] }
 0x1e8   :  { %5606 = vperm.xlu1 %9141, %v7740_v52   ;;  %5601 = vperm.xlu0 %9140, %v7739_v58   ;;  %v9153_v52 = vld [vmem:[%s13525_s4 + $0x18] sm:$0xff]   ;;  %v742_v58 = vmax.f32 %v726_v28, 0.0  ;;  %v854_v51 = vmul.f32 %v9813_v19, %v741_v48  ;;  %v10806_v28 = vpop.permute.xlu1 %3757  ;;  %v10808_v8 = vpop.permute.xlu0 %3752  ;;  %v853_v19 = vmul.f32 %v9815_v20, %v740_v35  ;;  %v482_v25 = vadd.f32 %v10629_v56, %v460_v59  ;;  %v7745_v35 = vld [vmem:[%s13531_s10 + $0x270] sm:$0xff]  ;;  %v9155_v59 = vld [vmem:[%s13525_s4 + $0x28] sm:$0xff]  }
 0x1e9   :  { %8256 = vmatmul.mubr.bf16.gmra.mrb[4].mxu0 %v862_v47  ;;  %v481_v17 = vadd.f32 %v10629_v56, %v459_v34  ;;  %v441_v43 = vmul.f32 %v10574_v6, %v425_v27  ;;  %v428_v48 = vsub.f32 %v412_v42, %v9901_v22  ;;  %v462_v32 = vmul.f32 %v10595_v40, %v440_v7  ;;  %v7772_v42 = vld [vmem:[%s13531_s10 + $0x288] sm:$0xff] }
 0x1ea   :  { %8272 = vmatpush3.bf16.msra.mxu0 %v9152_v11  ;;  %8259 = vmatprep.mubr.bf16.mxu0 %v863_v49  ;;  %v411_v11 = vld [vmem:[%s13522_s1 + $0x30] sm:$0xff]  ;;  %v855_v20 = vmul.f32 %v9828_v26, %v742_v58  ;;  %v744_v26 = vmax.f32 %v728_v62, 0.0  ;;  %v430_v47 = vsub.f32 %v414_v54, %v9901_v22  ;;  %v864_v29 = vpack.c.bf16 %v854_v51, %v853_v19 }
 0x1eb   :  { %8273 = vmatprep.subr.bf16.mxu0 %v9153_v52  ;;  %v427_v3 = vsub.f32 %v411_v11, %v9901_v22  ;;  %v461_v27 = vmul.f32 %v10595_v40, %v439_v61  ;;  %v464_v49 = vmul.f32 %v10595_v40, %v442_v4  ;;  %v484_v19 = vadd.f32 %v10629_v56, %v462_v32  ;;  %v416_v61 = vld [vmem:[%s13522_s1 + $0x58] sm:$0xff]  ;;  %v7771_v4 = vld [vmem:[%s13531_s10 + $0x280] sm:$0xff] }
 0x1ec   :  { %5616 = vperm.xlu1 %9141, %v7742_v13   ;;  %5611 = vperm.xlu0 %9140, %v7741_v14   ;;  %v413_v13 = vld [vmem:[%s13522_s1 + $0x40] sm:$0xff]  ;;  %v745_v14 = vmax.f32 %v729_v60, 0.0  ;;  %v865_v34 = vpack.c.bf16 %v856_v57, %v855_v20  ;;  %v498_v60 = vmax.f32 %v482_v25, 0.0  ;;  %v10850_v62 = vpop.permute.xlu1 %4178  ;;  %v10852_v7 = vpop.permute.xlu0 %4173  ;;  %v444_v57 = vmul.f32 %v10574_v6, %v428_v48  ;;  %v418_v25 = vld [vmem:[%s13522_s1 + $0x68] sm:$0xff] }
 0x1ed   :  { %v429_v58 = vsub.f32 %v413_v13, %v9901_v22  ;;  %v486_v11 = vadd.f32 %v10629_v56, %v464_v49  ;;  %v443_v54 = vmul.f32 %v10574_v6, %v427_v3  ;;  %v446_v20 = vmul.f32 %v10574_v6, %v430_v47  ;;  %v7774_v3 = vld [vmem:[%s13531_s10 + $0x298] sm:$0xff]  ;;  %v7773_v49 = vld [vmem:[%s13531_s10 + $0x290] sm:$0xff] }
 0x1ee   :  { %8274 = vmatpush3.bf16.msra.mxu0 %v9153_v52  ;;  %v463_v52 = vmul.f32 %v10595_v40, %v441_v43  ;;  %v858_v51 = vmul.f32 %v9837_v30, %v745_v14  ;;  %v415_v30 = vld [vmem:[%s13522_s1 + $0x50] sm:$0xff]  ;;  %v9441_v43 = vmov 0.0   ;;  %v610_v13 = vmul.f32 %v9847_v37, %v498_v60 }
 0x1ef   :  { %8275 = vmatprep.subr.bf16.mxu0 %v9154_v1  ;;  %4119 = vst [vmem:[#allocation2] sm:$0xff] %v9441_v43  ;;  %4120 = vst [vmem:[#allocation2 + $0x8] sm:$0xff] %v9441_v43  ;;  %v431_v32 = vsub.f32 %v415_v30, %v9901_v22  ;;  %v500_v47 = vmax.f32 %v484_v19, 0.0  ;;  %v434_v37 = vsub.f32 %v418_v25, %v9901_v22 }
 0x1f0   :  { %5626 = vperm.xlu1 %9141, %v7744_v15   ;;  %5621 = vperm.xlu0 %9140, %v7743_v12   ;;  %v497_v15 = vmax.f32 %v481_v17, 0.0  ;;  %v857_v12 = vmul.f32 %v9839_v31, %v744_v26  ;;  %v483_v31 = vadd.f32 %v10629_v56, %v461_v27  ;;  %v9156_v17 = vld [vmem:[%s13525_s4 + $0x30] sm:$0xff]   ;;  %4121 = vst [vmem:[#allocation2 + $0x90] sm:$0xff] %v9441_v43  ;;  %4122 = vst [vmem:[#allocation2 + $0x98] sm:$0xff] %v9441_v43  ;;  %v10897_v27 = vpop.permute.xlu0 %4183  ;;  %v9158_v43 = vld [vmem:[%s13525_s4 + $0x80] sm:$0xff]  }
 0x1f1   :  { %8260 = vmatmul.mubr.bf16.gmra.mrb[8].mxu0 %v864_v29  ;;  %v485_v48 = vadd.f32 %v10629_v56, %v463_v52  ;;  %v432_v26 = vsub.f32 %v416_v61, %v9901_v22  ;;  %v10895_v29 = vpop.permute.xlu1 %4188  ;;  %v465_v60 = vmul.f32 %v10595_v40, %v443_v54  ;;  %v9157_v52 = vld [vmem:[%s13525_s4 + $0x38] sm:$0xff]   ;;  %v450_v25 = vmul.f32 %v10574_v6, %v434_v37 }
 0x1f2   :  { %8276 = vmatpush3.bf16.msra.mxu0 %v9154_v1  ;;  %8263 = vmatprep.mubr.bf16.mxu0 %v865_v34  ;;  %v417_v1 = vld [vmem:[%s13522_s1 + $0x60] sm:$0xff]  ;;  %v609_v14 = vmul.f32 %v9849_v38, %v497_v15  ;;  %v499_v34 = vmax.f32 %v483_v31, 0.0  ;;  %v468_v15 = vmul.f32 %v10595_v40, %v446_v20  ;;  %v420_v31 = vld [vmem:[%s13522_s1 + $0x78] sm:$0xff] }
 0x1f3   :  { %8277 = vmatprep.subr.bf16.mxu0 %v9155_v59  ;;  %v433_v38 = vsub.f32 %v417_v1, %v9901_v22  ;;  %v501_v19 = vmax.f32 %v485_v48, 0.0  ;;  %v448_v61 = vmul.f32 %v10574_v6, %v432_v26  ;;  %v487_v20 = vadd.f32 %v10629_v56, %v465_v60  ;;  %v419_v1 = vld [vmem:[%s13522_s1 + $0x70] sm:$0xff] }
 0x1f4   :  { %5636 = vperm.xlu1 %9141, %v7746_v46   ;;  %5631 = vperm.xlu0 %9140, %v7745_v35   ;;  %v445_v46 = vmul.f32 %v10574_v6, %v429_v58  ;;  %v466_v35 = vmul.f32 %v10595_v40, %v444_v57  ;;  %v866_v58 = vpack.c.bf16 %v858_v51, %v857_v12  ;;  %v7776_v51 = vld [vmem:[%s13531_s10 + $0x2a8] sm:$0xff]  ;;  %v10940_v26 = vpop.permute.xlu0 %4193 }
 0x1f5   :  { %v612_v12 = vmul.f32 %v9857_v44, %v500_v47  ;;  %v611_v54 = vmul.f32 %v9859_v45, %v499_v34  ;;  %v490_v44 = vadd.f32 %v10629_v56, %v468_v15  ;;  %v449_v48 = vmul.f32 %v10574_v6, %v433_v38  ;;  %13688 = vst [vmem:[#allocation117_spill] sm:$0xff] %v10940_v26  ;;  %v7201_v47 = vld [vmem:[%s13522_s1 + $0x100] sm:$0xff] }
 0x1f6   :  { %8278 = vmatpush3.bf16.msra.mxu0 %v9155_v59  ;;  %v625_v59 = vpack.c.bf16 %v610_v13, %v609_v14  ;;  %v467_v57 = vmul.f32 %v10595_v40, %v445_v46  ;;  %v488_v30 = vadd.f32 %v10629_v56, %v466_v35  ;;  %v613_v13 = vmul.f32 %v9869_v55, %v501_v19  ;;  %v10938_v46 = vpop.permute.xlu1 %4198 }
 0x1f7   :  { %8279 = vmatprep.subr.bf16.mxu0 %v9156_v17  ;;  %13687 = vst [vmem:[#allocation116_spill] sm:$0xff] %v10938_v46  ;;  %v435_v37 = vsub.f32 %v419_v1, %v9901_v22  ;;  %v503_v34 = vmax.f32 %v487_v20, 0.0  ;;  %v506_v60 = vmax.f32 %v490_v44, 0.0  ;;  %v472_v15 = vmul.f32 %v10595_v40, %v450_v25 }
 0x1f8   :  { %5881 = vperm.xlu1 %9141, %v7772_v42   ;;  %5876 = vperm.xlu0 %9140, %v7771_v4   ;;  %v502_v42 = vmax.f32 %v486_v11, 0.0  ;;  %v447_v4 = vmul.f32 %v10574_v6, %v431_v32  ;;  %v7775_v11 = vld [vmem:[%s13531_s10 + $0x2a0] sm:$0xff]  ;;  %v489_v14 = vadd.f32 %v10629_v56, %v467_v57  ;;  %v470_v32 = vmul.f32 %v10595_v40, %v448_v61 }
 0x1f9   :  { %8264 = vmatmul.mubr.bf16.gmra.mrb[12].mxu0 %v866_v58  ;;  %v504_v55 = vmax.f32 %v488_v30, 0.0  ;;  %v626_v58 = vpack.c.bf16 %v612_v12, %v611_v54  ;;  %v471_v57 = vmul.f32 %v10595_v40, %v449_v48  ;;  %v7780_v12 = vld [vmem:[%s13531_s10 + $0x2c8] sm:$0xff]  ;;  %v7779_v54 = vld [vmem:[%s13531_s10 + $0x2c0] sm:$0xff]  ;;  %v615_v44 = vmul.f32 %v9879_v0, %v503_v34  ;;  %v9161_v34 = vld [vmem:[%s13525_s4 + $0x98] sm:$0xff]  }
 0x1fa   :  { %8280 = vmatpush3.bf16.msra.mxu0 %v9156_v17  ;;  %8283 = vmatprep.mubr.bf16.mxu0 %v625_v59  ;;  %v7202_v17 = vld [vmem:[%s13522_s1 + $0x108] sm:$0xff]  ;;  %v614_v45 = vmul.f32 %v9867_v53, %v502_v42  ;;  %v7778_v53 = vld [vmem:[%s13531_s10 + $0x2b8] sm:$0xff]  ;;  %v469_v35 = vmul.f32 %v10595_v40, %v447_v4  ;;  %v505_v19 = vmax.f32 %v489_v14, 0.0  ;;  %v492_v61 = vadd.f32 %v10629_v56, %v470_v32  ;;  %v7205_v48 = vld [vmem:[%s13522_s1 + $0x120] sm:$0xff] }
 0x1fb   :  { %8281 = vmatprep.subr.bf16.mxu0 %v9157_v52  ;;  %v1192_v38 = vsub.f32 %v7202_v17, %v9901_v22  ;;  %v9159_v59 = vld [vmem:[%s13525_s4 + $0x88] sm:$0xff]   ;;  %v451_v4 = vmul.f32 %v10574_v6, %v435_v37  ;;  %v616_v20 = vmul.f32 %v9877_v63, %v504_v55  ;;  %v618_v25 = vmul.f32 %v9887_v9, %v506_v60  ;;  %v7204_v17 = vld [vmem:[%s13522_s1 + $0x118] sm:$0xff] }
 0x1fc   :  { %5891 = vperm.xlu1 %9141, %v7774_v3   ;;  %5886 = vperm.xlu0 %9140, %v7773_v49   ;;  %v436_v3 = vsub.f32 %v420_v31, %v9901_v22  ;;  %v7777_v49 = vld [vmem:[%s13531_s10 + $0x2b0] sm:$0xff]  ;;  %v627_v42 = vpack.c.bf16 %v614_v45, %v613_v13  ;;  %v491_v30 = vadd.f32 %v10629_v56, %v469_v35  ;;  %v10969_v31 = vpop.permute.xlu1 %4208  ;;  %v7206_v14 = vld [vmem:[%s13522_s1 + $0x128] sm:$0xff]  ;;  %v508_v32 = vmax.f32 %v492_v61, 0.0 }
 0x1fd   :  { %13689 = vst [vmem:[#allocation118_spill] sm:$0xff] %v10969_v31  ;;  %v494_v1 = vadd.f32 %v10629_v56, %v472_v15  ;;  %v9160_v45 = vld [vmem:[%s13525_s4 + $0x90] sm:$0xff]   ;;  %v617_v63 = vmul.f32 %v9889_v10, %v505_v19  ;;  %v493_v0 = vadd.f32 %v10629_v56, %v471_v57  ;;  %v1208_v9 = vmul.f32 %v10574_v6, %v1192_v38  ;;  %v7782_v10 = vld [vmem:[%s13531_s10 + $0x2d8] sm:$0xff] }
 0x1fe   :  { %8282 = vmatpush3.bf16.msra.mxu0 %v9157_v52  ;;  %v1191_v52 = vsub.f32 %v7201_v47, %v9901_v22  ;;  %v507_v47 = vmax.f32 %v491_v30, 0.0  ;;  %v1194_v55 = vsub.f32 %v7204_v17, %v9901_v22  ;;  %v628_v37 = vpack.c.bf16 %v616_v20, %v615_v44  ;;  %v7208_v20 = vld [vmem:[%s13522_s1 + $0x138] sm:$0xff]  ;;  %v13693_v44 = vld [vmem:[#allocation12_spill] sm:$0xff]  ;;  %v7210_v17 = vld [vmem:[%s13522_s1 + $0x148] sm:$0xff] }
 0x1ff   :  { %8299 = vmatprep.subr.bf16.mxu0 %v9158_v43  ;;  %v510_v38 = vmax.f32 %v494_v1, 0.0  ;;  %v629_v60 = vpack.c.bf16 %v618_v25, %v617_v63  ;;  %v509_v15 = vmax.f32 %v493_v0, 0.0  ;;  %v620_v61 = vmul.f32 %v9897_v18, %v508_v32  ;;  %v7207_v18 = vld [vmem:[%s13522_s1 + $0x130] sm:$0xff]  ;;  %v13694_v63 = vld [vmem:[#allocation13_spill] sm:$0xff]  ;;  %v9177_v31 = vld [vmem:[%s13525_s4 + $0x118] sm:$0xff]  }
 0x200   :  { %5901 = vperm.xlu1 %9141, %v7776_v51   ;;  %5896 = vperm.xlu0 %9140, %v7775_v11   ;;  %v452_v51 = vmul.f32 %v10574_v6, %v436_v3  ;;  %v10971_v11 = vpop.permute.xlu0 %4203  ;;  %v1207_v13 = vmul.f32 %v10574_v6, %v1191_v52  ;;  %v11013_v57 = vpop.permute.xlu1 %4218  ;;  %v7781_v52 = vld [vmem:[%s13531_s10 + $0x2d0] sm:$0xff]  ;;  %v619_v30 = vmul.f32 %v9899_v21, %v507_v47  ;;  %v7786_v47 = vld [vmem:[%s13531_s10 + $0x2f8] sm:$0xff] }
 0x201   :  { %8284 = vmatmul.mubr.bf16.vlgmr.msra.gmra.mrb[0].mxu0 %v626_v58  ;;  %13690 = vst [vmem:[#allocation119_spill] sm:$0xff] %v10971_v11  ;;  %v1195_v58 = vsub.f32 %v7205_v48, %v9901_v22  ;;  %13691 = vst [vmem:[#allocation120_spill] sm:$0xff] %v11013_v57  ;;  %v622_v25 = vmul.f32 %v13693_v44, %v510_v38  ;;  %v621_v0 = vmul.f32 %v13694_v63, %v509_v15  ;;  %v7783_v48 = vld [vmem:[%s13531_s10 + $0x2e0] sm:$0xff]  ;;  %v7211_v63 = vld [vmem:[%s13522_s1 + $0x150] sm:$0xff] }
 0x202   :  { %8300 = vmatpush3.bf16.msra.mxu0 %v9158_v43  ;;  %8287 = vmatprep.mubr.bf16.mxu0 %v627_v42  ;;  %v7203_v43 = vld [vmem:[%s13522_s1 + $0x110] sm:$0xff]  ;;  %v474_v3 = vmul.f32 %v10595_v40, %v452_v51  ;;  %v1224_v42 = vmul.f32 %v10595_v40, %v1208_v9  ;;  %v1223_v19 = vmul.f32 %v10595_v40, %v1207_v13 }
 0x203   :  { %8301 = vmatprep.subr.bf16.mxu0 %v9159_v59  ;;  %v1193_v35 = vsub.f32 %v7203_v43, %v9901_v22  ;;  %v7209_v43 = vld [vmem:[%s13522_s1 + $0x140] sm:$0xff] }
 0x204   :  { %5911 = vperm.xlu1 %9141, %v7778_v53   ;;  %5906 = vperm.xlu0 %9140, %v7777_v49   ;;  %v473_v53 = vmul.f32 %v10595_v40, %v451_v4  ;;  %v1196_v49 = vsub.f32 %v7206_v14, %v9901_v22  ;;  %v496_v51 = vadd.f32 %v10629_v56, %v474_v3  ;;  %v11061_v38 = vpop.permute.xlu1 %4228 }
 0x205   :  { %v1209_v1 = vmul.f32 %v10574_v6, %v1193_v35  ;;  %v1240_v9 = vadd.f32 %v10629_v56, %v1224_v42  ;;  %v1239_v13 = vadd.f32 %v10629_v56, %v1223_v19  ;;  %v1211_v14 = vmul.f32 %v10574_v6, %v1195_v58  ;;  %13695 = vst [vmem:[#allocation12_spill] sm:$0xff] %v11061_v38  ;;  %v9163_v42 = vld [vmem:[%s13525_s4 + $0xa8] sm:$0xff]  }
 0x206   :  { %8302 = vmatpush3.bf16.msra.mxu0 %v9159_v59  ;;  %v11015_v59 = vpop.permute.xlu0 %4213  ;;  %v495_v4 = vadd.f32 %v10629_v56, %v473_v53  ;;  %v1212_v21 = vmul.f32 %v10574_v6, %v1196_v49  ;;  %v512_v32 = vmax.f32 %v496_v51, 0.0  ;;  %v1198_v3 = vsub.f32 %v7208_v20, %v9901_v22  ;;  %v13698_v20 = vld [vmem:[#allocation15_spill] sm:$0xff] }
 0x207   :  { %8303 = vmatprep.subr.bf16.mxu0 %v9160_v45  ;;  %13692 = vst [vmem:[#allocation121_spill] sm:$0xff] %v11015_v59  ;;  %v1200_v35 = vsub.f32 %v7210_v17, %v9901_v22  ;;  %v630_v58 = vpack.c.bf16 %v620_v61, %v619_v30  ;;  %v631_v19 = vpack.c.bf16 %v622_v25, %v621_v0  ;;  %v1255_v51 = vmax.f32 %v1239_v13, 0.0  ;;  %v7785_v61 = vld [vmem:[%s13531_s10 + $0x2f0] sm:$0xff]  ;;  %v7214_v0 = vld [vmem:[%s13522_s1 + $0x168] sm:$0xff] }
 0x208   :  { %5921 = vperm.xlu1 %9141, %v7780_v12   ;;  %5916 = vperm.xlu0 %9140, %v7779_v54   ;;  %v7784_v12 = vld [vmem:[%s13531_s10 + $0x2e8] sm:$0xff]  ;;  %v1210_v54 = vmul.f32 %v10574_v6, %v1194_v55  ;;  %v511_v53 = vmax.f32 %v495_v4, 0.0  ;;  %v1228_v15 = vmul.f32 %v10595_v40, %v1212_v21  ;;  %v1214_v4 = vmul.f32 %v10574_v6, %v1198_v3 }
 0x209   :  { %8288 = vmatmul.mubr.bf16.gmra.mrb[4].mxu0 %v628_v37  ;;  %v1199_v37 = vsub.f32 %v7209_v43, %v9901_v22  ;;  %v1216_v43 = vmul.f32 %v10574_v6, %v1200_v35 }
 0x20a   :  { %8304 = vmatpush3.bf16.msra.mxu0 %v9160_v45  ;;  %8291 = vmatprep.mubr.bf16.mxu0 %v629_v60  ;;  %v9162_v45 = vld [vmem:[%s13525_s4 + $0xa0] sm:$0xff]   ;;  %v1226_v55 = vmul.f32 %v10595_v40, %v1210_v54  ;;  %v11063_v49 = vpop.permute.xlu0 %4223  ;;  %v1225_v60 = vmul.f32 %v10595_v40, %v1209_v1  ;;  %v7812_v54 = vld [vmem:[%s13531_s10 + $0x308] sm:$0xff]  ;;  %v7212_v1 = vld [vmem:[%s13522_s1 + $0x158] sm:$0xff]  ;;  %v1244_v17 = vadd.f32 %v10629_v56, %v1228_v15 }
 0x20b   :  { %8305 = vmatprep.subr.bf16.mxu0 %v9161_v34  ;;  %13696 = vst [vmem:[#allocation13_spill] sm:$0xff] %v11063_v49  ;;  %v1215_v3 = vmul.f32 %v10574_v6, %v1199_v37  ;;  %v1202_v35 = vsub.f32 %v7212_v1, %v9901_v22  ;;  %v7814_v37 = vld [vmem:[%s13531_s10 + $0x318] sm:$0xff]  ;;  %v7816_v1 = vld [vmem:[%s13531_s10 + $0x328] sm:$0xff] }
 0x20c   :  { %5931 = vperm.xlu1 %9141, %v7782_v10   ;;  %5926 = vperm.xlu0 %9140, %v7781_v52   ;;  %v1197_v10 = vsub.f32 %v7207_v18, %v9901_v22  ;;  %v1256_v52 = vmax.f32 %v1240_v9, 0.0  ;;  %v623_v18 = vmul.f32 %v13698_v20, %v511_v53  ;;  %v1242_v44 = vadd.f32 %v10629_v56, %v1226_v55  ;;  %v13699_v9 = vld [vmem:[#allocation16_spill] sm:$0xff] }
 0x20d   :  { %v1241_v21 = vadd.f32 %v10629_v56, %v1225_v60  ;;  %v7811_v53 = vld [vmem:[%s13531_s10 + $0x300] sm:$0xff]  ;;  %v1230_v55 = vmul.f32 %v10595_v40, %v1214_v4  ;;  %v9165_v4 = vld [vmem:[%s13525_s4 + $0xb8] sm:$0xff]  }
 0x20e   :  { %8306 = vmatpush3.bf16.msra.mxu0 %v9161_v34  ;;  %v1227_v34 = vmul.f32 %v10595_v40, %v1211_v14  ;;  %v1213_v25 = vmul.f32 %v10574_v6, %v1197_v10  ;;  %v1369_v13 = vmul.f32 %v13699_v9, %v1256_v52  ;;  %v13700_v14 = vld [vmem:[#allocation17_spill] sm:$0xff]  ;;  %v11101_v10 = vpop.permute.xlu1 %4238  ;;  %v1258_v60 = vmax.f32 %v1242_v44, 0.0 }
 0x20f   :  { %8307 = vmatprep.subr.bf16.mxu0 %v9162_v45  ;;  %v1204_v52 = vsub.f32 %v7214_v0, %v9901_v22  ;;  %v1231_v44 = vmul.f32 %v10595_v40, %v1215_v3  ;;  %v7216_v0 = vld [vmem:[%s13522_s1 + $0x178] sm:$0xff] }
 0x210   :  { %5941 = vperm.xlu1 %9141, %v7784_v12   ;;  %5936 = vperm.xlu0 %9140, %v7783_v48   ;;  %v13697_v12 = vld [vmem:[#allocation14_spill] sm:$0xff]  ;;  %v1368_v48 = vmul.f32 %v13700_v14, %v1255_v51  ;;  %v1229_v15 = vmul.f32 %v10595_v40, %v1213_v25  ;;  %v13706_v14 = vld [vmem:[#allocation19_spill] sm:$0xff] }
 0x211   :  { %v624_v30 = vmul.f32 %v13697_v12, %v512_v32  ;;  %8292 = vmatmul.mubr.bf16.gmra.mrb[8].mxu0 %v630_v58  ;;  %v1243_v32 = vadd.f32 %v10629_v56, %v1227_v34  ;;  %13701 = vst [vmem:[#allocation14_spill] sm:$0xff] %v11101_v10  ;;  %v7213_v58 = vld [vmem:[%s13522_s1 + $0x160] sm:$0xff]  ;;  %v1257_v34 = vmax.f32 %v1241_v21, 0.0  ;;  %v1232_v12 = vmul.f32 %v10595_v40, %v1216_v43  ;;  %v13703_v21 = vld [vmem:[#allocation18_spill] sm:$0xff] }
 0x212   :  { %8308 = vmatpush3.bf16.msra.mxu0 %v9162_v45  ;;  %8295 = vmatprep.mubr.bf16.mxu0 %v631_v19  ;;  %v9164_v45 = vld [vmem:[%s13525_s4 + $0xb0] sm:$0xff]   ;;  %v1201_v19 = vsub.f32 %v7211_v63, %v9901_v22  ;;  %v1203_v25 = vsub.f32 %v7213_v58, %v9901_v22  ;;  %v1245_v43 = vadd.f32 %v10629_v56, %v1229_v15  ;;  %v11139_v9 = vpop.permute.xlu1 %4248  ;;  %v13708_v58 = vld [vmem:[#allocation21_spill] sm:$0xff] }
 0x213   :  { %8309 = vmatprep.subr.bf16.mxu0 %v9163_v42  ;;  %v632_v51 = vpack.c.bf16 %v624_v30, %v623_v18  ;;  %v1259_v20 = vmax.f32 %v1243_v32, 0.0  ;;  %v1218_v30 = vmul.f32 %v10574_v6, %v1202_v35  ;;  %v7813_v18 = vld [vmem:[%s13531_s10 + $0x310] sm:$0xff]  ;;  %13704 = vst [vmem:[#allocation16_spill] sm:$0xff] %v11139_v9  ;;  %v13707_v32 = vld [vmem:[#allocation20_spill] sm:$0xff]  ;;  %v9171_v9 = vld [vmem:[%s13525_s4 + $0xe8] sm:$0xff]  }
 0x214   :  { %5951 = vperm.xlu1 %9141, %v7786_v47   ;;  %5946 = vperm.xlu0 %9140, %v7785_v61   ;;  %v11103_v47 = vpop.permute.xlu0 %4233  ;;  %v1260_v61 = vmax.f32 %v1244_v17, 0.0  ;;  %v1371_v17 = vmul.f32 %v13703_v21, %v1258_v60  ;;  %v1217_v63 = vmul.f32 %v10574_v6, %v1201_v19  ;;  %v7215_v35 = vld [vmem:[%s13522_s1 + $0x170] sm:$0xff]  ;;  %v1247_v60 = vadd.f32 %v10629_v56, %v1231_v44  ;;  %v7258_v19 = vld [vmem:[%s13522_s1 + $0x188] sm:$0xff] }
 0x215   :  { %13702 = vst [vmem:[#allocation15_spill] sm:$0xff] %v11103_v47  ;;  %v1219_v15 = vmul.f32 %v10574_v6, %v1203_v25  ;;  %v1205_v44 = vsub.f32 %v7215_v35, %v9901_v22  ;;  %v9167_v21 = vld [vmem:[%s13525_s4 + $0xc8] sm:$0xff]  }
 0x216   :  { %8310 = vmatpush3.bf16.msra.mxu0 %v9163_v42  ;;  %v1246_v42 = vadd.f32 %v10629_v56, %v1230_v55  ;;  %v1373_v3 = vmul.f32 %v13707_v32, %v1260_v61  ;;  %v1220_v55 = vmul.f32 %v10574_v6, %v1204_v52  ;;  %v1234_v52 = vmul.f32 %v10595_v40, %v1218_v30  ;;  %v7815_v61 = vld [vmem:[%s13531_s10 + $0x320] sm:$0xff]  ;;  %v7818_v32 = vld [vmem:[%s13531_s10 + $0x338] sm:$0xff] }
 0x217   :  { %8311 = vmatprep.subr.bf16.mxu0 %v9164_v45 }
 0x218   :  { %6196 = vperm.xlu1 %9141, %v7812_v54   ;;  %6191 = vperm.xlu0 %9140, %v7811_v53   ;;  %v1384_v54 = vpack.c.bf16 %v1369_v13, %v1368_v48  ;;  %v11141_v13 = vpop.permute.xlu0 %4243  ;;  %v1370_v48 = vmul.f32 %v13706_v14, %v1257_v34  ;;  %v1248_v53 = vadd.f32 %v10629_v56, %v1232_v12  ;;  %v7257_v34 = vld [vmem:[%s13522_s1 + $0x180] sm:$0xff]  ;;  %v1262_v12 = vmax.f32 %v1246_v42, 0.0 }
 0x219   :  { %8296 = vmatmul.mubr.bf16.gmra.mrb[12].mxu0 %v632_v51  ;;  %13705 = vst [vmem:[#allocation17_spill] sm:$0xff] %v11141_v13  ;;  %v1206_v51 = vsub.f32 %v7216_v0, %v9901_v22  ;;  %v1236_v30 = vmul.f32 %v10595_v40, %v1220_v55  ;;  %v1263_v14 = vmax.f32 %v1247_v60, 0.0  ;;  %v1235_v42 = vmul.f32 %v10595_v40, %v1219_v15  ;;  %v13712_v55 = vld [vmem:[#allocation23_spill] sm:$0xff]  ;;  %v13713_v60 = vld [vmem:[#allocation24_spill] sm:$0xff] }
 0x21a   :  { %8312 = vmatpush3.bf16.msra.mxu0 %v9164_v45  ;;  %8315 = vmatprep.mubr.bf16.mxu0 %v1384_v54  ;;  %v9166_v45 = vld [vmem:[%s13525_s4 + $0xc0] sm:$0xff]   ;;  %v1261_v54 = vmax.f32 %v1245_v43, 0.0  ;;  %v1385_v25 = vpack.c.bf16 %v1371_v17, %v1370_v48  ;;  %v1587_v43 = vsub.f32 %v7257_v34, %v9901_v22  ;;  %v1250_v17 = vadd.f32 %v10629_v56, %v1234_v52  ;;  %v7259_v34 = vld [vmem:[%s13522_s1 + $0x190] sm:$0xff] }
 0x21b   :  { %8313 = vmatprep.subr.bf16.mxu0 %v9165_v4  ;;  %v1222_v48 = vmul.f32 %v10574_v6, %v1206_v51  ;;  %v1221_v52 = vmul.f32 %v10574_v6, %v1205_v44 }
 0x21c   :  { %6206 = vperm.xlu1 %9141, %v7814_v37   ;;  %v1372_v37 = vmul.f32 %v13708_v58, %v1259_v20  ;;  %6201 = vperm.xlu0 %9140, %v7813_v18   ;;  %v1233_v20 = vmul.f32 %v10595_v40, %v1217_v63  ;;  %v1264_v18 = vmax.f32 %v1248_v53, 0.0  ;;  %v11176_v63 = vpop.permute.xlu1 %4621  ;;  %v7817_v40 = vld [vmem:[%s13531_s10 + $0x330] sm:$0xff]  ;;  %v1374_v35 = vmul.f32 %v13712_v55, %v1261_v54 }
 0x21d   :  { %13709 = vst [vmem:[#allocation18_spill] sm:$0xff] %v11176_v63  ;;  %v1603_v44 = vmul.f32 %v10574_v6, %v1587_v43  ;;  %v1589_v43 = vsub.f32 %v7259_v34, %v9901_v22 }
 0x21e   :  { %8314 = vmatpush3.bf16.msra.mxu0 %v9165_v4  ;;  %v1386_v0 = vpack.c.bf16 %v1373_v3, %v1372_v37  ;;  %v11178_v4 = vpop.permute.xlu0 %4616  ;;  %v13711_v3 = vld [vmem:[#allocation22_spill] sm:$0xff]  ;;  %v1249_v58 = vadd.f32 %v10629_v56, %v1233_v20  ;;  %v7260_v37 = vld [vmem:[%s13522_s1 + $0x198] sm:$0xff]  ;;  %v1377_v15 = vmul.f32 %v13713_v60, %v1264_v18  ;;  %v1251_v20 = vadd.f32 %v10629_v56, %v1235_v42  ;;  %v11213_v18 = vld [vmem:[%s13523_s2] ss:$0 sm:$0xff] }
 0x21f   :  { %8331 = vmatprep.subr.bf16.mxu0 %v9166_v45  ;;  %13710 = vst [vmem:[#allocation19_spill] sm:$0xff] %v11178_v4  ;;  %v1375_v53 = vmul.f32 %v13711_v3, %v1262_v12  ;;  %v13714_v12 = vld [vmem:[#allocation25_spill] sm:$0xff]  ;;  %v1590_v42 = vsub.f32 %v7260_v37, %v9901_v22  ;;  %v1237_v55 = vmul.f32 %v11213_v18, %v1221_v52  ;;  %v7821_v52 = vld [vmem:[%s13531_s10 + $0x350] sm:$0xff] }
 0x220   :  { %6216 = vperm.xlu1 %9141, %v7816_v1   ;;  %v1588_v1 = vsub.f32 %v7258_v19, %v9901_v22  ;;  %6211 = vperm.xlu0 %9140, %v7815_v61   ;;  %v1252_v19 = vadd.f32 %v10629_v56, %v1236_v30  ;;  %v7262_v61 = vld [vmem:[%s13522_s1 + $0x1a8] sm:$0xff]  ;;  %v1376_v54 = vmul.f32 %v13714_v12, %v1263_v14  ;;  %v1265_v14 = vmax.f32 %v1249_v58, 0.0  ;;  %v9169_v58 = vld [vmem:[%s13525_s4 + $0xd8] sm:$0xff]   ;;  %v13715_v12 = vld [vmem:[#allocation26_spill] sm:$0xff] }
 0x221   :  { %8316 = vmatmul.mubr.bf16.vlgmr.msra.gmra.mrb[0].mxu0 %v1385_v25  ;;  %v1266_v25 = vmax.f32 %v1250_v17, 0.0  ;;  %v1238_v30 = vmul.f32 %v11213_v18, %v1222_v48  ;;  %v7820_v56 = vld [vmem:[%s13531_s10 + $0x348] sm:$0xff]  ;;  %v1592_v17 = vsub.f32 %v7262_v61, %v9901_v22  ;;  %v11228_v48 = vpop.permute.xlu1 %4631  ;;  %v1267_v34 = vmax.f32 %v1251_v20, 0.0 }
 0x222   :  { %8332 = vmatpush3.bf16.msra.mxu0 %v9166_v45  ;;  %8319 = vmatprep.mubr.bf16.mxu0 %v1386_v0  ;;  %v1604_v51 = vmul.f32 %v10574_v6, %v1588_v1  ;;  %v9168_v45 = vld [vmem:[%s13525_s4 + $0xd0] sm:$0xff]   ;;  %v7261_v1 = vld [vmem:[%s13522_s1 + $0x1a0] sm:$0xff]  ;;  %v1268_v3 = vmax.f32 %v1252_v19, 0.0  ;;  %v1388_v37 = vpack.c.bf16 %v1377_v15, %v1376_v54  ;;  %v1619_v61 = vmul.f32 %v11213_v18, %v1603_v44  ;;  %v7822_v15 = vld [vmem:[%s13531_s10 + $0x358] sm:$0xff] }
 0x223   :  { %8333 = vmatprep.subr.bf16.mxu0 %v9167_v21  ;;  %v7819_v0 = vld [vmem:[%s13531_s10 + $0x340] sm:$0xff]  ;;  %v1606_v20 = vmul.f32 %v10574_v6, %v1590_v42  ;;  %v1605_v44 = vmul.f32 %v10574_v6, %v1589_v43  ;;  %v7266_v42 = vld [vmem:[%s13522_s1 + $0x1c8] sm:$0xff] }
 0x224   :  { %6226 = vperm.xlu1 %9141, %v7818_v32   ;;  %6221 = vperm.xlu0 %9140, %v7817_v40   ;;  %v11230_v32 = vpop.permute.xlu0 %4626  ;;  %v1387_v40 = vpack.c.bf16 %v1375_v53, %v1374_v35  ;;  %v1620_v60 = vmul.f32 %v11213_v18, %v1604_v51  ;;  %v1379_v53 = vmul.f32 %v13715_v12, %v1266_v25  ;;  %v11243_v35 = vld [vmem:[%s13524_s3] ss:$0 sm:$0xff]  ;;  %v13716_v51 = vld [vmem:[#allocation27_spill] sm:$0xff]  ;;  %v13718_v43 = vld [vmem:[#allocation29_spill] sm:$0xff] }
 0x225   :  { %v1254_v19 = vadd.f32 %v11243_v35, %v1238_v30  ;;  %v1378_v54 = vmul.f32 %v13716_v51, %v1265_v14  ;;  %v7264_v25 = vld [vmem:[%s13522_s1 + $0x1b8] sm:$0xff]  ;;  %v13717_v30 = vld [vmem:[#allocation28_spill] sm:$0xff]  ;;  %v7263_v14 = vld [vmem:[%s13522_s1 + $0x1b0] sm:$0xff] }
 0x226   :  { %8334 = vmatpush3.bf16.msra.mxu0 %v9167_v21  ;;  %v1591_v21 = vsub.f32 %v7261_v1, %v9901_v22  ;;  %v1381_v1 = vmul.f32 %v13717_v30, %v1268_v3  ;;  %v1380_v3 = vmul.f32 %v13718_v43, %v1267_v34  ;;  %v1594_v51 = vsub.f32 %v7264_v25, %v9901_v22  ;;  %v7265_v30 = vld [vmem:[%s13522_s1 + $0x1c0] sm:$0xff]  ;;  %v7824_v34 = vld [vmem:[%s13531_s10 + $0x368] sm:$0xff] }
 0x227   :  { %8335 = vmatprep.subr.bf16.mxu0 %v9168_v45  ;;  %v1270_v12 = vmax.f32 %v1254_v19, 0.0  ;;  %v1593_v19 = vsub.f32 %v7263_v14, %v9901_v22  ;;  %v1389_v25 = vpack.c.bf16 %v1379_v53, %v1378_v54  ;;  %v13719_v14 = vld [vmem:[#allocation30_spill] sm:$0xff]  ;;  %v7826_v54 = vld [vmem:[%s13531_s10 + $0x378] sm:$0xff] }
 0x228   :  { %6236 = vperm.xlu1 %9141, %v7820_v56   ;;  %6231 = vperm.xlu0 %9140, %v7819_v0   ;;  %v1253_v56 = vadd.f32 %v11243_v35, %v1237_v55  ;;  %v1636_v0 = vadd.f32 %v11243_v35, %v1620_v60  ;;  %v1635_v55 = vadd.f32 %v11243_v35, %v1619_v61  ;;  %v7823_v61 = vld [vmem:[%s13531_s10 + $0x360] sm:$0xff] }
 0x229   :  { %8320 = vmatmul.mubr.bf16.gmra.mrb[4].mxu0 %v1387_v40  ;;  %v1608_v40 = vmul.f32 %v10574_v6, %v1592_v17  ;;  %v1607_v60 = vmul.f32 %v10574_v6, %v1591_v21  ;;  %v11274_v17 = vpop.permute.xlu1 %4641  ;;  %v1622_v21 = vmul.f32 %v11213_v18, %v1606_v20  ;;  %v1390_v13 = vpack.c.bf16 %v1381_v1, %v1380_v3  ;;  %v7825_v1 = vld [vmem:[%s13531_s10 + $0x370] sm:$0xff] }
 0x22a   :  { %8336 = vmatpush3.bf16.msra.mxu0 %v9168_v45  ;;  %8323 = vmatprep.mubr.bf16.mxu0 %v1388_v37  ;;  %v9170_v45 = vld [vmem:[%s13525_s4 + $0xe0] sm:$0xff]   ;;  %v11276_v37 = vpop.permute.xlu0 %4636  ;;  %v1269_v43 = vmax.f32 %v1253_v56, 0.0  ;;  %v1652_v4 = vmax.f32 %v1636_v0, 0.0  ;;  %v1651_v10 = vmax.f32 %v1635_v55, 0.0  ;;  %v1610_v53 = vmul.f32 %v10574_v6, %v1594_v51 }
 0x22b   :  { %8337 = vmatprep.subr.bf16.mxu0 %v9169_v58  ;;  %v1624_v63 = vmul.f32 %v11213_v18, %v1608_v40  ;;  %v1623_v20 = vmul.f32 %v11213_v18, %v1607_v60  ;;  %v1638_v56 = vadd.f32 %v11243_v35, %v1622_v21  ;;  %v1609_v40 = vmul.f32 %v10574_v6, %v1593_v19  ;;  %v13720_v60 = vld [vmem:[#allocation31_spill] sm:$0xff]  ;;  %v13721_v51 = vld [vmem:[#allocation32_spill] sm:$0xff]  ;;  %v7267_v21 = vld [vmem:[%s13522_s1 + $0x1d0] sm:$0xff] }
 0x22c   :  { %6246 = vperm.xlu1 %9141, %v7822_v15   ;;  %6241 = vperm.xlu0 %9140, %v7821_v52   ;;  %v1621_v15 = vmul.f32 %v11213_v18, %v1605_v44  ;;  %v1596_v52 = vsub.f32 %v7266_v42, %v9901_v22  ;;  %v1595_v44 = vsub.f32 %v7265_v30, %v9901_v22  ;;  %v7268_v42 = vld [vmem:[%s13522_s1 + $0x1d8] sm:$0xff] }
 0x22d   :  { %v11312_v3 = vpop.permute.xlu1 %4651  ;;  %v1765_v30 = vmul.f32 %v13721_v51, %v1652_v4  ;;  %v1639_v19 = vadd.f32 %v11243_v35, %v1623_v20  ;;  %v1626_v4 = vmul.f32 %v11213_v18, %v1610_v53  ;;  %v7851_v20 = vld [vmem:[%s13531_s10 + $0x380] sm:$0xff]  ;;  %v1597_v53 = vsub.f32 %v7267_v21, %v9901_v22 }
 0x22e   :  { %8338 = vmatpush3.bf16.msra.mxu0 %v9169_v58  ;;  %v1383_v58 = vmul.f32 %v13719_v14, %v1270_v12  ;;  %v1637_v0 = vadd.f32 %v11243_v35, %v1621_v15  ;;  %v11314_v55 = vpop.permute.xlu0 %4646  ;;  %v1382_v12 = vmul.f32 %v13720_v60, %v1269_v43  ;;  %v7269_v43 = vld [vmem:[%s13522_s1 + $0x1e0] sm:$0xff] }
 0x22f   :  { %8339 = vmatprep.subr.bf16.mxu0 %v9170_v45  ;;  %v1655_v38 = vmax.f32 %v1639_v19, 0.0 }
 0x230   :  { %6256 = vperm.xlu1 %9141, %v7824_v34   ;;  %6251 = vperm.xlu0 %9140, %v7823_v61   ;;  %v1640_v34 = vadd.f32 %v11243_v35, %v1624_v63  ;;  %v1612_v61 = vmul.f32 %v10574_v6, %v1596_v52  ;;  %v7270_v63 = vld [vmem:[%s13522_s1 + $0x1e8] sm:$0xff]  ;;  %v1598_v52 = vsub.f32 %v7268_v42, %v9901_v22  ;;  %v1653_v14 = vmax.f32 %v1637_v0, 0.0 }
 0x231   :  { %8324 = vmatmul.mubr.bf16.gmra.mrb[8].mxu0 %v1389_v25  ;;  %v1611_v25 = vmul.f32 %v10574_v6, %v1595_v44  ;;  %v1654_v44 = vmax.f32 %v1638_v56, 0.0  ;;  %v1600_v51 = vsub.f32 %v7270_v63, %v9901_v22  ;;  %v1599_v0 = vsub.f32 %v7269_v43, %v9901_v22  ;;  %v7272_v63 = vld [vmem:[%s13522_s1 + $0x1f8] sm:$0xff] }
 0x232   :  { %8340 = vmatpush3.bf16.msra.mxu0 %v9170_v45  ;;  %8327 = vmatprep.mubr.bf16.mxu0 %v1390_v13  ;;  %v9172_v13 = vld [vmem:[%s13525_s4 + $0xf0] sm:$0xff]   ;;  %v13722_v45 = vld [vmem:[#allocation33_spill] sm:$0xff]  ;;  %v1656_v42 = vmax.f32 %v1640_v34, 0.0  ;;  %v1628_v60 = vmul.f32 %v11213_v18, %v1612_v61 }
 0x233   :  { %8341 = vmatprep.subr.bf16.mxu0 %v9171_v9  ;;  %v1764_v15 = vmul.f32 %v13722_v45, %v1651_v10  ;;  %v7852_v10 = vld [vmem:[%s13531_s10 + $0x388] sm:$0xff]  ;;  %v9173_v45 = vld [vmem:[%s13525_s4 + $0xf8] sm:$0xff]   ;;  %v1627_v56 = vmul.f32 %v11213_v18, %v1611_v25  ;;  %v7853_v34 = vld [vmem:[%s13531_s10 + $0x390] sm:$0xff] }
 0x234   :  { %6266 = vperm.xlu1 %9141, %v7826_v54   ;;  %6261 = vperm.xlu0 %9140, %v7825_v1   ;;  %v1625_v54 = vmul.f32 %v11213_v18, %v1609_v40  ;;  %v1391_v1 = vpack.c.bf16 %v1383_v58, %v1382_v12  ;;  %v11352_v40 = vpop.permute.xlu1 %4661  ;;  %v1642_v58 = vadd.f32 %v11243_v35, %v1626_v4  ;;  %v13723_v61 = vld [vmem:[#allocation34_spill] sm:$0xff]  ;;  %v13725_v4 = vld [vmem:[#allocation36_spill] sm:$0xff] }
 0x235   :  { %v1780_v47 = vpack.c.bf16 %v1765_v30, %v1764_v15  ;;  %v1614_v12 = vmul.f32 %v10574_v6, %v1598_v52  ;;  %v7854_v30 = vld [vmem:[%s13531_s10 + $0x398] sm:$0xff]  ;;  %v1767_v21 = vmul.f32 %v13723_v61, %v1654_v44  ;;  %v1769_v52 = vmul.f32 %v13725_v4, %v1656_v42  ;;  %v7271_v44 = vld [vmem:[%s13522_s1 + $0x1f0] sm:$0xff]  ;;  %v7856_v61 = vld [vmem:[%s13531_s10 + $0x3a8] sm:$0xff] }
 0x236   :  { %8342 = vmatpush3.bf16.msra.mxu0 %v9171_v9  ;;  %v11354_v9 = vpop.permute.xlu0 %4656  ;;  %v13724_v15 = vld [vmem:[#allocation35_spill] sm:$0xff]  ;;  %v1641_v25 = vadd.f32 %v11243_v35, %v1625_v54  ;;  %v1644_v43 = vadd.f32 %v11243_v35, %v1628_v60  ;;  %v1602_v60 = vsub.f32 %v7272_v63, %v9901_v22 }
 0x237   :  { %8343 = vmatprep.subr.bf16.mxu0 %v9172_v13  ;;  %v1766_v19 = vmul.f32 %v13724_v15, %v1653_v14  ;;  %v7314_v14 = vld [vmem:[%s13522_s1 + $0x208] sm:$0xff]  ;;  %v1630_v42 = vmul.f32 %v11213_v18, %v1614_v12 }
 0x238   :  { %6511 = vperm.xlu1 %9141, %v7852_v10   ;;  %6506 = vperm.xlu0 %9140, %v7851_v20   ;;  %v1613_v10 = vmul.f32 %v10574_v6, %v1597_v53  ;;  %v1616_v20 = vmul.f32 %v10574_v6, %v1600_v51  ;;  %v1615_v53 = vmul.f32 %v10574_v6, %v1599_v0  ;;  %v7313_v51 = vld [vmem:[%s13522_s1 + $0x200] sm:$0xff]  ;;  %v1657_v0 = vmax.f32 %v1641_v25, 0.0 }
 0x239   :  { %8328 = vmatmul.mubr.bf16.gmra.mrb[12].mxu0 %v1391_v1  ;;  %v1643_v1 = vadd.f32 %v11243_v35, %v1627_v56  ;;  %v1658_v56 = vmax.f32 %v1642_v58, 0.0  ;;  %v1984_v12 = vsub.f32 %v7314_v14, %v9901_v22  ;;  %v1781_v63 = vpack.c.bf16 %v1767_v21, %v1766_v19  ;;  %v9175_v58 = vld [vmem:[%s13525_s4 + $0x108] sm:$0xff]  }
 0x23a   :  { %8344 = vmatpush3.bf16.msra.mxu0 %v9172_v13  ;;  %8347 = vmatprep.mubr.bf16.mxu0 %v1780_v47  ;;  %v9174_v47 = vld [vmem:[%s13525_s4 + $0x100] sm:$0xff]   ;;  %v13726_v13 = vld [vmem:[#allocation37_spill] sm:$0xff]  ;;  %v11401_v15 = vpop.permute.xlu0 %4666  ;;  %v1660_v4 = vmax.f32 %v1644_v43, 0.0  ;;  %v1632_v49 = vmul.f32 %v11213_v18, %v1616_v20  ;;  %v1631_v14 = vmul.f32 %v11213_v18, %v1615_v53  ;;  %v1646_v21 = vadd.f32 %v11243_v35, %v1630_v42  ;;  %v7858_v43 = vld [vmem:[%s13531_s10 + $0x3b8] sm:$0xff] }
 0x23b   :  { %8345 = vmatprep.subr.bf16.mxu0 %v9173_v45  ;;  %v1768_v54 = vmul.f32 %v13726_v13, %v1655_v38  ;;  %v7855_v38 = vld [vmem:[%s13531_s10 + $0x3a0] sm:$0xff]  ;;  %v1629_v13 = vmul.f32 %v11213_v18, %v1613_v10  ;;  %v1618_v19 = vmul.f32 %v10574_v6, %v1602_v60  ;;  %v13727_v10 = vld [vmem:[#allocation38_spill] sm:$0xff]  ;;  %v7316_v42 = vld [vmem:[%s13522_s1 + $0x218] sm:$0xff] }
 0x23c   :  { %6521 = vperm.xlu1 %9141, %v7854_v30   ;;  %6516 = vperm.xlu0 %9140, %v7853_v34   ;;  %v1601_v30 = vsub.f32 %v7271_v44, %v9901_v22  ;;  %v11399_v34 = vpop.permute.xlu1 %4671  ;;  %v1659_v44 = vmax.f32 %v1643_v1, 0.0  ;;  %v1771_v20 = vmul.f32 %v13727_v10, %v1658_v56  ;;  %v13729_v60 = vld [vmem:[#allocation40_spill] sm:$0xff]  ;;  %v7315_v56 = vld [vmem:[%s13522_s1 + $0x210] sm:$0xff]  ;;  %v1662_v10 = vmax.f32 %v1646_v21, 0.0 }
 0x23d   :  { %v1782_v25 = vpack.c.bf16 %v1769_v52, %v1768_v54  ;;  %v7857_v52 = vld [vmem:[%s13531_s10 + $0x3b0] sm:$0xff]  ;;  %v13728_v54 = vld [vmem:[#allocation39_spill] sm:$0xff]  ;;  %v1985_v21 = vsub.f32 %v7315_v56, %v9901_v22 }
 0x23e   :  { %8346 = vmatpush3.bf16.msra.mxu0 %v9173_v45  ;;  %v1983_v45 = vsub.f32 %v7313_v51, %v9901_v22  ;;  %v1770_v1 = vmul.f32 %v13728_v54, %v1657_v0  ;;  %v1617_v53 = vmul.f32 %v10574_v6, %v1601_v30  ;;  %v1773_v51 = vmul.f32 %v13729_v60, %v1660_v4  ;;  %v7318_v0 = vld [vmem:[%s13522_s1 + $0x228] sm:$0xff]  ;;  %v7317_v60 = vld [vmem:[%s13522_s1 + $0x220] sm:$0xff]  ;;  %v13731_v56 = vld [vmem:[#allocation42_spill] sm:$0xff] }
 0x23f   :  { %8363 = vmatprep.subr.bf16.mxu0 %v9174_v47  ;;  %v13730_v30 = vld [vmem:[#allocation41_spill] sm:$0xff]  ;;  %v1634_v54 = vmul.f32 %v11213_v18, %v1618_v19  ;;  %v1988_v19 = vsub.f32 %v7318_v0, %v9901_v22  ;;  %v7320_v0 = vld [vmem:[%s13522_s1 + $0x238] sm:$0xff] }
 0x240   :  { %6531 = vperm.xlu1 %9141, %v7856_v61   ;;  %6526 = vperm.xlu0 %9140, %v7855_v38   ;;  %v1645_v61 = vadd.f32 %v11243_v35, %v1629_v13  ;;  %v1648_v38 = vadd.f32 %v11243_v35, %v1632_v49  ;;  %v1772_v4 = vmul.f32 %v13730_v30, %v1659_v44  ;;  %v7860_v44 = vld [vmem:[%s13531_s10 + $0x3c8] sm:$0xff] }
 0x241   :  { %8348 = vmatmul.mubr.bf16.vlgmr.msra.gmra.mrb[0].mxu0 %v1781_v63  ;;  %v2000_v63 = vmul.f32 %v10574_v6, %v1984_v12  ;;  %v1647_v13 = vadd.f32 %v11243_v35, %v1631_v14  ;;  %v1999_v49 = vmul.f32 %v10574_v6, %v1983_v45  ;;  %v11440_v12 = vpop.permute.xlu1 %4681  ;;  %v7859_v14 = vld [vmem:[%s13531_s10 + $0x3c0] sm:$0xff]  ;;  %v1633_v45 = vmul.f32 %v11213_v18, %v1617_v53 }
 0x242   :  { %8364 = vmatpush3.bf16.msra.mxu0 %v9174_v47  ;;  %8351 = vmatprep.mubr.bf16.mxu0 %v1782_v25  ;;  %v9176_v47 = vld [vmem:[%s13525_s4 + $0x110] sm:$0xff]   ;;  %v11442_v25 = vpop.permute.xlu0 %4676  ;;  %v1661_v30 = vmax.f32 %v1645_v61, 0.0  ;;  %v1664_v57 = vmax.f32 %v1648_v38, 0.0  ;;  %v1784_v11 = vpack.c.bf16 %v1773_v51, %v1772_v4 }
 0x243   :  { %8365 = vmatprep.subr.bf16.mxu0 %v9175_v58  ;;  %v2016_v59 = vmul.f32 %v11213_v18, %v2000_v63  ;;  %v1663_v46 = vmax.f32 %v1647_v13, 0.0  ;;  %v2015_v53 = vmul.f32 %v11213_v18, %v1999_v49  ;;  %v7861_v51 = vld [vmem:[%s13531_s10 + $0x3d0] sm:$0xff]  ;;  %v1649_v61 = vadd.f32 %v11243_v35, %v1633_v45  ;;  %v13732_v49 = vld [vmem:[#allocation43_spill] sm:$0xff] }
 0x244   :  { %6541 = vperm.xlu1 %9141, %v7858_v43   ;;  %6536 = vperm.xlu0 %9140, %v7857_v52   ;;  %v1986_v43 = vsub.f32 %v7316_v42, %v9901_v22  ;;  %v1783_v52 = vpack.c.bf16 %v1771_v20, %v1770_v1  ;;  %v1987_v42 = vsub.f32 %v7317_v60, %v9901_v22  ;;  %v7862_v1 = vld [vmem:[%s13531_s10 + $0x3d8] sm:$0xff] }
 0x245   :  { %v1650_v20 = vadd.f32 %v11243_v35, %v1634_v54  ;;  %v2001_v63 = vmul.f32 %v10574_v6, %v1985_v21  ;;  %v11478_v4 = vpop.permute.xlu1 %4691  ;;  %v1777_v54 = vmul.f32 %v10113_v5, %v1664_v57  ;;  %v2032_v60 = vadd.f32 %v11243_v35, %v2016_v59  ;;  %v7322_v5 = vld [vmem:[%s13522_s1 + $0x248] sm:$0xff] }
 0x246   :  { %8366 = vmatpush3.bf16.msra.mxu0 %v9175_v58  ;;  %v1775_v58 = vmul.f32 %v13731_v56, %v1662_v10  ;;  %v2002_v38 = vmul.f32 %v10574_v6, %v1986_v43  ;;  %v11480_v13 = vpop.permute.xlu0 %4686  ;;  %v1774_v10 = vmul.f32 %v13732_v49, %v1661_v30  ;;  %v2031_v43 = vadd.f32 %v11243_v35, %v2015_v53  ;;  %v9179_v49 = vld [vmem:[%s13525_s4 + $0x128] sm:$0xff]  }
 0x247   :  { %8367 = vmatprep.subr.bf16.mxu0 %v9176_v47  ;;  %v2003_v21 = vmul.f32 %v10574_v6, %v1987_v42  ;;  %v1666_v57 = vmax.f32 %v1650_v20, 0.0  ;;  %v1990_v59 = vsub.f32 %v7320_v0, %v9901_v22  ;;  %v1665_v30 = vmax.f32 %v1649_v61, 0.0 }
 0x248   :  { %6551 = vperm.xlu1 %9141, %v7860_v44   ;;  %6546 = vperm.xlu0 %9140, %v7859_v14   ;;  %v2004_v44 = vmul.f32 %v10574_v6, %v1988_v19  ;;  %v7319_v14 = vld [vmem:[%s13522_s1 + $0x230] sm:$0xff]  ;;  %v7321_v19 = vld [vmem:[%s13522_s1 + $0x240] sm:$0xff]  ;;  %v2018_v53 = vmul.f32 %v11213_v18, %v2002_v38  ;;  %v2017_v42 = vmul.f32 %v11213_v18, %v2001_v63  ;;  %v2047_v61 = vmax.f32 %v2031_v43, 0.0 }
 0x249   :  { %8352 = vmatmul.mubr.bf16.gmra.mrb[4].mxu0 %v1783_v52  ;;  %v7863_v52 = vld [vmem:[%s13531_s10 + $0x3e0] sm:$0xff]  ;;  %v1989_v56 = vsub.f32 %v7319_v14, %v9901_v22  ;;  %v1785_v20 = vpack.c.bf16 %v1775_v58, %v1774_v10  ;;  %v1992_v0 = vsub.f32 %v7322_v5, %v9901_v22  ;;  %v2019_v38 = vmul.f32 %v11213_v18, %v2003_v21  ;;  %v11518_v26 = vpop.permute.xlu1 %4936  ;;  %v13736_v58 = vld [vmem:[#allocation45_spill] sm:$0xff]  ;;  %v13737_v14 = vld [vmem:[#allocation46_spill] sm:$0xff] }
 0x24a   :  { %8368 = vmatpush3.bf16.msra.mxu0 %v9176_v47  ;;  %8355 = vmatprep.mubr.bf16.mxu0 %v1784_v11  ;;  %v9178_v11 = vld [vmem:[%s13525_s4 + $0x120] sm:$0xff]   ;;  %v1991_v63 = vsub.f32 %v7321_v19, %v9901_v22  ;;  %13734 = vst [vmem:[#allocation20_spill] sm:$0xff] %v11518_v26  ;;  %v1779_v10 = vmul.f32 %v13736_v58, %v1666_v57  ;;  %v7324_v5 = vld [vmem:[%s13522_s1 + $0x258] sm:$0xff]  ;;  %v7892_v58 = vld [vmem:[%s13531_s10 + $0x408] sm:$0xff] }
 0x24b   :  { %8369 = vmatprep.subr.bf16.mxu0 %v9177_v31  ;;  %v13733_v47 = vld [vmem:[#allocation44_spill] sm:$0xff]  ;;  %v2034_v43 = vadd.f32 %v11243_v35, %v2018_v53  ;;  %v2033_v21 = vadd.f32 %v11243_v35, %v2017_v42  ;;  %v13738_v57 = vld [vmem:[#allocation47_spill] sm:$0xff]  ;;  %v7326_v53 = vld [vmem:[%s13522_s1 + $0x268] sm:$0xff] }
 0x24c   :  { %v1776_v45 = vmul.f32 %v13733_v47, %v1663_v46  ;;  %6561 = vperm.xlu1 %9141, %v7862_v1   ;;  %6556 = vperm.xlu0 %9140, %v7861_v51   ;;  %v7864_v46 = vld [vmem:[%s13531_s10 + $0x3e8] sm:$0xff]  ;;  %v2048_v1 = vmax.f32 %v2032_v60, 0.0  ;;  %v2020_v51 = vmul.f32 %v11213_v18, %v2004_v44  ;;  %v2006_v60 = vmul.f32 %v10574_v6, %v1990_v59  ;;  %v7865_v44 = vld [vmem:[%s13531_s10 + $0x3f0] sm:$0xff]  ;;  %v13739_v42 = vld [vmem:[#allocation48_spill] sm:$0xff] }
 0x24e   :  { %8370 = vmatpush3.bf16.msra.mxu0 %v9177_v31  ;;  %v1786_v47 = vpack.c.bf16 %v1777_v54, %v1776_v45  ;;  %v11520_v31 = vpop.permute.xlu0 %4931  ;;  %v7866_v54 = vld [vmem:[%s13531_s10 + $0x3f8] sm:$0xff]  ;;  %v1778_v45 = vmul.f32 %v13737_v14, %v1665_v30  ;;  %v2161_v59 = vmul.f32 %v13738_v57, %v2048_v1  ;;  %v2036_v19 = vadd.f32 %v11243_v35, %v2020_v51  ;;  %v7323_v30 = vld [vmem:[%s13522_s1 + $0x250] sm:$0xff] }
 0x24f   :  { %8371 = vmatprep.subr.bf16.mxu0 %v9178_v11  ;;  %13735 = vst [vmem:[#allocation21_spill] sm:$0xff] %v11520_v31  ;;  %v2035_v1 = vadd.f32 %v11243_v35, %v2019_v38  ;;  %v2022_v51 = vmul.f32 %v11213_v18, %v2006_v60  ;;  %v2050_v38 = vmax.f32 %v2034_v43, 0.0  ;;  %v1996_v60 = vsub.f32 %v7326_v53, %v9901_v22  ;;  %v9181_v43 = vld [vmem:[%s13525_s4 + $0x138] sm:$0xff]  }
 0x250   :  { %6571 = vperm.xlu1 %9141, %v7864_v46   ;;  %6566 = vperm.xlu0 %9140, %v7863_v52   ;;  %v2005_v46 = vmul.f32 %v10574_v6, %v1989_v56  ;;  %v2008_v52 = vmul.f32 %v10574_v6, %v1992_v0  ;;  %v2007_v56 = vmul.f32 %v10574_v6, %v1991_v63  ;;  %v2049_v63 = vmax.f32 %v2033_v21, 0.0 }
 0x251   :  { %8356 = vmatmul.mubr.bf16.gmra.mrb[8].mxu0 %v1785_v20  ;;  %v2160_v20 = vmul.f32 %v13739_v42, %v2047_v61  ;;  %v1994_v0 = vsub.f32 %v7324_v5, %v9901_v22  ;;  %v7891_v61 = vld [vmem:[%s13531_s10 + $0x400] sm:$0xff]  ;;  %v1787_v5 = vpack.c.bf16 %v1779_v10, %v1778_v45  ;;  %v2052_v57 = vmax.f32 %v2036_v19, 0.0  ;;  %v7894_v19 = vld [vmem:[%s13531_s10 + $0x418] sm:$0xff] }
 0x252   :  { %8372 = vmatpush3.bf16.msra.mxu0 %v9178_v11  ;;  %8359 = vmatprep.mubr.bf16.mxu0 %v1786_v47  ;;  %v9180_v11 = vld [vmem:[%s13525_s4 + $0x130] sm:$0xff]   ;;  %v7325_v47 = vld [vmem:[%s13522_s1 + $0x260] sm:$0xff]  ;;  %v11567_v14 = vpop.permute.xlu0 %4941  ;;  %v2021_v42 = vmul.f32 %v11213_v18, %v2005_v46  ;;  %v2024_v26 = vmul.f32 %v11213_v18, %v2008_v52  ;;  %v2038_v10 = vadd.f32 %v11243_v35, %v2022_v51 }
 0x253   :  { %8373 = vmatprep.subr.bf16.mxu0 %v9179_v49  ;;  %v11574_v21 = vpack.c.bf16 %v2161_v59, %v2160_v20  ;;  %v1995_v53 = vsub.f32 %v7325_v47, %v9901_v22  ;;  %v2010_v45 = vmul.f32 %v10574_v6, %v1994_v0  ;;  %v7893_v59 = vld [vmem:[%s13531_s10 + $0x410] sm:$0xff]  ;;  %v2163_v46 = vmul.f32 %v10152_v39, %v2050_v38 }
 0x254   :  { %6581 = vperm.xlu1 %9141, %v7866_v54   ;;  %6576 = vperm.xlu0 %9140, %v7865_v44   ;;  %v1993_v54 = vsub.f32 %v7323_v30, %v9901_v22  ;;  %v11565_v44 = vpop.permute.xlu1 %4946  ;;  %v2051_v30 = vmax.f32 %v2035_v1, 0.0  ;;  %v2162_v52 = vmul.f32 %v10154_v33, %v2049_v63  ;;  %v7328_v1 = vld [vmem:[%s13522_s1 + $0x278] sm:$0xff]  ;;  %v2037_v0 = vadd.f32 %v11243_v35, %v2021_v42  ;;  %v7327_v39 = vld [vmem:[%s13522_s1 + $0x270] sm:$0xff]  ;;  %v7370_v33 = vld [vmem:[%s13522_s1 + $0x288] sm:$0xff] }
 0x255   :  { %13740 = vst [vmem:[#allocation22_spill] sm:$0xff] %v11574_v21  ;;  %v2040_v47 = vadd.f32 %v11243_v35, %v2024_v26  ;;  %v2011_v26 = vmul.f32 %v10574_v6, %v1995_v53  ;;  %v7369_v42 = vld [vmem:[%s13522_s1 + $0x280] sm:$0xff]  ;;  %v2054_v53 = vmax.f32 %v2038_v10, 0.0 }
 0x256   :  { %8374 = vmatpush3.bf16.msra.mxu0 %v9179_v49  ;;  %v2023_v49 = vmul.f32 %v11213_v18, %v2007_v56  ;;  %v2009_v20 = vmul.f32 %v10574_v6, %v1993_v54  ;;  %v13741_v56 = vld [vmem:[#allocation49_spill] sm:$0xff] }
 0x257   :  { %8375 = vmatprep.subr.bf16.mxu0 %v9180_v11  ;;  %v2165_v51 = vmul.f32 %v13741_v56, %v2052_v57  ;;  %v1998_v57 = vsub.f32 %v7328_v1, %v9901_v22  ;;  %v11627_v1 = vpack.c.bf16 %v2163_v46, %v2162_v52  ;;  %v2053_v56 = vmax.f32 %v2037_v0, 0.0  ;;  %v7902_v52 = vld [vmem:[%s13531_s10 + $0x458] sm:$0xff] }
 0x258   :  { %6826 = vperm.xlu1 %9141, %v7892_v58   ;;  %6821 = vperm.xlu0 %9140, %v7891_v61   ;;  %v2012_v58 = vmul.f32 %v10574_v6, %v1996_v60  ;;  %v13742_v61 = vld [vmem:[#allocation50_spill] sm:$0xff]  ;;  %v2039_v63 = vadd.f32 %v11243_v35, %v2023_v49  ;;  %v11609_v54 = vpop.permute.xlu1 %4956  ;;  %v11611_v60 = vpop.permute.xlu0 %4951  ;;  %v7899_v49 = vld [vmem:[%s13531_s10 + $0x440] sm:$0xff] }
 0x259   :  { %8360 = vmatmul.mubr.bf16.gmra.mrb[12].mxu0 %v1787_v5  ;;  %v2164_v38 = vmul.f32 %v13742_v61, %v2051_v30  ;;  %13743 = vst [vmem:[#allocation23_spill] sm:$0xff] %v11609_v54  ;;  %v2026_v5 = vmul.f32 %v11213_v18, %v2010_v45  ;;  %v7900_v30 = vld [vmem:[%s13531_s10 + $0x448] sm:$0xff]  ;;  %v2396_v45 = vsub.f32 %v7370_v33, %v9901_v22  ;;  %13744 = vst [vmem:[#allocation24_spill] sm:$0xff] %v11627_v1 }
 0x25a   :  { %8376 = vmatpush3.bf16.msra.mxu0 %v9180_v11  ;;  %8379 = vmatprep.mubr.bf16.mxu0 %v11574_v21  ;;  %v9182_v11 = vld [vmem:[%s13525_s4 + $0x140] sm:$0xff]   ;;  %v2056_v61 = vmax.f32 %v2040_v47, 0.0  ;;  %v2028_v31 = vmul.f32 %v11213_v18, %v2012_v58  ;;  %v9183_v21 = vld [vmem:[%s13525_s4 + $0x148] sm:$0xff]   ;;  %v2055_v10 = vmax.f32 %v2039_v63, 0.0  ;;  %v2014_v46 = vmul.f32 %v10574_v6, %v1998_v57 }
 0x25b   :  { %8377 = vmatprep.subr.bf16.mxu0 %v9181_v43  ;;  %v11633_v54 = vpack.c.bf16 %v2165_v51, %v2164_v38  ;;  %v7901_v51 = vld [vmem:[%s13531_s10 + $0x450] sm:$0xff]  ;;  %v2412_v58 = vmul.f32 %v10574_v6, %v2396_v45  ;;  %v2167_v63 = vmul.f32 %v10174_v50, %v2054_v53  ;;  %v7373_v53 = vld [vmem:[%s13522_s1 + $0x2a0] sm:$0xff] }
 0x25c   :  { %6836 = vperm.xlu1 %9141, %v7894_v19   ;;  %6831 = vperm.xlu0 %9140, %v7893_v59   ;;  %v2025_v19 = vmul.f32 %v11213_v18, %v2009_v20  ;;  %v1997_v59 = vsub.f32 %v7327_v39, %v9901_v22  ;;  %v2027_v20 = vmul.f32 %v11213_v18, %v2011_v26  ;;  %v11650_v33 = vpop.permute.xlu1 %4966  ;;  %v11652_v38 = vpop.permute.xlu0 %4961 }
 0x25d   :  { %13745 = vst [vmem:[#allocation25_spill] sm:$0xff] %v11633_v54  ;;  %v2395_v39 = vsub.f32 %v7369_v42, %v9901_v22  ;;  %13746 = vst [vmem:[#allocation26_spill] sm:$0xff] %v11650_v33  ;;  %v2166_v26 = vmul.f32 %v10176_v24, %v2053_v56  ;;  %v2044_v42 = vadd.f32 %v11243_v35, %v2028_v31  ;;  %v7371_v24 = vld [vmem:[%s13522_s1 + $0x290] sm:$0xff]  ;;  %v7374_v31 = vld [vmem:[%s13522_s1 + $0x2a8] sm:$0xff] }
 0x25e   :  { %8378 = vmatpush3.bf16.msra.mxu0 %v9181_v43  ;;  %v2042_v43 = vadd.f32 %v11243_v35, %v2026_v5  ;;  %v2041_v0 = vadd.f32 %v11243_v35, %v2025_v19  ;;  %v2013_v47 = vmul.f32 %v10574_v6, %v1997_v59  ;;  %v13747_v5 = vld [vmem:[#allocation51_spill] sm:$0xff]  ;;  %v2043_v59 = vadd.f32 %v11243_v35, %v2027_v20 }
 0x25f   :  { %8395 = vmatprep.subr.bf16.mxu0 %v9182_v11  ;;  %v2169_v57 = vmul.f32 %v13747_v5, %v2056_v61  ;;  %v2411_v50 = vmul.f32 %v10574_v6, %v2395_v39  ;;  %v2030_v56 = vmul.f32 %v11213_v18, %v2014_v46  ;;  %v7896_v61 = vld [vmem:[%s13531_s10 + $0x428] sm:$0xff]  ;;  %v2428_v5 = vmul.f32 %v11213_v18, %v2412_v58 }
 0x260   :  { %6866 = vperm.xlu1 %9141, %v7900_v30   ;;  %6861 = vperm.xlu0 %9140, %v7899_v49   ;;  %v7372_v30 = vld [vmem:[%s13522_s1 + $0x298] sm:$0xff]  ;;  %v13748_v49 = vld [vmem:[#allocation52_spill] sm:$0xff]  ;;  %v2058_v45 = vmax.f32 %v2042_v43, 0.0  ;;  %v2057_v20 = vmax.f32 %v2041_v0, 0.0  ;;  %v2029_v39 = vmul.f32 %v11213_v18, %v2013_v47  ;;  %v2397_v43 = vsub.f32 %v7371_v24, %v9901_v22 }
 0x261   :  { %8380 = vmatmul.mubr.bf16.vlgmr.msra.gmra.mrb[0].mxu0 %v11627_v1  ;;  %v2168_v19 = vmul.f32 %v13748_v49, %v2055_v10  ;;  %v7895_v10 = vld [vmem:[%s13531_s10 + $0x420] sm:$0xff]  ;;  %v2398_v49 = vsub.f32 %v7372_v30, %v9901_v22  ;;  %v2400_v46 = vsub.f32 %v7374_v31, %v9901_v22  ;;  %v9185_v0 = vld [vmem:[%s13525_s4 + $0x158] sm:$0xff]   ;;  %v2060_v47 = vmax.f32 %v2044_v42, 0.0  ;;  %v7897_v42 = vld [vmem:[%s13531_s10 + $0x430] sm:$0xff] }
 0x262   :  { %8396 = vmatpush3.bf16.msra.mxu0 %v9182_v11  ;;  %8383 = vmatprep.mubr.bf16.mxu0 %v11633_v54  ;;  %v9184_v11 = vld [vmem:[%s13525_s4 + $0x150] sm:$0xff]   ;;  %v2059_v58 = vmax.f32 %v2043_v59, 0.0  ;;  %v2427_v30 = vmul.f32 %v11213_v18, %v2411_v50  ;;  %v2046_v31 = vadd.f32 %v11243_v35, %v2030_v56  ;;  %v2045_v50 = vadd.f32 %v11243_v35, %v2029_v39  ;;  %v9186_v39 = vld [vmem:[%s13525_s4 + $0x160] sm:$0xff]  }
 0x263   :  { %8397 = vmatprep.subr.bf16.mxu0 %v9183_v21  ;;  %v11694_v54 = vpack.c.bf16 %v2169_v57, %v2168_v19  ;;  %v7898_v57 = vld [vmem:[%s13531_s10 + $0x438] sm:$0xff]  ;;  %v13754_v19 = vld [vmem:[#allocation54_spill] sm:$0xff]  ;;  %v2414_v56 = vmul.f32 %v10574_v6, %v2398_v49 }
 0x264   :  { %6876 = vperm.xlu1 %9141, %v7902_v52   ;;  %6871 = vperm.xlu0 %9140, %v7901_v51   ;;  %v11686_v52 = vpack.c.bf16 %v2167_v63, %v2166_v26  ;;  %v2399_v51 = vsub.f32 %v7373_v53, %v9901_v22  ;;  %v11699_v63 = vpop.permute.xlu0 %4971  ;;  %v13753_v26 = vld [vmem:[#allocation53_spill] sm:$0xff]  ;;  %v2170_v59 = vmul.f32 %v13754_v19, %v2057_v20  ;;  %v7375_v20 = vld [vmem:[%s13522_s1 + $0x2b0] sm:$0xff]  ;;  %v13756_v19 = vld [vmem:[#allocation56_spill] sm:$0xff] }
 0x265   :  { %13750 = vst [vmem:[#allocation28_spill] sm:$0xff] %v11694_v54  ;;  %13752 = vst [vmem:[#allocation30_spill] sm:$0xff] %v11699_v63  ;;  %v2171_v24 = vmul.f32 %v13753_v26, %v2058_v45  ;;  %v2444_v53 = vadd.f32 %v11243_v35, %v2428_v5  ;;  %v7376_v45 = vld [vmem:[%s13522_s1 + $0x2b8] sm:$0xff]  ;;  %v2443_v49 = vadd.f32 %v11243_v35, %v2427_v30 }
 0x266   :  { %8398 = vmatpush3.bf16.msra.mxu0 %v9183_v21  ;;  %13749 = vst [vmem:[#allocation27_spill] sm:$0xff] %v11686_v52  ;;  %v11697_v21 = vpop.permute.xlu1 %4976  ;;  %v2415_v26 = vmul.f32 %v10574_v6, %v2399_v51  ;;  %v2402_v51 = vsub.f32 %v7376_v45, %v9901_v22 }
 0x267   :  { %8399 = vmatprep.subr.bf16.mxu0 %v9184_v11  ;;  %13751 = vst [vmem:[#allocation29_spill] sm:$0xff] %v11697_v21  ;;  %v11743_v30 = vpack.c.bf16 %v2171_v24, %v2170_v59  ;;  %v9187_v24 = vld [vmem:[%s13525_s4 + $0x168] sm:$0xff]  }
 0x268   :  { %6846 = vperm.xlu1 %9141, %v7896_v61   ;;  %6841 = vperm.xlu0 %9140, %v7895_v10   ;;  %v2413_v61 = vmul.f32 %v10574_v6, %v2397_v43  ;;  %v2416_v10 = vmul.f32 %v10574_v6, %v2400_v46  ;;  %v7378_v43 = vld [vmem:[%s13522_s1 + $0x2c8] sm:$0xff]  ;;  %v2062_v46 = vmax.f32 %v2046_v31, 0.0  ;;  %v2401_v31 = vsub.f32 %v7375_v20, %v9901_v22  ;;  %v11748_v45 = vpop.permute.xlu0 %4981  ;;  %v13762_v20 = vld [vmem:[#allocation58_spill] sm:$0xff] }
 0x269   :  { %8384 = vmatmul.mubr.bf16.gmra.mrb[4].mxu0 %v11686_v52  ;;  %v7377_v52 = vld [vmem:[%s13522_s1 + $0x2c0] sm:$0xff]  ;;  %13757 = vst [vmem:[#allocation31_spill] sm:$0xff] %v11743_v30  ;;  %13759 = vst [vmem:[#allocation33_spill] sm:$0xff] %v11748_v45  ;;  %v2431_v63 = vmul.f32 %v11213_v18, %v2415_v26  ;;  %v7906_v26 = vld [vmem:[%s13531_s10 + $0x478] sm:$0xff] }
 0x26a   :  { %8400 = vmatpush3.bf16.msra.mxu0 %v9184_v11  ;;  %8387 = vmatprep.mubr.bf16.mxu0 %v11694_v54  ;;  %v13755_v11 = vld [vmem:[#allocation55_spill] sm:$0xff]  ;;  %v2172_v54 = vmul.f32 %v13756_v19, %v2059_v58  ;;  %v7903_v58 = vld [vmem:[%s13531_s10 + $0x460] sm:$0xff]  ;;  %v2430_v19 = vmul.f32 %v11213_v18, %v2414_v56  ;;  %v2429_v1 = vmul.f32 %v11213_v18, %v2413_v61  ;;  %v13761_v56 = vld [vmem:[#allocation57_spill] sm:$0xff] }
 0x26b   :  { %8401 = vmatprep.subr.bf16.mxu0 %v9185_v0  ;;  %v2173_v5 = vmul.f32 %v13755_v11, %v2060_v47  ;;  %v7904_v47 = vld [vmem:[%s13531_s10 + $0x468] sm:$0xff]  ;;  %v2061_v11 = vmax.f32 %v2045_v50, 0.0  ;;  %v2432_v21 = vmul.f32 %v11213_v18, %v2416_v10  ;;  %v2404_v50 = vsub.f32 %v7378_v43, %v9901_v22  ;;  %v7381_v45 = vld [vmem:[%s13522_s1 + $0x2e0] sm:$0xff] }
 0x26c   :  { %6856 = vperm.xlu1 %9141, %v7898_v57   ;;  %6851 = vperm.xlu0 %9140, %v7897_v42   ;;  %v2460_v57 = vmax.f32 %v2444_v53, 0.0  ;;  %v11746_v42 = vpop.permute.xlu1 %4986  ;;  %v2403_v53 = vsub.f32 %v7377_v52, %v9901_v22  ;;  %v2175_v61 = vmul.f32 %v13761_v56, %v2062_v46  ;;  %v2418_v10 = vmul.f32 %v10574_v6, %v2402_v51  ;;  %v7380_v46 = vld [vmem:[%s13522_s1 + $0x2d8] sm:$0xff] }
 0x26d   :  { %13758 = vst [vmem:[#allocation32_spill] sm:$0xff] %v11746_v42  ;;  %v11757_v59 = vpack.c.bf16 %v2173_v5, %v2172_v54  ;;  %v7905_v54 = vld [vmem:[%s13531_s10 + $0x470] sm:$0xff]  ;;  %v2174_v5 = vmul.f32 %v13762_v20, %v2061_v11  ;;  %v2417_v43 = vmul.f32 %v10574_v6, %v2401_v31  ;;  %v2446_v51 = vadd.f32 %v11243_v35, %v2430_v19  ;;  %v13764_v31 = vld [vmem:[#allocation60_spill] sm:$0xff]  ;;  %v11795_v20 = vpop.permute.xlu0 %4991 }
 0x26e   :  { %8402 = vmatpush3.bf16.msra.mxu0 %v9185_v0  ;;  %v2459_v0 = vmax.f32 %v2443_v49, 0.0  ;;  %v13763_v49 = vld [vmem:[#allocation59_spill] sm:$0xff]  ;;  %v2447_v56 = vadd.f32 %v11243_v35, %v2431_v63  ;;  %v7379_v11 = vld [vmem:[%s13522_s1 + $0x2d0] sm:$0xff]  ;;  %13766 = vst [vmem:[#allocation36_spill] sm:$0xff] %v11795_v20  ;;  %v2406_v42 = vsub.f32 %v7380_v46, %v9901_v22 }
 0x26f   :  { %8403 = vmatprep.subr.bf16.mxu0 %v9186_v39  ;;  %13760 = vst [vmem:[#allocation34_spill] sm:$0xff] %v11757_v59  ;;  %v2573_v52 = vmul.f32 %v13763_v49, %v2460_v57  ;;  %v7382_v57 = vld [vmem:[%s13522_s1 + $0x2e8] sm:$0xff]  ;;  %v2434_v49 = vmul.f32 %v11213_v18, %v2418_v10  ;;  %v9189_v10 = vld [vmem:[%s13525_s4 + $0x178] sm:$0xff]  }
 0x270   :  { %6886 = vperm.xlu1 %9141, %v7904_v47   ;;  %6881 = vperm.xlu0 %9140, %v7903_v58   ;;  %v2445_v47 = vadd.f32 %v11243_v35, %v2429_v1  ;;  %v2448_v58 = vadd.f32 %v11243_v35, %v2432_v21  ;;  %v2572_v19 = vmul.f32 %v13764_v31, %v2459_v0  ;;  %v11793_v63 = vpop.permute.xlu1 %4996  ;;  %v2462_v31 = vmax.f32 %v2446_v51, 0.0 }
 0x271   :  { %8388 = vmatmul.mubr.bf16.gmra.mrb[8].mxu0 %v11743_v30  ;;  %v2420_v1 = vmul.f32 %v10574_v6, %v2404_v50  ;;  %v2419_v21 = vmul.f32 %v10574_v6, %v2403_v53  ;;  %13765 = vst [vmem:[#allocation35_spill] sm:$0xff] %v11793_v63  ;;  %v2433_v0 = vmul.f32 %v11213_v18, %v2417_v43  ;;  %v2463_v63 = vmax.f32 %v2447_v56, 0.0  ;;  %v13769_v56 = vld [vmem:[#allocation62_spill] sm:$0xff] }
 0x272   :  { %8404 = vmatpush3.bf16.msra.mxu0 %v9186_v39  ;;  %8391 = vmatprep.mubr.bf16.mxu0 %v11757_v59  ;;  %v9188_v39 = vld [vmem:[%s13525_s4 + $0x170] sm:$0xff]   ;;  %v11802_v59 = vpack.c.bf16 %v2175_v61, %v2174_v5  ;;  %v2405_v50 = vsub.f32 %v7379_v11, %v9901_v22  ;;  %v2408_v53 = vsub.f32 %v7382_v57, %v9901_v22  ;;  %v13770_v57 = vld [vmem:[#allocation63_spill] sm:$0xff] }
 0x273   :  { %8405 = vmatprep.subr.bf16.mxu0 %v9187_v24  ;;  %v2588_v46 = vpack.c.bf16 %v2573_v52, %v2572_v19  ;;  %v2436_v61 = vmul.f32 %v11213_v18, %v2420_v1  ;;  %v2435_v5 = vmul.f32 %v11213_v18, %v2419_v21  ;;  %v2407_v43 = vsub.f32 %v7381_v45, %v9901_v22  ;;  %v7384_v52 = vld [vmem:[%s13522_s1 + $0x2f8] sm:$0xff]  ;;  %v13771_v1 = vld [vmem:[#allocation64_spill] sm:$0xff]  ;;  %v7383_v21 = vld [vmem:[%s13522_s1 + $0x2f0] sm:$0xff] }
 0x274   :  { %6896 = vperm.xlu1 %9141, %v7906_v26   ;;  %6891 = vperm.xlu0 %9140, %v7905_v54   ;;  %13767 = vst [vmem:[#allocation37_spill] sm:$0xff] %v11802_v59  ;;  %v2461_v26 = vmax.f32 %v2445_v47, 0.0  ;;  %v2464_v54 = vmax.f32 %v2448_v58, 0.0  ;;  %v2450_v11 = vadd.f32 %v11243_v35, %v2434_v49  ;;  %v2449_v51 = vadd.f32 %v11243_v35, %v2433_v0  ;;  %v13768_v58 = vld [vmem:[#allocation61_spill] sm:$0xff]  ;;  %v9190_v49 = vld [vmem:[%s13525_s4 + $0x180] sm:$0xff]  }
 0x275   :  { %v2421_v47 = vmul.f32 %v10574_v6, %v2405_v50  ;;  %v2575_v18 = vmul.f32 %v13768_v58, %v2462_v31  ;;  %v2451_v0 = vadd.f32 %v11243_v35, %v2435_v5  ;;  %v2424_v50 = vmul.f32 %v10574_v6, %v2408_v53 }
 0x276   :  { %8406 = vmatpush3.bf16.msra.mxu0 %v9187_v24  ;;  %v2422_v24 = vmul.f32 %v10574_v6, %v2406_v42  ;;  %v2574_v45 = vmul.f32 %v13769_v56, %v2461_v26  ;;  %v2577_v19 = vmul.f32 %v13770_v57, %v2464_v54  ;;  %v2576_v42 = vmul.f32 %v13771_v1, %v2463_v63  ;;  %v7426_v63 = vld [vmem:[%s13522_s1 + $0x308] sm:$0xff]  ;;  %v7425_v26 = vld [vmem:[%s13522_s1 + $0x300] sm:$0xff] }
 0x277   :  { %8407 = vmatprep.subr.bf16.mxu0 %v9188_v39  ;;  %v2423_v31 = vmul.f32 %v10574_v6, %v2407_v43  ;;  %v2466_v54 = vmax.f32 %v2450_v11, 0.0  ;;  %v2410_v53 = vsub.f32 %v7384_v52, %v9901_v22  ;;  %v2409_v43 = vsub.f32 %v7383_v21, %v9901_v22  ;;  %v9191_v1 = vld [vmem:[%s13525_s4 + $0x188] sm:$0xff]  }
 0x278   :  { %v2589_v58 = vpack.c.bf16 %v2575_v18, %v2574_v45  ;;  %v2590_v56 = vpack.c.bf16 %v2577_v19, %v2576_v42  ;;  %v2792_v57 = vsub.f32 %v7426_v63, %v9901_v22  ;;  %v2791_v11 = vsub.f32 %v7425_v26, %v9901_v22  ;;  %v13772_v52 = vld [vmem:[#allocation65_spill] sm:$0xff]  ;;  %v13773_v19 = vld [vmem:[#allocation66_spill] sm:$0xff] }
 0x279   :  { %8392 = vmatmul.mubr.bf16.gmra.mrb[12].mxu0 %v11802_v59  ;;  %v2467_v20 = vmax.f32 %v2451_v0, 0.0  ;;  %v2579_v21 = vmul.f32 %v13772_v52, %v2466_v54  ;;  %v2426_v45 = vmul.f32 %v10574_v6, %v2410_v53  ;;  %v2425_v0 = vmul.f32 %v10574_v6, %v2409_v43  ;;  %v7427_v26 = vld [vmem:[%s13522_s1 + $0x310] sm:$0xff] }
 0x27a   :  { %8408 = vmatpush3.bf16.msra.mxu0 %v9188_v39  ;;  %8411 = vmatprep.mubr.bf16.mxu0 %v2588_v46  ;;  %v2452_v39 = vadd.f32 %v11243_v35, %v2436_v61  ;;  %v11844_v46 = vld [vmem:[%s13523_s2] ss:$0 sm:$0xff]  ;;  %v2465_v61 = vmax.f32 %v2449_v51, 0.0  ;;  %v2807_v63 = vmul.f32 %v10574_v6, %v2791_v11  ;;  %v9192_v54 = vld [vmem:[%s13525_s4 + $0x190] sm:$0xff]  }
 0x27b   :  { %8409 = vmatprep.subr.bf16.mxu0 %v9189_v10  ;;  %v2438_v35 = vmul.f32 %v11844_v46, %v2422_v24  ;;  %v2437_v5 = vmul.f32 %v11844_v46, %v2421_v47  ;;  %v2440_v51 = vmul.f32 %v11844_v46, %v2424_v50  ;;  %v2439_v47 = vmul.f32 %v11844_v46, %v2423_v31  ;;  %v7428_v50 = vld [vmem:[%s13522_s1 + $0x318] sm:$0xff] }
 0x27c   :  { %v2468_v24 = vmax.f32 %v2452_v39, 0.0  ;;  %v2578_v42 = vmul.f32 %v13773_v19, %v2465_v61  ;;  %v2808_v31 = vmul.f32 %v10574_v6, %v2792_v57  ;;  %v13775_v61 = vld [vmem:[#allocation68_spill] sm:$0xff]  ;;  %v2442_v11 = vmul.f32 %v11844_v46, %v2426_v45 }
 0x27d   :  { %v2794_v52 = vsub.f32 %v7428_v50, %v9901_v22 }
 0x27e   :  { %8410 = vmatpush3.bf16.msra.mxu0 %v9189_v10  ;;  %v11861_v10 = vld [vmem:[%s13524_s3] ss:$0 sm:$0xff] }
 0x27f   :  { %8427 = vmatprep.subr.bf16.mxu0 %v9190_v49  ;;  %v2454_v18 = vadd.f32 %v11861_v10, %v2438_v35  ;;  %v2453_v39 = vadd.f32 %v11861_v10, %v2437_v5  ;;  %v13774_v35 = vld [vmem:[#allocation67_spill] sm:$0xff]  ;;  %v2580_v5 = vmul.f32 %v13775_v61, %v2467_v20  ;;  %v2455_v43 = vadd.f32 %v11861_v10, %v2439_v47 }
 0x280   :  { %v2581_v53 = vmul.f32 %v13774_v35, %v2468_v24  ;;  %v2591_v24 = vpack.c.bf16 %v2579_v21, %v2578_v42  ;;  %v2441_v20 = vmul.f32 %v11844_v46, %v2425_v0  ;;  %v2824_v47 = vmul.f32 %v11844_v46, %v2808_v31  ;;  %v13777_v31 = vld [vmem:[#allocation70_spill] sm:$0xff] }
 0x281   :  { %8412 = vmatmul.mubr.bf16.vlgmr.msra.gmra.mrb[0].mxu0 %v2589_v58  ;;  %v7430_v58 = vld [vmem:[%s13522_s1 + $0x328] sm:$0xff]  ;;  %v2470_v57 = vmax.f32 %v2454_v18, 0.0  ;;  %v2469_v19 = vmax.f32 %v2453_v39, 0.0  ;;  %v2823_v35 = vmul.f32 %v11844_v46, %v2807_v63  ;;  %v9193_v18 = vld [vmem:[%s13525_s4 + $0x198] sm:$0xff]   ;;  %v2471_v42 = vmax.f32 %v2455_v43, 0.0 }
 0x282   :  { %8428 = vmatpush3.bf16.msra.mxu0 %v9190_v49  ;;  %8415 = vmatprep.mubr.bf16.mxu0 %v2590_v56  ;;  %v2456_v49 = vadd.f32 %v11861_v10, %v2440_v51  ;;  %v7429_v56 = vld [vmem:[%s13522_s1 + $0x320] sm:$0xff]  ;;  %v2793_v51 = vsub.f32 %v7427_v26, %v9901_v22  ;;  %v2796_v61 = vsub.f32 %v7430_v58, %v9901_v22  ;;  %v13776_v39 = vld [vmem:[#allocation69_spill] sm:$0xff] }
 0x283   :  { %8429 = vmatprep.subr.bf16.mxu0 %v9191_v1  ;;  %v2795_v59 = vsub.f32 %v7429_v56, %v9901_v22  ;;  %v2592_v21 = vpack.c.bf16 %v2581_v53, %v2580_v5  ;;  %v2583_v0 = vmul.f32 %v13776_v39, %v2470_v57  ;;  %v2810_v50 = vmul.f32 %v10574_v6, %v2794_v52  ;;  %v7432_v56 = vld [vmem:[%s13522_s1 + $0x338] sm:$0xff]  ;;  %v7431_v57 = vld [vmem:[%s13522_s1 + $0x330] sm:$0xff] }
 0x284   :  { %v2472_v45 = vmax.f32 %v2456_v49, 0.0  ;;  %v2582_v63 = vmul.f32 %v13777_v31, %v2469_v19  ;;  %v2457_v26 = vadd.f32 %v11861_v10, %v2441_v20  ;;  %v2809_v58 = vmul.f32 %v10574_v6, %v2793_v51  ;;  %v13778_v52 = vld [vmem:[#allocation71_spill] sm:$0xff] }
 0x285   :  { %v2840_v53 = vadd.f32 %v11861_v10, %v2824_v47  ;;  %v2839_v5 = vadd.f32 %v11861_v10, %v2823_v35  ;;  %v2812_v49 = vmul.f32 %v10574_v6, %v2796_v61  ;;  %v2811_v43 = vmul.f32 %v10574_v6, %v2795_v59  ;;  %v7434_v59 = vld [vmem:[%s13522_s1 + $0x348] sm:$0xff]  ;;  %v7433_v35 = vld [vmem:[%s13522_s1 + $0x340] sm:$0xff] }
 0x286   :  { %8430 = vmatpush3.bf16.msra.mxu0 %v9191_v1  ;;  %v2458_v1 = vadd.f32 %v11861_v10, %v2442_v11  ;;  %v9194_v11 = vld [vmem:[%s13525_s4 + $0x1a0] sm:$0xff]   ;;  %v2826_v51 = vmul.f32 %v11844_v46, %v2810_v50  ;;  %v2798_v47 = vsub.f32 %v7432_v56, %v9901_v22  ;;  %v2593_v61 = vpack.c.bf16 %v2583_v0, %v2582_v63  ;;  %v9195_v56 = vld [vmem:[%s13525_s4 + $0x1a8] sm:$0xff]  }
 0x287   :  { %8431 = vmatprep.subr.bf16.mxu0 %v9192_v54  ;;  %v2825_v39 = vmul.f32 %v11844_v46, %v2809_v58  ;;  %v2828_v50 = vmul.f32 %v11844_v46, %v2812_v49  ;;  %v2827_v31 = vmul.f32 %v11844_v46, %v2811_v43  ;;  %v2800_v0 = vsub.f32 %v7434_v59, %v9901_v22 }
 0x288   :  { %v2474_v20 = vmax.f32 %v2458_v1, 0.0  ;;  %v2855_v1 = vmax.f32 %v2839_v5, 0.0  ;;  %v2799_v63 = vsub.f32 %v7433_v35, %v9901_v22  ;;  %v13781_v5 = vld [vmem:[#allocation74_spill] sm:$0xff] }
 0x289   :  { %8416 = vmatmul.mubr.bf16.gmra.mrb[4].mxu0 %v2591_v24  ;;  %v13779_v24 = vld [vmem:[#allocation72_spill] sm:$0xff]  ;;  %v2841_v43 = vadd.f32 %v11861_v10, %v2825_v39  ;;  %v7435_v35 = vld [vmem:[%s13522_s1 + $0x350] sm:$0xff] }
 0x28a   :  { %8432 = vmatpush3.bf16.msra.mxu0 %v9192_v54  ;;  %8419 = vmatprep.mubr.bf16.mxu0 %v2592_v21  ;;  %v2585_v54 = vmul.f32 %v13778_v52, %v2472_v45  ;;  %v2584_v19 = vmul.f32 %v13779_v24, %v2471_v42  ;;  %v2473_v21 = vmax.f32 %v2457_v26, 0.0  ;;  %v2797_v45 = vsub.f32 %v7431_v57, %v9901_v22  ;;  %v13780_v26 = vld [vmem:[#allocation73_spill] sm:$0xff]  ;;  %v13782_v24 = vld [vmem:[#allocation75_spill] sm:$0xff] }
 0x28b   :  { %8433 = vmatprep.subr.bf16.mxu0 %v9193_v18  ;;  %v2856_v42 = vmax.f32 %v2840_v53, 0.0  ;;  %v2587_v58 = vmul.f32 %v13780_v26, %v2474_v20  ;;  %v2814_v53 = vmul.f32 %v10574_v6, %v2798_v47  ;;  %v13783_v20 = vld [vmem:[#allocation76_spill] sm:$0xff]  ;;  %v2843_v47 = vadd.f32 %v11861_v10, %v2827_v31 }
 0x28c   :  { %v2594_v52 = vpack.c.bf16 %v2585_v54, %v2584_v19  ;;  %v2586_v49 = vmul.f32 %v13781_v5, %v2473_v21  ;;  %v2813_v57 = vmul.f32 %v10574_v6, %v2797_v45  ;;  %v7436_v54 = vld [vmem:[%s13522_s1 + $0x358] sm:$0xff]  ;;  %v2968_v59 = vmul.f32 %v13783_v20, %v2855_v1  ;;  %v7438_v1 = vld [vmem:[%s13522_s1 + $0x368] sm:$0xff] }
 0x28d   :  { %v2969_v19 = vmul.f32 %v13782_v24, %v2856_v42  ;;  %v2815_v21 = vmul.f32 %v10574_v6, %v2799_v63  ;;  %v2830_v45 = vmul.f32 %v11844_v46, %v2814_v53  ;;  %v2802_v42 = vsub.f32 %v7436_v54, %v9901_v22  ;;  %v9197_v5 = vld [vmem:[%s13525_s4 + $0x1b8] sm:$0xff]   ;;  %v13784_v20 = vld [vmem:[#allocation77_spill] sm:$0xff] }
 0x28e   :  { %8434 = vmatpush3.bf16.msra.mxu0 %v9193_v18  ;;  %v2842_v18 = vadd.f32 %v11861_v10, %v2826_v51  ;;  %v2844_v51 = vadd.f32 %v11861_v10, %v2828_v50  ;;  %v7437_v50 = vld [vmem:[%s13522_s1 + $0x360] sm:$0xff]  ;;  %v2857_v31 = vmax.f32 %v2841_v43, 0.0  ;;  %v2595_v63 = vpack.c.bf16 %v2587_v58, %v2586_v49  ;;  %v13785_v49 = vld [vmem:[#allocation78_spill] sm:$0xff] }
 0x28f   :  { %8435 = vmatprep.subr.bf16.mxu0 %v9194_v11  ;;  %v2984_v26 = vpack.c.bf16 %v2969_v19, %v2968_v59  ;;  %v2859_v53 = vmax.f32 %v2843_v47, 0.0  ;;  %v2831_v24 = vmul.f32 %v11844_v46, %v2815_v21  ;;  %v2804_v43 = vsub.f32 %v7438_v1, %v9901_v22  ;;  %v13786_v47 = vld [vmem:[#allocation79_spill] sm:$0xff]  ;;  %v13787_v21 = vld [vmem:[#allocation80_spill] sm:$0xff] }
 0x290   :  { %v2858_v39 = vmax.f32 %v2842_v18, 0.0  ;;  %v2860_v18 = vmax.f32 %v2844_v51, 0.0  ;;  %v2818_v58 = vmul.f32 %v10574_v6, %v2802_v42  ;;  %v2970_v19 = vmul.f32 %v13785_v49, %v2857_v31 }
 0x291   :  { %8420 = vmatmul.mubr.bf16.gmra.mrb[8].mxu0 %v2593_v61  ;;  %v9196_v61 = vld [vmem:[%s13525_s4 + $0x1b0] sm:$0xff]   ;;  %v2972_v1 = vmul.f32 %v13787_v21, %v2859_v53 }
 0x292   :  { %8436 = vmatpush3.bf16.msra.mxu0 %v9194_v11  ;;  %8423 = vmatprep.mubr.bf16.mxu0 %v2594_v52  ;;  %v2816_v11 = vmul.f32 %v10574_v6, %v2800_v0  ;;  %v2829_v52 = vmul.f32 %v11844_v46, %v2813_v57  ;;  %v2801_v0 = vsub.f32 %v7435_v35, %v9901_v22 }
 0x293   :  { %8437 = vmatprep.subr.bf16.mxu0 %v9195_v56  ;;  %v2803_v57 = vsub.f32 %v7437_v50, %v9901_v22  ;;  %v2971_v35 = vmul.f32 %v13784_v20, %v2858_v39  ;;  %v7440_v39 = vld [vmem:[%s13522_s1 + $0x378] sm:$0xff]  ;;  %v2847_v50 = vadd.f32 %v11861_v10, %v2831_v24 }
 0x294   :  { %v2832_v54 = vmul.f32 %v11844_v46, %v2816_v11  ;;  %v2845_v59 = vadd.f32 %v11861_v10, %v2829_v52  ;;  %v2817_v51 = vmul.f32 %v10574_v6, %v2801_v0  ;;  %v2973_v11 = vmul.f32 %v13786_v47, %v2860_v18  ;;  %v7439_v52 = vld [vmem:[%s13522_s1 + $0x370] sm:$0xff]  ;;  %v7482_v0 = vld [vmem:[%s13522_s1 + $0x388] sm:$0xff] }
 0x295   :  { %v2819_v31 = vmul.f32 %v10574_v6, %v2803_v57  ;;  %v2834_v18 = vmul.f32 %v11844_v46, %v2818_v58  ;;  %v2985_v53 = vpack.c.bf16 %v2971_v35, %v2970_v19  ;;  %v2805_v20 = vsub.f32 %v7439_v52, %v9901_v22 }
 0x296   :  { %8438 = vmatpush3.bf16.msra.mxu0 %v9195_v56  ;;  %v2846_v56 = vadd.f32 %v11861_v10, %v2830_v45  ;;  %v9198_v45 = vld [vmem:[%s13525_s4 + $0x1c0] sm:$0xff]   ;;  %v2848_v42 = vadd.f32 %v11861_v10, %v2832_v54  ;;  %v2861_v54 = vmax.f32 %v2845_v59, 0.0  ;;  %v2833_v24 = vmul.f32 %v11844_v46, %v2817_v51  ;;  %v13788_v51 = vld [vmem:[#allocation81_spill] sm:$0xff] }
 0x297   :  { %8439 = vmatprep.subr.bf16.mxu0 %v9196_v61  ;;  %v2986_v57 = vpack.c.bf16 %v2973_v11, %v2972_v1  ;;  %v3188_v49 = vsub.f32 %v7482_v0, %v9901_v22  ;;  %v2863_v35 = vmax.f32 %v2847_v50, 0.0  ;;  %v2835_v59 = vmul.f32 %v11844_v46, %v2819_v31  ;;  %v13789_v1 = vld [vmem:[#allocation82_spill] sm:$0xff] }
 0x298   :  { %v2864_v58 = vmax.f32 %v2848_v42, 0.0  ;;  %v2850_v21 = vadd.f32 %v11861_v10, %v2834_v18  ;;  %v2849_v52 = vadd.f32 %v11861_v10, %v2833_v24  ;;  %v7483_v50 = vld [vmem:[%s13522_s1 + $0x390] sm:$0xff]  ;;  %v2821_v31 = vmul.f32 %v10574_v6, %v2805_v20  ;;  %v7485_v18 = vld [vmem:[%s13522_s1 + $0x3a0] sm:$0xff] }
 0x299   :  { %8424 = vmatmul.mubr.bf16.gmra.mrb[12].mxu0 %v2595_v63  ;;  %v7481_v63 = vld [vmem:[%s13522_s1 + $0x380] sm:$0xff]  ;;  %v3204_v0 = vmul.f32 %v10574_v6, %v3188_v49  ;;  %v2851_v20 = vadd.f32 %v11861_v10, %v2835_v59  ;;  %v3191_v33 = vsub.f32 %v7485_v18, %v9901_v22  ;;  %v7488_v18 = vld [vmem:[%s13522_s1 + $0x3b8] sm:$0xff] }
 0x29a   :  { %8440 = vmatpush3.bf16.msra.mxu0 %v9196_v61  ;;  %8443 = vmatprep.mubr.bf16.mxu0 %v2984_v26  ;;  %v2820_v61 = vmul.f32 %v10574_v6, %v2804_v43  ;;  %v2862_v26 = vmax.f32 %v2846_v56, 0.0  ;;  %v2806_v43 = vsub.f32 %v7440_v39, %v9901_v22  ;;  %v3187_v47 = vsub.f32 %v7481_v63, %v9901_v22  ;;  %v9199_v56 = vld [vmem:[%s13525_s4 + $0x1c8] sm:$0xff]   ;;  %v13791_v24 = vld [vmem:[#allocation84_spill] sm:$0xff] }
 0x29b   :  { %8441 = vmatprep.subr.bf16.mxu0 %v9197_v5  ;;  %v2974_v39 = vmul.f32 %v13789_v1, %v2861_v54  ;;  %v13790_v54 = vld [vmem:[#allocation83_spill] sm:$0xff]  ;;  %v2866_v49 = vmax.f32 %v2850_v21, 0.0  ;;  %v2865_v1 = vmax.f32 %v2849_v52, 0.0  ;;  %v2867_v52 = vmax.f32 %v2851_v20, 0.0 }
 0x29c   :  { %v2836_v19 = vmul.f32 %v11844_v46, %v2820_v61  ;;  %v2975_v11 = vmul.f32 %v13788_v51, %v2862_v26  ;;  %v2822_v42 = vmul.f32 %v10574_v6, %v2806_v43  ;;  %v7486_v61 = vld [vmem:[%s13522_s1 + $0x3a8] sm:$0xff]  ;;  %v3203_v63 = vmul.f32 %v10574_v6, %v3187_v47  ;;  %v9201_v21 = vld [vmem:[%s13525_s4 + $0x1d8] sm:$0xff]  }
 0x29d   :  { %v2976_v43 = vmul.f32 %v13791_v24, %v2863_v35  ;;  %v3189_v47 = vsub.f32 %v7483_v50, %v9901_v22  ;;  %v3220_v35 = vmul.f32 %v11844_v46, %v3204_v0 }
 0x29e   :  { %8442 = vmatpush3.bf16.msra.mxu0 %v9197_v5  ;;  %v7484_v5 = vld [vmem:[%s13522_s1 + $0x398] sm:$0xff]  ;;  %v2987_v51 = vpack.c.bf16 %v2975_v11, %v2974_v39  ;;  %v2838_v30 = vmul.f32 %v11844_v46, %v2822_v42  ;;  %v13792_v42 = vld [vmem:[#allocation85_spill] sm:$0xff] }
 0x29f   :  { %8459 = vmatprep.subr.bf16.mxu0 %v9198_v45  ;;  %v3190_v26 = vsub.f32 %v7484_v5, %v9901_v22  ;;  %v3192_v5 = vsub.f32 %v7486_v61, %v9901_v22  ;;  %v2979_v50 = vmul.f32 %v13792_v42, %v2866_v49  ;;  %v3236_v24 = vadd.f32 %v11861_v10, %v3220_v35  ;;  %v13795_v49 = vld [vmem:[#allocation88_spill] sm:$0xff] }
 0x2a0   :  { %v7489_v35 = vld [vmem:[%s13522_s1 + $0x3c0] sm:$0xff] }
 0x2a1   :  { %8444 = vmatmul.mubr.bf16.vlgmr.msra.gmra.mrb[0].mxu0 %v2985_v53  ;;  %v9200_v53 = vld [vmem:[%s13525_s4 + $0x1d0] sm:$0xff]   ;;  %v3206_v59 = vmul.f32 %v10574_v6, %v3190_v26  ;;  %v3208_v61 = vmul.f32 %v10574_v6, %v3192_v5  ;;  %v3207_v26 = vmul.f32 %v10574_v6, %v3191_v33  ;;  %v9202_v33 = vld [vmem:[%s13525_s4 + $0x1e0] sm:$0xff]  }
 0x2a2   :  { %8460 = vmatpush3.bf16.msra.mxu0 %v9198_v45  ;;  %8447 = vmatprep.mubr.bf16.mxu0 %v2986_v57  ;;  %v2977_v45 = vmul.f32 %v13790_v54, %v2864_v58  ;;  %v2852_v57 = vadd.f32 %v11861_v10, %v2836_v19  ;;  %v2837_v58 = vmul.f32 %v11844_v46, %v2821_v31  ;;  %v13793_v31 = vld [vmem:[#allocation86_spill] sm:$0xff] }
 0x2a3   :  { %8461 = vmatprep.subr.bf16.mxu0 %v9199_v56  ;;  %v3219_v19 = vmul.f32 %v11844_v46, %v3203_v63  ;;  %v2978_v0 = vmul.f32 %v13793_v31, %v2865_v1  ;;  %v2854_v63 = vadd.f32 %v11861_v10, %v2838_v30  ;;  %v7487_v54 = vld [vmem:[%s13522_s1 + $0x3b0] sm:$0xff]  ;;  %v3222_v30 = vmul.f32 %v11844_v46, %v3206_v59 }
 0x2a4   :  { %v2988_v11 = vpack.c.bf16 %v2977_v45, %v2976_v43  ;;  %v2868_v39 = vmax.f32 %v2852_v57, 0.0  ;;  %v2853_v45 = vadd.f32 %v11861_v10, %v2837_v58  ;;  %v13794_v57 = vld [vmem:[#allocation87_spill] sm:$0xff]  ;;  %v3224_v5 = vmul.f32 %v11844_v46, %v3208_v61  ;;  %v7490_v58 = vld [vmem:[%s13522_s1 + $0x3c8] sm:$0xff] }
 0x2a5   :  { %v3235_v43 = vadd.f32 %v11861_v10, %v3219_v19  ;;  %v3193_v1 = vsub.f32 %v7487_v54, %v9901_v22  ;;  %v2989_v19 = vpack.c.bf16 %v2979_v50, %v2978_v0  ;;  %v2870_v59 = vmax.f32 %v2854_v63, 0.0  ;;  %v9203_v61 = vld [vmem:[%s13525_s4 + $0x1e8] sm:$0xff]  }
 0x2a6   :  { %8462 = vmatpush3.bf16.msra.mxu0 %v9199_v56  ;;  %v3205_v56 = vmul.f32 %v10574_v6, %v3189_v47  ;;  %v2981_v20 = vmul.f32 %v13794_v57, %v2868_v39  ;;  %v2980_v47 = vmul.f32 %v13795_v49, %v2867_v52  ;;  %v2869_v39 = vmax.f32 %v2853_v45, 0.0  ;;  %v13798_v57 = vld [vmem:[#allocation91_spill] sm:$0xff]  ;;  %v13799_v49 = vld [vmem:[#allocation92_spill] sm:$0xff] }
 0x2a7   :  { %8463 = vmatprep.subr.bf16.mxu0 %v9200_v53  ;;  %v3252_v52 = vmax.f32 %v3236_v24, 0.0  ;;  %v3251_v42 = vmax.f32 %v3235_v43, 0.0  ;;  %v3195_v54 = vsub.f32 %v7489_v35, %v9901_v22  ;;  %v3240_v0 = vadd.f32 %v11861_v10, %v3224_v5  ;;  %v13797_v43 = vld [vmem:[#allocation90_spill] sm:$0xff]  ;;  %v7492_v5 = vld [vmem:[%s13522_s1 + $0x3d8] sm:$0xff] }
 0x2a8   :  { %v2990_v31 = vpack.c.bf16 %v2981_v20, %v2980_v47  ;;  %v3209_v63 = vmul.f32 %v10574_v6, %v3193_v1 }
 0x2a9   :  { %8448 = vmatmul.mubr.bf16.gmra.mrb[4].mxu0 %v2987_v51  ;;  %v3194_v51 = vsub.f32 %v7488_v18, %v9901_v22  ;;  %v3196_v18 = vsub.f32 %v7490_v58, %v9901_v22  ;;  %v3365_v20 = vmul.f32 %v13798_v57, %v3252_v52  ;;  %v3364_v47 = vmul.f32 %v13799_v49, %v3251_v42  ;;  %v7493_v52 = vld [vmem:[%s13522_s1 + $0x3e0] sm:$0xff]  ;;  %v13801_v57 = vld [vmem:[#allocation94_spill] sm:$0xff] }
 0x2aa   :  { %8464 = vmatpush3.bf16.msra.mxu0 %v9200_v53  ;;  %8451 = vmatprep.mubr.bf16.mxu0 %v2988_v11  ;;  %v3221_v53 = vmul.f32 %v11844_v46, %v3205_v56  ;;  %v3223_v11 = vmul.f32 %v11844_v46, %v3207_v26  ;;  %v3238_v56 = vadd.f32 %v11861_v10, %v3222_v30  ;;  %v13796_v26 = vld [vmem:[#allocation89_spill] sm:$0xff] }
 0x2ab   :  { %8465 = vmatprep.subr.bf16.mxu0 %v9201_v21  ;;  %v2983_v45 = vmul.f32 %v13796_v26, %v2870_v59  ;;  %v2982_v30 = vmul.f32 %v13797_v43, %v2869_v39  ;;  %v3212_v1 = vmul.f32 %v10574_v6, %v3196_v18  ;;  %v3211_v58 = vmul.f32 %v10574_v6, %v3195_v54  ;;  %v7494_v39 = vld [vmem:[%s13522_s1 + $0x3e8] sm:$0xff] }
 0x2ac   :  { %v3237_v50 = vadd.f32 %v11861_v10, %v3221_v53  ;;  %v3239_v24 = vadd.f32 %v11861_v10, %v3223_v11  ;;  %v3254_v53 = vmax.f32 %v3238_v56, 0.0  ;;  %v3225_v11 = vmul.f32 %v11844_v46, %v3209_v63 }
 0x2ad   :  { %v3198_v56 = vsub.f32 %v7492_v5, %v9901_v22  ;;  %v2991_v18 = vpack.c.bf16 %v2983_v45, %v2982_v30  ;;  %v3380_v54 = vpack.c.bf16 %v3365_v20, %v3364_v47  ;;  %v3228_v63 = vmul.f32 %v11844_v46, %v3212_v1  ;;  %v13803_v47 = vld [vmem:[#allocation96_spill] sm:$0xff]  ;;  %v7496_v1 = vld [vmem:[%s13522_s1 + $0x3f8] sm:$0xff] }
 0x2ae   :  { %8466 = vmatpush3.bf16.msra.mxu0 %v9201_v21  ;;  %v3210_v21 = vmul.f32 %v10574_v6, %v3194_v51  ;;  %v7491_v51 = vld [vmem:[%s13522_s1 + $0x3d0] sm:$0xff]  ;;  %v3253_v35 = vmax.f32 %v3237_v50, 0.0  ;;  %v3255_v42 = vmax.f32 %v3239_v24, 0.0  ;;  %v13800_v50 = vld [vmem:[#allocation93_spill] sm:$0xff]  ;;  %v3227_v26 = vmul.f32 %v11844_v46, %v3211_v58  ;;  %v9206_v58 = vld [vmem:[%s13525_s4 + $0x200] sm:$0xff]  }
 0x2af   :  { %8467 = vmatprep.subr.bf16.mxu0 %v9202_v33  ;;  %v3200_v24 = vsub.f32 %v7494_v39, %v9901_v22  ;;  %v3199_v43 = vsub.f32 %v7493_v52, %v9901_v22  ;;  %v3241_v20 = vadd.f32 %v11861_v10, %v3225_v11  ;;  %v3214_v5 = vmul.f32 %v10574_v6, %v3198_v56  ;;  %v7538_v39 = vld [vmem:[%s13522_s1 + $0x408] sm:$0xff]  ;;  %v7537_v52 = vld [vmem:[%s13522_s1 + $0x400] sm:$0xff] }
 0x2b0   :  { %v3226_v59 = vmul.f32 %v11844_v46, %v3210_v21  ;;  %v9205_v21 = vld [vmem:[%s13525_s4 + $0x1f8] sm:$0xff]   ;;  %v3366_v49 = vmul.f32 %v13801_v57, %v3253_v35  ;;  %v3244_v35 = vadd.f32 %v11861_v10, %v3228_v63  ;;  %v3202_v63 = vsub.f32 %v7496_v1, %v9901_v22  ;;  %v7539_v1 = vld [vmem:[%s13522_s1 + $0x410] sm:$0xff] }
 0x2b1   :  { %8452 = vmatmul.mubr.bf16.gmra.mrb[8].mxu0 %v2989_v19  ;;  %v3256_v19 = vmax.f32 %v3240_v0, 0.0  ;;  %v3367_v0 = vmul.f32 %v13800_v50, %v3254_v53  ;;  %v3368_v53 = vmul.f32 %v13803_v47, %v3255_v42  ;;  %v3215_v11 = vmul.f32 %v10574_v6, %v3199_v43 }
 0x2b2   :  { %8468 = vmatpush3.bf16.msra.mxu0 %v9202_v33  ;;  %8455 = vmatprep.mubr.bf16.mxu0 %v2990_v31  ;;  %v9204_v33 = vld [vmem:[%s13525_s4 + $0x1f0] sm:$0xff]   ;;  %v3197_v31 = vsub.f32 %v7491_v51, %v9901_v22  ;;  %v3242_v30 = vadd.f32 %v11861_v10, %v3226_v59  ;;  %v3216_v59 = vmul.f32 %v10574_v6, %v3200_v24  ;;  %v3260_v57 = vmax.f32 %v3244_v35, 0.0  ;;  %v7542_v35 = vld [vmem:[%s13522_s1 + $0x428] sm:$0xff] }
 0x2b3   :  { %8469 = vmatprep.subr.bf16.mxu0 %v9203_v61  ;;  %v3381_v42 = vpack.c.bf16 %v3367_v0, %v3366_v49  ;;  %v3584_v24 = vsub.f32 %v7538_v39, %v9901_v22  ;;  %v3583_v43 = vsub.f32 %v7537_v52, %v9901_v22  ;;  %v9207_v0 = vld [vmem:[%s13525_s4 + $0x208] sm:$0xff]   ;;  %v7541_v39 = vld [vmem:[%s13522_s1 + $0x420] sm:$0xff]  ;;  %v9208_v52 = vld [vmem:[%s13525_s4 + $0x210] sm:$0xff]  }
 0x2b4   :  { %v3213_v51 = vmul.f32 %v10574_v6, %v3197_v31  ;;  %v3258_v56 = vmax.f32 %v3242_v30, 0.0 }
 0x2b6   :  { %8470 = vmatpush3.bf16.msra.mxu0 %v9203_v61  ;;  %v13802_v61 = vld [vmem:[#allocation95_spill] sm:$0xff]  ;;  %v3229_v50 = vmul.f32 %v11844_v46, %v3213_v51 }
 0x2b7   :  { %8471 = vmatprep.subr.bf16.mxu0 %v9204_v33  ;;  %v3369_v45 = vmul.f32 %v13802_v61, %v3256_v19  ;;  %v3243_v19 = vadd.f32 %v11861_v10, %v3227_v26  ;;  %v3232_v61 = vmul.f32 %v11844_v46, %v3216_v59  ;;  %v7540_v51 = vld [vmem:[%s13522_s1 + $0x418] sm:$0xff] }
 0x2b9   :  { %8456 = vmatmul.mubr.bf16.gmra.mrb[12].mxu0 %v2991_v18  ;;  %v3382_v31 = vpack.c.bf16 %v3369_v45, %v3368_v53  ;;  %v3257_v18 = vmax.f32 %v3241_v20, 0.0  ;;  %v3259_v49 = vmax.f32 %v3243_v19, 0.0  ;;  %v3231_v45 = vmul.f32 %v11844_v46, %v3215_v11  ;;  %v13805_v20 = vld [vmem:[#allocation98_spill] sm:$0xff] }
 0x2ba   :  { %8472 = vmatpush3.bf16.msra.mxu0 %v9204_v33  ;;  %8475 = vmatprep.mubr.bf16.mxu0 %v3380_v54  ;;  %v7495_v33 = vld [vmem:[%s13522_s1 + $0x3f0] sm:$0xff]  ;;  %v3230_v54 = vmul.f32 %v11844_v46, %v3214_v5  ;;  %v3245_v5 = vadd.f32 %v11861_v10, %v3229_v50  ;;  %v3218_v19 = vmul.f32 %v10574_v6, %v3202_v63 }
 0x2bb   :  { %8473 = vmatprep.subr.bf16.mxu0 %v9205_v21  ;;  %v3201_v26 = vsub.f32 %v7495_v33, %v9901_v22  ;;  %v3370_v47 = vmul.f32 %v13805_v20, %v3257_v18  ;;  %v3600_v11 = vmul.f32 %v10574_v6, %v3584_v24  ;;  %v3599_v33 = vmul.f32 %v10574_v6, %v3583_v43 }
 0x2bc   :  { %v3246_v53 = vadd.f32 %v11861_v10, %v3230_v54  ;;  %v3248_v18 = vadd.f32 %v11861_v10, %v3232_v61  ;;  %v3247_v54 = vadd.f32 %v11861_v10, %v3231_v45  ;;  %v3586_v50 = vsub.f32 %v7540_v51, %v9901_v22  ;;  %v9209_v51 = vld [vmem:[%s13525_s4 + $0x218] sm:$0xff]  }
 0x2bd   :  { %v3217_v59 = vmul.f32 %v10574_v6, %v3201_v26  ;;  %v3585_v63 = vsub.f32 %v7539_v1, %v9901_v22  ;;  %v3588_v26 = vsub.f32 %v7542_v35, %v9901_v22  ;;  %v3587_v20 = vsub.f32 %v7541_v39, %v9901_v22  ;;  %v13808_v35 = vld [vmem:[#allocation101_spill] sm:$0xff] }
 0x2be   :  { %8474 = vmatpush3.bf16.msra.mxu0 %v9205_v21  ;;  %v13804_v21 = vld [vmem:[#allocation97_spill] sm:$0xff]  ;;  %v3262_v43 = vmax.f32 %v3246_v53, 0.0  ;;  %v3616_v61 = vmul.f32 %v11844_v46, %v3600_v11  ;;  %v3615_v45 = vmul.f32 %v11844_v46, %v3599_v33  ;;  %v3602_v53 = vmul.f32 %v10574_v6, %v3586_v50 }
 0x2bf   :  { %8491 = vmatprep.subr.bf16.mxu0 %v9206_v58  ;;  %v3371_v30 = vmul.f32 %v13804_v21, %v3258_v56  ;;  %v13807_v56 = vld [vmem:[#allocation100_spill] sm:$0xff]  ;;  %v3261_v21 = vmax.f32 %v3245_v5, 0.0  ;;  %v3604_v5 = vmul.f32 %v10574_v6, %v3588_v26  ;;  %v3603_v33 = vmul.f32 %v10574_v6, %v3587_v20  ;;  %v7546_v20 = vld [vmem:[%s13522_s1 + $0x448] sm:$0xff] }
 0x2c1   :  { %8476 = vmatmul.mubr.bf16.vlgmr.msra.gmra.mrb[0].mxu0 %v3381_v42  ;;  %v13806_v42 = vld [vmem:[#allocation99_spill] sm:$0xff]  ;;  %v3383_v24 = vpack.c.bf16 %v3371_v30, %v3370_v47  ;;  %v3264_v30 = vmax.f32 %v3248_v18, 0.0  ;;  %v3263_v47 = vmax.f32 %v3247_v54, 0.0  ;;  %v7543_v18 = vld [vmem:[%s13522_s1 + $0x430] sm:$0xff] }
 0x2c2   :  { %8492 = vmatpush3.bf16.msra.mxu0 %v9206_v58  ;;  %8479 = vmatprep.mubr.bf16.mxu0 %v3382_v31  ;;  %v3373_v58 = vmul.f32 %v13806_v42, %v3260_v57  ;;  %v3372_v31 = vmul.f32 %v13807_v56, %v3259_v49  ;;  %v3234_v57 = vmul.f32 %v11844_v46, %v3218_v19  ;;  %v13810_v54 = vld [vmem:[#allocation103_spill] sm:$0xff] }
 0x2c3   :  { %8493 = vmatprep.subr.bf16.mxu0 %v9207_v0  ;;  %v3233_v49 = vmul.f32 %v11844_v46, %v3217_v59  ;;  %v3375_v19 = vmul.f32 %v13808_v35, %v3262_v43  ;;  %v13809_v59 = vld [vmem:[#allocation102_spill] sm:$0xff]  ;;  %v3631_v56 = vadd.f32 %v11861_v10, %v3615_v45  ;;  %v3377_v50 = vmul.f32 %v13810_v54, %v3264_v30 }
 0x2c4   :  { %v3384_v1 = vpack.c.bf16 %v3373_v58, %v3372_v31  ;;  %v3374_v11 = vmul.f32 %v13809_v59, %v3261_v21  ;;  %v3250_v39 = vadd.f32 %v11861_v10, %v3234_v57  ;;  %v3632_v58 = vadd.f32 %v11861_v10, %v3616_v61  ;;  %v7544_v31 = vld [vmem:[%s13522_s1 + $0x438] sm:$0xff]  ;;  %v7545_v57 = vld [vmem:[%s13522_s1 + $0x440] sm:$0xff] }
 0x2c5   :  { %v3249_v42 = vadd.f32 %v11861_v10, %v3233_v49  ;;  %v3620_v21 = vmul.f32 %v11844_v46, %v3604_v5  ;;  %v3619_v61 = vmul.f32 %v11844_v46, %v3603_v33  ;;  %v3590_v45 = vsub.f32 %v7544_v31, %v9901_v22  ;;  %v9211_v5 = vld [vmem:[%s13525_s4 + $0x228] sm:$0xff]  }
 0x2c6   :  { %8494 = vmatpush3.bf16.msra.mxu0 %v9207_v0  ;;  %v3601_v0 = vmul.f32 %v10574_v6, %v3585_v63  ;;  %v13811_v63 = vld [vmem:[#allocation104_spill] sm:$0xff]  ;;  %v3385_v49 = vpack.c.bf16 %v3375_v19, %v3374_v11  ;;  %v3266_v30 = vmax.f32 %v3250_v39, 0.0  ;;  %v3592_v59 = vsub.f32 %v7546_v20, %v9901_v22 }
 0x2c7   :  { %8495 = vmatprep.subr.bf16.mxu0 %v9208_v52  ;;  %v3376_v26 = vmul.f32 %v13811_v63, %v3263_v47  ;;  %v3265_v47 = vmax.f32 %v3249_v42, 0.0  ;;  %v3591_v19 = vsub.f32 %v7545_v57, %v9901_v22  ;;  %v3635_v39 = vadd.f32 %v11861_v10, %v3619_v61  ;;  %v7547_v57 = vld [vmem:[%s13522_s1 + $0x450] sm:$0xff] }
 0x2c8   :  { %v3617_v43 = vmul.f32 %v11844_v46, %v3601_v0  ;;  %v3647_v0 = vmax.f32 %v3631_v56, 0.0  ;;  %v3606_v42 = vmul.f32 %v10574_v6, %v3590_v45  ;;  %v13812_v56 = vld [vmem:[#allocation105_spill] sm:$0xff] }
 0x2c9   :  { %8480 = vmatmul.mubr.bf16.gmra.mrb[4].mxu0 %v3383_v24  ;;  %v3618_v24 = vmul.f32 %v11844_v46, %v3602_v53  ;;  %v3648_v53 = vmax.f32 %v3632_v58, 0.0  ;;  %v3386_v35 = vpack.c.bf16 %v3377_v50, %v3376_v26  ;;  %v3379_v31 = vmul.f32 %v13812_v56, %v3266_v30  ;;  %v13814_v50 = vld [vmem:[#allocation107_spill] sm:$0xff]  ;;  %v13815_v26 = vld [vmem:[#allocation108_spill] sm:$0xff] }
 0x2ca   :  { %8496 = vmatpush3.bf16.msra.mxu0 %v9208_v52  ;;  %8483 = vmatprep.mubr.bf16.mxu0 %v3384_v1  ;;  %v9210_v52 = vld [vmem:[%s13525_s4 + $0x220] sm:$0xff]   ;;  %v3589_v1 = vsub.f32 %v7543_v18, %v9901_v22  ;;  %v3633_v33 = vadd.f32 %v11861_v10, %v3617_v43  ;;  %v13813_v18 = vld [vmem:[#allocation106_spill] sm:$0xff]  ;;  %v3607_v20 = vmul.f32 %v10574_v6, %v3591_v19 }
 0x2cb   :  { %8497 = vmatprep.subr.bf16.mxu0 %v9209_v51  ;;  %v3634_v11 = vadd.f32 %v11861_v10, %v3618_v24  ;;  %v3378_v54 = vmul.f32 %v13813_v18, %v3265_v47  ;;  %v3761_v63 = vmul.f32 %v13814_v50, %v3648_v53  ;;  %v3760_v24 = vmul.f32 %v13815_v26, %v3647_v0  ;;  %v9212_v43 = vld [vmem:[%s13525_s4 + $0x230] sm:$0xff]   ;;  %v7549_v30 = vld [vmem:[%s13522_s1 + $0x460] sm:$0xff] }
 0x2cc   :  { %v3605_v58 = vmul.f32 %v10574_v6, %v3589_v1  ;;  %v3649_v61 = vmax.f32 %v3633_v33, 0.0  ;;  %v7550_v1 = vld [vmem:[%s13522_s1 + $0x468] sm:$0xff]  ;;  %v3651_v47 = vmax.f32 %v3635_v39, 0.0  ;;  %v3622_v53 = vmul.f32 %v11844_v46, %v3606_v42  ;;  %v9213_v33 = vld [vmem:[%s13525_s4 + $0x238] sm:$0xff]  }
 0x2cd   :  { %v3623_v39 = vmul.f32 %v11844_v46, %v3607_v20  ;;  %v3596_v42 = vsub.f32 %v7550_v1, %v9901_v22  ;;  %v7552_v1 = vld [vmem:[%s13522_s1 + $0x478] sm:$0xff] }
 0x2ce   :  { %8498 = vmatpush3.bf16.msra.mxu0 %v9209_v51  ;;  %v3636_v51 = vadd.f32 %v11861_v10, %v3620_v21  ;;  %v3608_v21 = vmul.f32 %v10574_v6, %v3592_v59  ;;  %v3621_v0 = vmul.f32 %v11844_v46, %v3605_v58  ;;  %v3776_v59 = vpack.c.bf16 %v3761_v63, %v3760_v24  ;;  %v13819_v63 = vld [vmem:[#allocation112_spill] sm:$0xff] }
 0x2cf   :  { %8499 = vmatprep.subr.bf16.mxu0 %v9210_v52  ;;  %v3595_v58 = vsub.f32 %v7549_v30, %v9901_v22  ;;  %v3764_v26 = vmul.f32 %v13819_v63, %v3651_v47  ;;  %v3638_v24 = vadd.f32 %v11861_v10, %v3622_v53 }
 0x2d0   :  { %v3652_v45 = vmax.f32 %v3636_v51, 0.0  ;;  %v3624_v51 = vmul.f32 %v11844_v46, %v3608_v21 }
 0x2d1   :  { %8484 = vmatmul.mubr.bf16.gmra.mrb[8].mxu0 %v3385_v49  ;;  %v3650_v49 = vmax.f32 %v3634_v11, 0.0  ;;  %v3593_v11 = vsub.f32 %v7547_v57, %v9901_v22  ;;  %v3654_v53 = vmax.f32 %v3638_v24, 0.0 }
 0x2d2   :  { %8500 = vmatpush3.bf16.msra.mxu0 %v9210_v52  ;;  %8487 = vmatprep.mubr.bf16.mxu0 %v3386_v35  ;;  %v7548_v52 = vld [vmem:[%s13522_s1 + $0x458] sm:$0xff]  ;;  %v3387_v35 = vpack.c.bf16 %v3379_v31, %v3378_v54  ;;  %v13817_v31 = vld [vmem:[#allocation110_spill] sm:$0xff]  ;;  %v3640_v57 = vadd.f32 %v11861_v10, %v3624_v51 }
 0x2d3   :  { %8501 = vmatprep.subr.bf16.mxu0 %v9211_v5  ;;  %v3594_v19 = vsub.f32 %v7548_v52, %v9901_v22  ;;  %v3762_v18 = vmul.f32 %v13817_v31, %v3649_v61  ;;  %v13818_v54 = vld [vmem:[#allocation111_spill] sm:$0xff]  ;;  %v3637_v52 = vadd.f32 %v11861_v10, %v3621_v0  ;;  %v3609_v20 = vmul.f32 %v10574_v6, %v3593_v11  ;;  %v13821_v31 = vld [vmem:[#allocation114_spill] sm:$0xff] }
 0x2d4   :  { %v3765_v50 = vmul.f32 %v13818_v54, %v3652_v45  ;;  %v3612_v61 = vmul.f32 %v10574_v6, %v3596_v42  ;;  %v3611_v45 = vmul.f32 %v10574_v6, %v3595_v58  ;;  %v3656_v51 = vmax.f32 %v3640_v57, 0.0 }
 0x2d5   :  { %v3610_v21 = vmul.f32 %v10574_v6, %v3594_v19  ;;  %v3653_v0 = vmax.f32 %v3637_v52, 0.0  ;;  %v3598_v19 = vsub.f32 %v7552_v1, %v9901_v22 }
 0x2d6   :  { %8502 = vmatpush3.bf16.msra.mxu0 %v9211_v5  ;;  %v13816_v5 = vld [vmem:[#allocation109_spill] sm:$0xff]  ;;  %v3778_v47 = vpack.c.bf16 %v3765_v50, %v3764_v26  ;;  %v3628_v42 = vmul.f32 %v11844_v46, %v3612_v61  ;;  %v3627_v58 = vmul.f32 %v11844_v46, %v3611_v45  ;;  %v3769_v63 = vmul.f32 %v10687_v23, %v3656_v51  ;;  %v13822_v26 = vld [vmem:[#allocation115_spill] sm:$0xff] }
 0x2d7   :  { %8503 = vmatprep.subr.bf16.mxu0 %v9212_v43  ;;  %v3763_v56 = vmul.f32 %v13816_v5, %v3650_v49  ;;  %v3639_v49 = vadd.f32 %v11861_v10, %v3623_v39  ;;  %v13820_v5 = vld [vmem:[#allocation113_spill] sm:$0xff]  ;;  %v3614_v50 = vmul.f32 %v10574_v6, %v3598_v19 }
 0x2d8   :  { %v3644_v52 = vadd.f32 %v11861_v10, %v3628_v42  ;;  %v12326_v42 = vpop.permute.xlu0 %5001 }
 0x2d9   :  { %8488 = vmatmul.mubr.bf16.gmra.mrb[12].mxu0 %v3387_v35  ;;  %v3777_v30 = vpack.c.bf16 %v3763_v56, %v3762_v18  ;;  %v3626_v35 = vmul.f32 %v11844_v46, %v3610_v21  ;;  %v3655_v39 = vmax.f32 %v3639_v49, 0.0  ;;  %v3767_v56 = vmul.f32 %v13820_v5, %v3654_v53  ;;  %13824 = vst [vmem:[#allocation39_spill] sm:$0xff] %v12326_v42 }
 0x2da   :  { %8504 = vmatpush3.bf16.msra.mxu0 %v9212_v43  ;;  %8507 = vmatprep.mubr.bf16.mxu0 %v3776_v59  ;;  %v7551_v43 = vld [vmem:[%s13522_s1 + $0x470] sm:$0xff]  ;;  %v3625_v59 = vmul.f32 %v11844_v46, %v3609_v20  ;;  %v3766_v18 = vmul.f32 %v13821_v31, %v3653_v0  ;;  %v3643_v21 = vadd.f32 %v11861_v10, %v3627_v58 }
 0x2db   :  { %8505 = vmatprep.subr.bf16.mxu0 %v9213_v33  ;;  %v3597_v11 = vsub.f32 %v7551_v43, %v9901_v22  ;;  %v3768_v24 = vmul.f32 %v13822_v26, %v3655_v39  ;;  %v3630_v61 = vmul.f32 %v11844_v46, %v3614_v50  ;;  %v3660_v43 = vmax.f32 %v3644_v52, 0.0 }
 0x2dc   :  { %v3641_v54 = vadd.f32 %v11861_v10, %v3625_v59  ;;  %v3779_v20 = vpack.c.bf16 %v3767_v56, %v3766_v18 }
 0x2dd   :  { %v3613_v22 = vmul.f32 %v10574_v6, %v3597_v11  ;;  %v3780_v1 = vpack.c.bf16 %v3769_v63, %v3768_v24  ;;  %v3773_v0 = vmul.f32 %v10775_v2, %v3660_v43  ;;  %v12330_v2 = vpop.permute.xlu0 %5246 }
 0x2de   :  { %8506 = vmatpush3.bf16.msra.mxu0 %v9213_v33  ;;  %v3642_v33 = vadd.f32 %v11861_v10, %v3626_v35  ;;  %v3657_v49 = vmax.f32 %v3641_v54, 0.0  ;;  %13826 = vst [vmem:[#allocation41_spill] sm:$0xff] %v12330_v2 }
 0x2df   :  { %v3629_v45 = vmul.f32 %v11844_v46, %v3613_v22 }
 0x2e0   :  { %v3658_v57 = vmax.f32 %v3642_v33, 0.0  ;;  %v3770_v23 = vmul.f32 %v10731_v36, %v3657_v49  ;;  %v12324_v36 = vpop.permute.xlu1 %5006 }
 0x2e1   :  { %8508 = vmatmul.mubr.bf16.vlgmr.msra.gmra.mrb[0].mxu0 %v3777_v30  ;;  %v3659_v30 = vmax.f32 %v3643_v21, 0.0  ;;  %v3645_v53 = vadd.f32 %v11861_v10, %v3629_v45  ;;  %13823 = vst [vmem:[#allocation38_spill] sm:$0xff] %v12324_v36  ;;  %v12334_v58 = vpop.permute.xlu0 %5256  ;;  %v9229_v36 = vld [vmem:[%s13528_s7 + $0x238] sm:$0xff]  }
 0x2e2   :  { %8511 = vmatprep.mubr.bf16.mxu0 %v3778_v47  ;;  %v3771_v6 = vmul.f32 %v10729_v41, %v3658_v57  ;;  %v3646_v47 = vadd.f32 %v11861_v10, %v3630_v61  ;;  %13828 = vst [vmem:[#allocation43_spill] sm:$0xff] %v12334_v58 }
 0x2e3   :  { %v3772_v35 = vmul.f32 %v10777_v16, %v3659_v30  ;;  %v3661_v46 = vmax.f32 %v3645_v53, 0.0 }
 0x2e4   :  { %v3781_v59 = vpack.c.bf16 %v3771_v6, %v3770_v23  ;;  %v3662_v19 = vmax.f32 %v3646_v47, 0.0  ;;  %v12328_v10 = vpop.permute.xlu1 %5251 }
 0x2e5   :  { %v3782_v11 = vpack.c.bf16 %v3773_v0, %v3772_v35  ;;  %v3774_v41 = vmul.f32 %v10808_v8, %v3661_v46  ;;  %13825 = vst [vmem:[#allocation40_spill] sm:$0xff] %v12328_v10  ;;  %v12338_v56 = vpop.permute.xlu0 %5266 }
 0x2e6   :  { %v3775_v51 = vmul.f32 %v10806_v28, %v3662_v19  ;;  %13830 = vst [vmem:[#allocation45_spill] sm:$0xff] %v12338_v56 }
 0x2e8   :  { %v3783_v39 = vpack.c.bf16 %v3775_v51, %v3774_v41  ;;  %v12332_v16 = vpop.permute.xlu1 %5261  ;;  %v9214_v41 = vld [vmem:[%s13528_s7] sm:$0xff]  }
 0x2e9   :  { %8512 = vmatmul.mubr.bf16.gmra.mrb[4].mxu0 %v3779_v20  ;;  %13827 = vst [vmem:[#allocation42_spill] sm:$0xff] %v12332_v16  ;;  %v12342_v8 = vpop.permute.xlu0 %5276  ;;  %8523 = vmatprep.subr.bf16.mxu1 %v9214_v41 }
 0x2ea   :  { %8515 = vmatprep.mubr.bf16.mxu0 %v3780_v1  ;;  %13832 = vst [vmem:[#allocation47_spill] sm:$0xff] %v12342_v8  ;;  %8524 = vmatpush3.bf16.msra.mxu1 %v9214_v41  ;;  %v9219_v41 = vld [vmem:[%s13528_s7 + $0x210] sm:$0xff]  }
 0x2ec   :  { %v12336_v5 = vpop.permute.xlu1 %5271 }
 0x2ed   :  { %13829 = vst [vmem:[#allocation44_spill] sm:$0xff] %v12336_v5  ;;  %v12346_v18 = vpop.permute.xlu0 %5286 }
 0x2ee   :  { %13834 = vst [vmem:[#allocation49_spill] sm:$0xff] %v12346_v18 }
 0x2f0   :  { %v12340_v28 = vpop.permute.xlu1 %5281 }
 0x2f1   :  { %8516 = vmatmul.mubr.bf16.gmra.mrb[8].mxu0 %v3781_v59  ;;  %13831 = vst [vmem:[#allocation46_spill] sm:$0xff] %v12340_v28  ;;  %v12350_v54 = vpop.permute.xlu0 %5296 }
 0x2f2   :  { %8519 = vmatprep.mubr.bf16.mxu0 %v3782_v11  ;;  %13836 = vst [vmem:[#allocation51_spill] sm:$0xff] %v12350_v54 }
 0x2f4   :  { %v12344_v31 = vpop.permute.xlu1 %5291 }
 0x2f5   :  { %13833 = vst [vmem:[#allocation48_spill] sm:$0xff] %v12344_v31  ;;  %v12354_v22 = vpop.permute.xlu0 %5306 }
 0x2f6   :  { %13838 = vst [vmem:[#allocation53_spill] sm:$0xff] %v12354_v22 }
 0x2f8   :  { %v12348_v33 = vpop.permute.xlu1 %5301 }
 0x2f9   :  { %8520 = vmatmul.mubr.bf16.gmra.mrb[12].mxu0 %v3783_v39  ;;  %13835 = vst [vmem:[#allocation50_spill] sm:$0xff] %v12348_v33  ;;  %v12358_v26 = vpop.permute.xlu0 %5316  ;;  %v9215_v39 = vld [vmem:[%s13528_s7 + $0x200] sm:$0xff]  }
 0x2fa   :  { %13840 = vst [vmem:[#allocation55_spill] sm:$0xff] %v12358_v26  ;;  %8811 = vmatprep.subr.bf16.mxu0 %v9215_v39  ;;  %v9228_v26 = vld [vmem:[%s13528_s7 + $0x38] sm:$0xff]  }
 0x2fb   :  { %8812 = vmatpush3.bf16.msra.mxu0 %v9215_v39 }
 0x2fc   :  { %v12352_v50 = vpop.permute.xlu1 %5311 }
 0x2fd   :  { %13837 = vst [vmem:[#allocation52_spill] sm:$0xff] %v12352_v50  ;;  %v12362_v52 = vpop.permute.xlu0 %5561 }
 0x2fe   :  { %13842 = vst [vmem:[#allocation57_spill] sm:$0xff] %v12362_v52 }
 0x300   :  { %v12356_v63 = vpop.permute.xlu1 %5321 }
 0x301   :  { %13839 = vst [vmem:[#allocation54_spill] sm:$0xff] %v12356_v63  ;;  %v12366_v20 = vpop.permute.xlu0 %5571 }
 0x302   :  { %13844 = vst [vmem:[#allocation59_spill] sm:$0xff] %v12366_v20 }
 0x304   :  { %v12360_v24 = vpop.permute.xlu1 %5566 }
 0x305   :  { %13841 = vst [vmem:[#allocation56_spill] sm:$0xff] %v12360_v24  ;;  %v12370_v49 = vpop.permute.xlu0 %5581 }
 0x306   :  { %13846 = vst [vmem:[#allocation61_spill] sm:$0xff] %v12370_v49 }
 0x308   :  { %v12364_v21 = vpop.permute.xlu1 %5576 }
 0x309   :  { %13843 = vst [vmem:[#allocation58_spill] sm:$0xff] %v12364_v21  ;;  %v12374_v45 = vpop.permute.xlu0 %5591  ;;  %v9226_v21 = vld [vmem:[%s13528_s7 + $0x30] sm:$0xff]  }
 0x30a   :  { %13848 = vst [vmem:[#allocation63_spill] sm:$0xff] %v12374_v45 }
 0x30c   :  { %v12368_v57 = vpop.permute.xlu1 %5586 }
 0x30d   :  { %13845 = vst [vmem:[#allocation60_spill] sm:$0xff] %v12368_v57  ;;  %v12378_v43 = vpop.permute.xlu0 %5601 }
 0x30e   :  { %13850 = vst [vmem:[#allocation65_spill] sm:$0xff] %v12378_v43 }
 0x310   :  { %v12372_v61 = vpop.permute.xlu1 %5596 }
 0x311   :  { %13847 = vst [vmem:[#allocation62_spill] sm:$0xff] %v12372_v61  ;;  %v12382_v6 = vpop.permute.xlu0 %5611 }
 0x312   :  { %13852 = vst [vmem:[#allocation67_spill] sm:$0xff] %v12382_v6 }
 0x314   :  { %v12376_v1 = vpop.permute.xlu1 %5606 }
 0x315   :  { %13849 = vst [vmem:[#allocation64_spill] sm:$0xff] %v12376_v1  ;;  %v12386_v47 = vpop.permute.xlu0 %5621 }
 0x316   :  { %13854 = vst [vmem:[#allocation69_spill] sm:$0xff] %v12386_v47  ;;  %v9217_v47 = vld [vmem:[%s13528_s7 + $0x208] sm:$0xff]  }
 0x317   :  { %8813 = vmatprep.subr.bf16.mxu0 %v9217_v47 }
 0x318   :  { %v12380_v30 = vpop.permute.xlu1 %5616  ;;  %8814 = vmatpush3.bf16.msra.mxu0 %v9217_v47  ;;  %v9221_v47 = vld [vmem:[%s13528_s7 + $0x218] sm:$0xff]  }
 0x319   :  { %13851 = vst [vmem:[#allocation66_spill] sm:$0xff] %v12380_v30  ;;  %v12390_v0 = vpop.permute.xlu0 %5631  ;;  %v9218_v30 = vld [vmem:[%s13528_s7 + $0x10] sm:$0xff]   ;;  %8815 = vmatprep.subr.bf16.mxu0 %v9219_v41 }
 0x31a   :  { %13856 = vst [vmem:[#allocation71_spill] sm:$0xff] %v12390_v0 }
 0x31c   :  { %v12384_v23 = vpop.permute.xlu1 %5626  ;;  %8816 = vmatpush3.bf16.msra.mxu0 %v9219_v41  ;;  %v9223_v41 = vld [vmem:[%s13528_s7 + $0x220] sm:$0xff]  }
 0x31d   :  { %13853 = vst [vmem:[#allocation68_spill] sm:$0xff] %v12384_v23  ;;  %v12394_v59 = vpop.permute.xlu0 %5876  ;;  %v9216_v23 = vld [vmem:[%s13528_s7 + $0x8] sm:$0xff]   ;;  %8817 = vmatprep.subr.bf16.mxu0 %v9221_v47 }
 0x31e   :  { %13858 = vst [vmem:[#allocation73_spill] sm:$0xff] %v12394_v59  ;;  %8525 = vmatprep.subr.bf16.mxu1 %v9216_v23 }
 0x31f   :  { %8526 = vmatpush3.bf16.msra.mxu1 %v9216_v23  ;;  %v9220_v23 = vld [vmem:[%s13528_s7 + $0x18] sm:$0xff]  }
 0x320   :  { %v12388_v53 = vpop.permute.xlu1 %5636  ;;  %8527 = vmatprep.subr.bf16.mxu1 %v9218_v30  ;;  %8818 = vmatpush3.bf16.msra.mxu0 %v9221_v47  ;;  %v9225_v47 = vld [vmem:[%s13528_s7 + $0x228] sm:$0xff]  }
 0x321   :  { %13855 = vst [vmem:[#allocation70_spill] sm:$0xff] %v12388_v53  ;;  %v12398_v46 = vpop.permute.xlu0 %5886  ;;  %8819 = vmatprep.subr.bf16.mxu0 %v9223_v41 }
 0x322   :  { %13860 = vst [vmem:[#allocation75_spill] sm:$0xff] %v12398_v46 }
 0x323   :  { %8528 = vmatpush3.bf16.msra.mxu1 %v9218_v30  ;;  %v9222_v30 = vld [vmem:[%s13528_s7 + $0x20] sm:$0xff]  }
 0x324   :  { %v12392_v35 = vpop.permute.xlu1 %5881  ;;  %8529 = vmatprep.subr.bf16.mxu1 %v9220_v23  ;;  %8820 = vmatpush3.bf16.msra.mxu0 %v9223_v41 }
 0x325   :  { %13857 = vst [vmem:[#allocation72_spill] sm:$0xff] %v12392_v35  ;;  %v12402_v51 = vpop.permute.xlu0 %5896  ;;  %8821 = vmatprep.subr.bf16.mxu0 %v9225_v47 }
 0x326   :  { %13862 = vst [vmem:[#allocation77_spill] sm:$0xff] %v12402_v51 }
 0x327   :  { %8530 = vmatpush3.bf16.msra.mxu1 %v9220_v23  ;;  %v9224_v23 = vld [vmem:[%s13528_s7 + $0x28] sm:$0xff]  }
 0x328   :  { %v12396_v19 = vpop.permute.xlu1 %5891  ;;  %8531 = vmatprep.subr.bf16.mxu1 %v9222_v30  ;;  %8822 = vmatpush3.bf16.msra.mxu0 %v9225_v47 }
 0x329   :  { %13859 = vst [vmem:[#allocation74_spill] sm:$0xff] %v12396_v19  ;;  %v12412_v0 = vpop.permute.xlu0 %5906 }
 0x32a   :  { %13864 = vst [vmem:[#allocation79_spill] sm:$0xff] %v12412_v0 }
 0x32b   :  { %8532 = vmatpush3.bf16.msra.mxu1 %v9222_v30  ;;  %v9227_v30 = vld [vmem:[%s13528_s7 + $0x230] sm:$0xff]  }
 0x32c   :  { %v12400_v11 = vpop.permute.xlu1 %5901  ;;  %8533 = vmatprep.subr.bf16.mxu1 %v9224_v23  ;;  %8823 = vmatprep.subr.bf16.mxu0 %v9227_v30 }
 0x32d   :  { %13861 = vst [vmem:[#allocation76_spill] sm:$0xff] %v12400_v11  ;;  %v12428_v6 = vpop.permute.xlu0 %5916  ;;  %8824 = vmatpush3.bf16.msra.mxu0 %v9227_v30  ;;  %v12488_v11 = vld [vmem:[#allocation6] sm:$0xff]  }
 0x32e   :  { %13866 = vst [vmem:[#allocation81_spill] sm:$0xff] %v12428_v6  ;;  %8825 = vmatprep.subr.bf16.mxu0 %v9229_v36  ;;  %13875 = vst [vmem:[#allocation90_spill] sm:$0xff] %v12488_v11 }
 0x32f   :  { %8534 = vmatpush3.bf16.msra.mxu1 %v9224_v23 }
 0x330   :  { %v12410_v53 = vpop.permute.xlu1 %5911  ;;  %8535 = vmatprep.subr.bf16.mxu1 %v9226_v21 }
 0x331   :  { %13863 = vst [vmem:[#allocation78_spill] sm:$0xff] %v12410_v53  ;;  %v12438_v43 = vpop.permute.xlu0 %5926  ;;  %8826 = vmatpush3.bf16.msra.mxu0 %v9229_v36 }
 0x332   :  { %13868 = vst [vmem:[#allocation83_spill] sm:$0xff] %v12438_v43 }
 0x333   :  { %8536 = vmatpush3.bf16.msra.mxu1 %v9226_v21 }
 0x334   :  { %v12426_v39 = vpop.permute.xlu1 %5921  ;;  %8537 = vmatprep.subr.bf16.mxu1 %v9228_v26 }
 0x335   :  { %13865 = vst [vmem:[#allocation80_spill] sm:$0xff] %v12426_v39  ;;  %v12466_v41 = vpop.permute.xlu0 %5936 }
 0x336   :  { %13870 = vst [vmem:[#allocation85_spill] sm:$0xff] %v12466_v41 }
 0x337   :  { %8538 = vmatpush3.bf16.msra.mxu1 %v9228_v26 }
 0x338   :  { %v12436_v1 = vpop.permute.xlu1 %5931  ;;  %8555 = vmatprep.subr.bf16.mxu1 %v12488_v11 }
 0x339   :  { %13867 = vst [vmem:[#allocation82_spill] sm:$0xff] %v12436_v1  ;;  %v12482_v23 = vpop.permute.xlu0 %5946 }
 0x33a   :  { %13872 = vst [vmem:[#allocation87_spill] sm:$0xff] %v12482_v23 }
 0x33c   :  { %v12456_v57 = vpop.permute.xlu1 %5941 }
 0x33d   :  { %13869 = vst [vmem:[#allocation84_spill] sm:$0xff] %v12456_v57 }
 0x340   :  { %v12479_v57 = vpop.permute.xlu1 %5951 }
 0x341   :  { %13871 = vst [vmem:[#allocation86_spill] sm:$0xff] %v12479_v57  ;;  %v12486_v57 = vpop.permute.xlu0 %6191 }
 0x342   :  { %13874 = vst [vmem:[#allocation89_spill] sm:$0xff] %v12486_v57 }
 0x344   :  { %v12484_v0 = vpop.permute.xlu1 %6196 }
 0x345   :  { %13873 = vst [vmem:[#allocation88_spill] sm:$0xff] %v12484_v0  ;;  %v12493_v26 = vpop.permute.xlu0 %6201 }
 0x346   :  { %13877 = vst [vmem:[#allocation92_spill] sm:$0xff] %v12493_v26 }
 0x348   :  { %v12491_v19 = vpop.permute.xlu1 %6206 }
 0x349   :  { %13876 = vst [vmem:[#allocation91_spill] sm:$0xff] %v12491_v19 }
 0x34c   :  { %v12495_v57 = vpop.permute.xlu1 %6216 }
 0x34d   :  { %13878 = vst [vmem:[#allocation93_spill] sm:$0xff] %v12495_v57 }
 0x350   :  { %v12499_v54 = vpop.permute.xlu1 %6226 }
 0x351   :  { %13880 = vst [vmem:[#allocation95_spill] sm:$0xff] %v12499_v54 }
 0x354   :  { %v12503_v31 = vpop.permute.xlu1 %6236 }
 0x355   :  { %13882 = vst [vmem:[#allocation97_spill] sm:$0xff] %v12503_v31 }
 0x358   :  { %v12507_v28 = vpop.permute.xlu1 %6246 }
 0x359   :  { %13884 = vst [vmem:[#allocation99_spill] sm:$0xff] %v12507_v28 }
 0x3b4   :  { %v12446_v61 = vpop.f32.mrb[0].mxu0 }
 0x3b5   :  { %v12448_v45 = vpop.f32.mrb[1].mxu0 }
 0x3b6   :  { %v12458_v49 = vpop.f32.mrb[2].mxu0 }
 0x3b7   :  { %v12468_v20 = vpop.f32.mrb[3].mxu0 }
 0x3b8   :  { %v3964_v63 = vadd.f32 %v12468_v20, %v12448_v45 }
 0x3ba   :  { %v3965_v42 = vadd.f32 %v12446_v61, %v3964_v63 }
 0x3bc   :  { %v8513_v41 = vpop.f32.mrb[4].mxu0  ;;  %v3966_v1 = vadd.f32 %v12458_v49, %v3965_v42 }
 0x3bd   :  { %v3899_v47 = vpop.f32.mrb[5].mxu0 }
 0x3be   :  { %v3967_v43 = vadd.f32 %v3966_v1, %v3899_v47  ;;  %v8514_v39 = vpop.f32.mrb[6].mxu0 }
 0x3bf   :  { %v3902_v6 = vpop.f32.mrb[7].mxu0 }
 0x3c0   :  { %v3968_v53 = vadd.f32 %v3967_v43, %v3902_v6 }
 0x3c2   :  { %v3969_v63 = vadd.f32 %v8513_v41, %v3968_v53 }
 0x3c4   :  { %v8517_v42 = vpop.f32.mrb[8].mxu0  ;;  %v3970_v21 = vadd.f32 %v8514_v39, %v3969_v63  ;;  %v12497_v63 = vpop.permute.xlu0 %6211 }
 0x3c5   :  { %v3915_v30 = vpop.f32.mrb[9].mxu0  ;;  %13879 = vst [vmem:[#allocation94_spill] sm:$0xff] %v12497_v63 }
 0x3c6   :  { %v3971_v23 = vadd.f32 %v3970_v21, %v3915_v30  ;;  %v8518_v51 = vpop.f32.mrb[10].mxu0 }
 0x3c7   :  { %v3918_v1 = vpop.f32.mrb[11].mxu0 }
 0x3c8   :  { %v3972_v43 = vadd.f32 %v3971_v23, %v3918_v1  ;;  %v12501_v19 = vpop.permute.xlu0 %6221 }
 0x3c9   :  { %13881 = vst [vmem:[#allocation96_spill] sm:$0xff] %v12501_v19 }
 0x3ca   :  { %v3973_v36 = vadd.f32 %v8517_v42, %v3972_v43 }
 0x3cc   :  { %v8521_v0 = vpop.f32.mrb[12].mxu0  ;;  %v3974_v53 = vadd.f32 %v8518_v51, %v3973_v36  ;;  %v12505_v36 = vpop.permute.xlu0 %6231 }
 0x3cd   :  { %v3931_v46 = vpop.f32.mrb[13].mxu0  ;;  %13883 = vst [vmem:[#allocation98_spill] sm:$0xff] %v12505_v36 }
 0x3ce   :  { %v3975_v35 = vadd.f32 %v3974_v53, %v3931_v46  ;;  %v8522_v59 = vpop.f32.mrb[14].mxu0 }
 0x3cf   :  { %v3934_v50 = vpop.f32.mrb[15].mxu0 }
 0x3d0   :  { %v3976_v22 = vadd.f32 %v3975_v35, %v3934_v50  ;;  %v12509_v63 = vpop.permute.xlu0 %6241 }
 0x3d1   :  { %13885 = vst [vmem:[#allocation100_spill] sm:$0xff] %v12509_v63 }
 0x3d2   :  { %v3977_v21 = vadd.f32 %v8521_v0, %v3976_v22 }
 0x3d4   :  { %v3978_v33 = vadd.f32 %v8522_v59, %v3977_v21 }
 0x3d6   :  { %v3979_v23 = vrot.slane %v3978_v33, 4 }
 0x3d8   :  { %v3980_v26 = vadd.f32 %v3979_v23, %v3978_v33 }
 0x3da   :  { %v3981_v43 = vrot.slane %v3980_v26, 2 }
 0x3dc   :  { %v3982_v57 = vadd.f32 %v3981_v43, %v3980_v26 }
 0x3de   :  { %v3983_v53 = vrot.slane %v3982_v57, 1 }
 0x3e0   :  { %v3984_v18 = vadd.f32 %v3983_v53, %v3982_v57 }
 0x3e2   :  { %v3986_v22 = vmul.f32 0.0078125, %v3984_v18 }
 0x3e4   :  { %v12512_v35 = vsub.f32 %v12448_v45, %v3986_v22  ;;  %v12515_v21 = vsub.f32 %v12468_v20, %v3986_v22  ;;  %v12518_v33 = vsub.f32 %v12446_v61, %v3986_v22  ;;  %v12521_v23 = vsub.f32 %v12458_v49, %v3986_v22  ;;  %v12539_v61 = vpop.permute.xlu1 %6256  ;;  %v12541_v49 = vpop.permute.xlu0 %6251 }
 0x3e5   :  { %v12523_v26 = vsub.f32 %v3899_v47, %v3986_v22  ;;  %v12525_v57 = vsub.f32 %v3902_v6, %v3986_v22  ;;  %v12527_v43 = vsub.f32 %v8513_v41, %v3986_v22  ;;  %v12529_v53 = vsub.f32 %v8514_v39, %v3986_v22  ;;  %13886 = vst [vmem:[#allocation101_spill] sm:$0xff] %v12539_v61 }
 0x3e6   :  { %v12531_v18 = vsub.f32 %v3915_v30, %v3986_v22  ;;  %v12533_v45 = vsub.f32 %v3918_v1, %v3986_v22  ;;  %v12535_v20 = vsub.f32 %v8517_v42, %v3986_v22  ;;  %v12537_v28 = vsub.f32 %v8518_v51, %v3986_v22  ;;  %13887 = vst [vmem:[#allocation102_spill] sm:$0xff] %v12541_v49 }
 0x3e7   :  { %v12543_v47 = vsub.f32 %v3931_v46, %v3986_v22  ;;  %v12545_v6 = vsub.f32 %v3934_v50, %v3986_v22  ;;  %v12547_v41 = vsub.f32 %v8521_v0, %v3986_v22  ;;  %v12549_v39 = vsub.f32 %v8522_v59, %v3986_v22 }
 0x3e8   :  { %v4003_v30 = vmul.f32 %v12512_v35, %v12512_v35  ;;  %v4004_v42 = vmul.f32 %v12515_v21, %v12515_v21  ;;  %v4005_v51 = vmul.f32 %v12518_v33, %v12518_v33  ;;  %v12557_v61 = vpop.permute.xlu1 %6266  ;;  %v12559_v46 = vpop.permute.xlu0 %6261  ;;  %v4006_v50 = vmul.f32 %v12521_v23, %v12521_v23 }
 0x3e9   :  { %13888 = vst [vmem:[#allocation103_spill] sm:$0xff] %v12557_v61  ;;  %13889 = vst [vmem:[#allocation104_spill] sm:$0xff] %v12559_v46  ;;  %v4007_v59 = vmul.f32 %v12523_v26, %v12523_v26  ;;  %v4008_v49 = vmul.f32 %v12525_v57, %v12525_v57  ;;  %v4010_v61 = vmul.f32 %v12529_v53, %v12529_v53 }
 0x3ea   :  { %v4019_v1 = vadd.f32 %v4004_v42, %v4003_v30  ;;  %v4009_v30 = vmul.f32 %v12527_v43, %v12527_v43  ;;  %v4016_v54 = vmul.f32 %v12545_v6, %v12545_v6 }
 0x3ec   :  { %v4020_v0 = vadd.f32 %v4019_v1, %v4005_v51  ;;  %v12567_v31 = vpop.permute.xlu1 %6511  ;;  %v12569_v36 = vpop.permute.xlu0 %6506  ;;  %v4011_v1 = vmul.f32 %v12531_v18, %v12531_v18 }
 0x3ed   :  { %13890 = vst [vmem:[#allocation105_spill] sm:$0xff] %v12567_v31  ;;  %13891 = vst [vmem:[#allocation106_spill] sm:$0xff] %v12569_v36  ;;  %v4013_v31 = vmul.f32 %v12535_v20, %v12535_v20 }
 0x3ee   :  { %v4021_v22 = vadd.f32 %v4020_v0, %v4006_v50 }
 0x3f0   :  { %v4022_v63 = vadd.f32 %v4021_v22, %v4007_v59  ;;  %v12577_v0 = vpop.permute.xlu1 %6521  ;;  %v12579_v46 = vpop.permute.xlu0 %6516  ;;  %v4012_v59 = vmul.f32 %v12533_v45, %v12533_v45 }
 0x3f1   :  { %13892 = vst [vmem:[#allocation107_spill] sm:$0xff] %v12577_v0  ;;  %13893 = vst [vmem:[#allocation108_spill] sm:$0xff] %v12579_v46 }
 0x3f2   :  { %v4023_v42 = vadd.f32 %v4022_v63, %v4008_v49  ;;  %v4014_v49 = vmul.f32 %v12537_v28, %v12537_v28 }
 0x3f4   :  { %v4024_v51 = vadd.f32 %v4023_v42, %v4009_v30  ;;  %v12587_v42 = vpop.permute.xlu1 %6531  ;;  %v12589_v36 = vpop.permute.xlu0 %6526 }
 0x3f5   :  { %13894 = vst [vmem:[#allocation109_spill] sm:$0xff] %v12587_v42  ;;  %13895 = vst [vmem:[#allocation110_spill] sm:$0xff] %v12589_v36 }
 0x3f6   :  { %v4025_v50 = vadd.f32 %v4024_v51, %v4010_v61  ;;  %v4015_v61 = vmul.f32 %v12543_v47, %v12543_v47 }
 0x3f8   :  { %v4026_v22 = vadd.f32 %v4025_v50, %v4011_v1  ;;  %v4017_v50 = vmul.f32 %v12547_v41, %v12547_v41  ;;  %v12599_v19 = vpop.permute.xlu0 %6536 }
 0x3f9   :  { %13897 = vst [vmem:[#allocation112_spill] sm:$0xff] %v12599_v19 }
 0x3fa   :  { %v4027_v63 = vadd.f32 %v4026_v22, %v4012_v59  ;;  %v12597_v22 = vpop.permute.xlu1 %6541 }
 0x3fb   :  { %13896 = vst [vmem:[#allocation111_spill] sm:$0xff] %v12597_v22 }
 0x3fc   :  { %v4028_v30 = vadd.f32 %v4027_v63, %v4013_v31  ;;  %v4018_v31 = vmul.f32 %v12549_v39, %v12549_v39 }
 0x3fe   :  { %v4029_v51 = vadd.f32 %v4028_v30, %v4014_v49  ;;  %v12603_v0 = vpop.permute.xlu1 %6551  ;;  %v12605_v49 = vpop.permute.xlu0 %6546 }
 0x3ff   :  { %13898 = vst [vmem:[#allocation113_spill] sm:$0xff] %v12603_v0  ;;  %13899 = vst [vmem:[#allocation114_spill] sm:$0xff] %v12605_v49 }
 0x400   :  { %v4030_v1 = vadd.f32 %v4029_v51, %v4015_v61 }
 0x402   :  { %v4031_v59 = vadd.f32 %v4030_v1, %v4016_v54  ;;  %v12607_v46 = vpop.permute.xlu1 %6561  ;;  %v12609_v54 = vpop.permute.xlu0 %6556 }
 0x403   :  { %13900 = vst [vmem:[#allocation115_spill] sm:$0xff] %v12607_v46  ;;  %13901 = vst [vmem:[#allocation122_spill] sm:$0xff] %v12609_v54 }
 0x404   :  { %v4032_v63 = vadd.f32 %v4031_v59, %v4017_v50 }
 0x406   :  { %v4033_v42 = vadd.f32 %v4032_v63, %v4018_v31  ;;  %v12611_v8 = vpop.permute.xlu1 %6571  ;;  %v12613_v5 = vpop.permute.xlu0 %6566 }
 0x407   :  { %13902 = vst [vmem:[#allocation123_spill] sm:$0xff] %v12611_v8  ;;  %13903 = vst [vmem:[#allocation124_spill] sm:$0xff] %v12613_v5 }
 0x408   :  { %v4034_v36 = vrot.slane %v4033_v42, 4 }
 0x40a   :  { %v4035_v30 = vadd.f32 %v4034_v36, %v4033_v42  ;;  %v12615_v59 = vpop.permute.xlu1 %6581  ;;  %v12617_v31 = vpop.permute.xlu0 %6576 }
 0x40b   :  { %13904 = vst [vmem:[#allocation125_spill] sm:$0xff] %v12615_v59  ;;  %13905 = vst [vmem:[#allocation126_spill] sm:$0xff] %v12617_v31 }
 0x40c   :  { %v4036_v61 = vrot.slane %v4035_v30, 2 }
 0x40e   :  { %v4037_v51 = vadd.f32 %v4036_v61, %v4035_v30  ;;  %v12619_v36 = vpop.permute.xlu1 %6826  ;;  %v12621_v42 = vpop.permute.xlu0 %6821 }
 0x410   :  { %v4038_v1 = vrot.slane %v4037_v51, 1 }
 0x412   :  { %v4039_v22 = vadd.f32 %v4038_v1, %v4037_v51  ;;  %v12642_v54 = vpop.permute.xlu1 %6836 }
 0x414   :  { %v4040_v19 = vmul.f32 0.0078125, %v4039_v22 }
 0x416   :  { %v4041_v50 = vadd.f32 1e-05, %v4040_v19  ;;  %v7593_v19 = vld [vmem:[%s13526_s5] ss:$0 sm:$0xff] }
 0x418   :  { %9296 = vrsqrt.f32 %v4041_v50 }
 0x422   :  { %v9297_v63 = vpop.eup %9296 }
 0x423   :  { %v4043_v30 = vmul.f32 %v9297_v63, %v12512_v35  ;;  %v4044_v61 = vmul.f32 %v9297_v63, %v12515_v21  ;;  %v4045_v22 = vmul.f32 %v9297_v63, %v12518_v33  ;;  %v4046_v51 = vmul.f32 %v9297_v63, %v12521_v23 }
 0x424   :  { %v4047_v1 = vmul.f32 %v9297_v63, %v12523_v26  ;;  %v4048_v50 = vmul.f32 %v9297_v63, %v12525_v57  ;;  %v4049_v31 = vmul.f32 %v9297_v63, %v12527_v43  ;;  %v4050_v8 = vmul.f32 %v9297_v63, %v12529_v53  ;;  %v12644_v43 = vpop.permute.xlu0 %6831 }
 0x425   :  { %v4051_v35 = vmul.f32 %v9297_v63, %v12531_v18  ;;  %v4052_v21 = vmul.f32 %v9297_v63, %v12533_v45  ;;  %v4053_v33 = vmul.f32 %v9297_v63, %v12535_v20  ;;  %v4054_v23 = vmul.f32 %v9297_v63, %v12537_v28  ;;  %v7594_v28 = vld [vmem:[%s13527_s6] ss:$0 sm:$0xff] }
 0x426   :  { %v4055_v5 = vmul.f32 %v9297_v63, %v12543_v47  ;;  %v4056_v46 = vmul.f32 %v9297_v63, %v12545_v6  ;;  %v4057_v26 = vmul.f32 %v9297_v63, %v12547_v41  ;;  %v4058_v57 = vmul.f32 %v9297_v63, %v12549_v39 }
 0x427   :  { %v4065_v53 = vmul.f32 %v7593_v19, %v4043_v30  ;;  %v4066_v18 = vmul.f32 %v7593_v19, %v4044_v61  ;;  %v4067_v0 = vmul.f32 %v7593_v19, %v4045_v22  ;;  %v4068_v45 = vmul.f32 %v7593_v19, %v4046_v51 }
 0x428   :  { %v4069_v20 = vmul.f32 %v7593_v19, %v4047_v1  ;;  %v4070_v47 = vmul.f32 %v7593_v19, %v4048_v50  ;;  %v4071_v49 = vmul.f32 %v7593_v19, %v4049_v31  ;;  %v4072_v6 = vmul.f32 %v7593_v19, %v4050_v8  ;;  %v12649_v1 = vpop.permute.xlu1 %6866  ;;  %v12651_v31 = vpop.permute.xlu0 %6861 }
 0x429   :  { %v4073_v59 = vmul.f32 %v7593_v19, %v4051_v35  ;;  %v4074_v41 = vmul.f32 %v7593_v19, %v4052_v21  ;;  %v4075_v56 = vmul.f32 %v7593_v19, %v4053_v33  ;;  %v4076_v39 = vmul.f32 %v7593_v19, %v4054_v23 }
 0x42a   :  { %v4077_v63 = vmul.f32 %v7593_v19, %v4055_v5  ;;  %v4078_v16 = vmul.f32 %v7593_v19, %v4056_v46  ;;  %v4079_v24 = vmul.f32 %v7593_v19, %v4057_v26  ;;  %v4080_v58 = vmul.f32 %v7593_v19, %v4058_v57 }
 0x42b   :  { %v4088_v30 = vadd.f32 %v7594_v28, %v4066_v18  ;;  %v4089_v61 = vadd.f32 %v7594_v28, %v4067_v0  ;;  %v4090_v22 = vadd.f32 %v7594_v28, %v4068_v45  ;;  %v4091_v51 = vadd.f32 %v7594_v28, %v4069_v20 }
 0x42c   :  { %v4092_v10 = vadd.f32 %v7594_v28, %v4070_v47  ;;  %v4093_v52 = vadd.f32 %v7594_v28, %v4071_v49  ;;  %v4094_v2 = vadd.f32 %v7594_v28, %v4072_v6  ;;  %v4095_v11 = vadd.f32 %v7594_v28, %v4073_v59 }
 0x42d   :  { %v4096_v8 = vadd.f32 %v7594_v28, %v4074_v41  ;;  %v4097_v50 = vadd.f32 %v7594_v28, %v4075_v56  ;;  %v4098_v35 = vadd.f32 %v7594_v28, %v4076_v39  ;;  %v4099_v21 = vadd.f32 %v7594_v28, %v4077_v63 }
 0x42e   :  { %v4100_v5 = vadd.f32 %v7594_v28, %v4078_v16  ;;  %v4101_v46 = vadd.f32 %v7594_v28, %v4079_v24  ;;  %v4102_v33 = vadd.f32 %v7594_v28, %v4080_v58  ;;  %v12653_v19 = vmax.f32 %v4088_v30, 0.0  ;;  %v12660_v24 = vpop.permute.xlu1 %6876 }
 0x42f   :  { %v4105_v0 = vmax.f32 %v4089_v61, 0.0  ;;  %v4106_v23 = vmax.f32 %v4090_v22, 0.0  ;;  %v4107_v26 = vmax.f32 %v4091_v51, 0.0  ;;  %v4108_v57 = vmax.f32 %v4092_v10, 0.0 }
 0x430   :  { %v4109_v49 = vmax.f32 %v4093_v52, 0.0  ;;  %v4110_v18 = vmax.f32 %v4094_v2, 0.0  ;;  %v4111_v59 = vmax.f32 %v4095_v11, 0.0  ;;  %v4112_v45 = vmax.f32 %v4096_v8, 0.0  ;;  %4124 = vst [vmem:[#allocation2 + $0x18] sm:$0xff] %v12653_v19  ;;  %v12662_v52 = vpop.permute.xlu0 %6871 }
 0x431   :  { %v4113_v20 = vmax.f32 %v4097_v50, 0.0  ;;  %v4114_v47 = vmax.f32 %v4098_v35, 0.0  ;;  %v4115_v56 = vmax.f32 %v4099_v21, 0.0  ;;  %v4116_v6 = vmax.f32 %v4100_v5, 0.0  ;;  %4126 = vst [vmem:[#allocation2 + $0x28] sm:$0xff] %v4106_v23  ;;  %4127 = vst [vmem:[#allocation2 + $0x30] sm:$0xff] %v4107_v26 }
 0x432   :  { %4128 = vst [vmem:[#allocation2 + $0x38] sm:$0xff] %v4108_v57  ;;  %4125 = vst [vmem:[#allocation2 + $0x20] sm:$0xff] %v4105_v0  ;;  %v4117_v16 = vmax.f32 %v4101_v46, 0.0  ;;  %v4118_v58 = vmax.f32 %v4102_v33, 0.0  ;;  %v4087_v10 = vadd.f32 %v7594_v28, %v4065_v53  ;;  %v12658_v2 = vmul.f32 %v11230_v32, %v12653_v19  ;;  %v6847_v50 = vpop.permute.xlu1 %6846  ;;  %v4139_v46 = vld [vmem:[#allocation2 + $0x7] sm:$0xff] }
 0x433   :  { %4129 = vst [vmem:[#allocation2 + $0x40] sm:$0xff] %v4109_v49  ;;  %4130 = vst [vmem:[#allocation2 + $0x48] sm:$0xff] %v4110_v18  ;;  %v12665_v11 = vmul.f32 %v11228_v48, %v4105_v0  ;;  %v12668_v41 = vmul.f32 %v11276_v37, %v4106_v23  ;;  %v12671_v53 = vmul.f32 %v11274_v17, %v4107_v26 }
 0x434   :  { %4131 = vst [vmem:[#allocation2 + $0x50] sm:$0xff] %v4111_v59  ;;  %4132 = vst [vmem:[#allocation2 + $0x58] sm:$0xff] %v4112_v45  ;;  %v12674_v32 = vmul.f32 %v11314_v55, %v4108_v57  ;;  %v12676_v28 = vmax.f32 %v4087_v10, 0.0  ;;  %v12679_v39 = vmul.f32 %v11312_v3, %v4109_v49  ;;  %v12682_v63 = vmul.f32 %v11354_v9, %v4110_v18  ;;  %v6842_v35 = vpop.permute.xlu0 %6841 }
 0x435   :  { %4133 = vst [vmem:[#allocation2 + $0x60] sm:$0xff] %v4113_v20  ;;  %4134 = vst [vmem:[#allocation2 + $0x68] sm:$0xff] %v4114_v47  ;;  %v12685_v48 = vmul.f32 %v11352_v40, %v4111_v59  ;;  %v12692_v55 = vmul.f32 %v11401_v15, %v4112_v45  ;;  %v12695_v30 = vmul.f32 %v11399_v34, %v4113_v20 }
 0x436   :  { %4135 = vst [vmem:[#allocation2 + $0x70] sm:$0xff] %v4115_v56  ;;  %4136 = vst [vmem:[#allocation2 + $0x78] sm:$0xff] %v4116_v6  ;;  %v12703_v9 = vmul.f32 %v11442_v25, %v4114_v47  ;;  %v12708_v15 = vmul.f32 %v11440_v12, %v4115_v56  ;;  %v12711_v34 = vmul.f32 %v11480_v13, %v4116_v6 }
 0x437   :  { %4137 = vst [vmem:[#allocation2 + $0x80] sm:$0xff] %v4117_v16  ;;  %4138 = vst [vmem:[#allocation2 + $0x88] sm:$0xff] %v4118_v58  ;;  %v12714_v22 = vmul.f32 %v11478_v4, %v4117_v16  ;;  %v4251_v20 = vmul.f32 %v10852_v7, %v4139_v46  ;;  %v13909_v4 = vld [vmem:[#allocation118_spill] sm:$0xff] }
 0x438   :  { %4123 = vst [vmem:[#allocation2 + $0x10] sm:$0xff] %v12676_v28  ;;  %v12726_v5 = vld [vmem:[#allocation2 + $0x29] sm:$0xff]  ;;  %v6852_v7 = vpop.permute.xlu0 %6851 }
 0x439   :  { %v12716_v51 = vld [vmem:[#allocation2 + $0x19] sm:$0xff]  ;;  %v12718_v8 = vld [vmem:[#allocation2 + $0x21] sm:$0xff]  ;;  %v12728_v13 = vld [vmem:[#allocation2 + $0x31] sm:$0xff]  ;;  %v6901_v33 = vmul.f32 %v12644_v43, %v12726_v5 }
 0x43a   :  { %v6899_v25 = vmul.f32 %v12621_v42, %v12716_v51  ;;  %v6900_v21 = vmul.f32 %v12619_v36, %v12718_v8  ;;  %v12724_v12 = vld [vmem:[#allocation2 + $0x1f] sm:$0xff]  ;;  %v6902_v0 = vmul.f32 %v12642_v54, %v12728_v13  ;;  %v12742_v57 = vld [vmem:[#allocation2 + $0x27] sm:$0xff]  ;;  %v12744_v49 = vld [vmem:[#allocation2 + $0x2f] sm:$0xff]  ;;  %v12767_v40 = vmul.f32 %v12716_v51, %v11567_v14 }
 0x43b   :  { %v12736_v42 = vld [vmem:[#allocation2 + $0x39] sm:$0xff]  ;;  %v12738_v23 = vld [vmem:[#allocation2 + $0x41] sm:$0xff]  ;;  %v4254_v43 = vmul.f32 %v10895_v29, %v12724_v12  ;;  %v12750_v45 = vld [vmem:[#allocation2 + $0x49] sm:$0xff] }
 0x43c   :  { %v6915_v26 = vpack.c.bf16 %v6900_v21, %v6899_v25  ;;  %v6903_v18 = vmul.f32 %v6842_v35, %v12736_v42  ;;  %v6904_v59 = vmul.f32 %v6847_v50, %v12738_v23  ;;  %v6916_v54 = vpack.c.bf16 %v6902_v0, %v6901_v33  ;;  %v12753_v16 = vld [vmem:[#allocation2 + $0x51] sm:$0xff]  ;;  %v13906_v50 = vld [vmem:[#allocation117_spill] sm:$0xff]  ;;  %v13907_v29 = vld [vmem:[#allocation116_spill] sm:$0xff]  ;;  %v6857_v33 = vpop.permute.xlu1 %6856 }
 0x43d   :  { %v4255_v35 = vmul.f32 %v13906_v50, %v12742_v57  ;;  %v4256_v25 = vmul.f32 %v13907_v29, %v12744_v49  ;;  %v4145_v21 = vld [vmem:[#allocation2 + $0x37] sm:$0xff]  ;;  %v4146_v46 = vld [vmem:[#allocation2 + $0x3f] sm:$0xff]  ;;  %v4148_v29 = vld [vmem:[#allocation2 + $0x4f] sm:$0xff] }
 0x43e   :  { %8827 = vmatprep.mubr.bf16.mxu0 %v6915_v26  ;;  %v6917_v6 = vpack.c.bf16 %v6904_v59, %v6903_v18  ;;  %v6905_v18 = vmul.f32 %v6852_v7, %v12750_v45  ;;  %v4147_v59 = vld [vmem:[#allocation2 + $0x47] sm:$0xff]  ;;  %v4258_v61 = vmul.f32 %v13909_v4, %v4146_v46  ;;  %v12784_v4 = vmul.f32 %v12736_v42, %v11652_v38  ;;  %v13913_v14 = vld [vmem:[#allocation90_spill] sm:$0xff]  ;;  %v4150_v3 = vld [vmem:[#allocation2 + $0x5f] sm:$0xff] }
 0x43f   :  { %v4140_v47 = vld [vmem:[#allocation2 + $0xf] sm:$0xff]  ;;  %v4141_v56 = vld [vmem:[#allocation2 + $0x17] sm:$0xff]  ;;  %8828 = vmatmul.mubr.bf16.vlgmr.msra.gmra.mrb[16].mxu0 %v6916_v54  ;;  %v4269_v50 = vpack.c.bf16 %v4256_v25, %v4255_v35 }
 0x440   :  { %v4252_v58 = vmul.f32 %v10850_v62, %v4140_v47  ;;  %v4253_v10 = vmul.f32 %v10897_v27, %v4141_v56  ;;  %8831 = vmatprep.mubr.bf16.mxu0 %v6917_v6  ;;  %v6906_v62 = vmul.f32 %v6857_v33, %v12753_v16  ;;  %v9231_v27 = vld [vmem:[#allocation6 + $0x8] sm:$0xff]   ;;  %v13908_v54 = vld [vmem:[#allocation119_spill] sm:$0xff]  ;;  %13912 = vst [vmem:[#allocation117_spill] sm:$0xff] %v12784_v4  ;;  %v13914_v33 = vld [vmem:[#allocation26_spill] sm:$0xff] }
 0x441   :  { %v4257_v36 = vmul.f32 %v13908_v54, %v4145_v21  ;;  %v12791_v7 = vmul.f32 %v12738_v23, %v13914_v33  ;;  %v13916_v38 = vld [vmem:[#allocation30_spill] sm:$0xff]  ;;  %v13935_v4 = vld [vmem:[#allocation49_spill] sm:$0xff] }
 0x442   :  { %v4267_v0 = vpack.c.bf16 %v4252_v58, %v4251_v20  ;;  %v4268_v26 = vpack.c.bf16 %v4254_v43, %v4253_v10  ;;  %v12771_v43 = vmul.f32 %v12718_v8, %v11565_v44  ;;  %v13910_v20 = vld [vmem:[#allocation121_spill] sm:$0xff]  ;;  %v12776_v58 = vmul.f32 %v12726_v5, %v11611_v60  ;;  %v13911_v10 = vld [vmem:[#allocation23_spill] sm:$0xff]  ;;  %v9232_v60 = vld [vmem:[#allocation6 + $0x10] sm:$0xff]  }
 0x443   :  { %v4259_v6 = vmul.f32 %v13910_v20, %v4147_v59  ;;  %v12780_v35 = vmul.f32 %v12728_v13, %v13911_v10  ;;  %v6918_v44 = vpack.c.bf16 %v6906_v62, %v6905_v18  ;;  %v12798_v20 = vmul.f32 %v12750_v45, %v13916_v38  ;;  %v4149_v25 = vld [vmem:[#allocation2 + $0x57] sm:$0xff]  ;;  %v13925_v10 = vld [vmem:[#allocation56_spill] sm:$0xff] }
 0x444   :  { %8539 = vmatprep.mubr.bf16.mxu1 %v4267_v0  ;;  %v13915_v0 = vld [vmem:[#allocation120_spill] sm:$0xff]  ;;  %v4270_v38 = vpack.c.bf16 %v4258_v61, %v4257_v36  ;;  %v12824_v17 = vmul.f32 %v13925_v10, %v12653_v19  ;;  %v13927_v61 = vld [vmem:[#allocation42_spill] sm:$0xff]  ;;  %v13931_v10 = vld [vmem:[#allocation47_spill] sm:$0xff] }
 0x445   :  { %8540 = vmatmul.mubr.bf16.vlgmr.msra.gmra.mrb[0].mxu1 %v4268_v26  ;;  %v4260_v26 = vmul.f32 %v13915_v0, %v4148_v29  ;;  %13917 = vst [vmem:[#allocation116_spill] sm:$0xff] %v12798_v20  ;;  %v13921_v0 = vld [vmem:[#allocation57_spill] sm:$0xff]  ;;  %v12828_v36 = vmul.f32 %v13927_v61, %v12742_v57  ;;  %v12846_v57 = vmul.f32 %v13935_v4, %v4148_v29  ;;  %v13936_v61 = vld [vmem:[#allocation48_spill] sm:$0xff] }
 0x446   :  { %8556 = vmatpush3.bf16.msra.mxu1 %v13913_v14  ;;  %8543 = vmatprep.mubr.bf16.mxu1 %v4269_v50  ;;  %v13918_v50 = vld [vmem:[#allocation29_spill] sm:$0xff]  ;;  %v12813_v54 = vmul.f32 %v13921_v0, %v12676_v28  ;;  %13926 = vst [vmem:[#allocation121_spill] sm:$0xff] %v12824_v17 }
 0x447   :  { %8557 = vmatprep.subr.bf16.mxu1 %v9231_v27  ;;  %v12802_v18 = vmul.f32 %v12753_v16, %v13918_v50  ;;  %8832 = vmatmul.mubr.bf16.gmra.mrb[20].mxu0 %v6918_v44  ;;  %v13920_v14 = vld [vmem:[#allocation41_spill] sm:$0xff]  ;;  %v13923_v50 = vld [vmem:[#allocation40_spill] sm:$0xff]  ;;  %v13924_v44 = vld [vmem:[#allocation43_spill] sm:$0xff] }
 0x448   :  { %v12809_v33 = vmul.f32 %v13920_v14, %v4140_v47  ;;  %13922 = vst [vmem:[#allocation118_spill] sm:$0xff] %v12813_v54  ;;  %v12816_v37 = vmul.f32 %v13923_v50, %v4141_v56  ;;  %v12820_v62 = vmul.f32 %v13924_v44, %v12724_v12  ;;  %v4271_v47 = vpack.c.bf16 %v4260_v26, %v4259_v6  ;;  %v9233_v14 = vld [vmem:[#allocation6 + $0x18] sm:$0xff]   ;;  %v4151_v0 = vld [vmem:[#allocation2 + $0x67] sm:$0xff]  ;;  %v4152_v20 = vld [vmem:[#allocation2 + $0x6f] sm:$0xff] }
 0x449   :  { %13919 = vst [vmem:[#allocation119_spill] sm:$0xff] %v12802_v18  ;;  %v13928_v56 = vld [vmem:[#allocation45_spill] sm:$0xff]  ;;  %v13930_v50 = vld [vmem:[#allocation44_spill] sm:$0xff]  ;;  %v4153_v44 = vld [vmem:[#allocation2 + $0x77] sm:$0xff]  ;;  %v12840_v6 = vmul.f32 %v13931_v10, %v4146_v46 }
 0x44a   :  { %8558 = vmatpush3.bf16.msra.mxu1 %v9231_v27  ;;  %v12832_v27 = vmul.f32 %v13928_v56, %v12744_v49  ;;  %v12835_v12 = vmul.f32 %v13930_v50, %v4145_v21  ;;  %v13933_v26 = vld [vmem:[#allocation46_spill] sm:$0xff]  ;;  %v12853_v56 = vmul.f32 %v13936_v61, %v4149_v25  ;;  %v13937_v50 = vld [vmem:[#allocation51_spill] sm:$0xff]  ;;  %v13941_v4 = vld [vmem:[#allocation53_spill] sm:$0xff] }
 0x44b   :  { %8559 = vmatprep.subr.bf16.mxu1 %v9232_v60  ;;  %13932 = vst [vmem:[#allocation90_spill] sm:$0xff] %v12840_v6  ;;  %v12843_v18 = vmul.f32 %v13933_v26, %v4147_v59  ;;  %v12856_v19 = vmul.f32 %v13937_v50, %v4150_v3  ;;  %v13939_v59 = vld [vmem:[#allocation50_spill] sm:$0xff]  ;;  %v9234_v10 = vld [vmem:[#allocation6 + $0x20] sm:$0xff]   ;;  %v13943_v26 = vld [vmem:[#allocation13_spill] sm:$0xff] }
 0x44c   :  { %13929 = vst [vmem:[#allocation23_spill] sm:$0xff] %v12832_v27  ;;  %v12861_v29 = vmul.f32 %v13939_v59, %v4151_v0  ;;  %v4261_v21 = vmul.f32 %v13943_v26, %v4149_v25  ;;  %v13944_v61 = vld [vmem:[#allocation12_spill] sm:$0xff]  ;;  %v13947_v27 = vld [vmem:[#allocation15_spill] sm:$0xff]  ;;  %v13948_v6 = vld [vmem:[#allocation14_spill] sm:$0xff] }
 0x44d   :  { %13934 = vst [vmem:[#allocation26_spill] sm:$0xff] %v12843_v18  ;;  %8544 = vmatmul.mubr.bf16.gmra.mrb[4].mxu1 %v4270_v38  ;;  %13938 = vst [vmem:[#allocation120_spill] sm:$0xff] %v12856_v19  ;;  %v12864_v38 = vmul.f32 %v13941_v4, %v4152_v20  ;;  %v4262_v49 = vmul.f32 %v13944_v61, %v4150_v3  ;;  %v4263_v46 = vmul.f32 %v13947_v27, %v4151_v0  ;;  %v12881_v3 = vld [vmem:[#allocation2 + $0x11] sm:$0xff]  ;;  %v9235_v61 = vld [vmem:[#allocation6 + $0x28] sm:$0xff]  }
 0x44e   :  { %8560 = vmatpush3.bf16.msra.mxu1 %v9232_v60  ;;  %8547 = vmatprep.mubr.bf16.mxu1 %v4271_v47  ;;  %13940 = vst [vmem:[#allocation30_spill] sm:$0xff] %v12861_v29  ;;  %v13945_v60 = vld [vmem:[#allocation52_spill] sm:$0xff]  ;;  %v4264_v59 = vmul.f32 %v13948_v6, %v4152_v20  ;;  %v13950_v20 = vld [vmem:[#allocation73_spill] sm:$0xff]  ;;  %v9236_v27 = vld [vmem:[#allocation6 + $0x30] sm:$0xff]  }
 0x44f   :  { %13942 = vst [vmem:[#allocation29_spill] sm:$0xff] %v12864_v38  ;;  %8561 = vmatprep.subr.bf16.mxu1 %v9233_v14  ;;  %v12871_v47 = vmul.f32 %v13945_v60, %v4153_v44  ;;  %v4272_v26 = vpack.c.bf16 %v4262_v49, %v4261_v21  ;;  %v12883_v50 = vld [vmem:[#allocation2 + $0x7f] sm:$0xff]  ;;  %v12887_v0 = vmul.f32 %v13950_v20, %v12881_v3  ;;  %v13952_v6 = vld [vmem:[#allocation17_spill] sm:$0xff]  ;;  %v13958_v20 = vld [vmem:[#allocation74_spill] sm:$0xff] }
 0x450   :  { %v4273_v60 = vpack.c.bf16 %v4264_v59, %v4263_v46  ;;  %13949 = vst [vmem:[#allocation57_spill] sm:$0xff] %v12883_v50  ;;  %v4265_v18 = vmul.f32 %v13952_v6, %v4153_v44  ;;  %v12890_v25 = vld [vmem:[#allocation2 + $0x59] sm:$0xff]  ;;  %v12912_v6 = vmul.f32 %v12726_v5, %v13958_v20  ;;  %v13968_v5 = vld [vmem:[#allocation81_spill] sm:$0xff] }
 0x451   :  { %13946 = vst [vmem:[#allocation41_spill] sm:$0xff] %v12871_v47  ;;  %13951 = vst [vmem:[#allocation40_spill] sm:$0xff] %v12887_v0  ;;  %v13953_v4 = vld [vmem:[#allocation72_spill] sm:$0xff]  ;;  %v13955_v21 = vld [vmem:[#allocation75_spill] sm:$0xff]  ;;  %v12934_v20 = vmul.f32 %v12753_v16, %v13968_v5 }
 0x452   :  { %8562 = vmatpush3.bf16.msra.mxu1 %v9233_v14  ;;  %v12892_v14 = vld [vmem:[#allocation2 + $0x61] sm:$0xff]  ;;  %v12896_v49 = vmul.f32 %v12716_v51, %v13953_v4  ;;  %v12900_v46 = vmul.f32 %v12718_v8, %v13955_v21  ;;  %v12908_v44 = vld [vmem:[#allocation2 + $0x79] sm:$0xff]  ;;  %13959 = vst [vmem:[#allocation42_spill] sm:$0xff] %v12912_v6  ;;  %v13974_v16 = vld [vmem:[#allocation82_spill] sm:$0xff] }
 0x453   :  { %8563 = vmatprep.subr.bf16.mxu1 %v9234_v10  ;;  %v13957_v59 = vld [vmem:[#allocation16_spill] sm:$0xff]  ;;  %v13960_v51 = vld [vmem:[#allocation77_spill] sm:$0xff]  ;;  %v13964_v54 = vld [vmem:[#allocation79_spill] sm:$0xff]  ;;  %13969 = vst [vmem:[#allocation49_spill] sm:$0xff] %v12934_v20 }
 0x454   :  { %13954 = vst [vmem:[#allocation43_spill] sm:$0xff] %v12896_v49  ;;  %13956 = vst [vmem:[#allocation56_spill] sm:$0xff] %v12900_v46  ;;  %v12916_v4 = vmul.f32 %v12728_v13, %v13960_v51  ;;  %v13962_v8 = vld [vmem:[#allocation76_spill] sm:$0xff]  ;;  %v12926_v17 = vmul.f32 %v12738_v23, %v13964_v54  ;;  %v13972_v23 = vld [vmem:[#allocation83_spill] sm:$0xff] }
 0x455   :  { %8548 = vmatmul.mubr.bf16.gmra.mrb[8].mxu1 %v4272_v26  ;;  %v12904_v26 = vld [vmem:[#allocation2 + $0x69] sm:$0xff]  ;;  %v12920_v21 = vmul.f32 %v12736_v42, %v13962_v8  ;;  %v13970_v51 = vld [vmem:[#allocation80_spill] sm:$0xff]  ;;  %v12946_v54 = vmul.f32 %v13972_v23, %v12892_v14  ;;  %v9237_v23 = vld [vmem:[#allocation6 + $0x38] sm:$0xff]  }
 0x456   :  { %8564 = vmatpush3.bf16.msra.mxu1 %v9234_v10  ;;  %8551 = vmatprep.mubr.bf16.mxu1 %v4273_v60  ;;  %v4266_v10 = vmul.f32 %v13957_v59, %v12883_v50  ;;  %v12906_v60 = vld [vmem:[#allocation2 + $0x71] sm:$0xff]  ;;  %13961 = vst [vmem:[#allocation45_spill] sm:$0xff] %v12916_v4  ;;  %13965 = vst [vmem:[#allocation47_spill] sm:$0xff] %v12926_v17  ;;  %v12942_v8 = vmul.f32 %v13970_v51, %v12890_v25  ;;  %v13976_v5 = vld [vmem:[#allocation85_spill] sm:$0xff] }
 0x457   :  { %8565 = vmatprep.subr.bf16.mxu1 %v9235_v61  ;;  %13963 = vst [vmem:[#allocation44_spill] sm:$0xff] %v12920_v21  ;;  %v13966_v50 = vld [vmem:[#allocation78_spill] sm:$0xff]  ;;  %13973 = vst [vmem:[#allocation51_spill] sm:$0xff] %v12946_v54  ;;  %v12956_v13 = vmul.f32 %v13976_v5, %v12906_v60  ;;  %v13978_v42 = vld [vmem:[#allocation84_spill] sm:$0xff] }
 0x458   :  { %v12930_v38 = vmul.f32 %v12750_v45, %v13966_v50  ;;  %13971 = vst [vmem:[#allocation48_spill] sm:$0xff] %v12942_v8  ;;  %v12952_v50 = vmul.f32 %v13974_v16, %v12904_v26  ;;  %v12960_v51 = vmul.f32 %v13978_v42, %v12908_v44  ;;  %v4274_v59 = vpack.c.bf16 %v4266_v10, %v4265_v18  ;;  %v13980_v5 = vld [vmem:[#allocation22_spill] sm:$0xff]  ;;  %v9238_v42 = vld [vmem:[%s13528_s7 + $0x40] sm:$0xff]   ;;  %v12972_v18 = vld [vmem:[#allocation2 + $0x28] sm:$0xff] }
 0x459   :  { %13977 = vst [vmem:[#allocation53_spill] sm:$0xff] %v12956_v13  ;;  %13981 = vst [vmem:[#allocation12_spill] sm:$0xff] %v12972_v18  ;;  %v12974_v10 = vld [vmem:[#allocation2 + $0x30] sm:$0xff]  ;;  %v12978_v20 = vld [vmem:[#allocation2 + $0x40] sm:$0xff] }
 0x45a   :  { %13967 = vst [vmem:[#allocation46_spill] sm:$0xff] %v12930_v38  ;;  %8566 = vmatpush3.bf16.msra.mxu1 %v9235_v61  ;;  %13975 = vst [vmem:[#allocation50_spill] sm:$0xff] %v12952_v50  ;;  %v12976_v61 = vld [vmem:[#allocation2 + $0x38] sm:$0xff]  ;;  %v12980_v45 = vld [vmem:[#allocation2 + $0x48] sm:$0xff] }
 0x45b   :  { %13979 = vst [vmem:[#allocation13_spill] sm:$0xff] %v12960_v51  ;;  %8567 = vmatprep.subr.bf16.mxu1 %v9236_v27  ;;  %13982 = vst [vmem:[#allocation52_spill] sm:$0xff] %v12974_v10  ;;  %v12982_v16 = vld [vmem:[#allocation2 + $0x50] sm:$0xff]  ;;  %v13985_v13 = vld [vmem:[#allocation108_spill] sm:$0xff] }
 0x45c   :  { %13983 = vst [vmem:[#allocation15_spill] sm:$0xff] %v12976_v61  ;;  %13984 = vst [vmem:[#allocation14_spill] sm:$0xff] %v12978_v20  ;;  %v12992_v51 = vmul.f32 %v13985_v13, %v12972_v18  ;;  %v13987_v54 = vld [vmem:[#allocation107_spill] sm:$0xff]  ;;  %v9239_v8 = vld [vmem:[%s13528_s7 + $0x48] sm:$0xff]  }
 0x45d   :  { %8552 = vmatmul.mubr.bf16.gmra.mrb[12].mxu1 %v4274_v59  ;;  %v12986_v59 = vld [vmem:[#allocation2 + $0x60] sm:$0xff]  ;;  %v12996_v50 = vmul.f32 %v13987_v54, %v12974_v10  ;;  %v13003_v17 = vld [vmem:[#allocation2 + $0x78] sm:$0xff]  ;;  %v13990_v38 = vld [vmem:[#allocation110_spill] sm:$0xff] }
 0x45e   :  { %8568 = vmatpush3.bf16.msra.mxu1 %v9236_v27  ;;  %8571 = vmatprep.mubr.bf16.mxu1 %v13980_v5  ;;  %v12984_v27 = vld [vmem:[#allocation2 + $0x58] sm:$0xff]  ;;  %v12988_v5 = vld [vmem:[#allocation2 + $0x68] sm:$0xff]  ;;  %13986 = vst [vmem:[#allocation73_spill] sm:$0xff] %v12992_v51  ;;  %13989 = vst [vmem:[#allocation72_spill] sm:$0xff] %v13003_v17  ;;  %v13007_v4 = vmul.f32 %v13990_v38, %v12976_v61 }
 0x45f   :  { %8569 = vmatprep.subr.bf16.mxu1 %v9237_v23  ;;  %13988 = vst [vmem:[#allocation17_spill] sm:$0xff] %v12996_v50  ;;  %v13992_v13 = vld [vmem:[#allocation109_spill] sm:$0xff]  ;;  %v9353_v46 = vld [vmem:[#allocation2] sm:$0xff]  ;;  %v13997_v38 = vld [vmem:[#allocation111_spill] sm:$0xff] }
 0x460   :  { %13991 = vst [vmem:[#allocation75_spill] sm:$0xff] %v13007_v4  ;;  %v13011_v21 = vmul.f32 %v13992_v13, %v12978_v20  ;;  %v13994_v54 = vld [vmem:[#allocation125_spill] sm:$0xff]  ;;  %v13016_v0 = vld [vmem:[#allocation2 + $0x80] sm:$0xff]  ;;  %v13028_v61 = vmul.f32 %v13997_v38, %v12982_v16  ;;  %v14000_v20 = vld [vmem:[#allocation114_spill] sm:$0xff] }
 0x461   :  { %v13014_v6 = vmul.f32 %v9353_v46, %v13994_v54  ;;  %v13018_v49 = vld [vmem:[#allocation2 + $0x88] sm:$0xff]  ;;  %v13995_v18 = vld [vmem:[#allocation112_spill] sm:$0xff]  ;;  %v13035_v19 = vmul.f32 %v14000_v20, %v12984_v27  ;;  %v14005_v54 = vld [vmem:[#allocation115_spill] sm:$0xff] }
 0x462   :  { %8570 = vmatpush3.bf16.msra.mxu1 %v9237_v23  ;;  %v13001_v23 = vld [vmem:[#allocation2 + $0x70] sm:$0xff]  ;;  %13993 = vst [vmem:[#allocation16_spill] sm:$0xff] %v13011_v21  ;;  %v13024_v47 = vmul.f32 %v13995_v18, %v12980_v45  ;;  %13998 = vst [vmem:[#allocation77_spill] sm:$0xff] %v13028_v61  ;;  %v13999_v13 = vld [vmem:[#allocation24_spill] sm:$0xff]  ;;  %v6882_v61 = vpop.permute.xlu0 %6881 }
 0x463   :  { %8587 = vmatprep.subr.bf16.mxu1 %v9238_v42  ;;  %14001 = vst [vmem:[#allocation76_spill] sm:$0xff] %v13035_v19  ;;  %v14002_v29 = vld [vmem:[#allocation113_spill] sm:$0xff]  ;;  %v14003_v18 = vld [vmem:[#allocation122_spill] sm:$0xff]  ;;  %v13052_v20 = vmul.f32 %v14005_v54, %v13001_v23  ;;  %v14006_v4 = vld [vmem:[#allocation124_spill] sm:$0xff] }
 0x464   :  { %13996 = vst [vmem:[#allocation74_spill] sm:$0xff] %v13024_v47  ;;  %v13039_v10 = vmul.f32 %v14002_v29, %v12986_v59  ;;  %v13043_v51 = vmul.f32 %v14003_v18, %v12988_v5  ;;  %v14004_v38 = vld [vmem:[#allocation25_spill] sm:$0xff]  ;;  %v13056_v29 = vmul.f32 %v14006_v4, %v13003_v17  ;;  %v13073_v4 = vmul.f32 %v12651_v31, %v12890_v25  ;;  %v6887_v47 = vpop.permute.xlu1 %6886  ;;  %v9241_v31 = vld [vmem:[%s13528_s7 + $0x58] sm:$0xff]   ;;  %v14014_v19 = vld [vmem:[#allocation34_spill] sm:$0xff] }
 0x465   :  { %8572 = vmatmul.mubr.bf16.vlgmr.msra.gmra.mrb[0].mxu1 %v13999_v13  ;;  %v13046_v50 = vld [vmem:[#allocation2 + $0x81] sm:$0xff]  ;;  %v14008_v13 = vld [vmem:[#allocation126_spill] sm:$0xff]  ;;  %v13079_v18 = vmul.f32 %v12649_v1, %v12892_v14  ;;  %v13094_v17 = vmul.f32 %v6882_v61, %v12908_v44  ;;  %v14011_v61 = vld [vmem:[#allocation27_spill] sm:$0xff] }
 0x466   :  { %8588 = vmatpush3.bf16.msra.mxu1 %v9238_v42  ;;  %8575 = vmatprep.mubr.bf16.mxu1 %v14004_v38  ;;  %v9240_v42 = vld [vmem:[%s13528_s7 + $0x50] sm:$0xff]   ;;  %v14007_v38 = vld [vmem:[#allocation123_spill] sm:$0xff]  ;;  %v13069_v54 = vmul.f32 %v14008_v13, %v13018_v49  ;;  %v13087_v13 = vmul.f32 %v12660_v24, %v12906_v60  ;;  %v13097_v1 = vmul.f32 %v6887_v47, %v13046_v50  ;;  %v14012_v47 = vld [vmem:[#allocation28_spill] sm:$0xff] }
 0x467   :  { %8589 = vmatprep.subr.bf16.mxu1 %v9239_v8  ;;  %v13065_v21 = vmul.f32 %v14007_v38, %v13016_v0  ;;  %v13083_v38 = vmul.f32 %v12662_v52, %v12904_v26  ;;  %14009 = vst [vmem:[#allocation79_spill] sm:$0xff] %v13094_v17  ;;  %v9243_v24 = vld [vmem:[%s13528_s7 + $0x68] sm:$0xff]   ;;  %v14013_v52 = vld [vmem:[#allocation31_spill] sm:$0xff] }
 0x468   :  { %14010 = vst [vmem:[#allocation78_spill] sm:$0xff] %v13097_v1  ;;  %v14016_v17 = vld [vmem:[#allocation19_spill] sm:$0xff] }
 0x469   :  { %v9245_v1 = vld [vmem:[%s13528_s7 + $0x78] sm:$0xff]  }
 0x46a   :  { %8590 = vmatpush3.bf16.msra.mxu1 %v9239_v8  ;;  %v9242_v8 = vld [vmem:[%s13528_s7 + $0x60] sm:$0xff]  }
 0x46b   :  { %8591 = vmatprep.subr.bf16.mxu1 %v9240_v42 }
 0x46d   :  { %8576 = vmatmul.mubr.bf16.gmra.mrb[4].mxu1 %v14011_v61  ;;  %v14015_v61 = vld [vmem:[#allocation18_spill] sm:$0xff] }
 0x46e   :  { %8592 = vmatpush3.bf16.msra.mxu1 %v9240_v42  ;;  %8579 = vmatprep.mubr.bf16.mxu1 %v14012_v47  ;;  %v9244_v42 = vld [vmem:[%s13528_s7 + $0x70] sm:$0xff]   ;;  %v4695_v47 = vmul.f32 %v14015_v61, %v12676_v28  ;;  %v9247_v28 = vld [vmem:[%s13528_s7 + $0x88] sm:$0xff]  }
 0x46f   :  { %8593 = vmatprep.subr.bf16.mxu1 %v9241_v31 }
 0x472   :  { %8594 = vmatpush3.bf16.msra.mxu1 %v9241_v31  ;;  %v4694_v31 = vmul.f32 %v9353_v46, %v14016_v17  ;;  %v14018_v17 = vpack.c.bf16 %v12665_v11, %v12658_v2  ;;  %v14019_v46 = vpack.c.bf16 %v12671_v53, %v12668_v41  ;;  %v14020_v2 = vpack.c.bf16 %v12679_v39, %v12674_v32  ;;  %v9250_v41 = vld [vmem:[%s13528_s7 + $0xa0] sm:$0xff]   ;;  %v9251_v53 = vld [vmem:[%s13528_s7 + $0xa8] sm:$0xff]  }
 0x473   :  { %8595 = vmatprep.subr.bf16.mxu1 %v9242_v8  ;;  %v14021_v11 = vpack.c.bf16 %v12685_v48, %v12682_v63  ;;  %v14022_v32 = vpack.c.bf16 %v12695_v30, %v12692_v55  ;;  %v4896_v39 = vld [vmem:[#allocation2 + $0x9] sm:$0xff]  ;;  %v14023_v63 = vpack.c.bf16 %v12708_v15, %v12703_v9  ;;  %v9253_v55 = vld [vmem:[%s13528_s7 + $0xb8] sm:$0xff]   ;;  %v14026_v9 = vpack.c.bf16 %v12714_v22, %v12711_v34  ;;  %v9254_v15 = vld [vmem:[%s13528_s7 + $0xc0] sm:$0xff]  }
 0x474   :  { %v9252_v48 = vld [vmem:[%s13528_s7 + $0xb0] sm:$0xff]   ;;  %v14028_v34 = vpack.c.bf16 %v12780_v35, %v12776_v58  ;;  %v9258_v35 = vld [vmem:[%s13528_s7 + $0xe0] sm:$0xff]  }
 0x475   :  { %8580 = vmatmul.mubr.bf16.gmra.mrb[8].mxu1 %v14013_v52  ;;  %v4710_v52 = vpack.c.bf16 %v4695_v47, %v4694_v31  ;;  %v14025_v47 = vld [vmem:[#allocation20_spill] sm:$0xff]  ;;  %v9256_v22 = vld [vmem:[%s13528_s7 + $0xd0] sm:$0xff]  }
 0x476   :  { %8596 = vmatpush3.bf16.msra.mxu1 %v9242_v8  ;;  %8583 = vmatprep.mubr.bf16.mxu1 %v14014_v19  ;;  %v14017_v8 = vld [vmem:[#allocation37_spill] sm:$0xff]  ;;  %v9246_v19 = vld [vmem:[%s13528_s7 + $0x80] sm:$0xff]   ;;  %v5010_v31 = vmul.f32 %v14025_v47, %v12881_v3 }
 0x477   :  { %8597 = vmatprep.subr.bf16.mxu1 %v9243_v24  ;;  %v9255_v3 = vld [vmem:[%s13528_s7 + $0xc8] sm:$0xff]  }
 0x478   :  { %v9263_v47 = vld [vmem:[%s13528_s7 + $0x108] sm:$0xff]  }
 0x47a   :  { %8598 = vmatpush3.bf16.msra.mxu1 %v9243_v24  ;;  %v9248_v24 = vld [vmem:[%s13528_s7 + $0x90] sm:$0xff]  }
 0x47b   :  { %8599 = vmatprep.subr.bf16.mxu1 %v9244_v42 }
 0x47d   :  { %8584 = vmatmul.mubr.bf16.gmra.mrb[12].mxu1 %v14017_v8  ;;  %v9257_v8 = vld [vmem:[%s13528_s7 + $0xd8] sm:$0xff]  }
 0x47e   :  { %8600 = vmatpush3.bf16.msra.mxu1 %v9244_v42  ;;  %8603 = vmatprep.mubr.bf16.mxu1 %v4710_v52  ;;  %v14024_v42 = vld [vmem:[#allocation21_spill] sm:$0xff]  ;;  %v14027_v52 = vpack.c.bf16 %v12771_v43, %v12767_v40  ;;  %v14031_v43 = vld [vmem:[#allocation119_spill] sm:$0xff] }
 0x47f   :  { %8601 = vmatprep.subr.bf16.mxu1 %v9245_v1  ;;  %v5009_v61 = vmul.f32 %v14024_v42, %v4896_v39  ;;  %v9261_v42 = vld [vmem:[%s13528_s7 + $0xf8] sm:$0xff]  }
 0x481   :  { %v5025_v30 = vpack.c.bf16 %v5010_v31, %v5009_v61  ;;  %v14040_v61 = vpack.c.bf16 %v12816_v37, %v12809_v33  ;;  %v14041_v31 = vpack.c.bf16 %v12828_v36, %v12820_v62  ;;  %v9264_v33 = vld [vmem:[%s13528_s7 + $0x110] sm:$0xff]   ;;  %v14047_v36 = vpack.c.bf16 %v12853_v56, %v12846_v57  ;;  %v14051_v57 = vld [vmem:[#allocation41_spill] sm:$0xff] }
 0x482   :  { %8602 = vmatpush3.bf16.msra.mxu1 %v9245_v1  ;;  %v9249_v1 = vld [vmem:[%s13528_s7 + $0x98] sm:$0xff]   ;;  %v14052_v56 = vld [vmem:[#allocation29_spill] sm:$0xff] }
 0x483   :  { %8619 = vmatprep.subr.bf16.mxu1 %v9246_v19 }
 0x485   :  { %8604 = vmatmul.mubr.bf16.vlgmr.msra.gmra.mrb[0].mxu1 %v14018_v17  ;;  %v14034_v17 = vld [vmem:[#allocation33_spill] sm:$0xff] }
 0x486   :  { %8620 = vmatpush3.bf16.msra.mxu1 %v9246_v19  ;;  %8607 = vmatprep.mubr.bf16.mxu1 %v14019_v46  ;;  %v14029_v19 = vld [vmem:[#allocation117_spill] sm:$0xff]  ;;  %v5019_v46 = vmul.f32 %v14034_v17, %v12890_v25  ;;  %v9260_v25 = vld [vmem:[%s13528_s7 + $0xf0] sm:$0xff]  }
 0x487   :  { %8621 = vmatprep.subr.bf16.mxu1 %v9247_v28  ;;  %v14030_v40 = vpack.c.bf16 %v12791_v7, %v14029_v19  ;;  %v14053_v19 = vpack.c.bf16 %v14051_v57, %v14052_v56 }
 0x48a   :  { %8622 = vmatpush3.bf16.msra.mxu1 %v9247_v28  ;;  %v14032_v28 = vld [vmem:[#allocation116_spill] sm:$0xff] }
 0x48b   :  { %8623 = vmatprep.subr.bf16.mxu1 %v9248_v24  ;;  %v14033_v58 = vpack.c.bf16 %v14031_v43, %v14032_v28  ;;  %v14054_v43 = vld [vmem:[#allocation57_spill] sm:$0xff]  ;;  %v14055_v28 = vld [vmem:[#allocation55_spill] sm:$0xff] }
 0x48d   :  { %8608 = vmatmul.mubr.bf16.gmra.mrb[4].mxu1 %v14020_v2  ;;  %v14036_v2 = vld [vmem:[#allocation36_spill] sm:$0xff] }
 0x48e   :  { %8624 = vmatpush3.bf16.msra.mxu1 %v9248_v24  ;;  %8611 = vmatprep.mubr.bf16.mxu1 %v14021_v11  ;;  %v14035_v24 = vld [vmem:[#allocation32_spill] sm:$0xff]  ;;  %v5021_v7 = vmul.f32 %v14036_v2, %v12904_v26  ;;  %v14037_v11 = vld [vmem:[#allocation35_spill] sm:$0xff]  ;;  %v14057_v2 = vld [vmem:[#allocation121_spill] sm:$0xff] }
 0x48f   :  { %8625 = vmatprep.subr.bf16.mxu1 %v9249_v1 }
 0x492   :  { %8626 = vmatpush3.bf16.msra.mxu1 %v9249_v1  ;;  %v5020_v1 = vmul.f32 %v14035_v24, %v12892_v14  ;;  %v14038_v14 = vld [vmem:[#allocation39_spill] sm:$0xff] }
 0x493   :  { %8627 = vmatprep.subr.bf16.mxu1 %v9250_v41  ;;  %v5023_v26 = vmul.f32 %v14038_v14, %v12908_v44  ;;  %v9262_v44 = vld [vmem:[%s13528_s7 + $0x100] sm:$0xff]   ;;  %v9269_v24 = vld [vmem:[%s13528_s7 + $0x138] sm:$0xff]  }
 0x495   :  { %8612 = vmatmul.mubr.bf16.gmra.mrb[8].mxu1 %v14022_v32  ;;  %v9259_v32 = vld [vmem:[%s13528_s7 + $0xe8] sm:$0xff]  }
 0x496   :  { %8628 = vmatpush3.bf16.msra.mxu1 %v9250_v41  ;;  %8615 = vmatprep.mubr.bf16.mxu1 %v14023_v63  ;;  %v5022_v41 = vmul.f32 %v14037_v11, %v12906_v60  ;;  %v14039_v60 = vld [vmem:[#allocation38_spill] sm:$0xff] }
 0x497   :  { %8629 = vmatprep.subr.bf16.mxu1 %v9251_v53  ;;  %v5024_v63 = vmul.f32 %v14039_v60, %v13046_v50  ;;  %v14064_v60 = vld [vmem:[#allocation61_spill] sm:$0xff] }
 0x498   :  { %v5031_v39 = vpack.c.bf16 %v5022_v41, %v5021_v7  ;;  %v14058_v7 = vld [vmem:[#allocation118_spill] sm:$0xff]  ;;  %v9270_v41 = vld [vmem:[%s13528_s7 + $0x140] sm:$0xff]  }
 0x499   :  { %v14059_v11 = vpack.c.bf16 %v14057_v2, %v14058_v7 }
 0x49a   :  { %8630 = vmatpush3.bf16.msra.mxu1 %v9251_v53  ;;  %v5030_v53 = vpack.c.bf16 %v5020_v1, %v5019_v46  ;;  %v13275_v1 = vld [vmem:[#allocation2 + $0x20] sm:$0xff] }
 0x49b   :  { %8631 = vmatprep.subr.bf16.mxu1 %v9252_v48 }
 0x49d   :  { %8616 = vmatmul.mubr.bf16.gmra.mrb[12].mxu1 %v14026_v9  ;;  %v14044_v9 = vld [vmem:[#allocation26_spill] sm:$0xff] }
 0x49e   :  { %8632 = vmatpush3.bf16.msra.mxu1 %v9252_v48  ;;  %8635 = vmatprep.mubr.bf16.mxu1 %v5025_v30  ;;  %v5032_v48 = vpack.c.bf16 %v5024_v63, %v5023_v26  ;;  %v9265_v30 = vld [vmem:[%s13528_s7 + $0x118] sm:$0xff]   ;;  %v14063_v26 = vld [vmem:[#allocation52_spill] sm:$0xff] }
 0x49f   :  { %8633 = vmatprep.subr.bf16.mxu1 %v9253_v55  ;;  %v5643_v63 = vmul.f32 %v14064_v60, %v14063_v26  ;;  %v14085_v26 = vld [vmem:[#allocation44_spill] sm:$0xff]  ;;  %v14086_v60 = vld [vmem:[#allocation45_spill] sm:$0xff] }
 0x4a2   :  { %8634 = vmatpush3.bf16.msra.mxu1 %v9253_v55  ;;  %v14042_v55 = vld [vmem:[#allocation23_spill] sm:$0xff] }
 0x4a3   :  { %8651 = vmatprep.subr.bf16.mxu1 %v9254_v15  ;;  %v14043_v37 = vpack.c.bf16 %v12835_v12, %v14042_v55  ;;  %v9266_v12 = vld [vmem:[%s13528_s7 + $0x120] sm:$0xff]   ;;  %v9272_v55 = vld [vmem:[%s13528_s7 + $0x150] sm:$0xff]  }
 0x4a5   :  { %8636 = vmatmul.mubr.bf16.vlgmr.msra.gmra.mrb[0].mxu1 %v14027_v52  ;;  %v13257_v52 = vld [vmem:[#allocation2 + $0x87] sm:$0xff] }
 0x4a6   :  { %8652 = vmatpush3.bf16.msra.mxu1 %v9254_v15  ;;  %8639 = vmatprep.mubr.bf16.mxu1 %v14028_v34  ;;  %v14045_v15 = vld [vmem:[#allocation90_spill] sm:$0xff] }
 0x4a7   :  { %8653 = vmatprep.subr.bf16.mxu1 %v9255_v3  ;;  %v14046_v62 = vpack.c.bf16 %v14044_v9, %v14045_v15  ;;  %v14048_v34 = vld [vmem:[#allocation30_spill] sm:$0xff] }
 0x4a8   :  { %v14069_v9 = vld [vmem:[#allocation62_spill] sm:$0xff] }
 0x4a9   :  { %v5646_v15 = vmul.f32 %v14069_v9, %v12980_v45  ;;  %v9274_v45 = vld [vmem:[%s13528_s7 + $0x160] sm:$0xff]  }
 0x4aa   :  { %8654 = vmatpush3.bf16.msra.mxu1 %v9255_v3  ;;  %v9267_v3 = vld [vmem:[%s13528_s7 + $0x128] sm:$0xff]  }
 0x4ab   :  { %8655 = vmatprep.subr.bf16.mxu1 %v9256_v22 }
 0x4ad   :  { %8640 = vmatmul.mubr.bf16.gmra.mrb[4].mxu1 %v14030_v40  ;;  %v9268_v40 = vld [vmem:[%s13528_s7 + $0x130] sm:$0xff]  }
 0x4ae   :  { %8656 = vmatpush3.bf16.msra.mxu1 %v9256_v22  ;;  %8643 = vmatprep.mubr.bf16.mxu1 %v14033_v58  ;;  %v14049_v22 = vld [vmem:[#allocation120_spill] sm:$0xff]  ;;  %v5338_v58 = vmul.f32 %v14055_v28, %v14054_v43 }
 0x4af   :  { %8657 = vmatprep.subr.bf16.mxu1 %v9257_v8  ;;  %v14075_v43 = vld [vmem:[#allocation72_spill] sm:$0xff] }
 0x4b0   :  { %v14076_v28 = vld [vmem:[#allocation68_spill] sm:$0xff] }
 0x4b2   :  { %8658 = vmatpush3.bf16.msra.mxu1 %v9257_v8  ;;  %v14050_v8 = vpack.c.bf16 %v14048_v34, %v14049_v22  ;;  %v9273_v22 = vld [vmem:[%s13528_s7 + $0x158] sm:$0xff]  }
 0x4b3   :  { %8659 = vmatprep.subr.bf16.mxu1 %v9258_v35 }
 0x4b5   :  { %8644 = vmatmul.mubr.bf16.gmra.mrb[8].mxu1 %v5030_v53  ;;  %v14060_v53 = vld [vmem:[#allocation59_spill] sm:$0xff] }
 0x4b6   :  { %8660 = vmatpush3.bf16.msra.mxu1 %v9258_v35  ;;  %8647 = vmatprep.mubr.bf16.mxu1 %v5031_v39  ;;  %v14056_v35 = vld [vmem:[#allocation54_spill] sm:$0xff]  ;;  %v14061_v39 = vld [vmem:[#allocation12_spill] sm:$0xff] }
 0x4b7   :  { %8661 = vmatprep.subr.bf16.mxu1 %v9259_v32  ;;  %v5339_v17 = vmul.f32 %v14056_v35, %v13257_v52 }
 0x4b9   :  { %v5347_v46 = vpack.c.bf16 %v5339_v17, %v5338_v58  ;;  %v5652_v58 = vmul.f32 %v14076_v28, %v14075_v43  ;;  %v9275_v17 = vld [vmem:[%s13528_s7 + $0x168] sm:$0xff]   ;;  %v14101_v43 = vld [vmem:[#allocation86_spill] sm:$0xff] }
 0x4ba   :  { %8662 = vmatpush3.bf16.msra.mxu1 %v9259_v32  ;;  %v5641_v32 = vmul.f32 %v14060_v53, %v13275_v1  ;;  %v14080_v53 = vld [vmem:[#allocation40_spill] sm:$0xff] }
 0x4bb   :  { %8663 = vmatprep.subr.bf16.mxu1 %v9260_v25 }
 0x4bd   :  { %8648 = vmatmul.mubr.bf16.gmra.mrb[12].mxu1 %v5032_v48  ;;  %v14065_v48 = vld [vmem:[#allocation15_spill] sm:$0xff] }
 0x4be   :  { %8664 = vmatpush3.bf16.msra.mxu1 %v9260_v25  ;;  %8667 = vmatprep.mubr.bf16.mxu1 %v14040_v61  ;;  %v14062_v25 = vld [vmem:[#allocation58_spill] sm:$0xff] }
 0x4bf   :  { %8665 = vmatprep.subr.bf16.mxu1 %v9261_v42  ;;  %v5642_v14 = vmul.f32 %v14062_v25, %v14061_v39  ;;  %v14082_v39 = vld [vmem:[#allocation42_spill] sm:$0xff]  ;;  %v14083_v25 = vld [vmem:[#allocation56_spill] sm:$0xff] }
 0x4c2   :  { %8666 = vmatpush3.bf16.msra.mxu1 %v9261_v42  ;;  %v14066_v42 = vld [vmem:[#allocation60_spill] sm:$0xff] }
 0x4c3   :  { %8683 = vmatprep.subr.bf16.mxu1 %v9262_v44  ;;  %v5644_v61 = vmul.f32 %v14066_v42, %v14065_v48  ;;  %v9280_v48 = vld [vmem:[%s13528_s7 + $0x190] sm:$0xff]   ;;  %v9281_v42 = vld [vmem:[%s13528_s7 + $0x198] sm:$0xff]  }
 0x4c5   :  { %8668 = vmatmul.mubr.bf16.vlgmr.msra.gmra.mrb[0].mxu1 %v14041_v31  ;;  %v5657_v31 = vpack.c.bf16 %v5644_v61, %v5643_v63  ;;  %v14087_v63 = vpack.c.bf16 %v14085_v26, %v14086_v60  ;;  %v14088_v61 = vld [vmem:[#allocation46_spill] sm:$0xff] }
 0x4c6   :  { %8684 = vmatpush3.bf16.msra.mxu1 %v9262_v44  ;;  %8671 = vmatprep.mubr.bf16.mxu1 %v14043_v37  ;;  %v5656_v44 = vpack.c.bf16 %v5642_v14, %v5641_v32  ;;  %v14067_v37 = vld [vmem:[#allocation14_spill] sm:$0xff]  ;;  %v14084_v14 = vpack.c.bf16 %v14082_v39, %v14083_v25  ;;  %v14105_v25 = vld [vmem:[#allocation91_spill] sm:$0xff] }
 0x4c7   :  { %8685 = vmatprep.subr.bf16.mxu1 %v9263_v47  ;;  %v14106_v26 = vld [vmem:[#allocation94_spill] sm:$0xff] }
 0x4ca   :  { %8686 = vmatpush3.bf16.msra.mxu1 %v9263_v47  ;;  %v9271_v47 = vld [vmem:[%s13528_s7 + $0x148] sm:$0xff]  }
 0x4cb   :  { %8687 = vmatprep.subr.bf16.mxu1 %v9264_v33 }
 0x4cd   :  { %8672 = vmatmul.mubr.bf16.gmra.mrb[4].mxu1 %v14046_v62  ;;  %v14070_v62 = vld [vmem:[#allocation65_spill] sm:$0xff] }
 0x4ce   :  { %8688 = vmatpush3.bf16.msra.mxu1 %v9264_v33  ;;  %8675 = vmatprep.mubr.bf16.mxu1 %v14047_v36  ;;  %v14068_v33 = vld [vmem:[#allocation63_spill] sm:$0xff]  ;;  %v5647_v36 = vmul.f32 %v14070_v62, %v12982_v16  ;;  %v13369_v62 = vld [vmem:[#allocation2 + $0x89] sm:$0xff] }
 0x4cf   :  { %8689 = vmatprep.subr.bf16.mxu1 %v9265_v30  ;;  %v14072_v16 = vld [vmem:[#allocation67_spill] sm:$0xff]  ;;  %v5969_v28 = vmul.f32 %v14101_v43, %v13369_v62  ;;  %v6167_v43 = vld [vmem:[#allocation2 + $0x6f] sm:$0xff] }
 0x4d0   :  { %v5649_v57 = vmul.f32 %v14072_v16, %v12986_v59  ;;  %v9276_v59 = vld [vmem:[%s13528_s7 + $0x170] sm:$0xff]   ;;  %v14098_v16 = vld [vmem:[#allocation53_spill] sm:$0xff] }
 0x4d2   :  { %8690 = vmatpush3.bf16.msra.mxu1 %v9265_v30  ;;  %v5645_v30 = vmul.f32 %v14068_v33, %v14067_v37  ;;  %v9282_v33 = vld [vmem:[%s13528_s7 + $0x1a0] sm:$0xff]  }
 0x4d3   :  { %8691 = vmatprep.subr.bf16.mxu1 %v9266_v12 }
 0x4d4   :  { %v5658_v34 = vpack.c.bf16 %v5646_v15, %v5645_v30  ;;  %v9283_v30 = vld [vmem:[%s13528_s7 + $0x1a8] sm:$0xff]  }
 0x4d5   :  { %8676 = vmatmul.mubr.bf16.gmra.mrb[8].mxu1 %v14050_v8 }
 0x4d6   :  { %8692 = vmatpush3.bf16.msra.mxu1 %v9266_v12  ;;  %8679 = vmatprep.mubr.bf16.mxu1 %v14053_v19  ;;  %v14071_v12 = vld [vmem:[#allocation64_spill] sm:$0xff]  ;;  %v14074_v19 = vld [vmem:[#allocation69_spill] sm:$0xff] }
 0x4d7   :  { %8693 = vmatprep.subr.bf16.mxu1 %v9267_v3 }
 0x4da   :  { %8694 = vmatpush3.bf16.msra.mxu1 %v9267_v3  ;;  %v5648_v3 = vmul.f32 %v14071_v12, %v12984_v27  ;;  %v14073_v27 = vld [vmem:[#allocation66_spill] sm:$0xff]  ;;  %v14095_v12 = vld [vmem:[#allocation51_spill] sm:$0xff] }
 0x4db   :  { %8695 = vmatprep.subr.bf16.mxu1 %v9268_v40  ;;  %v5650_v56 = vmul.f32 %v14073_v27, %v12988_v5  ;;  %v14077_v5 = vld [vmem:[#allocation71_spill] sm:$0xff] }
 0x4dc   :  { %v5659_v8 = vpack.c.bf16 %v5648_v3, %v5647_v36  ;;  %v14094_v36 = vld [vmem:[#allocation50_spill] sm:$0xff] }
 0x4dd   :  { %8680 = vmatmul.mubr.bf16.gmra.mrb[12].mxu1 %v5347_v46  ;;  %v5660_v35 = vpack.c.bf16 %v5650_v56, %v5649_v57  ;;  %v14096_v3 = vpack.c.bf16 %v14094_v36, %v14095_v12  ;;  %v9284_v56 = vld [vmem:[%s13528_s7 + $0x1b0] sm:$0xff]   ;;  %v14109_v12 = vld [vmem:[#allocation95_spill] sm:$0xff] }
 0x4de   :  { %8696 = vmatpush3.bf16.msra.mxu1 %v9268_v40  ;;  %8699 = vmatprep.mubr.bf16.mxu1 %v14059_v11  ;;  %v5651_v40 = vmul.f32 %v14074_v19, %v13001_v23  ;;  %v5653_v23 = vmul.f32 %v14077_v5, %v13016_v0  ;;  %v9277_v11 = vld [vmem:[%s13528_s7 + $0x178] sm:$0xff]   ;;  %v9278_v0 = vld [vmem:[%s13528_s7 + $0x180] sm:$0xff]  }
 0x4df   :  { %8697 = vmatprep.subr.bf16.mxu1 %v9269_v24  ;;  %v14100_v19 = vld [vmem:[#allocation87_spill] sm:$0xff] }
 0x4e0   :  { %v5661_v46 = vpack.c.bf16 %v5652_v58, %v5651_v40  ;;  %v5968_v40 = vmul.f32 %v14100_v19, %v13046_v50  ;;  %v14102_v58 = vld [vmem:[#allocation89_spill] sm:$0xff]  ;;  %v9285_v5 = vld [vmem:[%s13528_s7 + $0x1b8] sm:$0xff]  }
 0x4e1   :  { %v6158_v50 = vld [vmem:[#allocation2 + $0x27] sm:$0xff] }
 0x4e2   :  { %8698 = vmatpush3.bf16.msra.mxu1 %v9269_v24  ;;  %v14078_v24 = vld [vmem:[#allocation70_spill] sm:$0xff] }
 0x4e3   :  { %8715 = vmatprep.subr.bf16.mxu1 %v9270_v41  ;;  %v5654_v2 = vmul.f32 %v14078_v24, %v13018_v49  ;;  %v9279_v49 = vld [vmem:[%s13528_s7 + $0x188] sm:$0xff]  }
 0x4e5   :  { %8700 = vmatmul.mubr.bf16.vlgmr.msra.gmra.mrb[0].mxu1 %v5656_v44  ;;  %v5662_v7 = vpack.c.bf16 %v5654_v2, %v5653_v23  ;;  %v14089_v44 = vld [vmem:[#allocation47_spill] sm:$0xff] }
 0x4e6   :  { %8716 = vmatpush3.bf16.msra.mxu1 %v9270_v41  ;;  %8703 = vmatprep.mubr.bf16.mxu1 %v5657_v31  ;;  %v14079_v41 = vld [vmem:[#allocation43_spill] sm:$0xff]  ;;  %v14091_v31 = vld [vmem:[#allocation48_spill] sm:$0xff] }
 0x4e7   :  { %8717 = vmatprep.subr.bf16.mxu1 %v9271_v47  ;;  %v14081_v32 = vpack.c.bf16 %v14079_v41, %v14080_v53  ;;  %v6160_v41 = vld [vmem:[#allocation2 + $0x37] sm:$0xff]  ;;  %v6161_v53 = vld [vmem:[#allocation2 + $0x3f] sm:$0xff] }
 0x4e8   :  { %v6273_v60 = vmul.f32 %v14106_v26, %v6160_v41  ;;  %v14116_v26 = vld [vmem:[#allocation104_spill] sm:$0xff] }
 0x4ea   :  { %8718 = vmatpush3.bf16.msra.mxu1 %v9271_v47  ;;  %v14090_v47 = vpack.c.bf16 %v14088_v61, %v14089_v44  ;;  %v9287_v61 = vld [vmem:[%s13528_s7 + $0x1c8] sm:$0xff]  }
 0x4eb   :  { %8719 = vmatprep.subr.bf16.mxu1 %v9272_v55 }
 0x4ed   :  { %8704 = vmatmul.mubr.bf16.gmra.mrb[4].mxu1 %v5658_v34 }
 0x4ee   :  { %8720 = vmatpush3.bf16.msra.mxu1 %v9272_v55  ;;  %8707 = vmatprep.mubr.bf16.mxu1 %v5659_v8  ;;  %v14092_v55 = vld [vmem:[#allocation49_spill] sm:$0xff]  ;;  %v6157_v8 = vld [vmem:[#allocation2 + $0x1f] sm:$0xff] }
 0x4ef   :  { %8721 = vmatprep.subr.bf16.mxu1 %v9273_v22  ;;  %v14093_v37 = vpack.c.bf16 %v14091_v31, %v14092_v55  ;;  %v6163_v31 = vld [vmem:[#allocation2 + $0x4f] sm:$0xff]  ;;  %v6164_v55 = vld [vmem:[#allocation2 + $0x57] sm:$0xff] }
 0x4f2   :  { %8722 = vmatpush3.bf16.msra.mxu1 %v9273_v22  ;;  %v6156_v22 = vld [vmem:[#allocation2 + $0x17] sm:$0xff] }
 0x4f3   :  { %8723 = vmatprep.subr.bf16.mxu1 %v9274_v45 }
 0x4f5   :  { %8708 = vmatmul.mubr.bf16.gmra.mrb[8].mxu1 %v5660_v35  ;;  %v6269_v35 = vmul.f32 %v14102_v58, %v6156_v22  ;;  %v14110_v22 = vld [vmem:[#allocation98_spill] sm:$0xff]  ;;  %v6169_v58 = vld [vmem:[#allocation2 + $0x7f] sm:$0xff] }
 0x4f6   :  { %8724 = vmatpush3.bf16.msra.mxu1 %v9274_v45  ;;  %8711 = vmatprep.mubr.bf16.mxu1 %v5661_v46  ;;  %v14097_v45 = vld [vmem:[#allocation13_spill] sm:$0xff] }
 0x4f7   :  { %8725 = vmatprep.subr.bf16.mxu1 %v9275_v17  ;;  %v14099_v57 = vpack.c.bf16 %v14097_v45, %v14098_v16  ;;  %v14111_v45 = vld [vmem:[#allocation97_spill] sm:$0xff] }
 0x4fa   :  { %8726 = vmatpush3.bf16.msra.mxu1 %v9275_v17  ;;  %v14103_v17 = vld [vmem:[#allocation88_spill] sm:$0xff] }
 0x4fb   :  { %8727 = vmatprep.subr.bf16.mxu1 %v9276_v59  ;;  %v6270_v46 = vmul.f32 %v14103_v17, %v6157_v8  ;;  %v6277_v8 = vmul.f32 %v14110_v22, %v6164_v55  ;;  %v14112_v17 = vld [vmem:[#allocation100_spill] sm:$0xff]  ;;  %v9293_v55 = vld [vmem:[%s13528_s7 + $0x1f8] sm:$0xff]   ;;  %v9355_v22 = vld [vmem:[%s13528_s7 + $0x208] sm:$0xff]  }
 0x4fd   :  { %8712 = vmatmul.mubr.bf16.gmra.mrb[12].mxu1 %v5662_v7  ;;  %v6285_v24 = vpack.c.bf16 %v6270_v46, %v6269_v35  ;;  %v6159_v7 = vld [vmem:[#allocation2 + $0x2f] sm:$0xff]  ;;  %v9290_v35 = vld [vmem:[%s13528_s7 + $0x1e0] sm:$0xff]  }
 0x4fe   :  { %8728 = vmatpush3.bf16.msra.mxu1 %v9276_v59  ;;  %8731 = vmatprep.mubr.bf16.mxu1 %v14081_v32  ;;  %v5977_v59 = vpack.c.bf16 %v5969_v28, %v5968_v40  ;;  %v6166_v40 = vld [vmem:[#allocation2 + $0x67] sm:$0xff]  ;;  %v6168_v28 = vld [vmem:[#allocation2 + $0x77] sm:$0xff] }
 0x4ff   :  { %8729 = vmatprep.subr.bf16.mxu1 %v9277_v11  ;;  %v6279_v46 = vmul.f32 %v14112_v17, %v6166_v40  ;;  %v9357_v40 = vld [vmem:[%s13528_s7 + $0x218] sm:$0xff]  }
 0x500   :  { %v6801_v17 = vld [vmem:[#allocation2 + $0x91] sm:$0xff] }
 0x502   :  { %8730 = vmatpush3.bf16.msra.mxu1 %v9277_v11 }
 0x503   :  { %8747 = vmatprep.subr.bf16.mxu1 %v9278_v0 }
 0x505   :  { %8732 = vmatmul.mubr.bf16.vlgmr.msra.gmra.mrb[0].mxu1 %v14084_v14  ;;  %v6272_v14 = vmul.f32 %v14105_v25, %v6159_v7  ;;  %v14115_v7 = vld [vmem:[#allocation101_spill] sm:$0xff]  ;;  %v6471_v25 = vld [vmem:[#allocation2 + $0x18] sm:$0xff] }
 0x506   :  { %8748 = vmatpush3.bf16.msra.mxu1 %v9278_v0  ;;  %8735 = vmatprep.mubr.bf16.mxu1 %v14087_v63  ;;  %v9286_v0 = vld [vmem:[%s13528_s7 + $0x1c0] sm:$0xff]   ;;  %v14107_v63 = vld [vmem:[#allocation93_spill] sm:$0xff]  ;;  %v6282_v41 = vmul.f32 %v14115_v7, %v6169_v58 }
 0x507   :  { %8749 = vmatprep.subr.bf16.mxu1 %v9279_v49  ;;  %v9359_v58 = vld [vmem:[%s13528_s7 + $0x228] sm:$0xff]  }
 0x50a   :  { %8750 = vmatpush3.bf16.msra.mxu1 %v9279_v49  ;;  %v14104_v49 = vld [vmem:[#allocation92_spill] sm:$0xff] }
 0x50b   :  { %8751 = vmatprep.subr.bf16.mxu1 %v9280_v48  ;;  %v6271_v39 = vmul.f32 %v14104_v49, %v6158_v50 }
 0x50d   :  { %8736 = vmatmul.mubr.bf16.gmra.mrb[4].mxu1 %v14090_v47  ;;  %v6162_v47 = vld [vmem:[#allocation2 + $0x47] sm:$0xff] }
 0x50e   :  { %8752 = vmatpush3.bf16.msra.mxu1 %v9280_v48  ;;  %8739 = vmatprep.mubr.bf16.mxu1 %v14093_v37  ;;  %v6274_v48 = vmul.f32 %v14107_v63, %v6161_v53  ;;  %v6165_v37 = vld [vmem:[#allocation2 + $0x5f] sm:$0xff] }
 0x50f   :  { %8753 = vmatprep.subr.bf16.mxu1 %v9281_v42  ;;  %v6278_v16 = vmul.f32 %v14111_v45, %v6165_v37  ;;  %v14117_v63 = vld [vmem:[#allocation103_spill] sm:$0xff]  ;;  %v14126_v45 = vld [vmem:[#allocation77_spill] sm:$0xff] }
 0x510   :  { %v6287_v44 = vpack.c.bf16 %v6274_v48, %v6273_v60  ;;  %v6283_v60 = vmul.f32 %v14116_v26, %v13257_v52  ;;  %v9354_v52 = vld [vmem:[%s13528_s7 + $0x200] sm:$0xff]  }
 0x511   :  { %v6289_v19 = vpack.c.bf16 %v6278_v16, %v6277_v8  ;;  %v9356_v8 = vld [vmem:[%s13528_s7 + $0x210] sm:$0xff]  }
 0x512   :  { %8754 = vmatpush3.bf16.msra.mxu1 %v9281_v42  ;;  %v13365_v9 = vpop.f32.mrb[16].mxu0  ;;  %v6286_v42 = vpack.c.bf16 %v6272_v14, %v6271_v39  ;;  %v6171_v39 = vld [vmem:[#allocation2 + $0x8f] sm:$0xff] }
 0x513   :  { %8755 = vmatprep.subr.bf16.mxu1 %v9282_v33  ;;  %v13367_v15 = vpop.f32.mrb[17].mxu0  ;;  %v9292_v14 = vld [vmem:[%s13528_s7 + $0x1f0] sm:$0xff]   ;;  %v6284_v48 = vmul.f32 %v14117_v63, %v6171_v39 }
 0x514   :  { %v13374_v34 = vpop.f32.mrb[18].mxu0  ;;  %v14127_v16 = vld [vmem:[#allocation74_spill] sm:$0xff] }
 0x515   :  { %8740 = vmatmul.mubr.bf16.gmra.mrb[8].mxu1 %v14096_v3  ;;  %v13379_v27 = vpop.f32.mrb[19].mxu0  ;;  %v6276_v3 = vmul.f32 %v14109_v12, %v6163_v31  ;;  %v6292_v31 = vpack.c.bf16 %v6284_v48, %v6283_v60  ;;  %v14124_v12 = vld [vmem:[#allocation75_spill] sm:$0xff] }
 0x516   :  { %8756 = vmatpush3.bf16.msra.mxu1 %v9282_v33  ;;  %8743 = vmatprep.mubr.bf16.mxu1 %v14099_v57  ;;  %v9288_v33 = vld [vmem:[%s13528_s7 + $0x1d0] sm:$0xff]  }
 0x517   :  { %8757 = vmatprep.subr.bf16.mxu1 %v9283_v30 }
 0x51a   :  { %8758 = vmatpush3.bf16.msra.mxu1 %v9283_v30  ;;  %v13393_v23 = vpop.f32.mrb[20].mxu0  ;;  %v14108_v30 = vld [vmem:[#allocation96_spill] sm:$0xff] }
 0x51b   :  { %8759 = vmatprep.subr.bf16.mxu1 %v9284_v56  ;;  %v13395_v2 = vpop.f32.mrb[21].mxu0  ;;  %v6275_v36 = vmul.f32 %v14108_v30, %v6162_v47 }
 0x51c   :  { %v13397_v11 = vpop.f32.mrb[22].mxu0 }
 0x51d   :  { %8744 = vmatmul.mubr.bf16.gmra.mrb[12].mxu1 %v5977_v59  ;;  %v13399_v32 = vpop.f32.mrb[23].mxu0  ;;  %v6288_v57 = vpack.c.bf16 %v6276_v3, %v6275_v36  ;;  %v14113_v59 = vld [vmem:[#allocation99_spill] sm:$0xff]  ;;  %v14123_v36 = vld [vmem:[#allocation16_spill] sm:$0xff] }
 0x51e   :  { %8760 = vmatpush3.bf16.msra.mxu1 %v9284_v56  ;;  %8763 = vmatprep.mubr.bf16.mxu1 %v6285_v24  ;;  %v9289_v56 = vld [vmem:[%s13528_s7 + $0x1d8] sm:$0xff]   ;;  %v14114_v24 = vld [vmem:[#allocation102_spill] sm:$0xff]  ;;  %v14125_v3 = vpack.c.bf16 %v14123_v36, %v14124_v12 }
 0x51f   :  { %8761 = vmatprep.subr.bf16.mxu1 %v9285_v5  ;;  %v6281_v50 = vmul.f32 %v14114_v24, %v6168_v28  ;;  %v14131_v28 = vpack.c.bf16 %v13052_v20, %v13043_v51  ;;  %v14133_v51 = vpack.c.bf16 %v13014_v6, %v13069_v54  ;;  %v9361_v20 = vld [vmem:[%s13528_s7 + $0x238] sm:$0xff]   ;;  %v14136_v6 = vld [vmem:[#allocation78_spill] sm:$0xff] }
 0x520   :  { %v14137_v54 = vld [vmem:[#allocation79_spill] sm:$0xff] }
 0x521   :  { %v6291_v49 = vpack.c.bf16 %v6282_v41, %v6281_v50 }
 0x522   :  { %8762 = vmatpush3.bf16.msra.mxu1 %v9285_v5  ;;  %v6280_v5 = vmul.f32 %v14113_v59, %v6167_v43  ;;  %v9358_v43 = vld [vmem:[%s13528_s7 + $0x220] sm:$0xff]   ;;  %v6892_v59 = vpop.permute.xlu0 %6891 }
 0x523   :  { %8779 = vmatprep.subr.bf16.mxu1 %v9286_v0 }
 0x524   :  { %v6290_v53 = vpack.c.bf16 %v6280_v5, %v6279_v46  ;;  %v6897_v46 = vpop.permute.xlu1 %6896  ;;  %v14138_v5 = vpack.c.bf16 %v14136_v6, %v14137_v54 }
 0x525   :  { %8764 = vmatmul.mubr.bf16.vlgmr.msra.gmra.mrb[0].mxu1 %v6286_v42  ;;  %v14118_v42 = vld [vmem:[#allocation106_spill] sm:$0xff] }
 0x526   :  { %8780 = vmatpush3.bf16.msra.mxu1 %v9286_v0  ;;  %8767 = vmatprep.mubr.bf16.mxu1 %v6287_v44  ;;  %v9291_v0 = vld [vmem:[%s13528_s7 + $0x1e8] sm:$0xff]  }
 0x527   :  { %8781 = vmatprep.subr.bf16.mxu1 %v9287_v61  ;;  %v14119_v44 = vld [vmem:[#allocation105_spill] sm:$0xff] }
 0x528   :  { %v6585_v47 = vmul.f32 %v14119_v44, %v13275_v1  ;;  %v14121_v1 = vld [vmem:[#allocation73_spill] sm:$0xff] }
 0x52a   :  { %8782 = vmatpush3.bf16.msra.mxu1 %v9287_v61  ;;  %v6584_v61 = vmul.f32 %v14118_v42, %v6471_v25 }
 0x52b   :  { %8783 = vmatprep.subr.bf16.mxu1 %v9288_v33 }
 0x52c   :  { %v6600_v37 = vpack.c.bf16 %v6585_v47, %v6584_v61 }
 0x52d   :  { %8768 = vmatmul.mubr.bf16.gmra.mrb[4].mxu1 %v6288_v57  ;;  %v14128_v57 = vpack.c.bf16 %v14126_v45, %v14127_v16 }
 0x52e   :  { %8784 = vmatpush3.bf16.msra.mxu1 %v9288_v33  ;;  %8771 = vmatprep.mubr.bf16.mxu1 %v6289_v19  ;;  %v14120_v33 = vld [vmem:[#allocation17_spill] sm:$0xff] }
 0x52f   :  { %8785 = vmatprep.subr.bf16.mxu1 %v9289_v56  ;;  %v14122_v30 = vpack.c.bf16 %v14120_v33, %v14121_v1 }
 0x532   :  { %8786 = vmatpush3.bf16.msra.mxu1 %v9289_v56  ;;  %v14129_v56 = vld [vmem:[#allocation76_spill] sm:$0xff] }
 0x533   :  { %8787 = vmatprep.subr.bf16.mxu1 %v9290_v35  ;;  %v14130_v19 = vpack.c.bf16 %v13039_v10, %v14129_v56  ;;  %v14132_v10 = vpack.c.bf16 %v13065_v21, %v13056_v29  ;;  %v14134_v21 = vpack.c.bf16 %v13079_v18, %v13073_v4  ;;  %v14135_v29 = vpack.c.bf16 %v13087_v13, %v13083_v38 }
 0x534   :  { %v6913_v18 = vmul.f32 %v6892_v59, %v13369_v62  ;;  %v6914_v4 = vmul.f32 %v6897_v46, %v6801_v17 }
 0x535   :  { %8772 = vmatmul.mubr.bf16.gmra.mrb[8].mxu1 %v6290_v53 }
 0x536   :  { %8788 = vmatpush3.bf16.msra.mxu1 %v9290_v35  ;;  %8775 = vmatprep.mubr.bf16.mxu1 %v6291_v49  ;;  %v9360_v35 = vld [vmem:[%s13528_s7 + $0x230] sm:$0xff]   ;;  %v6922_v24 = vpack.c.bf16 %v6914_v4, %v6913_v18  ;;  %s9442_s7 = smov [#allocation8]  }
 0x537   :  { %8789 = vmatprep.subr.bf16.mxu1 %v9291_v0  ;;  %s7122_s0 = sshll.u32 %s9442_s7, 4  ;;  %s7123_s0 = int_to_ptr.vmem [resolvable:$true] %s7122_s0 }
 0x538   :  { %s9406_s18 = scalar_lea.vmem %s7123_s0, 2048  ;;  %p9411_p3 = scmp.lt.s32.totalorder %s7123_s0, %s7123_s0 }
 0x539   :  { %p9407_p2 = scmp.ne.s32.totalorder %s7123_s0, %s9406_s18  ;;  %p9412_p4 = scmp.lt.s32.totalorder %s9406_s18, %s9406_s18 }
 0x53a   :  { %8790 = vmatpush3.bf16.msra.mxu1 %v9291_v0 }
 0x53b   :  { %8791 = vmatprep.subr.bf16.mxu1 %v9292_v14  ;;  %p9413_p5 = por %p9412_p4, %p9411_p3 }
 0x53d   :  { %8776 = vmatmul.mubr.bf16.gmra.mrb[12].mxu1 %v6292_v31  ;;  %p9414_p6 = pnand %p9413_p5, %p9407_p2 }
 0x53e   :  { %8792 = vmatpush3.bf16.msra.mxu1 %v9292_v14  ;;  %8795 = vmatprep.mubr.bf16.mxu1 %v6600_v37 }
 0x53f   :  { %8793 = vmatprep.subr.bf16.mxu1 %v9293_v55 }
 0x542   :  { %8794 = vmatpush3.bf16.msra.mxu1 %v9293_v55 }
 0x543   :  { %8843 = vmatprep.subr.bf16.mxu1 %v9354_v52 }
 0x545   :  { %8796 = vmatmul.mubr.bf16.vlgmr.msra.gmra.mrb[0].mxu1 %v14122_v30 }
 0x546   :  { %8851 = vmatpush3.bf16.msra.mxu1 %v9354_v52  ;;  %8799 = vmatprep.mubr.bf16.mxu1 %v14125_v3 }
 0x547   :  { %8844 = vmatprep.subr.bf16.mxu1 %v9355_v22 }
 0x54a   :  { %8852 = vmatpush3.bf16.msra.mxu1 %v9355_v22 }
 0x54b   :  { %8845 = vmatprep.subr.bf16.mxu1 %v9356_v8 }
 0x54d   :  { %8800 = vmatmul.mubr.bf16.gmra.mrb[4].mxu1 %v14128_v57 }
 0x54e   :  { %8853 = vmatpush3.bf16.msra.mxu1 %v9356_v8  ;;  %8803 = vmatprep.mubr.bf16.mxu1 %v14130_v19 }
 0x54f   :  { %8846 = vmatprep.subr.bf16.mxu1 %v9357_v40 }
 0x552   :  { %8854 = vmatpush3.bf16.msra.mxu1 %v9357_v40 }
 0x553   :  { %8847 = vmatprep.subr.bf16.mxu1 %v9358_v43 }
 0x555   :  { %8804 = vmatmul.mubr.bf16.gmra.mrb[8].mxu1 %v14131_v28 }
 0x556   :  { %8855 = vmatpush3.bf16.msra.mxu1 %v9358_v43  ;;  %8807 = vmatprep.mubr.bf16.mxu1 %v14132_v10 }
 0x557   :  { %8848 = vmatprep.subr.bf16.mxu1 %v9359_v58 }
 0x55a   :  { %8856 = vmatpush3.bf16.msra.mxu1 %v9359_v58 }
 0x55b   :  { %8849 = vmatprep.subr.bf16.mxu1 %v9360_v35 }
 0x55d   :  { %8808 = vmatmul.mubr.bf16.gmra.mrb[12].mxu1 %v14133_v51 }
 0x55e   :  { %8857 = vmatpush3.bf16.msra.mxu1 %v9360_v35  ;;  %8835 = vmatprep.mubr.bf16.mxu1 %v14134_v21 }
 0x55f   :  { %8850 = vmatprep.subr.bf16.mxu1 %v9361_v20 }
 0x562   :  { %8858 = vmatpush3.bf16.msra.mxu1 %v9361_v20 }
 0x565   :  { %8836 = vmatmul.mubr.bf16.vlgmr.msra.gmra.mrb[8].mxu1 %v14135_v29 }
 0x566   :  { %8839 = vmatprep.mubr.bf16.mxu1 %v14138_v5 }
 0x56d   :  { %8840 = vmatmul.mubr.bf16.gmra.mrb[12].mxu1 %v6922_v24 }
 0x618   :  { %v8797_v50 = vpop.f32.mrb[0].mxu1 }
 0x619   :  { %v8859_v7 = vadd.f32 %v13365_v9, %v8797_v50  ;;  %v6707_v41 = vpop.f32.mrb[1].mxu1 }
 0x61a   :  { %v8860_v53 = vadd.f32 %v13367_v15, %v6707_v41  ;;  %v8798_v38 = vpop.f32.mrb[2].mxu1 }
 0x61b   :  { %7103 = vst [vmem:[#allocation8 + $0x10] sm:$0xff] %v8859_v7  ;;  %v8861_v13 = vadd.f32 %v13374_v34, %v8798_v38  ;;  %v6710_v0 = vpop.f32.mrb[3].mxu1 }
 0x61c   :  { %7101 = vst [vmem:[#allocation8] sm:$0xff] %v8860_v53  ;;  %v8862_v49 = vadd.f32 %v13379_v27, %v6710_v0 }
 0x61d   :  { %7104 = vst [vmem:[#allocation8 + $0x18] sm:$0xff] %v8861_v13 }
 0x61e   :  { %7102 = vst [vmem:[#allocation8 + $0x8] sm:$0xff] %v8862_v49 }
 0x620   :  { %v8801_v62 = vpop.f32.mrb[4].mxu1 }
 0x621   :  { %v8863_v39 = vadd.f32 %v13393_v23, %v8801_v62  ;;  %v6723_v25 = vpop.f32.mrb[5].mxu1 }
 0x622   :  { %v8864_v14 = vadd.f32 %v13395_v2, %v6723_v25  ;;  %v8802_v9 = vpop.f32.mrb[6].mxu1 }
 0x623   :  { %7107 = vst [vmem:[#allocation8 + $0x30] sm:$0xff] %v8863_v39  ;;  %v8865_v15 = vadd.f32 %v13397_v11, %v8802_v9  ;;  %v6726_v26 = vpop.f32.mrb[7].mxu1 }
 0x624   :  { %7105 = vst [vmem:[#allocation8 + $0x20] sm:$0xff] %v8864_v14  ;;  %v8866_v34 = vadd.f32 %v13399_v32, %v6726_v26 }
 0x625   :  { %7108 = vst [vmem:[#allocation8 + $0x38] sm:$0xff] %v8865_v15 }
 0x626   :  { %7106 = vst [vmem:[#allocation8 + $0x28] sm:$0xff] %v8866_v34 }
 0x638   :  { %v8837_v60 = vpop.f32.mrb[8].mxu1 }
 0x639   :  { %7111 = vst [vmem:[#allocation8 + $0x50] sm:$0xff] %v8837_v60  ;;  %v7054_v27 = vpop.f32.mrb[9].mxu1 }
 0x63a   :  { %7109 = vst [vmem:[#allocation8 + $0x40] sm:$0xff] %v7054_v27  ;;  %v8838_v63 = vpop.f32.mrb[10].mxu1 }
 0x63b   :  { %7112 = vst [vmem:[#allocation8 + $0x58] sm:$0xff] %v8838_v63  ;;  %v7057_v23 = vpop.f32.mrb[11].mxu1 }
 0x63c   :  { %7110 = vst [vmem:[#allocation8 + $0x48] sm:$0xff] %v7057_v23 }
 0x640   :  { %v8841_v2 = vpop.f32.mrb[12].mxu1 }
 0x641   :  { %7115 = vst [vmem:[#allocation8 + $0x70] sm:$0xff] %v8841_v2  ;;  %v7070_v48 = vpop.f32.mrb[13].mxu1 }
 0x642   :  { %7113 = vst [vmem:[#allocation8 + $0x60] sm:$0xff] %v7070_v48  ;;  %v8842_v11 = vpop.f32.mrb[14].mxu1 }
 0x643   :  { %7116 = vst [vmem:[#allocation8 + $0x78] sm:$0xff] %v8842_v11  ;;  %v7073_v32 = vpop.f32.mrb[15].mxu1 }
 0x644   :  { %7114 = vst [vmem:[#allocation8 + $0x68] sm:$0xff] %v7073_v32 }
 0x645   :  { %9417 = shalt.err (!%p9414_p6)
}
 0x646   :  { %s9418_s24 = scalar_lea.hbm %s13532_s11, 2048 }
 0x647   :  { %p9419_p7 = scmp.ne.s32.totalorder %s13532_s11, %s9418_s24  ;;  %p9422_p8 = scmp.lt.u32.totalorder %s9418_s24, %s13532_s11 }
 0x649   :  { %p9424_p9 = pnand %p9422_p8, %p9419_p7 }
 0x64b   :  { %9427 = shalt.err (!%p9424_p9)
}
 0x64c   :  { %7128 = dma.vmem_to_hbm [thread:$0]  %s7123_s0, 2048, %s13532_s11, [#allocation5], %s9435_s27, %s9435_s27, %s9436_s28  }
 0x64d   :  { %9432 = dma.done.wait [#allocation5], 2048  }
 0x64e   :  { %9433 = vsyncadd [#allocation5], 4294965248 }
 0x64f   :  { %7132 = vsyncpa [#allocation4], 1 }
 0x650   :  { %7133 = vsyncpa [#allocation7], 1 }
 0x651   :  { %7134 = vsyncpa [#allocation5], 1 }

</bundles_post_ra>
